<compile_context>
chip_gen: v5e
topology: v5e:2x2
jax: 0.10.0
libtpu: 0.0.40
codegen_flags: <defaults>
</compile_context>

<pallas_src>
import functools

import jax
import jax.numpy as jnp
from jax.experimental import pallas as pl
from jax.experimental.pallas import tpu as pltpu

HIDDEN = 768  # fixed by pooler_config.hidden_size = 768 in CustomEncoder.__init__


def _custom_encoder_kernel(n_pad, ids_ref, emb_ref, w_ref, b_ref, out_ref, xcls_ref):
    """Whole forward pass on the [CLS] rows of all N sequences.

    ids_ref  : (n_pad,)      int32  SMEM  padded CLS token ids (rows >= N are 0)
    emb_ref  : (V, H)        f32    VMEM  embedding table (f32 keeps the dynamic
                                          sublane row-slice on the simple path)
    w_ref    : (3, H, H)     bf16   VMEM  [0]=encoder dense, [1]=sub pooler,
                                          [2]=top-level BertPooler
    b_ref    : (3, H)        f32    VMEM  matching biases
    out_ref  : (2*n_pad, H)  f32    VMEM  rows [0:n_pad]   = per-seq pooler outs
                                          rows [n_pad:2n]  = BertPooler(all rows)
    xcls_ref : (n_pad, H)    f32    VMEM  scratch for gathered CLS embeddings
    """
    # Fused CLS-row gather: static (unrolled) loop -> static store offsets,
    # only the table row offset is dynamic (scalar read from SMEM).
    for i in range(n_pad):
        xcls_ref[pl.ds(i, 1), :] = emb_ref[pl.ds(ids_ref[i], 1), :]

    x = xcls_ref[...].astype(jnp.bfloat16)                               # (n_pad, H)

    # Sub-encoder body on CLS rows only: dense + tanh (attention mask is all
    # ones in the reference forward, i.e. a no-op).
    h = jnp.tanh(
        jnp.dot(x, w_ref[0], preferred_element_type=jnp.float32) + b_ref[0:1, :])

    # Sub-encoder pooler_output = tanh(dense(h_cls)) for every sequence.
    sub_pool = jnp.tanh(
        jnp.dot(h.astype(jnp.bfloat16), w_ref[1],
                preferred_element_type=jnp.float32) + b_ref[1:2, :])     # (n_pad, H)

    # Top-level BertPooler on the full block (same MXU pass cost as M=1,
    # avoids a masked 1-sublane store). Wrapper keeps row 0 == sequence 0.
    bert_pool = jnp.tanh(
        jnp.dot(sub_pool.astype(jnp.bfloat16), w_ref[2],
                preferred_element_type=jnp.float32) + b_ref[2:3, :])     # (n_pad, H)

    out_ref[0:n_pad, :] = sub_pool
    out_ref[n_pad:2 * n_pad, :] = bert_pool


def custom_encoder_forward(input_ids, params):
    """input_ids: int32, shape (1, N, S) (or (N, S)). Returns dict of outputs."""
    ids = jnp.squeeze(input_ids, axis=0) if input_ids.ndim == 3 else input_ids
    N, S = ids.shape
    H = HIDDEN
    n_pad = max(16, ((N + 15) // 16) * 16)  # bf16 vregs pack [16, 128]

    emb = params["embedding"]   # (V, H) f32   (stored once; no per-call casts)
    w_all = params["w_all"]     # (3, H, H) bf16
    b_all = params["b_all"]     # (3, H) f32
    V = emb.shape[0]

    # Only the [CLS] (token 0) id of each sequence is consumed downstream.
    cls_ids = jnp.zeros((n_pad,), jnp.int32).at[:N].set(ids[:, 0].astype(jnp.int32))

    cost = pl.CostEstimate(
        flops=2 * H * H * 3 * n_pad,
        transcendentals=3 * n_pad * H,
        bytes_accessed=(3 * H * H * 2            # bf16 packed weights
                        + V * H * 4              # f32 embedding table
                        + 3 * H * 4              # f32 biases
                        + n_pad * 4              # int32 ids
                        + 2 * n_pad * H * 4),    # f32 output
    )

    smem = pl.BlockSpec(memory_space=pltpu.MemorySpace.SMEM)
    vmem = pl.BlockSpec(memory_space=pltpu.MemorySpace.VMEM)

    out = pl.pallas_call(
        functools.partial(_custom_encoder_kernel, n_pad),
        out_shape=jax.ShapeDtypeStruct((2 * n_pad, H), jnp.float32),
        in_specs=[smem, vmem, vmem, vmem],
        out_specs=vmem,
        scratch_shapes=[pltpu.VMEM((n_pad, H), jnp.float32)],
        cost_estimate=cost,
    )(cls_ids, emb, w_all, b_all)

    # pad_sequence of N tensors of shape (1, H) -> (L_max=1, N, H).
    # NOTE: padded rows N..n_pad of `out` contain bias-derived garbage and are
    # sliced off here; downstream code must never read them.
    last_hidden_state = out[:N][None, :, :]            # (1, N, H)
    pooler_output = out[n_pad:n_pad + 1, :]            # (1, H)  (sequence 0)
    return {"last_hidden_state": last_hidden_state, "pooler_output": pooler_output}


def init_params(key, vocab_size=64, hidden=HIDDEN):
    ks = jax.random.split(key, 2)
    scale = 0.02
    # Weights are stored ONCE in their kernel dtypes: bf16 MXU matrices packed
    # as (3, H, H) for a single contiguous DMA, f32 biases stacked as (3, H).
    w_all = scale * jax.random.normal(ks[1], (3, hidden, hidden), jnp.float32)
    return {
        "embedding": scale * jax.random.normal(ks[0], (vocab_size, hidden), jnp.float32),
        "w_all": w_all.astype(jnp.bfloat16),
        "b_all": jnp.zeros((3, hidden), jnp.float32),
    }


if __name__ == "__main__":
    key = jax.random.PRNGKey(0)
    pkey, ikey = jax.random.split(key)

    N, S, VOCAB = 4, 8, 64          # small: 4 sequences of length 8
    params = init_params(pkey, vocab_size=VOCAB)

    # (1, N, S) so that squeeze(axis=0) -> (N, S), mirroring the torch forward.
    input_ids = jax.random.randint(ikey, (1, N, S), 0, VOCAB, dtype=jnp.int32)

    out = custom_encoder_forward(input_ids, params)
    out = jax.block_until_ready(out)

    assert out["last_hidden_state"].shape == (1, N, HIDDEN)
    assert out["pooler_output"].shape == (1, HIDDEN)
    assert jnp.all(jnp.isfinite(out["last_hidden_state"]))
    assert jnp.all(jnp.isfinite(out["pooler_output"]))
    print("KERNEL_OK")
</pallas_src>

<mosaic_0001>
module attributes {stable_mosaic.version = 11 : i64} {
  func.func @_custom_encoder_kernel(%arg0: memref<16xi32, #tpu.memory_space<smem>>, %arg1: memref<64x768xf32, #tpu.memory_space<vmem>>, %arg2: memref<3x768x768xbf16, #tpu.memory_space<vmem>>, %arg3: memref<3x768xf32, #tpu.memory_space<vmem>>, %arg4: memref<32x768xf32, #tpu.memory_space<vmem>>, %arg5: memref<16x768xf32, #tpu.memory_space<vmem>>) attributes {dimension_semantics = [], scalar_prefetch = 0 : i64, scratch_operands = 1 : i64, tpu.core_type = #tpu.core_type<tc>} {
    %c0 = arith.constant 0 : index
    %0 = memref.load %arg0[%c0] : memref<16xi32, #tpu.memory_space<smem>>
    %1 = arith.index_cast %0 : i32 to index
    %c0_0 = arith.constant 0 : index
    %2 = vector.load %arg1[%1, %c0_0] : memref<64x768xf32, #tpu.memory_space<vmem>>, vector<1x768xf32>
    %c0_1 = arith.constant 0 : index
    %c0_2 = arith.constant 0 : index
    %3 = vector.load %arg5[%c0_1, %c0_2] : memref<16x768xf32, #tpu.memory_space<vmem>>, vector<1x768xf32>
    tpu.vector_store %arg5[%c0_1, %c0_2], %2 {strides = array<i32>} : memref<16x768xf32, #tpu.memory_space<vmem>>, vector<1x768xf32>,
    %c1 = arith.constant 1 : index
    %4 = memref.load %arg0[%c1] : memref<16xi32, #tpu.memory_space<smem>>
    %5 = arith.index_cast %4 : i32 to index
    %c0_3 = arith.constant 0 : index
    %6 = vector.load %arg1[%5, %c0_3] : memref<64x768xf32, #tpu.memory_space<vmem>>, vector<1x768xf32>
    %c1_4 = arith.constant 1 : index
    %c0_5 = arith.constant 0 : index
    %7 = vector.load %arg5[%c1_4, %c0_5] : memref<16x768xf32, #tpu.memory_space<vmem>>, vector<1x768xf32>
    tpu.vector_store %arg5[%c1_4, %c0_5], %6 {strides = array<i32>} : memref<16x768xf32, #tpu.memory_space<vmem>>, vector<1x768xf32>,
    %c2 = arith.constant 2 : index
    %8 = memref.load %arg0[%c2] : memref<16xi32, #tpu.memory_space<smem>>
    %9 = arith.index_cast %8 : i32 to index
    %c0_6 = arith.constant 0 : index
    %10 = vector.load %arg1[%9, %c0_6] : memref<64x768xf32, #tpu.memory_space<vmem>>, vector<1x768xf32>
    %c2_7 = arith.constant 2 : index
    %c0_8 = arith.constant 0 : index
    %11 = vector.load %arg5[%c2_7, %c0_8] : memref<16x768xf32, #tpu.memory_space<vmem>>, vector<1x768xf32>
    tpu.vector_store %arg5[%c2_7, %c0_8], %10 {strides = array<i32>} : memref<16x768xf32, #tpu.memory_space<vmem>>, vector<1x768xf32>,
    %c3 = arith.constant 3 : index
    %12 = memref.load %arg0[%c3] : memref<16xi32, #tpu.memory_space<smem>>
    %13 = arith.index_cast %12 : i32 to index
    %c0_9 = arith.constant 0 : index
    %14 = vector.load %arg1[%13, %c0_9] : memref<64x768xf32, #tpu.memory_space<vmem>>, vector<1x768xf32>
    %c3_10 = arith.constant 3 : index
    %c0_11 = arith.constant 0 : index
    %15 = vector.load %arg5[%c3_10, %c0_11] : memref<16x768xf32, #tpu.memory_space<vmem>>, vector<1x768xf32>
    tpu.vector_store %arg5[%c3_10, %c0_11], %14 {strides = array<i32>} : memref<16x768xf32, #tpu.memory_space<vmem>>, vector<1x768xf32>,
    %c4 = arith.constant 4 : index
    %16 = memref.load %arg0[%c4] : memref<16xi32, #tpu.memory_space<smem>>
    %17 = arith.index_cast %16 : i32 to index
    %c0_12 = arith.constant 0 : index
    %18 = vector.load %arg1[%17, %c0_12] : memref<64x768xf32, #tpu.memory_space<vmem>>, vector<1x768xf32>
    %c4_13 = arith.constant 4 : index
    %c0_14 = arith.constant 0 : index
    %19 = vector.load %arg5[%c4_13, %c0_14] : memref<16x768xf32, #tpu.memory_space<vmem>>, vector<1x768xf32>
    tpu.vector_store %arg5[%c4_13, %c0_14], %18 {strides = array<i32>} : memref<16x768xf32, #tpu.memory_space<vmem>>, vector<1x768xf32>,
    %c5 = arith.constant 5 : index
    %20 = memref.load %arg0[%c5] : memref<16xi32, #tpu.memory_space<smem>>
    %21 = arith.index_cast %20 : i32 to index
    %c0_15 = arith.constant 0 : index
    %22 = vector.load %arg1[%21, %c0_15] : memref<64x768xf32, #tpu.memory_space<vmem>>, vector<1x768xf32>
    %c5_16 = arith.constant 5 : index
    %c0_17 = arith.constant 0 : index
    %23 = vector.load %arg5[%c5_16, %c0_17] : memref<16x768xf32, #tpu.memory_space<vmem>>, vector<1x768xf32>
    tpu.vector_store %arg5[%c5_16, %c0_17], %22 {strides = array<i32>} : memref<16x768xf32, #tpu.memory_space<vmem>>, vector<1x768xf32>,
    %c6 = arith.constant 6 : index
    %24 = memref.load %arg0[%c6] : memref<16xi32, #tpu.memory_space<smem>>
    %25 = arith.index_cast %24 : i32 to index
    %c0_18 = arith.constant 0 : index
    %26 = vector.load %arg1[%25, %c0_18] : memref<64x768xf32, #tpu.memory_space<vmem>>, vector<1x768xf32>
    %c6_19 = arith.constant 6 : index
    %c0_20 = arith.constant 0 : index
    %27 = vector.load %arg5[%c6_19, %c0_20] : memref<16x768xf32, #tpu.memory_space<vmem>>, vector<1x768xf32>
    tpu.vector_store %arg5[%c6_19, %c0_20], %26 {strides = array<i32>} : memref<16x768xf32, #tpu.memory_space<vmem>>, vector<1x768xf32>,
    %c7 = arith.constant 7 : index
    %28 = memref.load %arg0[%c7] : memref<16xi32, #tpu.memory_space<smem>>
    %29 = arith.index_cast %28 : i32 to index
    %c0_21 = arith.constant 0 : index
    %30 = vector.load %arg1[%29, %c0_21] : memref<64x768xf32, #tpu.memory_space<vmem>>, vector<1x768xf32>
    %c7_22 = arith.constant 7 : index
    %c0_23 = arith.constant 0 : index
    %31 = vector.load %arg5[%c7_22, %c0_23] : memref<16x768xf32, #tpu.memory_space<vmem>>, vector<1x768xf32>
    tpu.vector_store %arg5[%c7_22, %c0_23], %30 {strides = array<i32>} : memref<16x768xf32, #tpu.memory_space<vmem>>, vector<1x768xf32>,
    %c8 = arith.constant 8 : index
    %32 = memref.load %arg0[%c8] : memref<16xi32, #tpu.memory_space<smem>>
    %33 = arith.index_cast %32 : i32 to index
    %c0_24 = arith.constant 0 : index
    %34 = vector.load %arg1[%33, %c0_24] : memref<64x768xf32, #tpu.memory_space<vmem>>, vector<1x768xf32>
    %c8_25 = arith.constant 8 : index
    %c0_26 = arith.constant 0 : index
    %35 = vector.load %arg5[%c8_25, %c0_26] : memref<16x768xf32, #tpu.memory_space<vmem>>, vector<1x768xf32>
    tpu.vector_store %arg5[%c8_25, %c0_26], %34 {strides = array<i32>} : memref<16x768xf32, #tpu.memory_space<vmem>>, vector<1x768xf32>,
    %c9 = arith.constant 9 : index
    %36 = memref.load %arg0[%c9] : memref<16xi32, #tpu.memory_space<smem>>
    %37 = arith.index_cast %36 : i32 to index
    %c0_27 = arith.constant 0 : index
    %38 = vector.load %arg1[%37, %c0_27] : memref<64x768xf32, #tpu.memory_space<vmem>>, vector<1x768xf32>
    %c9_28 = arith.constant 9 : index
    %c0_29 = arith.constant 0 : index
    %39 = vector.load %arg5[%c9_28, %c0_29] : memref<16x768xf32, #tpu.memory_space<vmem>>, vector<1x768xf32>
    tpu.vector_store %arg5[%c9_28, %c0_29], %38 {strides = array<i32>} : memref<16x768xf32, #tpu.memory_space<vmem>>, vector<1x768xf32>,
    %c10 = arith.constant 10 : index
    %40 = memref.load %arg0[%c10] : memref<16xi32, #tpu.memory_space<smem>>
    %41 = arith.index_cast %40 : i32 to index
    %c0_30 = arith.constant 0 : index
    %42 = vector.load %arg1[%41, %c0_30] : memref<64x768xf32, #tpu.memory_space<vmem>>, vector<1x768xf32>
    %c10_31 = arith.constant 10 : index
    %c0_32 = arith.constant 0 : index
    %43 = vector.load %arg5[%c10_31, %c0_32] : memref<16x768xf32, #tpu.memory_space<vmem>>, vector<1x768xf32>
    tpu.vector_store %arg5[%c10_31, %c0_32], %42 {strides = array<i32>} : memref<16x768xf32, #tpu.memory_space<vmem>>, vector<1x768xf32>,
    %c11 = arith.constant 11 : index
    %44 = memref.load %arg0[%c11] : memref<16xi32, #tpu.memory_space<smem>>
    %45 = arith.index_cast %44 : i32 to index
    %c0_33 = arith.constant 0 : index
    %46 = vector.load %arg1[%45, %c0_33] : memref<64x768xf32, #tpu.memory_space<vmem>>, vector<1x768xf32>
    %c11_34 = arith.constant 11 : index
    %c0_35 = arith.constant 0 : index
    %47 = vector.load %arg5[%c11_34, %c0_35] : memref<16x768xf32, #tpu.memory_space<vmem>>, vector<1x768xf32>
    tpu.vector_store %arg5[%c11_34, %c0_35], %46 {strides = array<i32>} : memref<16x768xf32, #tpu.memory_space<vmem>>, vector<1x768xf32>,
    %c12 = arith.constant 12 : index
    %48 = memref.load %arg0[%c12] : memref<16xi32, #tpu.memory_space<smem>>
    %49 = arith.index_cast %48 : i32 to index
    %c0_36 = arith.constant 0 : index
    %50 = vector.load %arg1[%49, %c0_36] : memref<64x768xf32, #tpu.memory_space<vmem>>, vector<1x768xf32>
    %c12_37 = arith.constant 12 : index
    %c0_38 = arith.constant 0 : index
    %51 = vector.load %arg5[%c12_37, %c0_38] : memref<16x768xf32, #tpu.memory_space<vmem>>, vector<1x768xf32>
    tpu.vector_store %arg5[%c12_37, %c0_38], %50 {strides = array<i32>} : memref<16x768xf32, #tpu.memory_space<vmem>>, vector<1x768xf32>,
    %c13 = arith.constant 13 : index
    %52 = memref.load %arg0[%c13] : memref<16xi32, #tpu.memory_space<smem>>
    %53 = arith.index_cast %52 : i32 to index
    %c0_39 = arith.constant 0 : index
    %54 = vector.load %arg1[%53, %c0_39] : memref<64x768xf32, #tpu.memory_space<vmem>>, vector<1x768xf32>
    %c13_40 = arith.constant 13 : index
    %c0_41 = arith.constant 0 : index
    %55 = vector.load %arg5[%c13_40, %c0_41] : memref<16x768xf32, #tpu.memory_space<vmem>>, vector<1x768xf32>
    tpu.vector_store %arg5[%c13_40, %c0_41], %54 {strides = array<i32>} : memref<16x768xf32, #tpu.memory_space<vmem>>, vector<1x768xf32>,
    %c14 = arith.constant 14 : index
    %56 = memref.load %arg0[%c14] : memref<16xi32, #tpu.memory_space<smem>>
    %57 = arith.index_cast %56 : i32 to index
    %c0_42 = arith.constant 0 : index
    %58 = vector.load %arg1[%57, %c0_42] : memref<64x768xf32, #tpu.memory_space<vmem>>, vector<1x768xf32>
    %c14_43 = arith.constant 14 : index
    %c0_44 = arith.constant 0 : index
    %59 = vector.load %arg5[%c14_43, %c0_44] : memref<16x768xf32, #tpu.memory_space<vmem>>, vector<1x768xf32>
    tpu.vector_store %arg5[%c14_43, %c0_44], %58 {strides = array<i32>} : memref<16x768xf32, #tpu.memory_space<vmem>>, vector<1x768xf32>,
    %c15 = arith.constant 15 : index
    %60 = memref.load %arg0[%c15] : memref<16xi32, #tpu.memory_space<smem>>
    %61 = arith.index_cast %60 : i32 to index
    %c0_45 = arith.constant 0 : index
    %62 = vector.load %arg1[%61, %c0_45] : memref<64x768xf32, #tpu.memory_space<vmem>>, vector<1x768xf32>
    %c15_46 = arith.constant 15 : index
    %c0_47 = arith.constant 0 : index
    %63 = vector.load %arg5[%c15_46, %c0_47] : memref<16x768xf32, #tpu.memory_space<vmem>>, vector<1x768xf32>
    tpu.vector_store %arg5[%c15_46, %c0_47], %62 {strides = array<i32>} : memref<16x768xf32, #tpu.memory_space<vmem>>, vector<1x768xf32>,
    %c0_48 = arith.constant 0 : index
    %c0_49 = arith.constant 0 : index
    %64 = vector.load %arg5[%c0_48, %c0_49] : memref<16x768xf32, #tpu.memory_space<vmem>>, vector<16x768xf32>
    %65 = arith.truncf %64 : vector<16x768xf32> to vector<16x768xbf16>
    %c0_50 = arith.constant 0 : index
    %c0_51 = arith.constant 0 : index
    %c0_52 = arith.constant 0 : index
    %66 = vector.load %arg2[%c0_50, %c0_51, %c0_52] : memref<3x768x768xbf16, #tpu.memory_space<vmem>>, vector<1x768x768xbf16>
    %67 = vector.shape_cast %66 : vector<1x768x768xbf16> to vector<768x768xbf16>
    %cst = arith.constant dense<0.000000e+00> : vector<16x768xf32>
    %68 = tpu.matmul %65, %67, %cst {dimension_numbers = #tpu.dot_dimension_numbers<[1], [0], [0], [1], [0, 0, 1, 1], [], []>} : vector<16x768xbf16>, vector<768x768xbf16>, vector<16x768xf32> -> vector<16x768xf32>
    %c0_53 = arith.constant 0 : index
    %c0_54 = arith.constant 0 : index
    %69 = vector.load %arg3[%c0_53, %c0_54] : memref<3x768xf32, #tpu.memory_space<vmem>>, vector<1x768xf32>
    %70 = vector.broadcast %69 : vector<1x768xf32> to vector<16x768xf32>
    %71 = arith.addf %68, %70 : vector<16x768xf32>
    %72 = math.tanh %71 : vector<16x768xf32>
    %73 = arith.truncf %72 : vector<16x768xf32> to vector<16x768xbf16>
    %c1_55 = arith.constant 1 : index
    %c0_56 = arith.constant 0 : index
    %c0_57 = arith.constant 0 : index
    %74 = vector.load %arg2[%c1_55, %c0_56, %c0_57] : memref<3x768x768xbf16, #tpu.memory_space<vmem>>, vector<1x768x768xbf16>
    %75 = vector.shape_cast %74 : vector<1x768x768xbf16> to vector<768x768xbf16>
    %cst_58 = arith.constant dense<0.000000e+00> : vector<16x768xf32>
    %76 = tpu.matmul %73, %75, %cst_58 {dimension_numbers = #tpu.dot_dimension_numbers<[1], [0], [0], [1], [0, 0, 1, 1], [], []>} : vector<16x768xbf16>, vector<768x768xbf16>, vector<16x768xf32> -> vector<16x768xf32>
    %c1_59 = arith.constant 1 : index
    %c0_60 = arith.constant 0 : index
    %77 = vector.load %arg3[%c1_59, %c0_60] : memref<3x768xf32, #tpu.memory_space<vmem>>, vector<1x768xf32>
    %78 = vector.broadcast %77 : vector<1x768xf32> to vector<16x768xf32>
    %79 = arith.addf %76, %78 : vector<16x768xf32>
    %80 = math.tanh %79 : vector<16x768xf32>
    %81 = arith.truncf %80 : vector<16x768xf32> to vector<16x768xbf16>
    %c2_61 = arith.constant 2 : index
    %c0_62 = arith.constant 0 : index
    %c0_63 = arith.constant 0 : index
    %82 = vector.load %arg2[%c2_61, %c0_62, %c0_63] : memref<3x768x768xbf16, #tpu.memory_space<vmem>>, vector<1x768x768xbf16>
    %83 = vector.shape_cast %82 : vector<1x768x768xbf16> to vector<768x768xbf16>
    %cst_64 = arith.constant dense<0.000000e+00> : vector<16x768xf32>
    %84 = tpu.matmul %81, %83, %cst_64 {dimension_numbers = #tpu.dot_dimension_numbers<[1], [0], [0], [1], [0, 0, 1, 1], [], []>} : vector<16x768xbf16>, vector<768x768xbf16>, vector<16x768xf32> -> vector<16x768xf32>
    %c2_65 = arith.constant 2 : index
    %c0_66 = arith.constant 0 : index
    %85 = vector.load %arg3[%c2_65, %c0_66] : memref<3x768xf32, #tpu.memory_space<vmem>>, vector<1x768xf32>
    %86 = vector.broadcast %85 : vector<1x768xf32> to vector<16x768xf32>
    %87 = arith.addf %84, %86 : vector<16x768xf32>
    %88 = math.tanh %87 : vector<16x768xf32>
    %c0_67 = arith.constant 0 : index
    %c0_68 = arith.constant 0 : index
    %89 = vector.load %arg4[%c0_67, %c0_68] : memref<32x768xf32, #tpu.memory_space<vmem>>, vector<16x768xf32>
    tpu.vector_store %arg4[%c0_67, %c0_68], %80 {strides = array<i32>} : memref<32x768xf32, #tpu.memory_space<vmem>>, vector<16x768xf32>,
    %c16 = arith.constant 16 : index
    %c0_69 = arith.constant 0 : index
    %90 = vector.load %arg4[%c16, %c0_69] : memref<32x768xf32, #tpu.memory_space<vmem>>, vector<16x768xf32>
    tpu.vector_store %arg4[%c16, %c0_69], %88 {strides = array<i32>} : memref<32x768xf32, #tpu.memory_space<vmem>>, vector<16x768xf32>,
    return
  }
}

</mosaic_0001>

<bundles_post_ra>
// kernel: tpu_custom_call.1
= control target key start
LH: loop header
LB: loop body
LE: loop exit
PB: predicated region body
PF: predicated region fallthrough
CT: control target
= control target key end

     0   :  { %9 = vsyncpa [#allocation6], 0  ;;  %s12255_s0 = inlined_call_operand.hbm [shape: s32[16], index: 0, kind: input, shape index: {}]   ;;  %s12256_s1 = inlined_call_operand.hbm [shape: f32[64,768], index: 1, kind: input, shape index: {}]   ;;  %s12257_s2 = inlined_call_operand.hbm [shape: bf16[3,768,768], index: 2, kind: input, shape index: {}]   ;;  %s12258_s3 = inlined_call_operand.hbm [shape: f32[3,768], index: 3, kind: input, shape index: {}]   ;;  %s12259_s4 = inlined_call_operand.hbm [shape: f32[32,768], index: 4, kind: output, shape index: {}]  }
   0x1   :  { %10 = vsyncpa [#allocation4], 0 }
   0x2   :  { %11 = vsyncpa [#allocation9], 0  ;;  %s39_s17 = sshll.u32 %s12257_s2, 4  ;;  %s40_s17 = int_to_ptr.hbm [resolvable:$true] %s39_s17 }
   0x3   :  { %12 = vsyncpa [#allocation5], 0  ;;  %s11770_s18 = smov [#allocation8]   ;;  %s18_s22 = sshll.u32 %s12255_s0, 4  ;;  %s19_s22 = int_to_ptr.hbm [resolvable:$true] %s18_s22 }
   0x4   :  { %s41_s19 = sshll.u32 %s11770_s18, 4  ;;  %s11771_s23 = smov 384   ;;  %s42_s19 = int_to_ptr.vmem [resolvable:$true] %s41_s19 }
   0x5   :  { %s11772_s24 = smov 24   ;;  %s11773_s25 = smov [#allocation3]  }
   0x6   :  { %47 = dma.hbm_to_vmem [thread:$0]  %s40_s17, 110592, %s42_s19, [#allocation9], %s11771_s23, %s11771_s23, %s11772_s24  }
   0x7   :  { %21 = dma.hbm_to_smem %s19_s22, 16, %s11773_s25, [#allocation6]  }
   0x8   :  { %s26_s28 = sshll.u32 %s12256_s1, 4  ;;  %s11774_s2 = smov [#allocation7]   ;;  %s27_s28 = int_to_ptr.hbm [resolvable:$true] %s26_s28 }
   0x9   :  { %s28_s29 = sshll.u32 %s11774_s2, 4  ;;  %s53_s6 = sshll.u32 %s12258_s3, 4  ;;  %s29_s29 = int_to_ptr.vmem [resolvable:$true] %s28_s29  ;;  %s54_s6 = int_to_ptr.hbm [resolvable:$true] %s53_s6 }
   0xa   :  { %s11775_s7 = smov 768   ;;  %s11776_s0 = smov 48  }
   0xb   :  { %34 = dma.hbm_to_vmem [thread:$0]  %s27_s28, 6144, %s29_s29, [#allocation4], %s11775_s7, %s11775_s7, %s11776_s0  }
   0xc   :  { %s11777_s8 = smov [#allocation10]  }
   0xd   :  { %s55_s9 = sshll.u32 %s11777_s8, 4  ;;  %s56_s9 = int_to_ptr.vmem [resolvable:$true] %s55_s9 }
   0xe   :  { %58 = dma.hbm_to_vmem [thread:$0]  %s54_s6, 384, %s56_s9, [#allocation9]  }
   0xf   :  { %11762 = dma.done.wait [#allocation6], 16  }
  0x10   :  { %11763 = vsyncadd [#allocation6], 4294967280 }
  0x11   :  { %11764 = dma.done.wait [#allocation4], 6144  }
  0x12   :  { %11765 = vsyncadd [#allocation4], 4294961152 }
  0x13   :  { %11766 = dma.done.wait [#allocation9], 110976  }
  0x14   :  { %11767 = vsyncadd [#allocation9], 4294856320 }
  0x15   :  { %75 = sfence }
  0x16   :  { %v7421_v0 = vld [vmem:[#allocation8 + $0x150] sm:$0xf]  ;;  %v10752_v1 = vld [vmem:[#allocation8 + $0x164] sm:$0xf0]  ;;  %v7397_v11 = vld [vmem:[#allocation8 + $0x120] sm:$0xf] }
  0x17   :  { %v7613_v2 = vld [vmem:[#allocation8 + $0x2d0] sm:$0xf]  ;;  %v7422_v3 = vor.u32 %v10752_v1, %v7421_v0  ;;  %v10800_v4 = vld [vmem:[#allocation8 + $0x2e4] sm:$0xf0]  ;;  %v10746_v13 = vld [vmem:[#allocation8 + $0x134] sm:$0xf0] }
  0x18   :  { %v7805_v5 = vld [vmem:[#allocation8 + $0x450] sm:$0xf]  ;;  %v10848_v6 = vld [vmem:[#allocation8 + $0x464] sm:$0xf0]  ;;  %v7614_v7 = vor.u32 %v10800_v4, %v7613_v2  ;;  %v7589_v14 = vld [vmem:[#allocation8 + $0x2a0] sm:$0xf]  ;;  %v7398_v16 = vor.u32 %v10746_v13, %v7397_v11 }
  0x19   :  { %v7806_v8 = vor.u32 %v10848_v6, %v7805_v5  ;;  %v7997_v9 = vld [vmem:[#allocation8 + $0x5d0] sm:$0xf]  ;;  %v10896_v10 = vld [vmem:[#allocation8 + $0x5e4] sm:$0xf0]  ;;  %2079 = vmatpush.bf16.msra.mxu0 %v7422_v3  ;;  %v10794_v15 = vld [vmem:[#allocation8 + $0x2b4] sm:$0xf0] }
  0x1a   :  { %v7998_v12 = vor.u32 %v10896_v10, %v7997_v9  ;;  %2093 = vmatpush.bf16.msra.mxu1 %v7614_v7  ;;  %v7590_v17 = vor.u32 %v10794_v15, %v7589_v14  ;;  %v7781_v18 = vld [vmem:[#allocation8 + $0x420] sm:$0xf]  ;;  %v10842_v19 = vld [vmem:[#allocation8 + $0x434] sm:$0xf0]  ;;  %v7373_v23 = vld [vmem:[#allocation8 + $0xf0] sm:$0xf] }
  0x1b   :  { %2107 = vmatpush.bf16.msra.mxu2 %v7806_v8  ;;  %v7973_v20 = vld [vmem:[#allocation8 + $0x5a0] sm:$0xf]  ;;  %v7782_v21 = vor.u32 %v10842_v19, %v7781_v18  ;;  %v10890_v22 = vld [vmem:[#allocation8 + $0x5b4] sm:$0xf0]  ;;  %v10740_v24 = vld [vmem:[#allocation8 + $0x104] sm:$0xf0] }
  0x1c   :  { %2121 = vmatpush.bf16.msra.mxu3 %v7998_v12  ;;  %v7974_v25 = vor.u32 %v10890_v22, %v7973_v20  ;;  %v7565_v26 = vld [vmem:[#allocation8 + $0x270] sm:$0xf]  ;;  %v10788_v27 = vld [vmem:[#allocation8 + $0x284] sm:$0xf0]  ;;  %v7374_v29 = vor.u32 %v10740_v24, %v7373_v23  ;;  %v7349_v35 = vld [vmem:[#allocation8 + $0xc0] sm:$0xf] }
  0x1d   :  { %v7757_v28 = vld [vmem:[#allocation8 + $0x3f0] sm:$0xf]  ;;  %2080 = vmatpush.bf16.msra.mxu0 %v7398_v16  ;;  %v10836_v30 = vld [vmem:[#allocation8 + $0x404] sm:$0xf0]  ;;  %v7566_v33 = vor.u32 %v10788_v27, %v7565_v26  ;;  %v10734_v36 = vld [vmem:[#allocation8 + $0xd4] sm:$0xf0] }
  0x1e   :  { %v7949_v31 = vld [vmem:[#allocation8 + $0x570] sm:$0xf]  ;;  %v10884_v32 = vld [vmem:[#allocation8 + $0x584] sm:$0xf0]  ;;  %2094 = vmatpush.bf16.msra.mxu1 %v7590_v17  ;;  %v7758_v34 = vor.u32 %v10836_v30, %v7757_v28  ;;  %v7541_v37 = vld [vmem:[#allocation8 + $0x240] sm:$0xf]  ;;  %v7350_v44 = vor.u32 %v10734_v36, %v7349_v35 }
  0x1f   :  { %2108 = vmatpush.bf16.msra.mxu2 %v7782_v21  ;;  %v7950_v38 = vor.u32 %v10884_v32, %v7949_v31  ;;  %v10782_v39 = vld [vmem:[#allocation8 + $0x254] sm:$0xf0]  ;;  %v7733_v40 = vld [vmem:[#allocation8 + $0x3c0] sm:$0xf]  ;;  %v7325_v47 = vld [vmem:[#allocation8 + $0x90] sm:$0xf] }
  0x20   :  { %2122 = vmatpush.bf16.msra.mxu3 %v7974_v25  ;;  %v10830_v41 = vld [vmem:[#allocation8 + $0x3d4] sm:$0xf0]  ;;  %v7925_v42 = vld [vmem:[#allocation8 + $0x540] sm:$0xf]  ;;  %v7542_v45 = vor.u32 %v10782_v39, %v7541_v37  ;;  %v10728_v48 = vld [vmem:[#allocation8 + $0xa4] sm:$0xf0] }
  0x21   :  { %v10878_v43 = vld [vmem:[#allocation8 + $0x554] sm:$0xf0]  ;;  %2081 = vmatpush.bf16.msra.mxu0 %v7374_v29  ;;  %v7734_v46 = vor.u32 %v10830_v41, %v7733_v40  ;;  %v7517_v49 = vld [vmem:[#allocation8 + $0x210] sm:$0xf]  ;;  %v10776_v51 = vld [vmem:[#allocation8 + $0x224] sm:$0xf0]  ;;  %v7326_v56 = vor.u32 %v10728_v48, %v7325_v47 }
  0x22   :  { %2095 = vmatpush.bf16.msra.mxu1 %v7566_v33  ;;  %v7926_v50 = vor.u32 %v10878_v43, %v7925_v42  ;;  %v7709_v52 = vld [vmem:[#allocation8 + $0x390] sm:$0xf]  ;;  %v10824_v53 = vld [vmem:[#allocation8 + $0x3a4] sm:$0xf0]  ;;  %v7518_v57 = vor.u32 %v10776_v51, %v7517_v49  ;;  %v7301_v59 = vld [vmem:[#allocation8 + $0x60] sm:$0xf] }
  0x23   :  { %2109 = vmatpush.bf16.msra.mxu2 %v7758_v34  ;;  %v7901_v54 = vld [vmem:[#allocation8 + $0x510] sm:$0xf]  ;;  %v10872_v55 = vld [vmem:[#allocation8 + $0x524] sm:$0xf0]  ;;  %v7710_v58 = vor.u32 %v10824_v53, %v7709_v52  ;;  %v10722_v60 = vld [vmem:[#allocation8 + $0x74] sm:$0xf0] }
  0x24   :  { %2123 = vmatpush.bf16.msra.mxu3 %v7950_v38  ;;  %v7493_v61 = vld [vmem:[#allocation8 + $0x1e0] sm:$0xf]  ;;  %v7902_v62 = vor.u32 %v10872_v55, %v7901_v54  ;;  %v10770_v63 = vld [vmem:[#allocation8 + $0x1f4] sm:$0xf0]  ;;  %v7302_v4 = vor.u32 %v10722_v60, %v7301_v59  ;;  %v7277_v7 = vld [vmem:[#allocation8 + $0x30] sm:$0xf] }
  0x25   :  { %2082 = vmatpush.bf16.msra.mxu0 %v7350_v44  ;;  %v7685_v0 = vld [vmem:[#allocation8 + $0x360] sm:$0xf]  ;;  %v10818_v1 = vld [vmem:[#allocation8 + $0x374] sm:$0xf0]  ;;  %v7494_v5 = vor.u32 %v10770_v63, %v7493_v61  ;;  %v10716_v8 = vld [vmem:[#allocation8 + $0x44] sm:$0xf0] }
  0x26   :  { %2096 = vmatpush.bf16.msra.mxu1 %v7542_v45  ;;  %v7877_v2 = vld [vmem:[#allocation8 + $0x4e0] sm:$0xf]  ;;  %v10866_v3 = vld [vmem:[#allocation8 + $0x4f4] sm:$0xf0]  ;;  %v7686_v6 = vor.u32 %v10818_v1, %v7685_v0  ;;  %v7469_v9 = vld [vmem:[#allocation8 + $0x1b0] sm:$0xf]  ;;  %v7278_v16 = vor.u32 %v10716_v8, %v7277_v7  ;;  %v88_v7 = vlaneseq }
  0x27   :  { %2110 = vmatpush.bf16.msra.mxu2 %v7734_v46  ;;  %v7878_v10 = vor.u32 %v10866_v3, %v7877_v2  ;;  %v10764_v11 = vld [vmem:[#allocation8 + $0x1c4] sm:$0xf0]  ;;  %v7661_v12 = vld [vmem:[#allocation8 + $0x330] sm:$0xf]  ;;  %v7253_v17 = vld [vmem:[#allocation8] sm:$0xf] }
  0x28   :  { %2124 = vmatpush.bf16.msra.mxu3 %v7926_v50  ;;  %v10812_v13 = vld [vmem:[#allocation8 + $0x344] sm:$0xf0]  ;;  %v7853_v14 = vld [vmem:[#allocation8 + $0x4b0] sm:$0xf]  ;;  %v10710_v18 = vld [vmem:[#allocation8 + $0x14] sm:$0xf0]  ;;  %v7470_v19 = vor.u32 %v10764_v11, %v7469_v9 }
  0x29   :  { %2083 = vmatpush.bf16.msra.mxu0 %v7326_v56  ;;  %v10860_v15 = vld [vmem:[#allocation8 + $0x4c4] sm:$0xf0]  ;;  %v7662_v20 = vor.u32 %v10812_v13, %v7661_v12  ;;  %v7445_v21 = vld [vmem:[#allocation8 + $0x180] sm:$0xf]  ;;  %v10758_v22 = vld [vmem:[#allocation8 + $0x194] sm:$0xf0]  ;;  %v7254_v31 = vor.u32 %v10710_v18, %v7253_v17 }
  0x2a   :  { %2097 = vmatpush.bf16.msra.mxu1 %v7518_v57  ;;  %v7637_v23 = vld [vmem:[#allocation8 + $0x300] sm:$0xf]  ;;  %v7854_v24 = vor.u32 %v10860_v15, %v7853_v14  ;;  %v10806_v25 = vld [vmem:[#allocation8 + $0x314] sm:$0xf0]  ;;  %v8189_v28 = vld [vmem:[#allocation8 + $0x750] sm:$0xf]  ;;  %v7446_v35 = vor.u32 %v10758_v22, %v7445_v21 }
  0x2b   :  { %2111 = vmatpush.bf16.msra.mxu2 %v7710_v58  ;;  %v7829_v26 = vld [vmem:[#allocation8 + $0x480] sm:$0xf]  ;;  %v10854_v27 = vld [vmem:[#allocation8 + $0x494] sm:$0xf0]  ;;  %v10944_v29 = vld [vmem:[#allocation8 + $0x764] sm:$0xf0]  ;;  %v7638_v36 = vor.u32 %v10806_v25, %v7637_v23 }
  0x2c   :  { %2125 = vmatpush.bf16.msra.mxu3 %v7902_v62  ;;  %v8381_v30 = vld [vmem:[#allocation8 + $0x8d0] sm:$0xf]  ;;  %v10992_v32 = vld [vmem:[#allocation8 + $0x8e4] sm:$0xf0]  ;;  %v10749_v33 = vld [vmem:[#allocation8 + $0x154] sm:$0xf]  ;;  %v7830_v39 = vor.u32 %v10854_v27, %v7829_v26  ;;  %v8190_v40 = vor.u32 %v10944_v29, %v8189_v28 }
  0x2d   :  { %2084 = vmatpush.bf16.msra.mxu0 %v7302_v4  ;;  %v7423_v34 = vld [vmem:[#allocation8 + $0x168] sm:$0xf0]  ;;  %v10797_v37 = vld [vmem:[#allocation8 + $0x2d4] sm:$0xf]  ;;  %v8382_v41 = vor.u32 %v10992_v32, %v8381_v30  ;;  %v8165_v43 = vld [vmem:[#allocation8 + $0x720] sm:$0xf] }
  0x2e   :  { %2098 = vmatpush.bf16.msra.mxu1 %v7494_v5  ;;  %v7615_v38 = vld [vmem:[#allocation8 + $0x2e8] sm:$0xf0]  ;;  %v7426_v42 = vor.u32 %v10749_v33, %v7423_v34  ;;  %v10938_v44 = vld [vmem:[#allocation8 + $0x734] sm:$0xf0]  ;;  %v8357_v45 = vld [vmem:[#allocation8 + $0x8a0] sm:$0xf] }
  0x2f   :  { %2112 = vmatpush.bf16.msra.mxu2 %v7686_v6  ;;  %v7618_v46 = vor.u32 %v10797_v37, %v7615_v38  ;;  %v10986_v47 = vld [vmem:[#allocation8 + $0x8b4] sm:$0xf0]  ;;  %v10743_v48 = vld [vmem:[#allocation8 + $0x124] sm:$0xf]  ;;  %v7399_v49 = vld [vmem:[#allocation8 + $0x138] sm:$0xf0]  ;;  %v8166_v52 = vor.u32 %v10938_v44, %v8165_v43 }
  0x30   :  { %2126 = vmatpush.bf16.msra.mxu3 %v7878_v10  ;;  %v10791_v50 = vld [vmem:[#allocation8 + $0x2a4] sm:$0xf]  ;;  %v7591_v51 = vld [vmem:[#allocation8 + $0x2b8] sm:$0xf0]  ;;  %s11819_s1 = sld [smem:[#allocation3]]  ;;  %v8358_v55 = vor.u32 %v10986_v47, %v8357_v45  ;;  %v7402_v56 = vor.u32 %v10743_v48, %v7399_v49  ;;  %vm11836_vm0 = vcmp.lt.s32.totalorder %v88_v7, 768 }
  0x31   :  { %2085 = vmatpush.bf16.msra.mxu0 %v7278_v16  ;;  %v8141_v53 = vld [vmem:[#allocation8 + $0x6f0] sm:$0xf]  ;;  %v10932_v54 = vld [vmem:[#allocation8 + $0x704] sm:$0xf0]  ;;  %s11821_s3 = sld [smem:[#allocation3 + $0x1]]  ;;  %v7594_v59 = vor.u32 %v10791_v50, %v7591_v51 }
  0x32   :  { %2099 = vmatpush.bf16.msra.mxu1 %v7470_v19  ;;  %v8333_v57 = vld [vmem:[#allocation8 + $0x870] sm:$0xf]  ;;  %v10980_v58 = vld [vmem:[#allocation8 + $0x884] sm:$0xf0]  ;;  %s11823_s10 = sld [smem:[#allocation3 + $0x2]]  ;;  %v8142_v0 = vor.u32 %v10932_v54, %v8141_v53 }
  0x33   :  { %2113 = vmatpush.bf16.msra.mxu2 %v7662_v20  ;;  %v10737_v60 = vld [vmem:[#allocation8 + $0xf4] sm:$0xf]  ;;  %v7375_v61 = vld [vmem:[#allocation8 + $0x108] sm:$0xf0]  ;;  %s11825_s11 = sld [smem:[#allocation3 + $0x3]]  ;;  %v8334_v3 = vor.u32 %v10980_v58, %v8333_v57 }
  0x34   :  { %2127 = vmatpush.bf16.msra.mxu3 %v7854_v24  ;;  %v10785_v62 = vld [vmem:[#allocation8 + $0x274] sm:$0xf]  ;;  %v7567_v63 = vld [vmem:[#allocation8 + $0x288] sm:$0xf0]  ;;  %s11827_s12 = sld [smem:[#allocation3 + $0x4]]  ;;  %v7378_v4 = vor.u32 %v10737_v60, %v7375_v61 }
  0x35   :  { %2086 = vmatpush.bf16.msra.mxu0 %v7254_v31  ;;  %v8117_v1 = vld [vmem:[#allocation8 + $0x6c0] sm:$0xf]  ;;  %v10926_v2 = vld [vmem:[#allocation8 + $0x6d4] sm:$0xf0]  ;;  %s11829_s13 = sld [smem:[#allocation3 + $0x5]]  ;;  %v7570_v8 = vor.u32 %v10785_v62, %v7567_v63 }
  0x36   :  { %2100 = vmatpush.bf16.msra.mxu1 %v7446_v35  ;;  %v8309_v5 = vld [vmem:[#allocation8 + $0x840] sm:$0xf]  ;;  %v10974_v6 = vld [vmem:[#allocation8 + $0x854] sm:$0xf0]  ;;  %s77_s14 = sshra.s32 %s11819_s1, 3  ;;  %s80_s15 = sand.u32 7, %s11819_s1  ;;  %v8118_v13 = vor.u32 %v10926_v2, %v8117_v1 }
  0x37   :  { %2114 = vmatpush.bf16.msra.mxu2 %v7638_v36  ;;  %v10731_v9 = vld [vmem:[#allocation8 + $0xc4] sm:$0xf]  ;;  %v7351_v10 = vld [vmem:[#allocation8 + $0xd8] sm:$0xf0]  ;;  %s7220_s16 = smul.u32 48, %s77_s14  ;;  %s95_s17 = sshra.s32 %s11821_s3, 3  ;;  %v8310_v14 = vor.u32 %v10974_v6, %v8309_v5 }
  0x38   :  { %2128 = vmatpush.bf16.msra.mxu3 %v7830_v39  ;;  %v10779_v11 = vld [vmem:[#allocation8 + $0x244] sm:$0xf]  ;;  %v7543_v12 = vld [vmem:[#allocation8 + $0x258] sm:$0xf0]  ;;  %s98_s18 = sand.u32 7, %s11821_s3  ;;  %s7222_s19 = smul.u32 48, %s95_s17  ;;  %v7354_v15 = vor.u32 %v10731_v9, %v7351_v10 }
  0x39   :  { %2135 = vmatpush.bf16.msrb.mxu0 %v8190_v40  ;;  %s83_s20 = sadd.s32 %s7220_s16, %s80_s15  ;;  %s110_s21 = sshra.s32 %s11823_s10, 3  ;;  %v7546_v17 = vor.u32 %v10779_v11, %v7543_v12  ;;  %v8093_v51 = vld [vmem:[#allocation8 + $0x690] sm:$0xf]  ;;  %v10725_v60 = vld [vmem:[#allocation8 + $0x94] sm:$0xf] }
  0x3a   :  { %2149 = vmatpush.bf16.msrb.mxu1 %v8382_v41  ;;  %s101_s22 = sadd.s32 %s7222_s19, %s98_s18  ;;  %s84_s23 = scalar_lea.vmem [#allocation7], %s83_s20  ;;  %v8285_v54 = vld [vmem:[#allocation8 + $0x810] sm:$0xf]  ;;  %v7327_v61 = vld [vmem:[#allocation8 + $0xa8] sm:$0xf0] }
  0x3b   :  { %2163 = vmatpush.bf16.msrb.mxu2 %v7426_v42  ;;  %v85_v18 = vld [vmem:[%s84_s23] ss:$8 sm:$0xf]  ;;  %s113_s24 = sand.u32 7, %s11823_s10  ;;  %s102_s25 = scalar_lea.vmem [#allocation7], %s101_s22  ;;  %v7330_v62 = vor.u32 %v10725_v60, %v7327_v61 }
  0x3c   :  { %2177 = vmatpush.bf16.msrb.mxu3 %v7618_v46  ;;  %v86_v19 = vld [vmem:[%s84_s23] ss:$8 sm:$0x30]  ;;  %s7224_s26 = smul.u32 48, %s110_s21  ;;  %s125_s27 = sshra.s32 %s11825_s11, 3 }
  0x3d   :  { %2136 = vmatpush.bf16.msrb.mxu0 %v8166_v52  ;;  %v87_v20 = vor.u32 %v86_v19, %v85_v18  ;;  %v103_v21 = vld [vmem:[%s102_s25] ss:$8 sm:$0xf]  ;;  %s128_s28 = sand.u32 7, %s11825_s11  ;;  %s7226_s2 = smul.u32 48, %s125_s27 }
  0x3e   :  { %2150 = vmatpush.bf16.msrb.mxu1 %v8358_v55  ;;  %v104_v22 = vld [vmem:[%s102_s25] ss:$8 sm:$0x30]  ;;  %s116_s29 = sadd.s32 %s7224_s26, %s113_s24  ;;  %s140_s30 = sshra.s32 %s11827_s12, 3  ;;  %v10773_v63 = vld [vmem:[#allocation8 + $0x214] sm:$0xf] }
  0x3f   :  { %2164 = vmatpush.bf16.msrb.mxu2 %v7402_v56  ;;  %92 = vst.msk [vmem:[#allocation2] ss:$8 sm:$0xf] %vm11836_vm0, %v87_v20  ;;  %v105_v23 = vor.u32 %v104_v22, %v103_v21  ;;  %s131_s5 = sadd.s32 %s7226_s2, %s128_s28  ;;  %s117_s6 = scalar_lea.vmem [#allocation7], %s116_s29  ;;  %v10920_v52 = vld [vmem:[#allocation8 + $0x6a4] sm:$0xf0] }
  0x40   :  { %2178 = vmatpush.bf16.msrb.mxu3 %v7594_v59  ;;  %93 = vst.msk [vmem:[#allocation2] ss:$8 sm:$0x30] %vm11836_vm0, %v87_v20  ;;  %v118_v24 = vld [vmem:[%s117_s6] ss:$8 sm:$0xf]  ;;  %v8094_v53 = vor.u32 %v10920_v52, %v8093_v51 }
  0x41   :  { %2137 = vmatpush.bf16.msrb.mxu0 %v8142_v0  ;;  %107 = vst.msk [vmem:[#allocation2 + $0x1] ss:$8 sm:$0xf] %vm11836_vm0, %v105_v23  ;;  %v119_v25 = vld [vmem:[%s117_s6] ss:$8 sm:$0x30] }
  0x42   :  { %2151 = vmatpush.bf16.msrb.mxu1 %v8334_v3  ;;  %108 = vst.msk [vmem:[#allocation2 + $0x1] ss:$8 sm:$0x30] %vm11836_vm0, %v105_v23  ;;  %v120_v26 = vor.u32 %v119_v25, %v118_v24  ;;  %s143_s8 = sand.u32 7, %s11827_s12  ;;  %s132_s9 = scalar_lea.vmem [#allocation7], %s131_s5 }
  0x43   :  { %2165 = vmatpush.bf16.msrb.mxu2 %v7378_v4  ;;  %v133_v27 = vld [vmem:[%s132_s9] ss:$8 sm:$0xf]  ;;  %s7228_s1 = smul.u32 48, %s140_s30  ;;  %s155_s3 = sshra.s32 %s11829_s13, 3 }
  0x44   :  { %2179 = vmatpush.bf16.msrb.mxu3 %v7570_v8  ;;  %v134_v28 = vld [vmem:[%s132_s9] ss:$8 sm:$0x30]  ;;  %122 = vst.msk [vmem:[#allocation2 + $0x2] ss:$8 sm:$0xf] %vm11836_vm0, %v120_v26 }
  0x45   :  { %2138 = vmatpush.bf16.msrb.mxu0 %v8118_v13  ;;  %v135_v29 = vor.u32 %v134_v28, %v133_v27  ;;  %s158_s10 = sand.u32 7, %s11829_s13  ;;  %s7230_s11 = smul.u32 48, %s155_s3  ;;  %123 = vst.msk [vmem:[#allocation2 + $0x2] ss:$8 sm:$0x30] %vm11836_vm0, %v120_v26 }
  0x46   :  { %2152 = vmatpush.bf16.msrb.mxu1 %v8310_v14  ;;  %s146_s14 = sadd.s32 %s7228_s1, %s143_s8  ;;  %s7231_s15 = sld [smem:[#allocation3 + $0x6]]  ;;  %v10968_v55 = vld [vmem:[#allocation8 + $0x824] sm:$0xf0]  ;;  %v7519_v0 = vld [vmem:[#allocation8 + $0x228] sm:$0xf0] }
  0x47   :  { %2166 = vmatpush.bf16.msrb.mxu2 %v7354_v15  ;;  %137 = vst.msk [vmem:[#allocation2 + $0x3] ss:$8 sm:$0xf] %vm11836_vm0, %v135_v29  ;;  %s161_s12 = sadd.s32 %s7230_s11, %s158_s10  ;;  %s147_s16 = scalar_lea.vmem [#allocation7], %s146_s14  ;;  %v8286_v58 = vor.u32 %v10968_v55, %v8285_v54  ;;  %v7522_v1 = vor.u32 %v10773_v63, %v7519_v0  ;;  %v8069_v2 = vld [vmem:[#allocation8 + $0x660] sm:$0xf] }
  0x48   :  { %2180 = vmatpush.bf16.msrb.mxu3 %v7546_v17  ;;  %138 = vst.msk [vmem:[#allocation2 + $0x3] ss:$8 sm:$0x30] %vm11836_vm0, %v135_v29  ;;  %v148_v30 = vld [vmem:[%s147_s16] ss:$8 sm:$0xf] }
  0x49   :  { %v149_v31 = vld [vmem:[%s147_s16] ss:$8 sm:$0x30]  ;;  %s7233_s17 = sld [smem:[#allocation3 + $0x7]]  ;;  %s162_s18 = scalar_lea.vmem [#allocation7], %s161_s12  ;;  %2139 = vmatpush.bf16.msrb.mxu0 %v8094_v53 }
  0x4a   :  { %v150_v32 = vor.u32 %v149_v31, %v148_v30  ;;  %v163_v33 = vld [vmem:[%s162_s18] ss:$8 sm:$0xf]  ;;  %s7235_s13 = sld [smem:[#allocation3 + $0x8]]  ;;  %2153 = vmatpush.bf16.msrb.mxu1 %v8286_v58  ;;  %v10719_v14 = vld [vmem:[#allocation8 + $0x64] sm:$0xf] }
  0x4b   :  { %v164_v34 = vld [vmem:[%s162_s18] ss:$8 sm:$0x30]  ;;  %s11869_s22 = sld [smem:[#allocation3 + $0x9]]  ;;  %2167 = vmatpush.bf16.msrb.mxu2 %v7330_v62  ;;  %v10914_v3 = vld [vmem:[#allocation8 + $0x674] sm:$0xf0] }
  0x4c   :  { %152 = vst.msk [vmem:[#allocation2 + $0x4] ss:$8 sm:$0xf] %vm11836_vm0, %v150_v32  ;;  %v165_v35 = vor.u32 %v164_v34, %v163_v33  ;;  %s170_s19 = sshra.s32 %s7231_s15, 3  ;;  %s173_s20 = sand.u32 7, %s7231_s15  ;;  %2181 = vmatpush.bf16.msrb.mxu3 %v7522_v1  ;;  %v8070_v6 = vor.u32 %v10914_v3, %v8069_v2 }
  0x4d   :  { %153 = vst.msk [vmem:[#allocation2 + $0x4] ss:$8 sm:$0x30] %vm11836_vm0, %v150_v32  ;;  %s7232_s21 = smul.u32 48, %s170_s19  ;;  %s11871_s23 = sld [smem:[#allocation3 + $0xa]] }
  0x4e   :  { %167 = vst.msk [vmem:[#allocation2 + $0x5] ss:$8 sm:$0xf] %vm11836_vm0, %v165_v35  ;;  %s7241_s16 = sld [smem:[#allocation3 + $0xb]]  ;;  %v8261_v8 = vld [vmem:[#allocation8 + $0x7e0] sm:$0xf]  ;;  %2140 = vmatpush.bf16.msrb.mxu0 %v8070_v6 }
  0x4f   :  { %168 = vst.msk [vmem:[#allocation2 + $0x5] ss:$8 sm:$0x30] %vm11836_vm0, %v165_v35  ;;  %s176_s24 = sadd.s32 %s7232_s21, %s173_s20  ;;  %s185_s25 = sshra.s32 %s7233_s17, 3  ;;  %v10962_v9 = vld [vmem:[#allocation8 + $0x7f4] sm:$0xf0] }
  0x50   :  { %s188_s26 = sand.u32 7, %s7233_s17  ;;  %s177_s27 = scalar_lea.vmem [#allocation7], %s176_s24  ;;  %v8262_v12 = vor.u32 %v10962_v9, %v8261_v8  ;;  %v7303_v15 = vld [vmem:[#allocation8 + $0x78] sm:$0xf0]  ;;  %v10767_v21 = vld [vmem:[#allocation8 + $0x1e4] sm:$0xf] }
  0x51   :  { %v178_v36 = vld [vmem:[%s177_s27] ss:$8 sm:$0xf]  ;;  %s7234_s28 = smul.u32 48, %s185_s25  ;;  %s200_s2 = sshra.s32 %s7235_s13, 3  ;;  %v7306_v19 = vor.u32 %v10719_v14, %v7303_v15 }
  0x52   :  { %v179_v37 = vld [vmem:[%s177_s27] ss:$8 sm:$0x30]  ;;  %s203_s29 = sand.u32 7, %s7235_s13  ;;  %s7236_s30 = smul.u32 48, %s200_s2  ;;  %2154 = vmatpush.bf16.msrb.mxu1 %v8262_v12 }
  0x53   :  { %v180_v38 = vor.u32 %v179_v37, %v178_v36  ;;  %s191_s5 = sadd.s32 %s7234_s28, %s188_s26  ;;  %s215_s6 = sshra.s32 %s11869_s22, 3  ;;  %v7495_v22 = vld [vmem:[#allocation8 + $0x1f8] sm:$0xf0]  ;;  %2168 = vmatpush.bf16.msrb.mxu2 %v7306_v19  ;;  %v8045_v27 = vld [vmem:[#allocation8 + $0x630] sm:$0xf] }
  0x54   :  { %s206_s8 = sadd.s32 %s7236_s30, %s203_s29  ;;  %s192_s9 = scalar_lea.vmem [#allocation7], %s191_s5  ;;  %v7498_v25 = vor.u32 %v10767_v21, %v7495_v22  ;;  %v10908_v28 = vld [vmem:[#allocation8 + $0x644] sm:$0xf0]  ;;  %v8237_v30 = vld [vmem:[#allocation8 + $0x7b0] sm:$0xf] }
  0x55   :  { %182 = vst.msk [vmem:[#allocation2 + $0x6] ss:$8 sm:$0xf] %vm11836_vm0, %v180_v38  ;;  %v193_v39 = vld [vmem:[%s192_s9] ss:$8 sm:$0xf]  ;;  %v8046_v29 = vor.u32 %v10908_v28, %v8045_v27 }
  0x56   :  { %183 = vst.msk [vmem:[#allocation2 + $0x6] ss:$8 sm:$0x30] %vm11836_vm0, %v180_v38  ;;  %v194_v40 = vld [vmem:[%s192_s9] ss:$8 sm:$0x30]  ;;  %2182 = vmatpush.bf16.msrb.mxu3 %v7498_v25 }
  0x57   :  { %v195_v41 = vor.u32 %v194_v40, %v193_v39  ;;  %s218_s1 = sand.u32 7, %s11869_s22  ;;  %s207_s3 = scalar_lea.vmem [#allocation7], %s206_s8  ;;  %v10956_v31 = vld [vmem:[#allocation8 + $0x7c4] sm:$0xf0]  ;;  %2141 = vmatpush.bf16.msrb.mxu0 %v8046_v29  ;;  %v10713_v33 = vld [vmem:[#allocation8 + $0x34] sm:$0xf] }
  0x58   :  { %v208_v42 = vld [vmem:[%s207_s3] ss:$8 sm:$0xf]  ;;  %s7238_s10 = smul.u32 48, %s215_s6  ;;  %s230_s11 = sshra.s32 %s11871_s23, 3  ;;  %v8238_v32 = vor.u32 %v10956_v31, %v8237_v30 }
  0x59   :  { %v209_v43 = vld [vmem:[%s207_s3] ss:$8 sm:$0x30]  ;;  %197 = vst.msk [vmem:[#allocation2 + $0x7] ss:$8 sm:$0xf] %vm11836_vm0, %v195_v41 }
  0x5a   :  { %v210_v44 = vor.u32 %v209_v43, %v208_v42  ;;  %s233_s14 = sand.u32 7, %s11871_s23  ;;  %s7240_s15 = smul.u32 48, %s230_s11  ;;  %198 = vst.msk [vmem:[#allocation2 + $0x7] ss:$8 sm:$0x30] %vm11836_vm0, %v195_v41  ;;  %2155 = vmatpush.bf16.msrb.mxu1 %v8238_v32 }
  0x5b   :  { %s221_s12 = sadd.s32 %s7238_s10, %s218_s1  ;;  %s11891_s13 = sld [smem:[#allocation3 + $0xc]]  ;;  %v7279_v34 = vld [vmem:[#allocation8 + $0x48] sm:$0xf0]  ;;  %v10761_v35 = vld [vmem:[#allocation8 + $0x1b4] sm:$0xf] }
  0x5c   :  { %212 = vst.msk [vmem:[#allocation2 + $0x30] ss:$8 sm:$0xf] %vm11836_vm0, %v210_v44  ;;  %s236_s17 = sadd.s32 %s7240_s15, %s233_s14  ;;  %s222_s18 = scalar_lea.vmem [#allocation7], %s221_s12  ;;  %v7282_v39 = vor.u32 %v10713_v33, %v7279_v34  ;;  %v7471_v40 = vld [vmem:[#allocation8 + $0x1c8] sm:$0xf0] }
  0x5d   :  { %213 = vst.msk [vmem:[#allocation2 + $0x30] ss:$8 sm:$0x30] %vm11836_vm0, %v210_v44  ;;  %v223_v45 = vld [vmem:[%s222_s18] ss:$8 sm:$0xf]  ;;  %v7474_v44 = vor.u32 %v10761_v35, %v7471_v40 }
  0x5e   :  { %v224_v46 = vld [vmem:[%s222_s18] ss:$8 sm:$0x30]  ;;  %s237_s19 = scalar_lea.vmem [#allocation7], %s236_s17  ;;  %s11895_s20 = sld [smem:[#allocation3 + $0xd]]  ;;  %2169 = vmatpush.bf16.msrb.mxu2 %v7282_v39 }
  0x5f   :  { %v225_v47 = vor.u32 %v224_v46, %v223_v45  ;;  %v238_v48 = vld [vmem:[%s237_s19] ss:$8 sm:$0xf]  ;;  %s245_s21 = sshra.s32 %s7241_s16, 3  ;;  %s248_s22 = sand.u32 7, %s7241_s16  ;;  %2183 = vmatpush.bf16.msrb.mxu3 %v7474_v44 }
  0x60   :  { %v239_v49 = vld [vmem:[%s237_s19] ss:$8 sm:$0x30]  ;;  %s7242_s23 = smul.u32 48, %s245_s21  ;;  %s11901_s24 = sld [smem:[#allocation3 + $0xe]]  ;;  %v321_v38 = vld [vmem:[#allocation2 + $0x10] sm:$0xff] }
  0x61   :  { %227 = vst.msk [vmem:[#allocation2 + $0x31] ss:$8 sm:$0xf] %vm11836_vm0, %v225_v47  ;;  %v240_v50 = vor.u32 %v239_v49, %v238_v48  ;;  %s11903_s25 = sld [smem:[#allocation3 + $0xf]]  ;;  %s260_s27 = sshra.s32 %s11891_s13, 3  ;;  %v319_v36 = vld [vmem:[#allocation2] sm:$0xff] }
  0x62   :  { %228 = vst.msk [vmem:[#allocation2 + $0x31] ss:$8 sm:$0x30] %vm11836_vm0, %v225_v47  ;;  %s251_s26 = sadd.s32 %s7242_s23, %s248_s22  ;;  %s263_s28 = sand.u32 7, %s11891_s13  ;;  %v320_v37 = vld [vmem:[#allocation2 + $0x8] sm:$0xff]  ;;  %v322_v43 = vld [vmem:[#allocation2 + $0x18] sm:$0xff] }
  0x63   :  { %242 = vst.msk [vmem:[#allocation2 + $0x32] ss:$8 sm:$0xf] %vm11836_vm0, %v240_v50  ;;  %s252_s2 = scalar_lea.vmem [#allocation7], %s251_s26  ;;  %s7244_s29 = smul.u32 48, %s260_s27  ;;  %v323_v32 = vld [vmem:[#allocation2 + $0x20] sm:$0xff] }
  0x64   :  { %243 = vst.msk [vmem:[#allocation2 + $0x32] ss:$8 sm:$0x30] %vm11836_vm0, %v240_v50  ;;  %v253_v56 = vld [vmem:[%s252_s2] ss:$8 sm:$0xf] }
  0x65   :  { %v254_v57 = vld [vmem:[%s252_s2] ss:$8 sm:$0x30]  ;;  %s275_s30 = sshra.s32 %s11895_s20, 3  ;;  %s278_s5 = sand.u32 7, %s11895_s20 }
  0x66   :  { %v255_v59 = vor.u32 %v254_v57, %v253_v56  ;;  %s7246_s6 = smul.u32 48, %s275_s30  ;;  %s266_s8 = sadd.s32 %s7244_s29, %s263_s28  ;;  %v8021_v41 = vld [vmem:[#allocation8 + $0x600] sm:$0xf]  ;;  %v10902_v42 = vld [vmem:[#allocation8 + $0x614] sm:$0xf0] }
  0x67   :  { %s290_s9 = sshra.s32 %s11901_s24, 3  ;;  %s267_s3 = scalar_lea.vmem [#allocation7], %s266_s8  ;;  %v8022_v45 = vor.u32 %v10902_v42, %v8021_v41  ;;  %v8213_v46 = vld [vmem:[#allocation8 + $0x780] sm:$0xf]  ;;  %v10950_v16 = vld [vmem:[#allocation8 + $0x794] sm:$0xf0] }
  0x68   :  { %257 = vst.msk [vmem:[#allocation2 + $0x33] ss:$8 sm:$0xf] %vm11836_vm0, %v255_v59  ;;  %s281_s1 = sadd.s32 %s7246_s6, %s278_s5  ;;  %v268_v4 = vld [vmem:[%s267_s3] ss:$8 sm:$0xf]  ;;  %v8214_v48 = vor.u32 %v10950_v16, %v8213_v46 }
  0x69   :  { %258 = vst.msk [vmem:[#allocation2 + $0x33] ss:$8 sm:$0x30] %vm11836_vm0, %v255_v59  ;;  %v269_v5 = vld [vmem:[%s267_s3] ss:$8 sm:$0x30]  ;;  %2142 = vmatpush.bf16.msrb.mxu0 %v8022_v45 }
  0x6a   :  { %v270_v7 = vor.u32 %v269_v5, %v268_v4  ;;  %s293_s10 = sand.u32 7, %s11901_s24  ;;  %s282_s11 = scalar_lea.vmem [#allocation7], %s281_s1  ;;  %v10707_v47 = vld [vmem:[#allocation8 + $0x4] sm:$0xf]  ;;  %v7255_v49 = vld [vmem:[#allocation8 + $0x18] sm:$0xf0]  ;;  %2156 = vmatpush.bf16.msrb.mxu1 %v8214_v48 }
  0x6b   :  { %v283_v10 = vld [vmem:[%s282_s11] ss:$8 sm:$0xf]  ;;  %s7248_s14 = smul.u32 48, %s290_s9  ;;  %s305_s15 = sshra.s32 %s11903_s25, 3  ;;  %v7258_v52 = vor.u32 %v10707_v47, %v7255_v49 }
  0x6c   :  { %v284_v11 = vld [vmem:[%s282_s11] ss:$8 sm:$0x30]  ;;  %272 = vst.msk [vmem:[#allocation2 + $0x34] ss:$8 sm:$0xf] %vm11836_vm0, %v270_v7 }
  0x6d   :  { %v285_v13 = vor.u32 %v284_v11, %v283_v10  ;;  %s308_s12 = sand.u32 7, %s11903_s25  ;;  %s7250_s16 = smul.u32 48, %s305_s15  ;;  %273 = vst.msk [vmem:[#allocation2 + $0x34] ss:$8 sm:$0x30] %vm11836_vm0, %v270_v7  ;;  %2170 = vmatpush.bf16.msrb.mxu2 %v7258_v52 }
  0x6e   :  { %s296_s17 = sadd.s32 %s7248_s14, %s293_s10  ;;  %v10755_v50 = vld [vmem:[#allocation8 + $0x184] sm:$0xf]  ;;  %v7447_v51 = vld [vmem:[#allocation8 + $0x198] sm:$0xf0]  ;;  %v10845_v53 = vld [vmem:[#allocation8 + $0x454] sm:$0xf] }
  0x6f   :  { %287 = vst.msk [vmem:[#allocation2 + $0x35] ss:$8 sm:$0xf] %vm11836_vm0, %v285_v13  ;;  %s311_s18 = sadd.s32 %s7250_s16, %s308_s12  ;;  %s297_s13 = scalar_lea.vmem [#allocation7], %s296_s17  ;;  %v7807_v54 = vld [vmem:[#allocation8 + $0x468] sm:$0xf0]  ;;  %v7450_v59 = vor.u32 %v10755_v50, %v7447_v51 }
  0x70   :  { %288 = vst.msk [vmem:[#allocation2 + $0x35] ss:$8 sm:$0x30] %vm11836_vm0, %v285_v13  ;;  %v298_v17 = vld [vmem:[%s297_s13] ss:$8 sm:$0xf]  ;;  %v7810_v0 = vor.u32 %v10845_v53, %v7807_v54 }
  0x71   :  { %v299_v18 = vld [vmem:[%s297_s13] ss:$8 sm:$0x30]  ;;  %s312_s19 = scalar_lea.vmem [#allocation7], %s311_s18  ;;  %v10893_v55 = vld [vmem:[#allocation8 + $0x5d4] sm:$0xf]  ;;  %2184 = vmatpush.bf16.msrb.mxu3 %v7450_v59 }
  0x72   :  { %v300_v20 = vor.u32 %v299_v18, %v298_v17  ;;  %v313_v23 = vld [vmem:[%s312_s19] ss:$8 sm:$0xf]  ;;  %v7999_v1 = vld [vmem:[#allocation8 + $0x5e8] sm:$0xf0]  ;;  %s11778_s20 = smov [#allocation11]  }
  0x73   :  { %v314_v24 = vld [vmem:[%s312_s19] ss:$8 sm:$0x30]  ;;  %v10941_v2 = vld [vmem:[#allocation8 + $0x754] sm:$0xf]  ;;  %v8002_v4 = vor.u32 %v10893_v55, %v7999_v1  ;;  %s7155_s21 = sshll.u32 %s11778_s20, 4  ;;  %s7156_s21 = int_to_ptr.vmem [resolvable:$true] %s7155_s21 }
  0x74   :  { %302 = vst.msk [vmem:[#allocation2 + $0x36] ss:$8 sm:$0xf] %vm11836_vm0, %v300_v20  ;;  %v315_v26 = vor.u32 %v314_v24, %v313_v23  ;;  %v8191_v5 = vld [vmem:[#allocation8 + $0x768] sm:$0xf0]  ;;  %s7157_s24 = sshll.u32 %s12259_s4, 4  ;;  %s7158_s24 = int_to_ptr.hbm [resolvable:$true] %s7157_s24 }
  0x75   :  { %303 = vst.msk [vmem:[#allocation2 + $0x36] ss:$8 sm:$0x30] %vm11836_vm0, %v300_v20  ;;  %v10989_v6 = vld [vmem:[#allocation8 + $0x8d4] sm:$0xf]  ;;  %v8194_v8 = vor.u32 %v10941_v2, %v8191_v5 }
  0x76   :  { %317 = vst.msk [vmem:[#allocation2 + $0x37] ss:$8 sm:$0xf] %vm11836_vm0, %v315_v26  ;;  %v8383_v7 = vld [vmem:[#allocation8 + $0x8e8] sm:$0xf0] }
  0x77   :  { %318 = vst.msk [vmem:[#allocation2 + $0x37] ss:$8 sm:$0x30] %vm11836_vm0, %v315_v26  ;;  %v8386_v9 = vor.u32 %v10989_v6, %v8383_v7  ;;  %v10839_v10 = vld [vmem:[#allocation8 + $0x424] sm:$0xf] }
  0x78   :  { %v7783_v11 = vld [vmem:[#allocation8 + $0x438] sm:$0xf0]  ;;  %v10887_v12 = vld [vmem:[#allocation8 + $0x5a4] sm:$0xf]  ;;  %v10833_v22 = vld [vmem:[#allocation8 + $0x3f4] sm:$0xf] }
  0x79   :  { %v7975_v13 = vld [vmem:[#allocation8 + $0x5b8] sm:$0xf0]  ;;  %v7786_v14 = vor.u32 %v10839_v10, %v7783_v11  ;;  %v10935_v15 = vld [vmem:[#allocation8 + $0x724] sm:$0xf]  ;;  %v7759_v23 = vld [vmem:[#allocation8 + $0x408] sm:$0xf0] }
  0x7a   :  { %v8167_v17 = vld [vmem:[#allocation8 + $0x738] sm:$0xf0]  ;;  %v10983_v18 = vld [vmem:[#allocation8 + $0x8a4] sm:$0xf]  ;;  %v7978_v19 = vor.u32 %v10887_v12, %v7975_v13  ;;  %v10881_v25 = vld [vmem:[#allocation8 + $0x574] sm:$0xf]  ;;  %v7762_v31 = vor.u32 %v10833_v22, %v7759_v23 }
  0x7b   :  { %v8170_v20 = vor.u32 %v10935_v15, %v8167_v17  ;;  %v8359_v21 = vld [vmem:[#allocation8 + $0x8b8] sm:$0xf0]  ;;  %v7951_v26 = vld [vmem:[#allocation8 + $0x588] sm:$0xf0]  ;;  %v10929_v27 = vld [vmem:[#allocation8 + $0x6f4] sm:$0xf] }
  0x7c   :  { %v8362_v24 = vor.u32 %v10983_v18, %v8359_v21  ;;  %v8143_v28 = vld [vmem:[#allocation8 + $0x708] sm:$0xf0]  ;;  %v10977_v29 = vld [vmem:[#allocation8 + $0x874] sm:$0xf]  ;;  %v7954_v33 = vor.u32 %v10881_v25, %v7951_v26  ;;  %v10827_v35 = vld [vmem:[#allocation8 + $0x3c4] sm:$0xf] }
  0x7d   :  { %v325_v56 = vld [vmem:[#allocation2 + $0x30] sm:$0xff]  ;;  %v326_v57 = vld [vmem:[#allocation2 + $0x38] sm:$0xff]  ;;  %v327_v58 = vld [vmem:[#allocation2 + $0x40] sm:$0xff]  ;;  %v8146_v34 = vor.u32 %v10929_v27, %v8143_v28 }
  0x7e   :  { %v11935_v60 = vpack.c.bf16 %v325_v56, %v319_v36  ;;  %v11937_v61 = vpack.c.bf16 %v326_v57, %v320_v37  ;;  %v11939_v62 = vpack.c.bf16 %v327_v58, %v321_v38  ;;  %v328_v63 = vld [vmem:[#allocation2 + $0x48] sm:$0xff]  ;;  %v7735_v36 = vld [vmem:[#allocation8 + $0x3d8] sm:$0xf0]  ;;  %v10875_v37 = vld [vmem:[#allocation8 + $0x544] sm:$0xf] }
  0x7f   :  { %v11941_v3 = vpack.c.bf16 %v328_v63, %v322_v43  ;;  %v8335_v30 = vld [vmem:[#allocation8 + $0x888] sm:$0xf0]  ;;  %v7927_v39 = vld [vmem:[#allocation8 + $0x558] sm:$0xf0]  ;;  %v10923_v40 = vld [vmem:[#allocation8 + $0x6c4] sm:$0xf]  ;;  %v7738_v45 = vor.u32 %v10827_v35, %v7735_v36 }
  0x80   :  { %2087 = vmatmul.bf16.vlgmr.msra.gmra.mxu0 %v11935_v60  ;;  %2101 = vmatmul.bf16.vlgmr.msra.gmra.mxu1 %v11937_v61  ;;  %v8338_v38 = vor.u32 %v10977_v29, %v8335_v30  ;;  %v8119_v41 = vld [vmem:[#allocation8 + $0x6d8] sm:$0xf0]  ;;  %v329_v42 = vld [vmem:[#allocation2 + $0x50] sm:$0xff]  ;;  %v324_v43 = vld [vmem:[#allocation2 + $0x28] sm:$0xff]  ;;  %v7930_v47 = vor.u32 %v10875_v37, %v7927_v39 }
  0x81   :  { %2115 = vmatmul.bf16.vlgmr.msra.gmra.mxu2 %v11939_v62  ;;  %2129 = vmatmul.bf16.vlgmr.msra.gmra.mxu3 %v11941_v3  ;;  %v330_v44 = vld [vmem:[#allocation2 + $0x58] sm:$0xff]  ;;  %v10971_v46 = vld [vmem:[#allocation8 + $0x844] sm:$0xf]  ;;  %v8122_v48 = vor.u32 %v10923_v40, %v8119_v41  ;;  %v10821_v49 = vld [vmem:[#allocation8 + $0x394] sm:$0xf]  ;;  %v11947_v52 = vpack.c.bf16 %v329_v42, %v323_v32 }
  0x82   :  { %2191 = vmatpush.bf16.msra.mxu0 %v7810_v0  ;;  %2205 = vmatpush.bf16.msra.mxu1 %v8002_v4  ;;  %v8311_v16 = vld [vmem:[#allocation8 + $0x858] sm:$0xf0]  ;;  %v7711_v50 = vld [vmem:[#allocation8 + $0x3a8] sm:$0xf0]  ;;  %v10869_v51 = vld [vmem:[#allocation8 + $0x514] sm:$0xf]  ;;  %v11949_v53 = vpack.c.bf16 %v330_v44, %v324_v43 }
  0x83   :  { %2219 = vmatpush.bf16.msra.mxu2 %v8194_v8  ;;  %2233 = vmatpush.bf16.msra.mxu3 %v8386_v9  ;;  %v7903_v54 = vld [vmem:[#allocation8 + $0x528] sm:$0xf0]  ;;  %v10917_v55 = vld [vmem:[#allocation8 + $0x694] sm:$0xf]  ;;  %v8314_v57 = vor.u32 %v10971_v46, %v8311_v16  ;;  %v7714_v58 = vor.u32 %v10821_v49, %v7711_v50  ;;  %v10815_v2 = vld [vmem:[#allocation8 + $0x364] sm:$0xf] }
  0x84   :  { %v8095_v56 = vld [vmem:[#allocation8 + $0x6a8] sm:$0xf0]  ;;  %v10965_v59 = vld [vmem:[#allocation8 + $0x814] sm:$0xf]  ;;  %v7906_v0 = vor.u32 %v10869_v51, %v7903_v54  ;;  %v7687_v4 = vld [vmem:[#allocation8 + $0x378] sm:$0xf0] }
  0x85   :  { %v8287_v63 = vld [vmem:[#allocation8 + $0x828] sm:$0xf0]  ;;  %v8098_v1 = vor.u32 %v10917_v55, %v8095_v56  ;;  %v10863_v5 = vld [vmem:[#allocation8 + $0x4e4] sm:$0xf]  ;;  %v7879_v6 = vld [vmem:[#allocation8 + $0x4f8] sm:$0xf0]  ;;  %v7690_v10 = vor.u32 %v10815_v2, %v7687_v4 }
  0x86   :  { %2192 = vmatpush.bf16.msra.mxu0 %v7786_v14  ;;  %2206 = vmatpush.bf16.msra.mxu1 %v7978_v19  ;;  %v10911_v7 = vld [vmem:[#allocation8 + $0x664] sm:$0xf]  ;;  %v8071_v8 = vld [vmem:[#allocation8 + $0x678] sm:$0xf0]  ;;  %v8290_v9 = vor.u32 %v10965_v59, %v8287_v63  ;;  %v7882_v13 = vor.u32 %v10863_v5, %v7879_v6  ;;  %v10809_v15 = vld [vmem:[#allocation8 + $0x334] sm:$0xf] }
  0x87   :  { %2220 = vmatpush.bf16.msra.mxu2 %v8170_v20  ;;  %2234 = vmatpush.bf16.msra.mxu3 %v8362_v24  ;;  %v10959_v11 = vld [vmem:[#allocation8 + $0x7e4] sm:$0xf]  ;;  %v8263_v12 = vld [vmem:[#allocation8 + $0x7f8] sm:$0xf0]  ;;  %v8074_v14 = vor.u32 %v10911_v7, %v8071_v8  ;;  %v7663_v17 = vld [vmem:[#allocation8 + $0x348] sm:$0xf0] }
  0x88   :  { %v10857_v18 = vld [vmem:[#allocation8 + $0x4b4] sm:$0xf]  ;;  %v7855_v19 = vld [vmem:[#allocation8 + $0x4c8] sm:$0xf0]  ;;  %v8266_v22 = vor.u32 %v10959_v11, %v8263_v12  ;;  %v7666_v24 = vor.u32 %v10809_v15, %v7663_v17  ;;  %v10803_v26 = vld [vmem:[#allocation8 + $0x304] sm:$0xf] }
  0x89   :  { %v10905_v20 = vld [vmem:[#allocation8 + $0x634] sm:$0xf]  ;;  %v8047_v21 = vld [vmem:[#allocation8 + $0x648] sm:$0xf0]  ;;  %v7639_v27 = vld [vmem:[#allocation8 + $0x318] sm:$0xf0]  ;;  %v7858_v28 = vor.u32 %v10857_v18, %v7855_v19 }
  0x8a   :  { %2193 = vmatpush.bf16.msra.mxu0 %v7762_v31  ;;  %2207 = vmatpush.bf16.msra.mxu1 %v7954_v33  ;;  %v10953_v23 = vld [vmem:[#allocation8 + $0x7b4] sm:$0xf]  ;;  %v8239_v25 = vld [vmem:[#allocation8 + $0x7c8] sm:$0xf0]  ;;  %v8050_v29 = vor.u32 %v10905_v20, %v8047_v21  ;;  %v10851_v30 = vld [vmem:[#allocation8 + $0x484] sm:$0xf]  ;;  %v7642_v40 = vor.u32 %v10803_v26, %v7639_v27 }
  0x8b   :  { %2221 = vmatpush.bf16.msra.mxu2 %v8146_v34  ;;  %2235 = vmatpush.bf16.msra.mxu3 %v8338_v38  ;;  %v7831_v31 = vld [vmem:[#allocation8 + $0x498] sm:$0xf0]  ;;  %v10899_v32 = vld [vmem:[#allocation8 + $0x604] sm:$0xf]  ;;  %v7429_v35 = vld [vmem:[#allocation8 + $0x158] sm:$0xf]  ;;  %v8242_v36 = vor.u32 %v10953_v23, %v8239_v25 }
  0x8c   :  { %v8023_v33 = vld [vmem:[#allocation8 + $0x618] sm:$0xf0]  ;;  %v10947_v34 = vld [vmem:[#allocation8 + $0x784] sm:$0xf]  ;;  %v10753_v37 = vld [vmem:[#allocation8 + $0x16c] sm:$0xf0]  ;;  %v7834_v44 = vor.u32 %v10851_v30, %v7831_v31 }
  0x8d   :  { %v7621_v38 = vld [vmem:[#allocation8 + $0x2d8] sm:$0xf]  ;;  %v10801_v39 = vld [vmem:[#allocation8 + $0x2ec] sm:$0xf0]  ;;  %v8215_v41 = vld [vmem:[#allocation8 + $0x798] sm:$0xf0] }
  0x8e   :  { %2194 = vmatpush.bf16.msra.mxu0 %v7738_v45  ;;  %2208 = vmatpush.bf16.msra.mxu1 %v7930_v47  ;;  %v7813_v42 = vld [vmem:[#allocation8 + $0x458] sm:$0xf]  ;;  %v10849_v43 = vld [vmem:[#allocation8 + $0x46c] sm:$0xf0]  ;;  %v8026_v45 = vor.u32 %v10899_v32, %v8023_v33  ;;  %v7430_v47 = vor.u32 %v10753_v37, %v7429_v35  ;;  %v8218_v49 = vor.u32 %v10947_v34, %v8215_v41  ;;  %v7405_v51 = vld [vmem:[#allocation8 + $0x128] sm:$0xf] }
  0x8f   :  { %2222 = vmatpush.bf16.msra.mxu2 %v8122_v48  ;;  %2236 = vmatpush.bf16.msra.mxu3 %v8314_v57  ;;  %v8005_v46 = vld [vmem:[#allocation8 + $0x5d8] sm:$0xf]  ;;  %v10897_v16 = vld [vmem:[#allocation8 + $0x5ec] sm:$0xf0]  ;;  %v7622_v48 = vor.u32 %v10801_v39, %v7621_v38  ;;  %v7814_v50 = vor.u32 %v10849_v43, %v7813_v42  ;;  %v10747_v54 = vld [vmem:[#allocation8 + $0x13c] sm:$0xf0] }
  0x90   :  { %2143 = vmatmul.bf16.vlgmr.msrb.gmra.mxu0 %v11947_v52  ;;  %2157 = vmatmul.bf16.vlgmr.msrb.gmra.mxu1 %v11949_v53  ;;  %v7597_v55 = vld [vmem:[#allocation8 + $0x2a8] sm:$0xf]  ;;  %v8006_v56 = vor.u32 %v10897_v16, %v8005_v46  ;;  %v10795_v57 = vld [vmem:[#allocation8 + $0x2bc] sm:$0xf0]  ;;  %v7381_v5 = vld [vmem:[#allocation8 + $0xf8] sm:$0xf] }
  0x91   :  { %2171 = vmatmul.bf16.vlgmr.msrb.gmra.mxu2 %v11935_v60  ;;  %2185 = vmatmul.bf16.vlgmr.msrb.gmra.mxu3 %v11937_v61  ;;  %v10843_v59 = vld [vmem:[#allocation8 + $0x43c] sm:$0xf0]  ;;  %v7981_v63 = vld [vmem:[#allocation8 + $0x5a8] sm:$0xf]  ;;  %v7598_v2 = vor.u32 %v10795_v57, %v7597_v55  ;;  %v10741_v6 = vld [vmem:[#allocation8 + $0x10c] sm:$0xf0] }
  0x92   :  { %2195 = vmatpush.bf16.msra.mxu0 %v7714_v58  ;;  %2209 = vmatpush.bf16.msra.mxu1 %v7906_v0  ;;  %v7789_v58 = vld [vmem:[#allocation8 + $0x428] sm:$0xf]  ;;  %v10891_v0 = vld [vmem:[#allocation8 + $0x5bc] sm:$0xf0]  ;;  %v7573_v7 = vld [vmem:[#allocation8 + $0x278] sm:$0xf] }
  0x93   :  { %2223 = vmatpush.bf16.msra.mxu2 %v8098_v1  ;;  %2237 = vmatpush.bf16.msra.mxu3 %v8290_v9  ;;  %v7406_v1 = vor.u32 %v10747_v54, %v7405_v51  ;;  %v7790_v4 = vor.u32 %v10843_v59, %v7789_v58  ;;  %v7982_v8 = vor.u32 %v10891_v0, %v7981_v63  ;;  %v10789_v9 = vld [vmem:[#allocation8 + $0x28c] sm:$0xf0]  ;;  %v7957_v12 = vld [vmem:[#allocation8 + $0x578] sm:$0xf]  ;;  %v7357_v18 = vld [vmem:[#allocation8 + $0xc8] sm:$0xf] }
  0x94   :  { %v10837_v11 = vld [vmem:[#allocation8 + $0x40c] sm:$0xf0]  ;;  %v7574_v15 = vor.u32 %v10789_v9, %v7573_v7  ;;  %v10735_v19 = vld [vmem:[#allocation8 + $0xdc] sm:$0xf0]  ;;  %v7549_v20 = vld [vmem:[#allocation8 + $0x248] sm:$0xf] }
  0x95   :  { %v7741_v23 = vld [vmem:[#allocation8 + $0x3c8] sm:$0xf]  ;;  %v10879_v26 = vld [vmem:[#allocation8 + $0x55c] sm:$0xf0]  ;;  %v7358_v27 = vor.u32 %v10735_v19, %v7357_v18  ;;  %v7333_v30 = vld [vmem:[#allocation8 + $0x98] sm:$0xf] }
  0x96   :  { %2196 = vmatpush.bf16.msra.mxu0 %v7690_v10  ;;  %2210 = vmatpush.bf16.msra.mxu1 %v7882_v13  ;;  %v7765_v10 = vld [vmem:[#allocation8 + $0x3f8] sm:$0xf]  ;;  %v10885_v13 = vld [vmem:[#allocation8 + $0x58c] sm:$0xf0]  ;;  %v7933_v25 = vld [vmem:[#allocation8 + $0x548] sm:$0xf] }
  0x97   :  { %2224 = vmatpush.bf16.msra.mxu2 %v8074_v14  ;;  %2238 = vmatpush.bf16.msra.mxu3 %v8266_v22  ;;  %v7382_v14 = vor.u32 %v10741_v6, %v7381_v5  ;;  %v7766_v17 = vor.u32 %v10837_v11, %v7765_v10  ;;  %v7958_v21 = vor.u32 %v10885_v13, %v7957_v12  ;;  %v10783_v22 = vld [vmem:[#allocation8 + $0x25c] sm:$0xf0]  ;;  %v10729_v31 = vld [vmem:[#allocation8 + $0xac] sm:$0xf0]  ;;  %v7525_v32 = vld [vmem:[#allocation8 + $0x218] sm:$0xf] }
  0x98   :  { %v7934_v33 = vor.u32 %v10879_v26, %v7933_v25  ;;  %v10777_v34 = vld [vmem:[#allocation8 + $0x22c] sm:$0xf0]  ;;  %v7717_v35 = vld [vmem:[#allocation8 + $0x398] sm:$0xf]  ;;  %v7334_v39 = vor.u32 %v10729_v31, %v7333_v30  ;;  %v7309_v42 = vld [vmem:[#allocation8 + $0x68] sm:$0xf] }
  0x99   :  { %v7909_v37 = vld [vmem:[#allocation8 + $0x518] sm:$0xf]  ;;  %v10873_v38 = vld [vmem:[#allocation8 + $0x52c] sm:$0xf0]  ;;  %v10723_v43 = vld [vmem:[#allocation8 + $0x7c] sm:$0xf0] }
  0x9a   :  { %2197 = vmatpush.bf16.msra.mxu0 %v7666_v24  ;;  %2211 = vmatpush.bf16.msra.mxu1 %v7858_v28  ;;  %v10831_v24 = vld [vmem:[#allocation8 + $0x3dc] sm:$0xf0]  ;;  %v7550_v28 = vor.u32 %v10783_v22, %v7549_v20  ;;  %v7693_v16 = vld [vmem:[#allocation8 + $0x368] sm:$0xf]  ;;  %v7285_v55 = vld [vmem:[#allocation8 + $0x38] sm:$0xf] }
  0x9b   :  { %2225 = vmatpush.bf16.msra.mxu2 %v8050_v29  ;;  %2239 = vmatpush.bf16.msra.mxu3 %v8242_v36  ;;  %v7742_v29 = vor.u32 %v10831_v24, %v7741_v23  ;;  %v10825_v36 = vld [vmem:[#allocation8 + $0x3ac] sm:$0xf0]  ;;  %v10771_v46 = vld [vmem:[#allocation8 + $0x1fc] sm:$0xf0]  ;;  %v7477_v57 = vld [vmem:[#allocation8 + $0x1b8] sm:$0xf] }
  0x9c   :  { %v7718_v41 = vor.u32 %v10825_v36, %v7717_v35  ;;  %v10765_v59 = vld [vmem:[#allocation8 + $0x1cc] sm:$0xf0]  ;;  %v7669_v63 = vld [vmem:[#allocation8 + $0x338] sm:$0xf]  ;;  %v7261_v5 = vld [vmem:[#allocation8 + $0x8] sm:$0xf] }
  0x9d   :  { %v10813_v0 = vld [vmem:[#allocation8 + $0x34c] sm:$0xf0]  ;;  %v10711_v6 = vld [vmem:[#allocation8 + $0x1c] sm:$0xf0]  ;;  %v7478_v7 = vor.u32 %v10765_v59, %v7477_v57  ;;  %v7453_v9 = vld [vmem:[#allocation8 + $0x188] sm:$0xf] }
  0x9e   :  { %2198 = vmatpush.bf16.msra.mxu0 %v7642_v40  ;;  %2212 = vmatpush.bf16.msra.mxu1 %v7834_v44  ;;  %v7526_v40 = vor.u32 %v10777_v34, %v7525_v32  ;;  %v7501_v44 = vld [vmem:[#allocation8 + $0x1e8] sm:$0xf]  ;;  %v10759_v10 = vld [vmem:[#allocation8 + $0x19c] sm:$0xf0]  ;;  %v10945_v18 = vld [vmem:[#allocation8 + $0x76c] sm:$0xf0]  ;;  %v7262_v20 = vor.u32 %v10711_v6, %v7261_v5 }
  0x9f   :  { %2226 = vmatpush.bf16.msra.mxu2 %v8026_v45  ;;  %2240 = vmatpush.bf16.msra.mxu3 %v8218_v49  ;;  %v7910_v45 = vor.u32 %v10873_v38, %v7909_v37  ;;  %v10867_v49 = vld [vmem:[#allocation8 + $0x4fc] sm:$0xf0]  ;;  %v7502_v51 = vor.u32 %v10771_v46, %v7501_v44  ;;  %v7645_v11 = vld [vmem:[#allocation8 + $0x308] sm:$0xf]  ;;  %v8389_v19 = vld [vmem:[#allocation8 + $0x8d8] sm:$0xf]  ;;  %v7454_v24 = vor.u32 %v10759_v10, %v7453_v9 }
  0xa0   :  { %v10807_v13 = vld [vmem:[#allocation8 + $0x31c] sm:$0xf0]  ;;  %v10750_v22 = vld [vmem:[#allocation8 + $0x15c] sm:$0xf]  ;;  %v7431_v23 = vld [vmem:[#allocation8 + $0x170] sm:$0xf0] }
  0xa1   :  { %2199 = vmatmul.bf16.vlgmr.msra.gmra.mxu0 %v11939_v62  ;;  %2213 = vmatmul.bf16.vlgmr.msra.gmra.mxu1 %v11941_v3  ;;  %v7646_v25 = vor.u32 %v10807_v13, %v7645_v11  ;;  %v10798_v26 = vld [vmem:[#allocation8 + $0x2dc] sm:$0xf]  ;;  %v7434_v31 = vor.u32 %v10750_v22, %v7431_v23  ;;  %v8173_v32 = vld [vmem:[#allocation8 + $0x728] sm:$0xf]  ;;  %v10987_v36 = vld [vmem:[#allocation8 + $0x8bc] sm:$0xf0] }
  0xa2   :  { %2247 = vmatpush.bf16.msrb.mxu0 %v7430_v47  ;;  %2261 = vmatpush.bf16.msrb.mxu1 %v7622_v48  ;;  %v10819_v47 = vld [vmem:[#allocation8 + $0x37c] sm:$0xf0]  ;;  %v7885_v48 = vld [vmem:[#allocation8 + $0x4e8] sm:$0xf]  ;;  %v10744_v37 = vld [vmem:[#allocation8 + $0x12c] sm:$0xf] }
  0xa3   :  { %2275 = vmatpush.bf16.msrb.mxu2 %v7814_v50  ;;  %2289 = vmatpush.bf16.msrb.mxu3 %v8006_v56  ;;  %v7310_v50 = vor.u32 %v10723_v43, %v7309_v42  ;;  %v7694_v54 = vor.u32 %v10819_v47, %v7693_v16  ;;  %v10717_v56 = vld [vmem:[#allocation8 + $0x4c] sm:$0xf0]  ;;  %v7886_v58 = vor.u32 %v10867_v49, %v7885_v48  ;;  %v8365_v34 = vld [vmem:[#allocation8 + $0x8a8] sm:$0xf]  ;;  %v7407_v38 = vld [vmem:[#allocation8 + $0x140] sm:$0xf0] }
  0xa4   :  { %2227 = vmatmul.bf16.vlgmr.msra.gmra.mxu2 %v11947_v52  ;;  %2241 = vmatmul.bf16.vlgmr.msra.gmra.mxu3 %v11949_v53  ;;  %v8366_v42 = vor.u32 %v10987_v36, %v8365_v34  ;;  %v7410_v43 = vor.u32 %v10744_v37, %v7407_v38  ;;  %v8149_v44 = vld [vmem:[#allocation8 + $0x6f8] sm:$0xf]  ;;  %v10981_v47 = vld [vmem:[#allocation8 + $0x88c] sm:$0xf0]  ;;  %v10738_v48 = vld [vmem:[#allocation8 + $0xfc] sm:$0xf] }
  0xa5   :  { %v8341_v46 = vld [vmem:[#allocation8 + $0x878] sm:$0xf]  ;;  %v7383_v49 = vld [vmem:[#allocation8 + $0x110] sm:$0xf0]  ;;  %v8125_v57 = vld [vmem:[#allocation8 + $0x6c8] sm:$0xf] }
  0xa6   :  { %2248 = vmatpush.bf16.msrb.mxu0 %v7406_v1  ;;  %2262 = vmatpush.bf16.msrb.mxu1 %v7598_v2  ;;  %v7861_v1 = vld [vmem:[#allocation8 + $0x4b8] sm:$0xf]  ;;  %v10861_v2 = vld [vmem:[#allocation8 + $0x4cc] sm:$0xf0]  ;;  %v8317_v59 = vld [vmem:[#allocation8 + $0x848] sm:$0xf] }
  0xa7   :  { %2276 = vmatpush.bf16.msrb.mxu2 %v7790_v4  ;;  %2290 = vmatpush.bf16.msrb.mxu3 %v7982_v8  ;;  %v7286_v4 = vor.u32 %v10717_v56, %v7285_v55  ;;  %v7670_v8 = vor.u32 %v10813_v0, %v7669_v63  ;;  %v7862_v12 = vor.u32 %v10861_v2, %v7861_v1  ;;  %v10975_v0 = vld [vmem:[#allocation8 + $0x85c] sm:$0xf0]  ;;  %v10732_v1 = vld [vmem:[#allocation8 + $0xcc] sm:$0xf]  ;;  %v7359_v2 = vld [vmem:[#allocation8 + $0xe0] sm:$0xf0] }
  0xa8   :  { %v8342_v55 = vor.u32 %v10981_v47, %v8341_v46  ;;  %v7386_v56 = vor.u32 %v10738_v48, %v7383_v49  ;;  %v7551_v5 = vld [vmem:[#allocation8 + $0x260] sm:$0xf0]  ;;  %v8101_v9 = vld [vmem:[#allocation8 + $0x698] sm:$0xf]  ;;  %v10921_v10 = vld [vmem:[#allocation8 + $0x6ac] sm:$0xf0] }
  0xa9   :  { %v8293_v11 = vld [vmem:[#allocation8 + $0x818] sm:$0xf]  ;;  %v10969_v13 = vld [vmem:[#allocation8 + $0x82c] sm:$0xf0]  ;;  %v8077_v22 = vld [vmem:[#allocation8 + $0x668] sm:$0xf] }
  0xaa   :  { %2249 = vmatpush.bf16.msrb.mxu0 %v7382_v14  ;;  %2263 = vmatpush.bf16.msrb.mxu1 %v7574_v15  ;;  %v7837_v14 = vld [vmem:[#allocation8 + $0x488] sm:$0xf]  ;;  %v10855_v15 = vld [vmem:[#allocation8 + $0x49c] sm:$0xf0]  ;;  %v8053_v34 = vld [vmem:[#allocation8 + $0x638] sm:$0xf] }
  0xab   :  { %2277 = vmatpush.bf16.msrb.mxu2 %v7766_v17  ;;  %2291 = vmatpush.bf16.msrb.mxu3 %v7958_v21  ;;  %v8197_v17 = vld [vmem:[#allocation8 + $0x758] sm:$0xf]  ;;  %v10993_v21 = vld [vmem:[#allocation8 + $0x8ec] sm:$0xf0]  ;;  %v10915_v23 = vld [vmem:[#allocation8 + $0x67c] sm:$0xf0] }
  0xac   :  { %v8390_v30 = vor.u32 %v10993_v21, %v8389_v19  ;;  %v8102_v19 = vor.u32 %v10921_v10, %v8101_v9  ;;  %v8245_v36 = vld [vmem:[#allocation8 + $0x7b8] sm:$0xf]  ;;  %v10957_v38 = vld [vmem:[#allocation8 + $0x7cc] sm:$0xf0]  ;;  %v8221_v47 = vld [vmem:[#allocation8 + $0x788] sm:$0xf] }
  0xad   :  { %v8246_v46 = vor.u32 %v10957_v38, %v8245_v36  ;;  %v10951_v48 = vld [vmem:[#allocation8 + $0x79c] sm:$0xf0]  ;;  %v10708_v49 = vld [vmem:[#allocation8 + $0xc] sm:$0xf] }
  0xae   :  { %2250 = vmatpush.bf16.msrb.mxu0 %v7358_v27  ;;  %2264 = vmatpush.bf16.msrb.mxu1 %v7550_v28  ;;  %v7623_v27 = vld [vmem:[#allocation8 + $0x2f0] sm:$0xf0]  ;;  %v7838_v28 = vor.u32 %v10855_v15, %v7837_v14  ;;  %v10726_v14 = vld [vmem:[#allocation8 + $0x9c] sm:$0xf]  ;;  %v10828_v36 = vld [vmem:[#allocation8 + $0x3cc] sm:$0xf] }
  0xaf   :  { %2278 = vmatpush.bf16.msrb.mxu2 %v7742_v29  ;;  %2292 = vmatpush.bf16.msrb.mxu3 %v7934_v33  ;;  %v8198_v29 = vor.u32 %v10945_v18, %v8197_v17  ;;  %v10939_v33 = vld [vmem:[#allocation8 + $0x73c] sm:$0xf0]  ;;  %v7626_v35 = vor.u32 %v10798_v26, %v7623_v27  ;;  %v7335_v15 = vld [vmem:[#allocation8 + $0xb0] sm:$0xf0]  ;;  %v10774_v17 = vld [vmem:[#allocation8 + $0x21c] sm:$0xf] }
  0xb0   :  { %v7527_v18 = vld [vmem:[#allocation8 + $0x230] sm:$0xf0]  ;;  %v7338_v21 = vor.u32 %v10726_v14, %v7335_v15  ;;  %v10963_v26 = vld [vmem:[#allocation8 + $0x7fc] sm:$0xf0]  ;;  %v10720_v27 = vld [vmem:[#allocation8 + $0x6c] sm:$0xf] }
  0xb1   :  { %v7983_v15 = vld [vmem:[#allocation8 + $0x5c0] sm:$0xf0]  ;;  %v10876_v38 = vld [vmem:[#allocation8 + $0x54c] sm:$0xf] }
  0xb2   :  { %2251 = vmatpush.bf16.msrb.mxu0 %v7334_v39  ;;  %2265 = vmatpush.bf16.msrb.mxu1 %v7526_v40  ;;  %v10792_v39 = vld [vmem:[#allocation8 + $0x2ac] sm:$0xf]  ;;  %v7599_v40 = vld [vmem:[#allocation8 + $0x2c0] sm:$0xf0] }
  0xb3   :  { %2279 = vmatpush.bf16.msrb.mxu2 %v7718_v41  ;;  %2293 = vmatpush.bf16.msrb.mxu3 %v7910_v45  ;;  %v8174_v41 = vor.u32 %v10939_v33, %v8173_v32  ;;  %v10933_v45 = vld [vmem:[#allocation8 + $0x70c] sm:$0xf0]  ;;  %v7602_v16 = vor.u32 %v10792_v39, %v7599_v40  ;;  %v10714_v39 = vld [vmem:[#allocation8 + $0x3c] sm:$0xf]  ;;  %v7287_v40 = vld [vmem:[#allocation8 + $0x50] sm:$0xf0] }
  0xb6   :  { %2252 = vmatpush.bf16.msrb.mxu0 %v7310_v50  ;;  %2266 = vmatpush.bf16.msrb.mxu1 %v7502_v51  ;;  %v10786_v50 = vld [vmem:[#allocation8 + $0x27c] sm:$0xf]  ;;  %v7575_v51 = vld [vmem:[#allocation8 + $0x290] sm:$0xf0] }
  0xb7   :  { %2280 = vmatpush.bf16.msrb.mxu2 %v7694_v54  ;;  %2294 = vmatpush.bf16.msrb.mxu3 %v7886_v58  ;;  %v8150_v54 = vor.u32 %v10933_v45, %v8149_v44  ;;  %v10927_v58 = vld [vmem:[#allocation8 + $0x6dc] sm:$0xf0]  ;;  %v7578_v63 = vor.u32 %v10786_v50, %v7575_v51  ;;  %v8029_v44 = vld [vmem:[#allocation8 + $0x608] sm:$0xf]  ;;  %v7263_v51 = vld [vmem:[#allocation8 + $0x20] sm:$0xf0] }
  0xb8   :  { %v8126_v6 = vor.u32 %v10927_v58, %v8125_v57  ;;  %v10903_v45 = vld [vmem:[#allocation8 + $0x61c] sm:$0xf0]  ;;  %v7815_v57 = vld [vmem:[#allocation8 + $0x470] sm:$0xf0]  ;;  %v10894_v58 = vld [vmem:[#allocation8 + $0x5dc] sm:$0xf] }
  0xba   :  { %2253 = vmatpush.bf16.msrb.mxu0 %v7286_v4  ;;  %2267 = vmatpush.bf16.msrb.mxu1 %v7478_v7  ;;  %v10780_v4 = vld [vmem:[#allocation8 + $0x24c] sm:$0xf]  ;;  %v8318_v7 = vor.u32 %v10975_v0, %v8317_v59  ;;  %v8030_v59 = vor.u32 %v10903_v45, %v8029_v44  ;;  %v10942_v0 = vld [vmem:[#allocation8 + $0x75c] sm:$0xf]  ;;  %v8319_v44 = vld [vmem:[#allocation8 + $0x860] sm:$0xf0] }
  0xbb   :  { %2281 = vmatpush.bf16.msrb.mxu2 %v7670_v8  ;;  %2295 = vmatpush.bf16.msrb.mxu3 %v7862_v12  ;;  %v7362_v8 = vor.u32 %v10732_v1, %v7359_v2  ;;  %v7554_v12 = vor.u32 %v10780_v4, %v7551_v5  ;;  %v8199_v1 = vld [vmem:[#allocation8 + $0x770] sm:$0xf0]  ;;  %v8222_v2 = vor.u32 %v10951_v48, %v8221_v47  ;;  %v10990_v5 = vld [vmem:[#allocation8 + $0x8dc] sm:$0xf] }
  0xbc   :  { %v7266_v4 = vor.u32 %v10708_v49, %v7263_v51  ;;  %v8202_v10 = vor.u32 %v10942_v0, %v8199_v1  ;;  %v10822_v47 = vld [vmem:[#allocation8 + $0x39c] sm:$0xf]  ;;  %v7719_v48 = vld [vmem:[#allocation8 + $0x3b0] sm:$0xf0]  ;;  %v10816_v0 = vld [vmem:[#allocation8 + $0x36c] sm:$0xf] }
  0xbd   :  { %v10870_v49 = vld [vmem:[#allocation8 + $0x51c] sm:$0xf]  ;;  %v7911_v51 = vld [vmem:[#allocation8 + $0x530] sm:$0xf0]  ;;  %v7695_v1 = vld [vmem:[#allocation8 + $0x380] sm:$0xf0] }
  0xbe   :  { %2254 = vmatpush.bf16.msrb.mxu0 %v7262_v20  ;;  %2268 = vmatpush.bf16.msrb.mxu1 %v7454_v24  ;;  %v8294_v20 = vor.u32 %v10969_v13, %v8293_v11  ;;  %v8269_v24 = vld [vmem:[#allocation8 + $0x7e8] sm:$0xf]  ;;  %v10840_v11 = vld [vmem:[#allocation8 + $0x42c] sm:$0xf] }
  0xbf   :  { %2282 = vmatpush.bf16.msrb.mxu2 %v7646_v25  ;;  %2296 = vmatpush.bf16.msrb.mxu3 %v7838_v28  ;;  %v7530_v25 = vor.u32 %v10774_v17, %v7527_v18  ;;  %v7311_v28 = vld [vmem:[#allocation8 + $0x80] sm:$0xf0]  ;;  %v8270_v32 = vor.u32 %v10963_v26, %v8269_v24  ;;  %v10888_v13 = vld [vmem:[#allocation8 + $0x5ac] sm:$0xf]  ;;  %v10834_v24 = vld [vmem:[#allocation8 + $0x3fc] sm:$0xf] }
  0xc0   :  { %v7314_v33 = vor.u32 %v10720_v27, %v7311_v28  ;;  %v10936_v17 = vld [vmem:[#allocation8 + $0x72c] sm:$0xf]  ;;  %v8175_v18 = vld [vmem:[#allocation8 + $0x740] sm:$0xf0]  ;;  %v10882_v26 = vld [vmem:[#allocation8 + $0x57c] sm:$0xf] }
  0xc1   :  { %2255 = vmatmul.bf16.vlgmr.msrb.gmra.mxu0 %v11935_v60  ;;  %2269 = vmatmul.bf16.vlgmr.msrb.gmra.mxu1 %v11937_v61  ;;  %v7959_v28 = vld [vmem:[#allocation8 + $0x590] sm:$0xf0] }
  0xc2   :  { %2303 = vmatpush.bf16.msra.mxu0 %v8198_v29  ;;  %2317 = vmatpush.bf16.msra.mxu1 %v8390_v30  ;;  %v10768_v29 = vld [vmem:[#allocation8 + $0x1ec] sm:$0xf]  ;;  %v7503_v30 = vld [vmem:[#allocation8 + $0x200] sm:$0xf0] }
  0xc3   :  { %2331 = vmatpush.bf16.msra.mxu2 %v7434_v31  ;;  %2345 = vmatpush.bf16.msra.mxu3 %v7626_v35  ;;  %v8078_v31 = vor.u32 %v10915_v23, %v8077_v22  ;;  %v10909_v35 = vld [vmem:[#allocation8 + $0x64c] sm:$0xf0]  ;;  %v7506_v37 = vor.u32 %v10768_v29, %v7503_v30  ;;  %v7986_v22 = vor.u32 %v10888_v13, %v7983_v15  ;;  %v10930_v29 = vld [vmem:[#allocation8 + $0x6fc] sm:$0xf]  ;;  %v8151_v30 = vld [vmem:[#allocation8 + $0x710] sm:$0xf0] }
  0xc4   :  { %2283 = vmatmul.bf16.vlgmr.msrb.gmra.mxu2 %v11939_v62  ;;  %2297 = vmatmul.bf16.vlgmr.msrb.gmra.mxu3 %v11941_v3  ;;  %v8178_v23 = vor.u32 %v10936_v17, %v8175_v18  ;;  %v10810_v13 = vld [vmem:[#allocation8 + $0x33c] sm:$0xf]  ;;  %v7863_v18 = vld [vmem:[#allocation8 + $0x4d0] sm:$0xf0] }
  0xc5   :  { %v10858_v15 = vld [vmem:[#allocation8 + $0x4bc] sm:$0xf] }
  0xc6   :  { %2304 = vmatpush.bf16.msra.mxu0 %v8174_v41  ;;  %2318 = vmatpush.bf16.msra.mxu1 %v8366_v42  ;;  %v10762_v41 = vld [vmem:[#allocation8 + $0x1bc] sm:$0xf]  ;;  %v7479_v42 = vld [vmem:[#allocation8 + $0x1d0] sm:$0xf0] }
  0xc7   :  { %2332 = vmatpush.bf16.msra.mxu2 %v7410_v43  ;;  %2346 = vmatpush.bf16.msra.mxu3 %v7602_v16  ;;  %v8054_v43 = vor.u32 %v10909_v35, %v8053_v34  ;;  %v7290_v16 = vor.u32 %v10714_v39, %v7287_v40  ;;  %v7482_v50 = vor.u32 %v10762_v41, %v7479_v42  ;;  %v7935_v40 = vld [vmem:[#allocation8 + $0x560] sm:$0xf0]  ;;  %v10924_v41 = vld [vmem:[#allocation8 + $0x6cc] sm:$0xf] }
  0xc8   :  { %v7962_v34 = vor.u32 %v10882_v26, %v7959_v28  ;;  %v8154_v35 = vor.u32 %v10930_v29, %v8151_v30  ;;  %v8127_v42 = vld [vmem:[#allocation8 + $0x6e0] sm:$0xf0]  ;;  %v7866_v26 = vor.u32 %v10858_v15, %v7863_v18  ;;  %v10852_v28 = vld [vmem:[#allocation8 + $0x48c] sm:$0xf]  ;;  %v7365_v15 = vld [vmem:[#allocation8 + $0xd0] sm:$0xf] }
  0xc9   :  { %v7839_v29 = vld [vmem:[#allocation8 + $0x4a0] sm:$0xf0]  ;;  %v10900_v30 = vld [vmem:[#allocation8 + $0x60c] sm:$0xf]  ;;  %v7557_v18 = vld [vmem:[#allocation8 + $0x250] sm:$0xf] }
  0xca   :  { %2305 = vmatpush.bf16.msra.mxu0 %v8150_v54  ;;  %2319 = vmatpush.bf16.msra.mxu1 %v8342_v55  ;;  %v10756_v54 = vld [vmem:[#allocation8 + $0x18c] sm:$0xf]  ;;  %v7455_v55 = vld [vmem:[#allocation8 + $0x1a0] sm:$0xf0] }
  0xcb   :  { %2333 = vmatpush.bf16.msra.mxu2 %v7386_v56  ;;  %2347 = vmatpush.bf16.msra.mxu3 %v7578_v63  ;;  %v10846_v56 = vld [vmem:[#allocation8 + $0x45c] sm:$0xf]  ;;  %v8007_v63 = vld [vmem:[#allocation8 + $0x5f0] sm:$0xf0] }
  0xcc   :  { %v8010_v9 = vor.u32 %v10894_v58, %v8007_v63  ;;  %v7722_v58 = vor.u32 %v10822_v47, %v7719_v48 }
  0xce   :  { %2306 = vmatpush.bf16.msra.mxu0 %v8126_v6  ;;  %2320 = vmatpush.bf16.msra.mxu1 %v8318_v7  ;;  %v8391_v6 = vld [vmem:[#allocation8 + $0x8f0] sm:$0xf0]  ;;  %v7458_v7 = vor.u32 %v10756_v54, %v7455_v55  ;;  %v10918_v54 = vld [vmem:[#allocation8 + $0x69c] sm:$0xf] }
  0xcf   :  { %2334 = vmatpush.bf16.msra.mxu2 %v7362_v8  ;;  %2348 = vmatpush.bf16.msra.mxu3 %v7554_v12  ;;  %v7818_v8 = vor.u32 %v10846_v56, %v7815_v57  ;;  %v7791_v12 = vld [vmem:[#allocation8 + $0x440] sm:$0xf0]  ;;  %v8394_v14 = vor.u32 %v10990_v5, %v8391_v6  ;;  %v8103_v55 = vld [vmem:[#allocation8 + $0x6b0] sm:$0xf0]  ;;  %v10966_v56 = vld [vmem:[#allocation8 + $0x81c] sm:$0xf] }
  0xd0   :  { %v8295_v57 = vld [vmem:[#allocation8 + $0x830] sm:$0xf0]  ;;  %v8106_v63 = vor.u32 %v10918_v54, %v8103_v55  ;;  %v7887_v5 = vld [vmem:[#allocation8 + $0x500] sm:$0xf0]  ;;  %v10912_v6 = vld [vmem:[#allocation8 + $0x66c] sm:$0xf] }
  0xd1   :  { %v10796_v55 = vld [vmem:[#allocation8 + $0x2c4] sm:$0xf0] }
  0xd2   :  { %2307 = vmatpush.bf16.msra.mxu0 %v8102_v19  ;;  %2321 = vmatpush.bf16.msra.mxu1 %v8294_v20  ;;  %v10984_v19 = vld [vmem:[#allocation8 + $0x8ac] sm:$0xf]  ;;  %v8367_v20 = vld [vmem:[#allocation8 + $0x8c0] sm:$0xf0] }
  0xd3   :  { %2335 = vmatpush.bf16.msra.mxu2 %v7338_v21  ;;  %2349 = vmatpush.bf16.msra.mxu3 %v7530_v25  ;;  %v7794_v21 = vor.u32 %v10840_v11, %v7791_v12  ;;  %v7767_v25 = vld [vmem:[#allocation8 + $0x410] sm:$0xf0]  ;;  %v8370_v27 = vor.u32 %v10984_v19, %v8367_v20  ;;  %v10906_v19 = vld [vmem:[#allocation8 + $0x63c] sm:$0xf] }
  0xd4   :  { %v8055_v20 = vld [vmem:[#allocation8 + $0x650] sm:$0xf0] }
  0xd6   :  { %2308 = vmatpush.bf16.msra.mxu0 %v8078_v31  ;;  %2322 = vmatpush.bf16.msra.mxu1 %v8270_v32  ;;  %v10978_v31 = vld [vmem:[#allocation8 + $0x87c] sm:$0xf]  ;;  %v8343_v32 = vld [vmem:[#allocation8 + $0x890] sm:$0xf0] }
  0xd7   :  { %2336 = vmatpush.bf16.msra.mxu2 %v7314_v33  ;;  %2350 = vmatpush.bf16.msra.mxu3 %v7506_v37  ;;  %v7770_v33 = vor.u32 %v10834_v24, %v7767_v25  ;;  %v7743_v37 = vld [vmem:[#allocation8 + $0x3e0] sm:$0xf0]  ;;  %v8346_v39 = vor.u32 %v10978_v31, %v8343_v32  ;;  %v10804_v24 = vld [vmem:[#allocation8 + $0x30c] sm:$0xf] }
  0xd8   :  { %v7746_v45 = vor.u32 %v10828_v36, %v7743_v37  ;;  %v7647_v25 = vld [vmem:[#allocation8 + $0x320] sm:$0xf0]  ;;  %v10754_v36 = vld [vmem:[#allocation8 + $0x174] sm:$0xf0]  ;;  %v7629_v37 = vld [vmem:[#allocation8 + $0x2e0] sm:$0xf] }
  0xd9   :  { %v8031_v32 = vld [vmem:[#allocation8 + $0x620] sm:$0xf0] }
  0xda   :  { %2309 = vmatpush.bf16.msra.mxu0 %v8054_v43  ;;  %2323 = vmatpush.bf16.msra.mxu1 %v8246_v46  ;;  %v10972_v43 = vld [vmem:[#allocation8 + $0x84c] sm:$0xf]  ;;  %v7938_v46 = vor.u32 %v10876_v38, %v7935_v40  ;;  %v7650_v38 = vor.u32 %v10804_v24, %v7647_v25  ;;  %v7821_v40 = vld [vmem:[#allocation8 + $0x460] sm:$0xf]  ;;  %v10880_v24 = vld [vmem:[#allocation8 + $0x564] sm:$0xf0] }
  0xdb   :  { %2337 = vmatpush.bf16.msra.mxu2 %v7290_v16  ;;  %2351 = vmatpush.bf16.msra.mxu3 %v7482_v50  ;;  %v8130_v16 = vor.u32 %v10924_v41, %v8127_v42  ;;  %v8322_v50 = vor.u32 %v10972_v43, %v8319_v44  ;;  %v10850_v41 = vld [vmem:[#allocation8 + $0x474] sm:$0xf0]  ;;  %v7842_v42 = vor.u32 %v10852_v28, %v7839_v29  ;;  %v8013_v44 = vld [vmem:[#allocation8 + $0x5e0] sm:$0xf] }
  0xdc   :  { %v8034_v43 = vor.u32 %v10900_v30, %v8031_v32  ;;  %v7822_v48 = vor.u32 %v10850_v41, %v7821_v40  ;;  %v7341_v28 = vld [vmem:[#allocation8 + $0xa0] sm:$0xf]  ;;  %v10730_v29 = vld [vmem:[#allocation8 + $0xb4] sm:$0xf0]  ;;  %v7317_v40 = vld [vmem:[#allocation8 + $0x70] sm:$0xf] }
  0xdd   :  { %v7533_v30 = vld [vmem:[#allocation8 + $0x220] sm:$0xf]  ;;  %v10778_v32 = vld [vmem:[#allocation8 + $0x234] sm:$0xf0]  ;;  %v10724_v41 = vld [vmem:[#allocation8 + $0x84] sm:$0xf0] }
  0xde   :  { %2310 = vmatpush.bf16.msra.mxu0 %v8030_v59  ;;  %2324 = vmatpush.bf16.msra.mxu1 %v8222_v2  ;;  %v7914_v59 = vor.u32 %v10870_v49, %v7911_v51  ;;  %v10864_v2 = vld [vmem:[#allocation8 + $0x4ec] sm:$0xf]  ;;  %v7413_v49 = vld [vmem:[#allocation8 + $0x130] sm:$0xf] }
  0xdf   :  { %2338 = vmatpush.bf16.msra.mxu2 %v7266_v4  ;;  %2352 = vmatpush.bf16.msra.mxu3 %v7458_v7  ;;  %v8298_v4 = vor.u32 %v10966_v56, %v8295_v57  ;;  %v8079_v7 = vld [vmem:[#allocation8 + $0x680] sm:$0xf0]  ;;  %v7890_v11 = vor.u32 %v10864_v2, %v7887_v5  ;;  %v7605_v51 = vld [vmem:[#allocation8 + $0x2b0] sm:$0xf]  ;;  %v10844_v57 = vld [vmem:[#allocation8 + $0x444] sm:$0xf0] }
  0xe0   :  { %v8082_v12 = vor.u32 %v10912_v6, %v8079_v7  ;;  %v7797_v56 = vld [vmem:[#allocation8 + $0x430] sm:$0xf]  ;;  %v7389_v2 = vld [vmem:[#allocation8 + $0x100] sm:$0xf]  ;;  %v10790_v7 = vld [vmem:[#allocation8 + $0x294] sm:$0xf0] }
  0xe1   :  { %2311 = vmatmul.bf16.vlgmr.msra.gmra.mxu0 %v11947_v52  ;;  %2325 = vmatmul.bf16.vlgmr.msra.gmra.mxu1 %v11949_v53  ;;  %v7581_v5 = vld [vmem:[#allocation8 + $0x280] sm:$0xf] }
  0xe2   :  { %2359 = vmatpush.bf16.msrb.mxu0 %v7818_v8  ;;  %2373 = vmatpush.bf16.msrb.mxu1 %v8010_v9  ;;  %v10960_v8 = vld [vmem:[#allocation8 + $0x7ec] sm:$0xf]  ;;  %v8271_v9 = vld [vmem:[#allocation8 + $0x800] sm:$0xf0] }
  0xe3   :  { %2387 = vmatpush.bf16.msrb.mxu2 %v8202_v10  ;;  %2401 = vmatpush.bf16.msrb.mxu3 %v8394_v14  ;;  %v7698_v10 = vor.u32 %v10816_v0, %v7695_v1  ;;  %v7671_v14 = vld [vmem:[#allocation8 + $0x350] sm:$0xf0]  ;;  %v8274_v17 = vor.u32 %v10960_v8, %v8271_v9  ;;  %v7606_v0 = vor.u32 %v10796_v55, %v7605_v51  ;;  %v7773_v8 = vld [vmem:[#allocation8 + $0x400] sm:$0xf]  ;;  %v10838_v9 = vld [vmem:[#allocation8 + $0x414] sm:$0xf0] }
  0xe4   :  { %2339 = vmatmul.bf16.vlgmr.msra.gmra.mxu2 %v11935_v60  ;;  %2353 = vmatmul.bf16.vlgmr.msra.gmra.mxu3 %v11937_v61  ;;  %v7798_v1 = vor.u32 %v10844_v57, %v7797_v56  ;;  %v7293_v51 = vld [vmem:[#allocation8 + $0x40] sm:$0xf]  ;;  %v10766_v57 = vld [vmem:[#allocation8 + $0x1d4] sm:$0xf0] }
  0xe5   :  { %v7485_v55 = vld [vmem:[#allocation8 + $0x1c0] sm:$0xf] }
  0xe6   :  { %2360 = vmatpush.bf16.msrb.mxu0 %v7794_v21  ;;  %2374 = vmatpush.bf16.msrb.mxu1 %v7986_v22  ;;  %v10954_v21 = vld [vmem:[#allocation8 + $0x7bc] sm:$0xf]  ;;  %v8247_v22 = vld [vmem:[#allocation8 + $0x7d0] sm:$0xf0] }
  0xe7   :  { %2388 = vmatpush.bf16.msrb.mxu2 %v8178_v23  ;;  %2402 = vmatpush.bf16.msrb.mxu3 %v8370_v27  ;;  %v7674_v23 = vor.u32 %v10810_v13, %v7671_v14  ;;  %v8058_v27 = vor.u32 %v10906_v19, %v8055_v20  ;;  %v8250_v31 = vor.u32 %v10954_v21, %v8247_v22  ;;  %v10784_v20 = vld [vmem:[#allocation8 + $0x264] sm:$0xf0]  ;;  %v7749_v21 = vld [vmem:[#allocation8 + $0x3d0] sm:$0xf] }
  0xe8   :  { %v7582_v13 = vor.u32 %v10790_v7, %v7581_v5  ;;  %v7774_v14 = vor.u32 %v10838_v9, %v7773_v8  ;;  %v10832_v22 = vld [vmem:[#allocation8 + $0x3e4] sm:$0xf0]  ;;  %v7461_v8 = vld [vmem:[#allocation8 + $0x190] sm:$0xf] }
  0xe9   :  { %v10760_v9 = vld [vmem:[#allocation8 + $0x1a4] sm:$0xf0] }
  0xea   :  { %2361 = vmatpush.bf16.msrb.mxu0 %v7770_v33  ;;  %2375 = vmatpush.bf16.msrb.mxu1 %v7962_v34  ;;  %v10948_v33 = vld [vmem:[#allocation8 + $0x78c] sm:$0xf]  ;;  %v8223_v34 = vld [vmem:[#allocation8 + $0x7a0] sm:$0xf0] }
  0xeb   :  { %2389 = vmatpush.bf16.msrb.mxu2 %v8154_v35  ;;  %2403 = vmatpush.bf16.msrb.mxu3 %v8346_v39  ;;  %v7437_v35 = vld [vmem:[#allocation8 + $0x160] sm:$0xf]  ;;  %v10802_v39 = vld [vmem:[#allocation8 + $0x2f4] sm:$0xf0] }
  0xec   :  { %v7630_v47 = vor.u32 %v10802_v39, %v7629_v37  ;;  %v7342_v37 = vor.u32 %v10730_v29, %v7341_v28 }
  0xee   :  { %2362 = vmatpush.bf16.msrb.mxu0 %v7746_v45  ;;  %2376 = vmatpush.bf16.msrb.mxu1 %v7938_v46  ;;  %v10898_v45 = vld [vmem:[#allocation8 + $0x5f4] sm:$0xf0]  ;;  %v8226_v46 = vor.u32 %v10948_v33, %v8223_v34  ;;  %v7725_v33 = vld [vmem:[#allocation8 + $0x3a0] sm:$0xf] }
  0xef   :  { %2390 = vmatpush.bf16.msrb.mxu2 %v8130_v16  ;;  %2404 = vmatpush.bf16.msrb.mxu3 %v8322_v50  ;;  %v7438_v16 = vor.u32 %v10754_v36, %v7437_v35  ;;  %v10748_v50 = vld [vmem:[#allocation8 + $0x144] sm:$0xf0]  ;;  %v8014_v54 = vor.u32 %v10898_v45, %v8013_v44  ;;  %v10826_v34 = vld [vmem:[#allocation8 + $0x3b4] sm:$0xf0]  ;;  %v7917_v35 = vld [vmem:[#allocation8 + $0x520] sm:$0xf] }
  0xf0   :  { %v10874_v36 = vld [vmem:[#allocation8 + $0x534] sm:$0xf0]  ;;  %v7726_v39 = vor.u32 %v10826_v34, %v7725_v33  ;;  %v10772_v44 = vld [vmem:[#allocation8 + $0x204] sm:$0xf0]  ;;  %v7701_v45 = vld [vmem:[#allocation8 + $0x370] sm:$0xf] }
  0xf1   :  { %v10940_v33 = vld [vmem:[#allocation8 + $0x744] sm:$0xf0]  ;;  %v8373_v34 = vld [vmem:[#allocation8 + $0x8b0] sm:$0xf] }
  0xf2   :  { %2363 = vmatpush.bf16.msrb.mxu0 %v7722_v58  ;;  %2377 = vmatpush.bf16.msrb.mxu1 %v7914_v59  ;;  %v7989_v58 = vld [vmem:[#allocation8 + $0x5b0] sm:$0xf]  ;;  %v10892_v59 = vld [vmem:[#allocation8 + $0x5c4] sm:$0xf0] }
  0xf3   :  { %2391 = vmatpush.bf16.msrb.mxu2 %v8106_v63  ;;  %2405 = vmatpush.bf16.msrb.mxu3 %v8298_v4  ;;  %v7414_v63 = vor.u32 %v10748_v50, %v7413_v49  ;;  %v10742_v4 = vld [vmem:[#allocation8 + $0x114] sm:$0xf0]  ;;  %v7990_v6 = vor.u32 %v10892_v59, %v7989_v58  ;;  %v7677_v58 = vld [vmem:[#allocation8 + $0x340] sm:$0xf] }
  0xf4   :  { %v10814_v59 = vld [vmem:[#allocation8 + $0x354] sm:$0xf0] }
  0xf5   :  { %v7678_v7 = vor.u32 %v10814_v59, %v7677_v58 }
  0xf6   :  { %2364 = vmatpush.bf16.msrb.mxu0 %v7698_v10  ;;  %2378 = vmatpush.bf16.msrb.mxu1 %v7890_v11  ;;  %v7965_v10 = vld [vmem:[#allocation8 + $0x580] sm:$0xf]  ;;  %v10886_v11 = vld [vmem:[#allocation8 + $0x594] sm:$0xf0] }
  0xf7   :  { %2392 = vmatpush.bf16.msrb.mxu2 %v8082_v12  ;;  %2406 = vmatpush.bf16.msrb.mxu3 %v8274_v17  ;;  %v7390_v12 = vor.u32 %v10742_v4, %v7389_v2  ;;  %v10736_v17 = vld [vmem:[#allocation8 + $0xe4] sm:$0xf0]  ;;  %v7966_v19 = vor.u32 %v10886_v11, %v7965_v10  ;;  %v7269_v2 = vld [vmem:[#allocation8 + $0x10] sm:$0xf] }
  0xf8   :  { %v7366_v25 = vor.u32 %v10736_v17, %v7365_v15  ;;  %v10712_v4 = vld [vmem:[#allocation8 + $0x24] sm:$0xf0]  ;;  %v7653_v10 = vld [vmem:[#allocation8 + $0x310] sm:$0xf]  ;;  %v8205_v17 = vld [vmem:[#allocation8 + $0x760] sm:$0xf] }
  0xf9   :  { %v10856_v15 = vld [vmem:[#allocation8 + $0x4a4] sm:$0xf0] }
  0xfa   :  { %2365 = vmatpush.bf16.msrb.mxu0 %v7674_v23  ;;  %2379 = vmatpush.bf16.msrb.mxu1 %v7866_v26  ;;  %v7941_v23 = vld [vmem:[#allocation8 + $0x550] sm:$0xf]  ;;  %v7558_v26 = vor.u32 %v10784_v20, %v7557_v18  ;;  %v10946_v18 = vld [vmem:[#allocation8 + $0x774] sm:$0xf0]  ;;  %v7270_v20 = vor.u32 %v10712_v4, %v7269_v2 }
  0xfb   :  { %2393 = vmatpush.bf16.msrb.mxu2 %v8058_v27  ;;  %2407 = vmatpush.bf16.msrb.mxu3 %v8250_v31  ;;  %v7750_v27 = vor.u32 %v10832_v22, %v7749_v21  ;;  %v7942_v31 = vor.u32 %v10880_v24, %v7941_v23  ;;  %v10994_v21 = vld [vmem:[#allocation8 + $0x8f4] sm:$0xf0]  ;;  %v10751_v22 = vld [vmem:[#allocation8 + $0x164] sm:$0xf]  ;;  %v7439_v23 = vld [vmem:[#allocation8 + $0x178] sm:$0xf0]  ;;  %v7462_v24 = vor.u32 %v10760_v9, %v7461_v8 }
  0xfc   :  { %v8206_v29 = vor.u32 %v10946_v18, %v8205_v17  ;;  %v8325_v2 = vld [vmem:[#allocation8 + $0x850] sm:$0xf]  ;;  %v7367_v8 = vld [vmem:[#allocation8 + $0xe8] sm:$0xf0]  ;;  %v10781_v9 = vld [vmem:[#allocation8 + $0x254] sm:$0xf] }
  0xfd   :  { %v11971_v5 = vpop.f32.mrf.mxu0  ;;  %v11973_v11 = vpop.f32.mrf.mxu1  ;;  %v8109_v17 = vld [vmem:[#allocation8 + $0x6a0] sm:$0xf]  ;;  %v10922_v18 = vld [vmem:[#allocation8 + $0x6b4] sm:$0xf0] }
  0xfe   :  { %2366 = vmatpush.bf16.msrb.mxu0 %v7650_v38  ;;  %2380 = vmatpush.bf16.msrb.mxu1 %v7842_v42  ;;  %v7534_v38 = vor.u32 %v10778_v32, %v7533_v30  ;;  %v7509_v42 = vld [vmem:[#allocation8 + $0x1f0] sm:$0xf] }
  0xff   :  { %2394 = vmatpush.bf16.msrb.mxu2 %v8034_v43  ;;  %2408 = vmatpush.bf16.msrb.mxu3 %v8226_v46  ;;  %v7918_v43 = vor.u32 %v10874_v36, %v7917_v35  ;;  %v10820_v46 = vld [vmem:[#allocation8 + $0x384] sm:$0xf0]  ;;  %v7510_v49 = vor.u32 %v10772_v44, %v7509_v42  ;;  %v8181_v32 = vld [vmem:[#allocation8 + $0x730] sm:$0xf] }
 0x100   :  { %v7702_v50 = vor.u32 %v10820_v46, %v7701_v45  ;;  %v10988_v36 = vld [vmem:[#allocation8 + $0x8c4] sm:$0xf0]  ;;  %v8182_v42 = vor.u32 %v10940_v33, %v8181_v32  ;;  %v8157_v46 = vld [vmem:[#allocation8 + $0x700] sm:$0xf]  ;;  %v8085_v32 = vld [vmem:[#allocation8 + $0x670] sm:$0xf] }
 0x101   :  { %2367 = vmatmul.bf16.vlgmr.msrb.gmra.mxu0 %v11939_v62  ;;  %2381 = vmatmul.bf16.vlgmr.msrb.gmra.mxu1 %v11941_v3  ;;  %v8374_v44 = vor.u32 %v10988_v36, %v8373_v34  ;;  %v10916_v33 = vld [vmem:[#allocation8 + $0x684] sm:$0xf0]  ;;  %v8277_v34 = vld [vmem:[#allocation8 + $0x7f0] sm:$0xf] }
 0x102   :  { %2415 = vmatpush.bf16.msra.mxu0 %v7438_v16  ;;  %2429 = vmatpush.bf16.msra.mxu1 %v7630_v47  ;;  %v7893_v16 = vld [vmem:[#allocation8 + $0x4f0] sm:$0xf]  ;;  %v10868_v47 = vld [vmem:[#allocation8 + $0x504] sm:$0xf0] }
 0x103   :  { %2443 = vmatpush.bf16.msra.mxu2 %v7822_v48  ;;  %2457 = vmatpush.bf16.msra.mxu3 %v8014_v54  ;;  %v7318_v48 = vor.u32 %v10724_v41, %v7317_v40  ;;  %v10718_v54 = vld [vmem:[#allocation8 + $0x54] sm:$0xf0]  ;;  %v7894_v56 = vor.u32 %v10868_v47, %v7893_v16  ;;  %v10793_v40 = vld [vmem:[#allocation8 + $0x2b4] sm:$0xf]  ;;  %v7607_v41 = vld [vmem:[#allocation8 + $0x2c8] sm:$0xf0] }
 0x104   :  { %2395 = vmatmul.bf16.vlgmr.msrb.gmra.mxu2 %v11947_v52  ;;  %2409 = vmatmul.bf16.vlgmr.msrb.gmra.mxu3 %v11949_v53  ;;  %v10934_v16 = vld [vmem:[#allocation8 + $0x714] sm:$0xf0]  ;;  %v8349_v47 = vld [vmem:[#allocation8 + $0x880] sm:$0xf]  ;;  %v10964_v36 = vld [vmem:[#allocation8 + $0x804] sm:$0xf0] }
 0x105   :  { %v8158_v58 = vor.u32 %v10934_v16, %v8157_v46  ;;  %v8061_v16 = vld [vmem:[#allocation8 + $0x640] sm:$0xf] }
 0x106   :  { %2416 = vmatpush.bf16.msra.mxu0 %v7414_v63  ;;  %2430 = vmatpush.bf16.msra.mxu1 %v7606_v0  ;;  %v7869_v63 = vld [vmem:[#allocation8 + $0x4c0] sm:$0xf]  ;;  %v10862_v0 = vld [vmem:[#allocation8 + $0x4d4] sm:$0xf0] }
 0x107   :  { %2444 = vmatpush.bf16.msra.mxu2 %v7798_v1  ;;  %2458 = vmatpush.bf16.msra.mxu3 %v7990_v6  ;;  %v7294_v1 = vor.u32 %v10718_v54, %v7293_v51  ;;  %v7486_v6 = vor.u32 %v10766_v57, %v7485_v55  ;;  %v10739_v51 = vld [vmem:[#allocation8 + $0x104] sm:$0xf]  ;;  %v7391_v54 = vld [vmem:[#allocation8 + $0x118] sm:$0xf0]  ;;  %v11982_v55 = vpop.f32.mrf.mxu3 }
 0x108   :  { %v7583_v57 = vld [vmem:[#allocation8 + $0x298] sm:$0xf0] }
 0x10a   :  { %2417 = vmatpush.bf16.msra.mxu0 %v7390_v12  ;;  %2431 = vmatpush.bf16.msra.mxu1 %v7582_v13  ;;  %v7870_v12 = vor.u32 %v10862_v0, %v7869_v63  ;;  %v10808_v13 = vld [vmem:[#allocation8 + $0x324] sm:$0xf0]  ;;  %v7394_v63 = vor.u32 %v10739_v51, %v7391_v54  ;;  %v8133_v0 = vld [vmem:[#allocation8 + $0x6d0] sm:$0xf]  ;;  %v10958_v51 = vld [vmem:[#allocation8 + $0x7d4] sm:$0xf0] }
 0x10b   :  { %2445 = vmatpush.bf16.msra.mxu2 %v7774_v14  ;;  %2459 = vmatpush.bf16.msra.mxu3 %v7966_v19  ;;  %v7845_v14 = vld [vmem:[#allocation8 + $0x490] sm:$0xf]  ;;  %v8397_v19 = vld [vmem:[#allocation8 + $0x8e0] sm:$0xf]  ;;  %v10715_v54 = vld [vmem:[#allocation8 + $0x44] sm:$0xf] }
 0x10c   :  { %v7846_v28 = vor.u32 %v10856_v15, %v7845_v14  ;;  %v8398_v30 = vor.u32 %v10994_v21, %v8397_v19  ;;  %v8301_v19 = vld [vmem:[#allocation8 + $0x820] sm:$0xf]  ;;  %v10970_v21 = vld [vmem:[#allocation8 + $0x834] sm:$0xf0] }
 0x10e   :  { %2418 = vmatpush.bf16.msra.mxu0 %v7366_v25  ;;  %2432 = vmatpush.bf16.msra.mxu1 %v7558_v26  ;;  %v7654_v25 = vor.u32 %v10808_v13, %v7653_v10  ;;  %v10799_v26 = vld [vmem:[#allocation8 + $0x2e4] sm:$0xf]  ;;  %v7559_v10 = vld [vmem:[#allocation8 + $0x268] sm:$0xf0] }
 0x10f   :  { %2446 = vmatpush.bf16.msra.mxu2 %v7750_v27  ;;  %2460 = vmatpush.bf16.msra.mxu3 %v7942_v31  ;;  %v7631_v27 = vld [vmem:[#allocation8 + $0x2f8] sm:$0xf0]  ;;  %v7442_v31 = vor.u32 %v10751_v22, %v7439_v23  ;;  %v10727_v22 = vld [vmem:[#allocation8 + $0xa4] sm:$0xf] }
 0x110   :  { %v7634_v35 = vor.u32 %v10799_v26, %v7631_v27  ;;  %v7343_v23 = vld [vmem:[#allocation8 + $0xb8] sm:$0xf0] }
 0x111   :  { %v7535_v26 = vld [vmem:[#allocation8 + $0x238] sm:$0xf0] }
 0x112   :  { %2419 = vmatpush.bf16.msra.mxu0 %v7342_v37  ;;  %2433 = vmatpush.bf16.msra.mxu1 %v7534_v38  ;;  %v10745_v37 = vld [vmem:[#allocation8 + $0x134] sm:$0xf]  ;;  %v7415_v38 = vld [vmem:[#allocation8 + $0x148] sm:$0xf0] }
 0x113   :  { %2447 = vmatpush.bf16.msra.mxu2 %v7726_v39  ;;  %2461 = vmatpush.bf16.msra.mxu3 %v7918_v43  ;;  %v11975_v39 = vpop.f32.mrf.mxu2  ;;  %v11977_v43 = vpop.f32.mrf.mxu0  ;;  %v7418_v45 = vor.u32 %v10745_v37, %v7415_v38  ;;  %v10721_v37 = vld [vmem:[#allocation8 + $0x74] sm:$0xf]  ;;  %v7319_v38 = vld [vmem:[#allocation8 + $0x88] sm:$0xf0] }
 0x114   :  { %v7322_v46 = vor.u32 %v10721_v37, %v7319_v38  ;;  %v10841_v37 = vld [vmem:[#allocation8 + $0x434] sm:$0xf]  ;;  %v7799_v38 = vld [vmem:[#allocation8 + $0x448] sm:$0xf0] }
 0x116   :  { %2420 = vmatpush.bf16.msra.mxu0 %v7318_v48  ;;  %2434 = vmatpush.bf16.msra.mxu1 %v7510_v49  ;;  %v11979_v48 = vpop.f32.mrf.mxu1  ;;  %v7610_v49 = vor.u32 %v10793_v40, %v7607_v41  ;;  %v10769_v40 = vld [vmem:[#allocation8 + $0x1f4] sm:$0xf]  ;;  %v7511_v41 = vld [vmem:[#allocation8 + $0x208] sm:$0xf0] }
 0x117   :  { %2448 = vmatpush.bf16.msra.mxu2 %v7702_v50  ;;  %2462 = vmatpush.bf16.msra.mxu3 %v7894_v56  ;;  %v10982_v50 = vld [vmem:[#allocation8 + $0x894] sm:$0xf0]  ;;  %v10787_v56 = vld [vmem:[#allocation8 + $0x284] sm:$0xf] }
 0x118   :  { %v8350_v59 = vor.u32 %v10982_v50, %v8349_v47  ;;  %v7586_v4 = vor.u32 %v10787_v56, %v7583_v57  ;;  %v10910_v47 = vld [vmem:[#allocation8 + $0x654] sm:$0xf0]  ;;  %v7514_v50 = vor.u32 %v10769_v40, %v7511_v41  ;;  %v7295_v56 = vld [vmem:[#allocation8 + $0x58] sm:$0xf0]  ;;  %v10763_v57 = vld [vmem:[#allocation8 + $0x1c4] sm:$0xf] }
 0x119   :  { %v10889_v40 = vld [vmem:[#allocation8 + $0x5b4] sm:$0xf] }
 0x11a   :  { %2421 = vmatpush.bf16.msra.mxu0 %v7294_v1  ;;  %2435 = vmatpush.bf16.msra.mxu1 %v7486_v6  ;;  %v10928_v1 = vld [vmem:[#allocation8 + $0x6e4] sm:$0xf0] }
 0x11b   :  { %2449 = vmatpush.bf16.msra.mxu2 %v7678_v7  ;;  %2463 = vmatpush.bf16.msra.mxu3 %v7870_v12  ;;  %v10976_v6 = vld [vmem:[#allocation8 + $0x864] sm:$0xf0]  ;;  %v10733_v7 = vld [vmem:[#allocation8 + $0xd4] sm:$0xf]  ;;  %v8134_v12 = vor.u32 %v10928_v1, %v8133_v0  ;;  %v11987_v13 = vpop.f32.mrf.mxu2 }
 0x11c   :  { %v8326_v14 = vor.u32 %v10976_v6, %v8325_v2  ;;  %v7370_v15 = vor.u32 %v10733_v7, %v7367_v8  ;;  %v10904_v0 = vld [vmem:[#allocation8 + $0x624] sm:$0xf0]  ;;  %v7298_v6 = vor.u32 %v10715_v54, %v7295_v56  ;;  %v8229_v7 = vld [vmem:[#allocation8 + $0x790] sm:$0xf] }
 0x11d   :  { %v10952_v8 = vld [vmem:[#allocation8 + $0x7a4] sm:$0xf0] }
 0x11e   :  { %2422 = vmatpush.bf16.msra.mxu0 %v7270_v20  ;;  %2436 = vmatpush.bf16.msra.mxu1 %v7462_v24  ;;  %v7562_v20 = vor.u32 %v10781_v9, %v7559_v10  ;;  %v11989_v24 = vpop.f32.mrf.mxu0  ;;  %v11991_v27 = vpop.f32.mrf.mxu1  ;;  %v10709_v9 = vld [vmem:[#allocation8 + $0x14] sm:$0xf] }
 0x11f   :  { %2450 = vmatpush.bf16.msra.mxu2 %v7654_v25  ;;  %2464 = vmatpush.bf16.msra.mxu3 %v7846_v28  ;;  %v10775_v25 = vld [vmem:[#allocation8 + $0x224] sm:$0xf]  ;;  %v8110_v28 = vor.u32 %v10922_v18, %v8109_v17  ;;  %v7463_v17 = vld [vmem:[#allocation8 + $0x1a8] sm:$0xf0] }
 0x120   :  { %v10847_v18 = vld [vmem:[#allocation8 + $0x464] sm:$0xf] }
 0x121   :  { %2423 = vmatmul.bf16.vlgmr.msra.gmra.mxu0 %v11935_v60  ;;  %2437 = vmatmul.bf16.vlgmr.msra.gmra.mxu1 %v11937_v61 }
 0x122   :  { %2471 = vmatpush.bf16.msrb.mxu0 %v8206_v29  ;;  %2485 = vmatpush.bf16.msrb.mxu1 %v8398_v30  ;;  %v11993_v29 = vpop.f32.mrf.mxu3  ;;  %v8302_v30 = vor.u32 %v10970_v21, %v8301_v19  ;;  %v7823_v19 = vld [vmem:[#allocation8 + $0x478] sm:$0xf0] }
 0x123   :  { %2499 = vmatpush.bf16.msrb.mxu2 %v7442_v31  ;;  %2513 = vmatpush.bf16.msrb.mxu3 %v7634_v35  ;;  %v7346_v31 = vor.u32 %v10727_v22, %v7343_v23  ;;  %v7538_v35 = vor.u32 %v10775_v25, %v7535_v26  ;;  %v8015_v22 = vld [vmem:[#allocation8 + $0x5f8] sm:$0xf0]  ;;  %v10943_v23 = vld [vmem:[#allocation8 + $0x764] sm:$0xf]  ;;  %v8230_v26 = vor.u32 %v10952_v8, %v8229_v7 }
 0x124   :  { %2451 = vmatmul.bf16.vlgmr.msra.gmra.mxu2 %v11939_v62  ;;  %2465 = vmatmul.bf16.vlgmr.msra.gmra.mxu3 %v11941_v3  ;;  %v8207_v25 = vld [vmem:[#allocation8 + $0x778] sm:$0xf0]  ;;  %v10979_v8 = vld [vmem:[#allocation8 + $0x884] sm:$0xf] }
 0x125   :  { %v8159_v7 = vld [vmem:[#allocation8 + $0x718] sm:$0xf0] }
 0x126   :  { %2472 = vmatpush.bf16.msrb.mxu0 %v8182_v42  ;;  %2486 = vmatpush.bf16.msrb.mxu1 %v8374_v44  ;;  %v8086_v42 = vor.u32 %v10916_v33, %v8085_v32  ;;  %v11995_v44 = vpop.f32.mrf.mxu2  ;;  %v11997_v1 = vpop.f32.mrf.mxu0  ;;  %v7826_v33 = vor.u32 %v10847_v18, %v7823_v19  ;;  %v7751_v18 = vld [vmem:[#allocation8 + $0x3e8] sm:$0xf0]  ;;  %v10877_v19 = vld [vmem:[#allocation8 + $0x554] sm:$0xf] }
 0x127   :  { %2500 = vmatpush.bf16.msrb.mxu2 %v7418_v45  ;;  %2514 = vmatpush.bf16.msrb.mxu3 %v7610_v49  ;;  %v8278_v45 = vor.u32 %v10964_v36, %v8277_v34  ;;  %v8253_v49 = vld [vmem:[#allocation8 + $0x7c0] sm:$0xf]  ;;  %v12001_v10 = vpop.f32.mrf.mxu1  ;;  %v8210_v36 = vor.u32 %v10943_v23, %v8207_v25  ;;  %v8135_v23 = vld [vmem:[#allocation8 + $0x6e8] sm:$0xf0] }
 0x12a   :  { %2473 = vmatpush.bf16.msrb.mxu0 %v8158_v58  ;;  %2487 = vmatpush.bf16.msrb.mxu1 %v8350_v59  ;;  %v7487_v58 = vld [vmem:[#allocation8 + $0x1d8] sm:$0xf0]  ;;  %v8062_v59 = vor.u32 %v10910_v47, %v8061_v16  ;;  %v11999_v2 = vpop.f32.mrf.mxu3  ;;  %v10985_v47 = vld [vmem:[#allocation8 + $0x8b4] sm:$0xf] }
 0x12b   :  { %2501 = vmatpush.bf16.msrb.mxu2 %v7394_v63  ;;  %2515 = vmatpush.bf16.msrb.mxu3 %v7586_v4  ;;  %v8037_v63 = vld [vmem:[#allocation8 + $0x610] sm:$0xf]  ;;  %v8254_v4 = vor.u32 %v10958_v51, %v8253_v49  ;;  %v8375_v49 = vld [vmem:[#allocation8 + $0x8c8] sm:$0xf0]  ;;  %v7802_v51 = vor.u32 %v10841_v37, %v7799_v38  ;;  %v7919_v38 = vld [vmem:[#allocation8 + $0x538] sm:$0xf0] }
 0x12c   :  { %v8038_v21 = vor.u32 %v10904_v0, %v8037_v63  ;;  %v10883_v63 = vld [vmem:[#allocation8 + $0x584] sm:$0xf]  ;;  %v8378_v0 = vor.u32 %v10985_v47, %v8375_v49 }
 0x12d   :  { %v12023_v47 = vld [vmem:[#allocation10] ss:$4 sm:$0x3f] }
 0x12e   :  { %2474 = vmatpush.bf16.msrb.mxu0 %v8134_v12  ;;  %2488 = vmatpush.bf16.msrb.mxu1 %v8326_v14  ;;  %v7490_v12 = vor.u32 %v10763_v57, %v7487_v58  ;;  %v7271_v14 = vld [vmem:[#allocation8 + $0x28] sm:$0xf0]  ;;  %v12003_v34 = vpop.f32.mrf.mxu2  ;;  %v12005_v16 = vpop.f32.mrf.mxu0  ;;  %v10835_v58 = vld [vmem:[#allocation8 + $0x404] sm:$0xf] }
 0x12f   :  { %2502 = vmatpush.bf16.msrb.mxu2 %v7370_v15  ;;  %2516 = vmatpush.bf16.msrb.mxu3 %v7562_v20  ;;  %v10757_v15 = vld [vmem:[#allocation8 + $0x194] sm:$0xf]  ;;  %v10895_v20 = vld [vmem:[#allocation8 + $0x5e4] sm:$0xf] }
 0x130   :  { %v7466_v32 = vor.u32 %v10757_v15, %v7463_v17  ;;  %v10829_v17 = vld [vmem:[#allocation8 + $0x3d4] sm:$0xf] }
 0x132   :  { %2475 = vmatpush.bf16.msrb.mxu0 %v8110_v28  ;;  %2489 = vmatpush.bf16.msrb.mxu1 %v8302_v30  ;;  %v7274_v28 = vor.u32 %v10709_v9, %v7271_v14  ;;  %v10991_v30 = vld [vmem:[#allocation8 + $0x8e4] sm:$0xf]  ;;  %v12009_v54 = vpop.f32.mrf.mxu3  ;;  %v8351_v9 = vld [vmem:[#allocation8 + $0x898] sm:$0xf0] }
 0x133   :  { %2503 = vmatpush.bf16.msrb.mxu2 %v7346_v31  ;;  %2517 = vmatpush.bf16.msrb.mxu3 %v7538_v35  ;;  %v8399_v31 = vld [vmem:[#allocation8 + $0x8f8] sm:$0xf0]  ;;  %v8018_v35 = vor.u32 %v10895_v20, %v8015_v22  ;;  %v8354_v20 = vor.u32 %v10979_v8, %v8351_v9  ;;  %v10925_v22 = vld [vmem:[#allocation8 + $0x6d4] sm:$0xf]  ;;  %v8279_v8 = vld [vmem:[#allocation8 + $0x808] sm:$0xf0] }
 0x134   :  { %v8402_v41 = vor.u32 %v10991_v30, %v8399_v31  ;;  %v8138_v31 = vor.u32 %v10925_v22, %v8135_v23  ;;  %v627_v9 = vperm.slane %v12023_v47, 0  ;;  %v7871_v23 = vld [vmem:[#allocation8 + $0x4d8] sm:$0xf0] }
 0x136   :  { %2476 = vmatpush.bf16.msrb.mxu0 %v8086_v42  ;;  %2490 = vmatpush.bf16.msrb.mxu1 %v8278_v45  ;;  %v7991_v42 = vld [vmem:[#allocation8 + $0x5c8] sm:$0xf0]  ;;  %v10937_v45 = vld [vmem:[#allocation8 + $0x734] sm:$0xf]  ;;  %v12015_v25 = vpop.f32.mrf.mxu2  ;;  %v12017_v30 = vpop.f32.mrf.mxu0 }
 0x137   :  { %2504 = vmatpush.bf16.msrb.mxu2 %v7322_v46  ;;  %2518 = vmatpush.bf16.msrb.mxu3 %v7514_v50  ;;  %v8183_v46 = vld [vmem:[#allocation8 + $0x748] sm:$0xf0]  ;;  %v12007_v50 = vpop.f32.mrf.mxu1  ;;  %v7994_v56 = vor.u32 %v10889_v40, %v7991_v42  ;;  %v10919_v40 = vld [vmem:[#allocation8 + $0x6a4] sm:$0xf] }
 0x138   :  { %v8186_v57 = vor.u32 %v10937_v45, %v8183_v46  ;;  %v10967_v45 = vld [vmem:[#allocation8 + $0x824] sm:$0xf]  ;;  %v8303_v46 = vld [vmem:[#allocation8 + $0x838] sm:$0xf0] }
 0x13a   :  { %2477 = vmatpush.bf16.msrb.mxu0 %v8062_v59  ;;  %2491 = vmatpush.bf16.msrb.mxu1 %v8254_v4  ;;  %v7775_v59 = vld [vmem:[#allocation8 + $0x418] sm:$0xf0]  ;;  %v12021_v42 = vpop.f32.mrf.mxu3 }
 0x13b   :  { %2505 = vmatpush.bf16.msrb.mxu2 %v7298_v6  ;;  %2519 = vmatpush.bf16.msrb.mxu3 %v7490_v12  ;;  %v7967_v4 = vld [vmem:[#allocation8 + $0x598] sm:$0xf0]  ;;  %v10931_v6 = vld [vmem:[#allocation8 + $0x704] sm:$0xf]  ;;  %v7778_v12 = vor.u32 %v10835_v58, %v7775_v59  ;;  %v7703_v58 = vld [vmem:[#allocation8 + $0x388] sm:$0xf0] }
 0x13c   :  { %v7970_v14 = vor.u32 %v10883_v63, %v7967_v4  ;;  %v8162_v15 = vor.u32 %v10931_v6, %v8159_v7  ;;  %v10865_v59 = vld [vmem:[#allocation8 + $0x4f4] sm:$0xf]  ;;  %v8306_v63 = vor.u32 %v10967_v45, %v8303_v46  ;;  %v8087_v6 = vld [vmem:[#allocation8 + $0x688] sm:$0xf0] }
 0x13d   :  { %v10913_v4 = vld [vmem:[#allocation8 + $0x674] sm:$0xf] }
 0x13e   :  { %2478 = vmatpush.bf16.msrb.mxu0 %v8038_v21  ;;  %2492 = vmatpush.bf16.msrb.mxu1 %v8230_v26  ;;  %v7943_v21 = vld [vmem:[#allocation8 + $0x568] sm:$0xf0]  ;;  %v10961_v7 = vld [vmem:[#allocation8 + $0x7f4] sm:$0xf] }
 0x13f   :  { %2506 = vmatpush.bf16.msrb.mxu2 %v7274_v28  ;;  %2520 = vmatpush.bf16.msrb.mxu3 %v7466_v32  ;;  %v8327_v26 = vld [vmem:[#allocation8 + $0x868] sm:$0xf0]  ;;  %v7754_v28 = vor.u32 %v10829_v17, %v7751_v18  ;;  %v10823_v32 = vld [vmem:[#allocation8 + $0x3a4] sm:$0xf]  ;;  %v8090_v17 = vor.u32 %v10913_v4, %v8087_v6  ;;  %v2256_v18 = vpop.f32.mrf.mxu0  ;;  %v8282_v22 = vor.u32 %v10961_v7, %v8279_v8  ;;  %v10853_v46 = vld [vmem:[#allocation8 + $0x494] sm:$0xf] }
 0x140   :  { %v2091_v6 = vadd.f32 %v11977_v43, %v627_v9  ;;  %v11088_v8 = vld [vmem:[#allocation8 + $0xbe4] sm:$0xf0] }
 0x141   :  { %2479 = vmatmul.bf16.vlgmr.msrb.gmra.mxu0 %v11947_v52  ;;  %2493 = vmatmul.bf16.vlgmr.msrb.gmra.mxu1 %v11949_v53 }
 0x142   :  { %2527 = vmatpush.bf16.msra.mxu0 %v7826_v33  ;;  %2541 = vmatpush.bf16.msra.mxu1 %v8018_v35  ;;  %v7727_v33 = vld [vmem:[#allocation8 + $0x3b8] sm:$0xf0]  ;;  %v10871_v35 = vld [vmem:[#allocation8 + $0x524] sm:$0xf] }
 0x143   :  { %2555 = vmatpush.bf16.msra.mxu2 %v8210_v36  ;;  %2569 = vmatpush.bf16.msra.mxu3 %v8402_v41  ;;  %v12019_v36 = vpop.f32.mrf.mxu1  ;;  %v8111_v41 = vld [vmem:[#allocation8 + $0x6b8] sm:$0xf0]  ;;  %v7730_v49 = vor.u32 %v10823_v32, %v7727_v33  ;;  %v2089_v32 = vadd.f32 %v11971_v5, %v627_v9  ;;  %v629_v33 = vperm.slane %v12023_v47, 2  ;;  %v8231_v5 = vld [vmem:[#allocation8 + $0x7a8] sm:$0xf0] }
 0x144   :  { %2507 = vmatmul.bf16.vlgmr.msrb.gmra.mxu2 %v11935_v60  ;;  %2521 = vmatmul.bf16.vlgmr.msrb.gmra.mxu3 %v11937_v61  ;;  %v10973_v60 = vld [vmem:[#allocation8 + $0x854] sm:$0xf]  ;;  %v7946_v61 = vor.u32 %v10877_v19, %v7943_v21  ;;  %v10811_v19 = vld [vmem:[#allocation8 + $0x344] sm:$0xf] }
 0x145   :  { %v8330_v37 = vor.u32 %v10973_v60, %v8327_v26  ;;  %v10859_v21 = vld [vmem:[#allocation8 + $0x4c4] sm:$0xf]  ;;  %v8063_v26 = vld [vmem:[#allocation8 + $0x658] sm:$0xf0]  ;;  %v2103_v4 = vadd.f32 %v11973_v11, %v2089_v32  ;;  %v11034_v11 = vld [vmem:[#allocation8 + $0xa34] sm:$0xf0] }
 0x146   :  { %2528 = vmatpush.bf16.msra.mxu0 %v7802_v51  ;;  %2542 = vmatpush.bf16.msra.mxu1 %v7994_v56  ;;  %v7922_v51 = vor.u32 %v10871_v35, %v7919_v38  ;;  %v8114_v56 = vor.u32 %v10919_v40, %v8111_v41  ;;  %v10907_v60 = vld [vmem:[#allocation8 + $0x644] sm:$0xf]  ;;  %v7655_v38 = vld [vmem:[#allocation8 + $0x328] sm:$0xf0]  ;;  %v12030_v40 = vpop.f32.mrf.mxu3  ;;  %v7874_v41 = vor.u32 %v10859_v21, %v7871_v23  ;;  %v9149_v32 = vld [vmem:[#allocation8 + $0xed0] sm:$0xf] }
 0x147   :  { %2556 = vmatpush.bf16.msra.mxu2 %v8186_v57  ;;  %2570 = vmatpush.bf16.msra.mxu3 %v8378_v0  ;;  %v10817_v57 = vld [vmem:[#allocation8 + $0x374] sm:$0xf]  ;;  %v7895_v0 = vld [vmem:[#allocation8 + $0x508] sm:$0xf0]  ;;  %v8066_v45 = vor.u32 %v10907_v60, %v8063_v26  ;;  %v8549_v26 = vld [vmem:[#allocation8 + $0xa20] sm:$0xf]  ;;  %v2258_v9 = vpop.f32.mrf.mxu0 }
 0x14a   :  { %2529 = vmatpush.bf16.msra.mxu0 %v7778_v12  ;;  %2543 = vmatpush.bf16.msra.mxu1 %v7970_v14  ;;  %v7706_v12 = vor.u32 %v10817_v57, %v7703_v58  ;;  %v12026_v14 = vpop.f32.mrf.mxu2  ;;  %v8039_v57 = vld [vmem:[#allocation8 + $0x628] sm:$0xf0]  ;;  %v10949_v58 = vld [vmem:[#allocation8 + $0x794] sm:$0xf] }
 0x14b   :  { %2557 = vmatpush.bf16.msra.mxu2 %v8162_v15  ;;  %2571 = vmatpush.bf16.msra.mxu3 %v8354_v20  ;;  %v7898_v15 = vor.u32 %v10865_v59, %v7895_v0  ;;  %v7679_v20 = vld [vmem:[#allocation8 + $0x358] sm:$0xf0]  ;;  %v8573_v59 = vld [vmem:[#allocation8 + $0xa50] sm:$0xf]  ;;  %v8234_v23 = vor.u32 %v10949_v58, %v8231_v5  ;;  %v2259_v58 = vadd.f32 %v2258_v9, %v629_v33 }
 0x14c   :  { %v7682_v35 = vor.u32 %v10811_v19, %v7679_v20  ;;  %v8765_v0 = vld [vmem:[#allocation8 + $0xbd0] sm:$0xf]  ;;  %v2257_v19 = vadd.f32 %v2256_v18, %v629_v33  ;;  %v2117_v18 = vadd.f32 %v11975_v39, %v2103_v4  ;;  %v8550_v5 = vor.u32 %v11034_v11, %v8549_v26  ;;  %v11076_v33 = vld [vmem:[#allocation8 + $0xb84] sm:$0xf0]  ;;  %v11070_v26 = vld [vmem:[#allocation8 + $0xb54] sm:$0xf0] }
 0x14d   :  { %v8717_v4 = vld [vmem:[#allocation8 + $0xb70] sm:$0xf] }
 0x14e   :  { %2530 = vmatpush.bf16.msra.mxu0 %v7754_v28  ;;  %2544 = vmatpush.bf16.msra.mxu1 %v7946_v61  ;;  %v2270_v28 = vpop.f32.mrf.mxu1  ;;  %v10955_v61 = vld [vmem:[#allocation8 + $0x7c4] sm:$0xf] }
 0x14f   :  { %2558 = vmatpush.bf16.msra.mxu2 %v8138_v31  ;;  %2572 = vmatpush.bf16.msra.mxu3 %v8330_v37  ;;  %v8255_v31 = vld [vmem:[#allocation8 + $0x7d8] sm:$0xf0]  ;;  %v10805_v37 = vld [vmem:[#allocation8 + $0x314] sm:$0xf] }
 0x150   :  { %v7658_v7 = vor.u32 %v10805_v37, %v7655_v38  ;;  %v2105_v37 = vadd.f32 %v11979_v48, %v2091_v6  ;;  %v11082_v38 = vld [vmem:[#allocation8 + $0xbb4] sm:$0xf0]  ;;  %v8525_v48 = vld [vmem:[#allocation8 + $0x9f0] sm:$0xf]  ;;  %v9125_v6 = vld [vmem:[#allocation8 + $0xea0] sm:$0xf] }
 0x152   :  { %2531 = vmatpush.bf16.msra.mxu0 %v7730_v49  ;;  %2545 = vmatpush.bf16.msra.mxu1 %v7922_v51  ;;  %v7847_v49 = vld [vmem:[#allocation8 + $0x4a8] sm:$0xf0]  ;;  %v10901_v51 = vld [vmem:[#allocation8 + $0x614] sm:$0xf] }
 0x153   :  { %2559 = vmatpush.bf16.msra.mxu2 %v8114_v56  ;;  %2573 = vmatpush.bf16.msra.mxu3 %v8306_v63  ;;  %v8258_v56 = vor.u32 %v10955_v61, %v8255_v31  ;;  %v11040_v63 = vld [vmem:[#allocation8 + $0xa64] sm:$0xf0]  ;;  %v7850_v20 = vor.u32 %v10853_v46, %v7847_v49  ;;  %v8042_v21 = vor.u32 %v10901_v51, %v8039_v57  ;;  %v8741_v31 = vld [vmem:[#allocation8 + $0xba0] sm:$0xf]  ;;  %v2298_v57 = vpop.f32.mrf.mxu3 }
 0x154   :  { %v8574_v60 = vor.u32 %v11040_v63, %v8573_v59  ;;  %v8766_v61 = vor.u32 %v11088_v8, %v8765_v0  ;;  %v11028_v59 = vld [vmem:[#allocation8 + $0xa04] sm:$0xf0]  ;;  %v8742_v63 = vor.u32 %v11082_v38, %v8741_v31 }
 0x155   :  { %v11124_v8 = vld [vmem:[#allocation8 + $0xd04] sm:$0xf0] }
 0x156   :  { %2532 = vmatpush.bf16.msra.mxu0 %v7706_v12  ;;  %2546 = vmatpush.bf16.msra.mxu1 %v7898_v15  ;;  %v8957_v12 = vld [vmem:[#allocation8 + $0xd50] sm:$0xf]  ;;  %v11136_v15 = vld [vmem:[#allocation8 + $0xd64] sm:$0xf0]  ;;  %v2272_v46 = vpop.f32.mrf.mxu1 }
 0x157   :  { %2560 = vmatpush.bf16.msra.mxu2 %v8090_v17  ;;  %2574 = vmatpush.bf16.msra.mxu3 %v8282_v22  ;;  %v628_v17 = vperm.slane %v12023_v47, 1  ;;  %v2284_v22 = vpop.f32.mrf.mxu2  ;;  %v8958_v43 = vor.u32 %v11136_v15, %v8957_v12  ;;  %v11016_v38 = vld [vmem:[#allocation8 + $0x9a4] sm:$0xf0] }
 0x159   :  { %v2173_v49 = vadd.f32 %v11995_v44, %v628_v17  ;;  %v2175_v51 = vadd.f32 %v12003_v34, %v628_v17  ;;  %v11178_v44 = vld [vmem:[#allocation8 + $0xeb4] sm:$0xf0]  ;;  %v2131_v34 = vadd.f32 %v11982_v55, %v2117_v18  ;;  %v2273_v55 = vadd.f32 %v2272_v46, %v2259_v58  ;;  %v8477_v18 = vld [vmem:[#allocation8 + $0x990] sm:$0xf] }
 0x15a   :  { %2533 = vmatpush.bf16.msra.mxu0 %v7682_v35  ;;  %2547 = vmatpush.bf16.msra.mxu1 %v7874_v41  ;;  %v11184_v35 = vld [vmem:[#allocation8 + $0xee4] sm:$0xf0]  ;;  %v8933_v41 = vld [vmem:[#allocation8 + $0xd20] sm:$0xf]  ;;  %v8669_v46 = vld [vmem:[#allocation8 + $0xb10] sm:$0xf] }
 0x15b   :  { %2561 = vmatpush.bf16.msra.mxu2 %v8066_v45  ;;  %2575 = vmatpush.bf16.msra.mxu3 %v8258_v56  ;;  %v11130_v45 = vld [vmem:[#allocation8 + $0xd34] sm:$0xf0]  ;;  %v2271_v56 = vadd.f32 %v2270_v28, %v2257_v19  ;;  %v9150_v39 = vor.u32 %v11184_v35, %v9149_v32  ;;  %v2119_v28 = vadd.f32 %v11987_v13, %v2105_v37  ;;  %v8501_v13 = vld [vmem:[#allocation8 + $0x9c0] sm:$0xf] }
 0x15c   :  { %v8934_v0 = vor.u32 %v11130_v45, %v8933_v41  ;;  %v2187_v12 = vadd.f32 %v11999_v2, %v2173_v49  ;;  %v2189_v15 = vadd.f32 %v12009_v54, %v2175_v51  ;;  %v8526_v19 = vor.u32 %v11028_v59, %v8525_v48  ;;  %v11172_v54 = vld [vmem:[#allocation8 + $0xe84] sm:$0xf0]  ;;  %v9077_v49 = vld [vmem:[#allocation8 + $0xe40] sm:$0xf] }
 0x15d   :  { %v2285_v17 = vadd.f32 %v2284_v22, %v2271_v56  ;;  %v11118_v22 = vld [vmem:[#allocation8 + $0xcd4] sm:$0xf0]  ;;  %v2145_v11 = vadd.f32 %v11989_v24, %v2131_v34  ;;  %v2300_v24 = vpop.f32.mrf.mxu3  ;;  %v11064_v51 = vld [vmem:[#allocation8 + $0xb24] sm:$0xf0]  ;;  %v8861_v56 = vld [vmem:[#allocation8 + $0xc90] sm:$0xf] }
 0x15e   :  { %2534 = vmatpush.bf16.msra.mxu0 %v7658_v7  ;;  %2548 = vmatpush.bf16.msra.mxu1 %v7850_v20  ;;  %v8909_v7 = vld [vmem:[#allocation8 + $0xcf0] sm:$0xf]  ;;  %v11022_v20 = vld [vmem:[#allocation8 + $0x9d4] sm:$0xf0]  ;;  %v2312_v31 = vpop.f32.mrf.mxu0  ;;  %v2326_v35 = vpop.f32.mrf.mxu1 }
 0x15f   :  { %2562 = vmatpush.bf16.msra.mxu2 %v8042_v21  ;;  %2576 = vmatpush.bf16.msra.mxu3 %v8234_v23  ;;  %v8910_v21 = vor.u32 %v11124_v8, %v8909_v7  ;;  %v8693_v23 = vld [vmem:[#allocation8 + $0xb40] sm:$0xf]  ;;  %v2286_v2 = vpop.f32.mrf.mxu2  ;;  %v2299_v9 = vadd.f32 %v2298_v57, %v2285_v17  ;;  %v8502_v32 = vor.u32 %v11022_v20, %v8501_v13  ;;  %v11112_v57 = vld [vmem:[#allocation8 + $0xca4] sm:$0xf0]  ;;  %v11106_v8 = vld [vmem:[#allocation8 + $0xc74] sm:$0xf0] }
 0x160   :  { %v2287_v37 = vadd.f32 %v2286_v2, %v2273_v55  ;;  %v2159_v58 = vadd.f32 %v11991_v27, %v2145_v11  ;;  %v8862_v34 = vor.u32 %v11112_v57, %v8861_v56  ;;  %v9053_v27 = vld [vmem:[#allocation8 + $0xe10] sm:$0xf]  ;;  %v8837_v7 = vld [vmem:[#allocation8 + $0xc60] sm:$0xf]  ;;  %v11004_v20 = vld [vmem:[#allocation8 + $0x944] sm:$0xf0] }
 0x161   :  { %2535 = vmatmul.bf16.vlgmr.msra.gmra.mxu0 %v11939_v62  ;;  %2549 = vmatmul.bf16.vlgmr.msra.gmra.mxu1 %v11941_v3  ;;  %v9126_v62 = vor.u32 %v11178_v44, %v9125_v6  ;;  %v8718_v3 = vor.u32 %v11076_v33, %v8717_v4  ;;  %v2313_v59 = vadd.f32 %v2312_v31, %v2299_v9  ;;  %v11010_v4 = vld [vmem:[#allocation8 + $0x974] sm:$0xf0]  ;;  %v11160_v33 = vld [vmem:[#allocation8 + $0xe24] sm:$0xf0]  ;;  %v8429_v13 = vld [vmem:[#allocation8 + $0x930] sm:$0xf] }
 0x162   :  { %4345 = vmatpush.bf16.msrb.mxu0 %v8574_v60  ;;  %4359 = vmatpush.bf16.msrb.mxu1 %v8766_v61  ;;  %v9101_v60 = vld [vmem:[#allocation8 + $0xe70] sm:$0xf]  ;;  %v2201_v61 = vadd.f32 %v12005_v16, %v2187_v12  ;;  %v11166_v16 = vld [vmem:[#allocation8 + $0xe54] sm:$0xf0]  ;;  %11580 = vtanh.f32 %v2159_v58  ;;  %v9029_v2 = vld [vmem:[#allocation8 + $0xde0] sm:$0xf] }
 0x163   :  { %4373 = vmatpush.bf16.msrb.mxu2 %v8958_v43  ;;  %2577 = vmatmul.bf16.vlgmr.msra.gmra.mxu3 %v11949_v53  ;;  %v8885_v53 = vld [vmem:[#allocation8 + $0xcc0] sm:$0xf]  ;;  %v2203_v43 = vadd.f32 %v12017_v30, %v2189_v15  ;;  %v9102_v41 = vor.u32 %v11172_v54, %v9101_v60  ;;  %v9078_v6 = vor.u32 %v11166_v16, %v9077_v49  ;;  %v11052_v54 = vld [vmem:[#allocation8 + $0xac4] sm:$0xf0] }
 0x164   :  { %2563 = vmatmul.bf16.vlgmr.msra.gmra.mxu2 %v11947_v52  ;;  %4387 = vmatpush.bf16.msrb.mxu3 %v9150_v39  ;;  %v2133_v52 = vadd.f32 %v11993_v29, %v2119_v28  ;;  %v8694_v29 = vor.u32 %v11070_v26, %v8693_v23  ;;  %v8886_v45 = vor.u32 %v11118_v22, %v8885_v53  ;;  %v8645_v28 = vld [vmem:[#allocation8 + $0xae0] sm:$0xf]  ;;  %v8621_v23 = vld [vmem:[#allocation8 + $0xab0] sm:$0xf]  ;;  %v11100_v26 = vld [vmem:[#allocation8 + $0xc44] sm:$0xf0] }
 0x165   :  { %v2217_v48 = vadd.f32 %v12019_v36, %v2203_v43  ;;  %v8478_v39 = vor.u32 %v11016_v38, %v8477_v18  ;;  %v11058_v36 = vld [vmem:[#allocation8 + $0xaf4] sm:$0xf0]  ;;  %v2327_v15 = vadd.f32 %v2326_v35, %v2313_v59  ;;  %v8430_v22 = vor.u32 %v11004_v20, %v8429_v13  ;;  %v8405_v11 = vld [vmem:[#allocation8 + $0x900] sm:$0xf]  ;;  %v11148_v35 = vld [vmem:[#allocation8 + $0xdc4] sm:$0xf0] }
 0x166   :  { %4346 = vmatpush.bf16.msrb.mxu0 %v8550_v5  ;;  %4360 = vmatpush.bf16.msrb.mxu1 %v8742_v63  ;;  %v2147_v30 = vadd.f32 %v11997_v1, %v2133_v52  ;;  %v2215_v5 = vadd.f32 %v12007_v50, %v2201_v61  ;;  %v2301_v63 = vadd.f32 %v2300_v24, %v2287_v37  ;;  %v2314_v17 = vpop.f32.mrf.mxu0  ;;  %v8813_v52 = vld [vmem:[#allocation8 + $0xc30] sm:$0xf]  ;;  %v8597_v31 = vld [vmem:[#allocation8 + $0xa80] sm:$0xf]  ;;  %v11046_v37 = vld [vmem:[#allocation8 + $0xa94] sm:$0xf0] }
 0x167   :  { %4374 = vmatpush.bf16.msrb.mxu2 %v8934_v0  ;;  %v8453_v0 = vld [vmem:[#allocation8 + $0x960] sm:$0xf]  ;;  %v2231_v44 = vadd.f32 %v12026_v14, %v2217_v48  ;;  %v8670_v1 = vor.u32 %v11064_v51, %v8669_v46  ;;  %v2328_v14 = vpop.f32.mrf.mxu1  ;;  %v8622_v43 = vor.u32 %v11052_v54, %v8621_v23  ;;  %v8814_v9 = vor.u32 %v11100_v26, %v8813_v52  ;;  %v11094_v38 = vld [vmem:[#allocation8 + $0xc14] sm:$0xf0]  ;;  %v2340_v24 = vpop.f32.mrf.mxu2  ;;  %v11019_v20 = vld [vmem:[#allocation8 + $0x9c4] sm:$0xf] }
 0x168   :  { %4388 = vmatpush.bf16.msrb.mxu3 %v9126_v62  ;;  %v2161_v50 = vadd.f32 %v12001_v10, %v2147_v30  ;;  %v2229_v12 = vadd.f32 %v12015_v25, %v2215_v5  ;;  %v2315_v55 = vadd.f32 %v2314_v17, %v2301_v63  ;;  %v9054_v62 = vor.u32 %v11160_v33, %v9053_v27  ;;  %v11154_v25 = vld [vmem:[#allocation8 + $0xdf4] sm:$0xf0]  ;;  %v8789_v18 = vld [vmem:[#allocation8 + $0xc00] sm:$0xf]  ;;  %v2354_v56 = vpop.f32.mrf.mxu3  ;;  %v11031_v5 = vld [vmem:[#allocation8 + $0xa24] sm:$0xf] }
 0x169   :  { %v8646_v10 = vor.u32 %v11058_v36, %v8645_v28  ;;  %v9030_v61 = vor.u32 %v11154_v25, %v9029_v2  ;;  %v8598_v30 = vor.u32 %v11046_v37, %v8597_v31  ;;  %v8790_v51 = vor.u32 %v11094_v38, %v8789_v18  ;;  %v8981_v48 = vld [vmem:[#allocation8 + $0xd80] sm:$0xf]  ;;  %v11142_v59 = vld [vmem:[#allocation8 + $0xd94] sm:$0xf0]  ;;  %v8551_v63 = vld [vmem:[#allocation8 + $0xa38] sm:$0xf0] }
 0x16a   :  { %4347 = vmatpush.bf16.msrb.mxu0 %v8526_v19  ;;  %4361 = vmatpush.bf16.msrb.mxu1 %v8718_v3  ;;  %v8454_v19 = vor.u32 %v11010_v4, %v8453_v0  ;;  %v2245_v3 = vadd.f32 %v12030_v40, %v2231_v44  ;;  %11582 = vtanh.f32 %v2161_v50  ;;  %v2329_v60 = vadd.f32 %v2328_v14, %v2315_v55  ;;  %v10998_v40 = vld [vmem:[#allocation8 + $0x914] sm:$0xf0]  ;;  %v11085_v0 = vld [vmem:[#allocation8 + $0xbd4] sm:$0xf]  ;;  %v8767_v4 = vld [vmem:[#allocation8 + $0xbe8] sm:$0xf0] }
 0x16b   :  { %4375 = vmatpush.bf16.msrb.mxu2 %v8910_v21  ;;  %v8838_v21 = vor.u32 %v11106_v8, %v8837_v7  ;;  %v2243_v53 = vadd.f32 %v12021_v42, %v2229_v12  ;;  %11584 = vtanh.f32 %v2327_v15  ;;  %v11581_v42 = vpop.eup %11580  ;;  %v8406_v46 = vor.u32 %v10998_v40, %v8405_v11  ;;  %v11025_v50 = vld [vmem:[#allocation8 + $0x9f4] sm:$0xf]  ;;  %v8527_v7 = vld [vmem:[#allocation8 + $0xa08] sm:$0xf0]  ;;  %v11079_v8 = vld [vmem:[#allocation8 + $0xba4] sm:$0xf] }
 0x16c   :  { %4389 = vmatpush.bf16.msrb.mxu3 %v9102_v41  ;;  %11586 = vtanh.f32 %v2329_v60  ;;  %v11037_v41 = vld [vmem:[#allocation8 + $0xa54] sm:$0xf]  ;;  %v630_v44 = vperm.slane %v12023_v47, 3  ;;  %v8982_v28 = vor.u32 %v11142_v59, %v8981_v48  ;;  %v8554_v33 = vor.u32 %v11031_v5, %v8551_v63  ;;  %v8743_v12 = vld [vmem:[#allocation8 + $0xbb8] sm:$0xf0] }
 0x16d   :  { %11588 = vtanh.f32 %v2245_v3  ;;  %v8770_v36 = vor.u32 %v11085_v0, %v8767_v4  ;;  %v9341_v17 = vld [vmem:[#allocation8 + $0x1050] sm:$0xf]  ;;  %v11232_v55 = vld [vmem:[#allocation8 + $0x1064] sm:$0xf0]  ;;  %v8530_v14 = vor.u32 %v11025_v50, %v8527_v7  ;;  %v9317_v3 = vld [vmem:[#allocation8 + $0x1020] sm:$0xf] }
 0x16e   :  { %4348 = vmatpush.bf16.msrb.mxu0 %v8502_v32  ;;  %4362 = vmatpush.bf16.msrb.mxu1 %v8694_v29  ;;  %v9005_v32 = vld [vmem:[#allocation8 + $0xdb0] sm:$0xf]  ;;  %11590 = vtanh.f32 %v2243_v53  ;;  %v8575_v29 = vld [vmem:[#allocation8 + $0xa68] sm:$0xf0]  ;;  %v2341_v15 = vadd.f32 %v2340_v24, %v630_v44  ;;  %v8503_v23 = vld [vmem:[#allocation8 + $0x9d8] sm:$0xf0] }
 0x16f   :  { %4376 = vmatpush.bf16.msrb.mxu2 %v8886_v45  ;;  %v9006_v49 = vor.u32 %v11148_v35, %v9005_v32  ;;  %v8578_v58 = vor.u32 %v11037_v41, %v8575_v29  ;;  %v2342_v13 = vpop.f32.mrf.mxu2  ;;  %v11073_v2 = vld [vmem:[#allocation8 + $0xb74] sm:$0xf]  ;;  %v8719_v25 = vld [vmem:[#allocation8 + $0xb88] sm:$0xf0]  ;;  %v9293_v52 = vld [vmem:[#allocation8 + $0xff0] sm:$0xf] }
 0x170   :  { %4390 = vmatpush.bf16.msrb.mxu3 %v9078_v6  ;;  %v11583_v45 = vpop.eup %11582  ;;  %v2355_v54 = vadd.f32 %v2354_v56, %v2341_v15  ;;  %v11220_v26 = vld [vmem:[#allocation8 + $0x1004] sm:$0xf0]  ;;  %v11013_v40 = vld [vmem:[#allocation8 + $0x994] sm:$0xf]  ;;  %v11067_v31 = vld [vmem:[#allocation8 + $0xb44] sm:$0xf] }
 0x171   :  { %v11585_v16 = vpop.eup %11584  ;;  %v8695_v32 = vld [vmem:[#allocation8 + $0xb58] sm:$0xf0]  ;;  %v9294_v35 = vor.u32 %v11220_v26, %v9293_v52  ;;  %v9269_v18 = vld [vmem:[#allocation8 + $0xfc0] sm:$0xf]  ;;  %v11214_v38 = vld [vmem:[#allocation8 + $0xfd4] sm:$0xf0] }
 0x172   :  { %4349 = vmatpush.bf16.msrb.mxu0 %v8478_v39  ;;  %4363 = vmatpush.bf16.msrb.mxu1 %v8670_v1  ;;  %v11587_v57 = vpop.eup %11586  ;;  %v11007_v41 = vld [vmem:[#allocation8 + $0x964] sm:$0xf]  ;;  %v8698_v29 = vor.u32 %v11067_v31, %v8695_v32  ;;  %v11061_v24 = vld [vmem:[#allocation8 + $0xb14] sm:$0xf]  ;;  %v9245_v56 = vld [vmem:[#allocation8 + $0xf90] sm:$0xf] }
 0x173   :  { %4377 = vmatpush.bf16.msrb.mxu2 %v8862_v34  ;;  %v11589_v39 = vpop.eup %11588  ;;  %v12060_v6 = vpack.c.bf16 %v11587_v57, %v11585_v16  ;;  %v12063_v34 = vpack.c.bf16 %v11583_v45, %v11581_v42  ;;  %v9270_v16 = vor.u32 %v11214_v38, %v9269_v18  ;;  %v11208_v57 = vld [vmem:[#allocation8 + $0xfa4] sm:$0xf0]  ;;  %v11001_v59 = vld [vmem:[#allocation8 + $0x934] sm:$0xf]  ;;  %v8431_v0 = vld [vmem:[#allocation8 + $0x948] sm:$0xf0] }
 0x174   :  { %4391 = vmatpush.bf16.msrb.mxu3 %v9054_v62  ;;  %v11591_v1 = vpop.eup %11590  ;;  %v8746_v62 = vor.u32 %v11079_v8, %v8743_v12  ;;  %v11055_v4 = vld [vmem:[#allocation8 + $0xae4] sm:$0xf]  ;;  %v9221_v50 = vld [vmem:[#allocation8 + $0xf60] sm:$0xf]  ;;  %v8434_v7 = vor.u32 %v11001_v59, %v8431_v0  ;;  %v8407_v12 = vld [vmem:[#allocation8 + $0x918] sm:$0xf0] }
 0x175   :  { %v12065_v27 = vpack.c.bf16 %v11589_v39, %v11591_v1  ;;  %v9246_v1 = vor.u32 %v11208_v57, %v9245_v56  ;;  %v10995_v8 = vld [vmem:[#allocation8 + $0x904] sm:$0xf]  ;;  %v8959_v31 = vld [vmem:[#allocation8 + $0xd68] sm:$0xf0] }
 0x176   :  { %4350 = vmatpush.bf16.msrb.mxu0 %v8454_v19  ;;  %4364 = vmatpush.bf16.msrb.mxu1 %v8646_v10  ;;  %v9342_v19 = vor.u32 %v11232_v55, %v9341_v17  ;;  %v11226_v10 = vld [vmem:[#allocation8 + $0x1034] sm:$0xf0]  ;;  %v11229_v55 = vld [vmem:[#allocation8 + $0x1054] sm:$0xf]  ;;  %v11223_v26 = vld [vmem:[#allocation8 + $0x1024] sm:$0xf] }
 0x177   :  { %4378 = vmatpush.bf16.msrb.mxu2 %v8838_v21  ;;  %v2356_v21 = vpop.f32.mrf.mxu3  ;;  %v9318_v60 = vor.u32 %v11226_v10, %v9317_v3  ;;  %v9343_v3 = vld [vmem:[#allocation8 + $0x1068] sm:$0xf0]  ;;  %v9197_v10 = vld [vmem:[#allocation8 + $0xf30] sm:$0xf] }
 0x178   :  { %4392 = vmatpush.bf16.msrb.mxu3 %v9030_v61  ;;  %v8722_v61 = vor.u32 %v11073_v2, %v8719_v25  ;;  %v8410_v25 = vor.u32 %v10995_v8, %v8407_v12  ;;  %v9346_v52 = vor.u32 %v11229_v55, %v9343_v3  ;;  %v9295_v18 = vld [vmem:[#allocation8 + $0x1008] sm:$0xf0]  ;;  %v9511_v8 = vld [vmem:[#allocation8 + $0x11b8] sm:$0xf0]  ;;  %v11115_v12 = vld [vmem:[#allocation8 + $0xcc4] sm:$0xf] }
 0x179   :  { %v9223_v55 = vld [vmem:[#allocation8 + $0xf78] sm:$0xf0]  ;;  %v9487_v3 = vld [vmem:[#allocation8 + $0x1188] sm:$0xf0] }
 0x17a   :  { %4351 = vmatpush.bf16.msrb.mxu0 %v8430_v22  ;;  %4365 = vmatpush.bf16.msrb.mxu1 %v8622_v43  ;;  %v8506_v22 = vor.u32 %v11019_v20, %v8503_v23  ;;  %v2343_v43 = vadd.f32 %v2342_v13, %v630_v44  ;;  %v8647_v44 = vld [vmem:[#allocation8 + $0xaf8] sm:$0xf0] }
 0x17b   :  { %4379 = vmatpush.bf16.msrb.mxu2 %v8814_v9  ;;  %v8479_v9 = vld [vmem:[#allocation8 + $0x9a8] sm:$0xf0]  ;;  %v8650_v15 = vor.u32 %v11055_v4, %v8647_v44  ;;  %v11205_v4 = vld [vmem:[#allocation8 + $0xf94] sm:$0xf] }
 0x17c   :  { %4393 = vmatpush.bf16.msrb.mxu3 %v9006_v49  ;;  %v8482_v42 = vor.u32 %v11013_v40, %v8479_v9  ;;  %v2357_v45 = vadd.f32 %v2356_v21, %v2343_v43  ;;  %v8671_v49 = vld [vmem:[#allocation8 + $0xb28] sm:$0xf0]  ;;  %v11196_v21 = vld [vmem:[#allocation8 + $0xf44] sm:$0xf0]  ;;  %v9319_v40 = vld [vmem:[#allocation8 + $0x1038] sm:$0xf0] }
 0x17d   :  { %v8674_v39 = vor.u32 %v11061_v24, %v8671_v49  ;;  %v11190_v43 = vld [vmem:[#allocation8 + $0xf14] sm:$0xf0]  ;;  %v11133_v9 = vld [vmem:[#allocation8 + $0xd54] sm:$0xf]  ;;  %v8935_v24 = vld [vmem:[#allocation8 + $0xd38] sm:$0xf0] }
 0x17e   :  { %4352 = vmatpush.bf16.msrb.mxu0 %v8406_v46  ;;  %4366 = vmatpush.bf16.msrb.mxu1 %v8598_v30  ;;  %v2368_v53 = vpop.f32.mrf.mxu0  ;;  %v2382_v11 = vpop.f32.mrf.mxu1  ;;  %v8455_v46 = vld [vmem:[#allocation8 + $0x978] sm:$0xf0]  ;;  %v9247_v44 = vld [vmem:[#allocation8 + $0xfa8] sm:$0xf0] }
 0x17f   :  { %4380 = vmatpush.bf16.msrb.mxu2 %v8790_v51  ;;  %v2369_v37 = vadd.f32 %v2368_v53, %v2355_v54  ;;  %v8458_v48 = vor.u32 %v11007_v41, %v8455_v46  ;;  %v11043_v53 = vld [vmem:[#allocation8 + $0xa84] sm:$0xf]  ;;  %v9533_v41 = vld [vmem:[#allocation8 + $0x11d0] sm:$0xf] }
 0x180   :  { %4394 = vmatpush.bf16.msrb.mxu3 %v8982_v28  ;;  %v11127_v46 = vld [vmem:[#allocation8 + $0xd24] sm:$0xf] }
 0x181   :  { %4353 = vmatmul.bf16.vlgmr.msrb.gmra.mxu0 %v12063_v34  ;;  %4367 = vmatmul.bf16.vlgmr.msrb.gmra.mxu1 %v12065_v27  ;;  %v2383_v30 = vadd.f32 %v2382_v11, %v2369_v37  ;;  %v9198_v11 = vor.u32 %v11196_v21, %v9197_v10  ;;  %v11217_v37 = vld [vmem:[#allocation8 + $0xff4] sm:$0xf]  ;;  %v8938_v59 = vor.u32 %v11127_v46, %v8935_v24  ;;  %v11256_v46 = vld [vmem:[#allocation8 + $0x1124] sm:$0xf0] }
 0x182   :  { %4381 = vmatmul.bf16.vlgmr.msrb.gmra.mxu2 %v12060_v6  ;;  %4401 = vmatpush.bf16.msra.mxu0 %v9342_v19  ;;  %v11049_v19 = vld [vmem:[#allocation8 + $0xab4] sm:$0xf]  ;;  %v9298_v56 = vor.u32 %v11217_v37, %v9295_v18  ;;  %v9463_v37 = vld [vmem:[#allocation8 + $0x1158] sm:$0xf0]  ;;  %v11137_v18 = vld [vmem:[#allocation8 + $0xd6c] sm:$0xf0] }
 0x183   :  { %4429 = vmatpush.bf16.msra.mxu2 %v8578_v58  ;;  %v11253_v24 = vld [vmem:[#allocation8 + $0x1114] sm:$0xf] }
 0x184   :  { %4443 = vmatpush.bf16.msra.mxu3 %v8770_v36  ;;  %v11202_v36 = vld [vmem:[#allocation8 + $0xf74] sm:$0xf0] }
 0x185   :  { %v9222_v13 = vor.u32 %v11202_v36, %v9221_v50  ;;  %v11271_v50 = vld [vmem:[#allocation8 + $0x11a4] sm:$0xf]  ;;  %v9250_v36 = vor.u32 %v11205_v4, %v9247_v44  ;;  %v9413_v4 = vld [vmem:[#allocation8 + $0x10e0] sm:$0xf] }
 0x186   :  { %4402 = vmatpush.bf16.msra.mxu0 %v9318_v60  ;;  %v2370_v58 = vpop.f32.mrf.mxu0 }
 0x187   :  { %4430 = vmatpush.bf16.msra.mxu2 %v8554_v33  ;;  %v2396_v51 = vpop.f32.mrf.mxu2  ;;  %v2410_v5 = vpop.f32.mrf.mxu3  ;;  %v2371_v63 = vadd.f32 %v2370_v58, %v2357_v45  ;;  %v11277_v45 = vld [vmem:[#allocation8 + $0x11d4] sm:$0xf] }
 0x188   :  { %4444 = vmatpush.bf16.msra.mxu3 %v8746_v62  ;;  %v2397_v28 = vadd.f32 %v2396_v51, %v2383_v30  ;;  %v2384_v33 = vpop.f32.mrf.mxu1 }
 0x189   :  { %v2385_v17 = vadd.f32 %v2384_v33, %v2371_v63  ;;  %v8911_v63 = vld [vmem:[#allocation8 + $0xd08] sm:$0xf0]  ;;  %v11274_v33 = vld [vmem:[#allocation8 + $0x11b4] sm:$0xf0] }
 0x18a   :  { %4403 = vmatpush.bf16.msra.mxu0 %v9294_v35  ;;  %v2411_v20 = vadd.f32 %v2410_v5, %v2397_v28  ;;  %v9322_v35 = vor.u32 %v11223_v26, %v9319_v40  ;;  %v11211_v5 = vld [vmem:[#allocation8 + $0xfc4] sm:$0xf]  ;;  %v9509_v28 = vld [vmem:[#allocation8 + $0x11a0] sm:$0xf] }
 0x18b   :  { %4431 = vmatpush.bf16.msra.mxu2 %v8530_v14  ;;  %v8623_v14 = vld [vmem:[#allocation8 + $0xac8] sm:$0xf0] }
 0x18c   :  { %4445 = vmatpush.bf16.msra.mxu3 %v8722_v61  ;;  %v8626_v60 = vor.u32 %v11049_v19, %v8623_v14  ;;  %11592 = vtanh.f32 %v2411_v20  ;;  %v9173_v61 = vld [vmem:[#allocation8 + $0xf00] sm:$0xf]  ;;  %v9514_v19 = vor.u32 %v11271_v50, %v9511_v8  ;;  %v11268_v20 = vld [vmem:[#allocation8 + $0x1184] sm:$0xf0]  ;;  %v9415_v50 = vld [vmem:[#allocation8 + $0x10f8] sm:$0xf0] }
 0x18d   :  { %v9174_v38 = vor.u32 %v11190_v43, %v9173_v61  ;;  %v9461_v61 = vld [vmem:[#allocation8 + $0x1140] sm:$0xf]  ;;  %v11262_v43 = vld [vmem:[#allocation8 + $0x1154] sm:$0xf0]  ;;  %v11125_v8 = vld [vmem:[#allocation8 + $0xd0c] sm:$0xf0] }
 0x18e   :  { %4404 = vmatpush.bf16.msra.mxu0 %v9270_v16  ;;  %v9535_v16 = vld [vmem:[#allocation8 + $0x11e8] sm:$0xf0] }
 0x18f   :  { %4432 = vmatpush.bf16.msra.mxu2 %v8506_v22  ;;  %v2398_v62 = vpop.f32.mrf.mxu2  ;;  %v2412_v2 = vpop.f32.mrf.mxu3  ;;  %v8599_v22 = vld [vmem:[#allocation8 + $0xa98] sm:$0xf0]  ;;  %v9538_v57 = vor.u32 %v11277_v45, %v9535_v16  ;;  %v9437_v45 = vld [vmem:[#allocation8 + $0x1110] sm:$0xf] }
 0x190   :  { %4446 = vmatpush.bf16.msra.mxu3 %v8698_v29  ;;  %v2399_v23 = vadd.f32 %v2398_v62, %v2385_v17  ;;  %v8602_v32 = vor.u32 %v11043_v53, %v8599_v22  ;;  %v11280_v29 = vld [vmem:[#allocation8 + $0x11e4] sm:$0xf0]  ;;  %v11199_v17 = vld [vmem:[#allocation8 + $0xf64] sm:$0xf]  ;;  %v11265_v62 = vld [vmem:[#allocation8 + $0x1174] sm:$0xf] }
 0x191   :  { %v9534_v49 = vor.u32 %v11280_v29, %v9533_v41  ;;  %v9490_v21 = vor.u32 %v11265_v62, %v9487_v3  ;;  %v631_v53 = vperm.slane %v12023_v47, 4  ;;  %v8839_v41 = vld [vmem:[#allocation8 + $0xc78] sm:$0xf0]  ;;  %v11244_v3 = vld [vmem:[#allocation8 + $0x10c4] sm:$0xf0] }
 0x192   :  { %4405 = vmatpush.bf16.msra.mxu0 %v9246_v1  ;;  %v2413_v54 = vadd.f32 %v2412_v2, %v2399_v23  ;;  %v11593_v30 = vpop.eup %11592  ;;  %v11109_v23 = vld [vmem:[#allocation8 + $0xc94] sm:$0xf]  ;;  %v8863_v2 = vld [vmem:[#allocation8 + $0xca8] sm:$0xf0] }
 0x193   :  { %4433 = vmatpush.bf16.msra.mxu2 %v8482_v42  ;;  %v8962_v42 = vor.u32 %v11133_v9, %v8959_v31  ;;  %4415 = vmatpush.bf16.msra.mxu1 %v9534_v49  ;;  %v11259_v9 = vld [vmem:[#allocation8 + $0x1144] sm:$0xf]  ;;  %v9175_v31 = vld [vmem:[#allocation8 + $0xf18] sm:$0xf0] }
 0x194   :  { %4447 = vmatpush.bf16.msra.mxu3 %v8674_v39  ;;  %11594 = vtanh.f32 %v2413_v54  ;;  %v11121_v39 = vld [vmem:[#allocation8 + $0xcf4] sm:$0xf]  ;;  %v9199_v54 = vld [vmem:[#allocation8 + $0xf48] sm:$0xf0] }
 0x195   :  { %v8914_v1 = vor.u32 %v11121_v39, %v8911_v63  ;;  %v8815_v39 = vld [vmem:[#allocation8 + $0xc48] sm:$0xf0]  ;;  %v8917_v63 = vld [vmem:[#allocation8 + $0xcf8] sm:$0xf] }
 0x196   :  { %4406 = vmatpush.bf16.msra.mxu0 %v9222_v13  ;;  %v9485_v13 = vld [vmem:[#allocation8 + $0x1170] sm:$0xf]  ;;  %v8918_v62 = vor.u32 %v11125_v8, %v8917_v63 }
 0x197   :  { %4434 = vmatpush.bf16.msra.mxu2 %v8458_v48  ;;  %v9271_v48 = vld [vmem:[#allocation8 + $0xfd8] sm:$0xf0]  ;;  %v9486_v10 = vor.u32 %v11268_v20, %v9485_v13  ;;  %v9389_v20 = vld [vmem:[#allocation8 + $0x10b0] sm:$0xf] }
 0x198   :  { %4448 = vmatpush.bf16.msra.mxu3 %v8650_v15  ;;  %v9274_v0 = vor.u32 %v11211_v5, %v9271_v48  ;;  %v8887_v15 = vld [vmem:[#allocation8 + $0xcd8] sm:$0xf0]  ;;  %v11173_v8 = vld [vmem:[#allocation8 + $0xe8c] sm:$0xf0] }
 0x199   :  { %v8890_v14 = vor.u32 %v11115_v12, %v8887_v15 }
 0x19a   :  { %4407 = vmatpush.bf16.msra.mxu0 %v9198_v11  ;;  %v11595_v51 = vpop.eup %11594  ;;  %v11187_v11 = vld [vmem:[#allocation8 + $0xf04] sm:$0xf] }
 0x19b   :  { %4435 = vmatpush.bf16.msra.mxu2 %v8434_v7  ;;  %v12071_v58 = vpack.c.bf16 %v11595_v51, %v11593_v30  ;;  %v9510_v7 = vor.u32 %v11274_v33, %v9509_v28  ;;  %v9178_v29 = vor.u32 %v11187_v11, %v9175_v31  ;;  %v8941_v30 = vld [vmem:[#allocation8 + $0xd28] sm:$0xf]  ;;  %v11131_v51 = vld [vmem:[#allocation8 + $0xd3c] sm:$0xf0]  ;;  %v11250_v28 = vld [vmem:[#allocation8 + $0x10f4] sm:$0xf0] }
 0x19c   :  { %4449 = vmatpush.bf16.msra.mxu3 %v8626_v60  ;;  %v11193_v60 = vld [vmem:[#allocation8 + $0xf34] sm:$0xf]  ;;  %v11247_v33 = vld [vmem:[#allocation8 + $0x10e4] sm:$0xf]  ;;  %v9414_v12 = vor.u32 %v11250_v28, %v9413_v4  ;;  %v9151_v31 = vld [vmem:[#allocation8 + $0xee8] sm:$0xf0] }
 0x19d   :  { %4395 = vmatmul.bf16.vlgmr.msrb.gmra.mxu3 %v12071_v58  ;;  %4416 = vmatpush.bf16.msra.mxu1 %v9510_v7  ;;  %v9202_v40 = vor.u32 %v11193_v60, %v9199_v54  ;;  %v9418_v15 = vor.u32 %v11247_v33, %v9415_v50  ;;  %v11119_v54 = vld [vmem:[#allocation8 + $0xcdc] sm:$0xf0]  ;;  %v9109_v28 = vld [vmem:[#allocation8 + $0xe78] sm:$0xf] }
 0x19e   :  { %4408 = vmatpush.bf16.msra.mxu0 %v9174_v38  ;;  %v2424_v26 = vpop.f32.mrf.mxu0  ;;  %v2438_v22 = vpop.f32.mrf.mxu1  ;;  %v9466_v38 = vor.u32 %v11259_v9, %v9463_v37  ;;  %v8821_v50 = vld [vmem:[#allocation8 + $0xc38] sm:$0xf] }
 0x19f   :  { %4436 = vmatpush.bf16.msra.mxu2 %v8410_v25  ;;  %v9226_v25 = vor.u32 %v11199_v17, %v9223_v55  ;;  %v2425_v49 = vadd.f32 %v2424_v26, %v631_v53  ;;  %v11091_v17 = vld [vmem:[#allocation8 + $0xc04] sm:$0xf]  ;;  %v8791_v55 = vld [vmem:[#allocation8 + $0xc18] sm:$0xf0]  ;;  %v11238_v26 = vld [vmem:[#allocation8 + $0x1094] sm:$0xf0] }
 0x1a0   :  { %4450 = vmatpush.bf16.msra.mxu3 %v8602_v32  ;;  %v8965_v32 = vld [vmem:[#allocation8 + $0xd58] sm:$0xf] }
 0x1a1   :  { %4417 = vmatpush.bf16.msra.mxu1 %v9486_v10  ;;  %v8966_v16 = vor.u32 %v11137_v18, %v8965_v32  ;;  %v11241_v10 = vld [vmem:[#allocation8 + $0x10b4] sm:$0xf]  ;;  %v9157_v32 = vld [vmem:[#allocation8 + $0xed8] sm:$0xf] }
 0x1a2   :  { %4437 = vmatmul.bf16.vlgmr.msra.gmra.mxu2 %v12063_v34  ;;  %4457 = vmatpush.bf16.msrb.mxu0 %v8962_v42  ;;  %v11103_v42 = vld [vmem:[#allocation8 + $0xc64] sm:$0xf] }
 0x1a3   :  { %4485 = vmatpush.bf16.msrb.mxu2 %v9346_v52  ;;  %v8866_v52 = vor.u32 %v11109_v23, %v8863_v2  ;;  %v8842_v47 = vor.u32 %v11103_v42, %v8839_v41  ;;  %v8893_v2 = vld [vmem:[#allocation8 + $0xcc8] sm:$0xf] }
 0x1a4   :  { %4499 = vmatpush.bf16.msrb.mxu3 %v9538_v57  ;;  %v9439_v57 = vld [vmem:[#allocation8 + $0x1128] sm:$0xf0]  ;;  %v8894_v18 = vor.u32 %v11119_v54, %v8893_v2  ;;  %v8581_v2 = vld [vmem:[#allocation8 + $0xa58] sm:$0xf]  ;;  %v11157_v54 = vld [vmem:[#allocation8 + $0xe14] sm:$0xf] }
 0x1a5   :  { %v9442_v48 = vor.u32 %v11253_v24, %v9439_v57  ;;  %v9133_v57 = vld [vmem:[#allocation8 + $0xea8] sm:$0xf] }
 0x1a6   :  { %4458 = vmatpush.bf16.msrb.mxu0 %v8938_v59  ;;  %v11097_v59 = vld [vmem:[#allocation8 + $0xc34] sm:$0xf]  ;;  %v2426_v44 = vpop.f32.mrf.mxu0  ;;  %v2440_v7 = vpop.f32.mrf.mxu1 }
 0x1a7   :  { %4486 = vmatpush.bf16.msrb.mxu2 %v9322_v35  ;;  %v9462_v35 = vor.u32 %v11262_v43, %v9461_v61  ;;  %v2452_v5 = vpop.f32.mrf.mxu2  ;;  %v2427_v13 = vadd.f32 %v2426_v44, %v631_v53  ;;  %v11235_v53 = vld [vmem:[#allocation8 + $0x1084] sm:$0xf]  ;;  %v11181_v61 = vld [vmem:[#allocation8 + $0xed4] sm:$0xf] }
 0x1a8   :  { %4500 = vmatpush.bf16.msrb.mxu3 %v9514_v19  ;;  %v2466_v19 = vpop.f32.mrf.mxu3  ;;  %v11169_v44 = vld [vmem:[#allocation8 + $0xe74] sm:$0xf] }
 0x1a9   :  { %4418 = vmatpush.bf16.msra.mxu1 %v9462_v35  ;;  %v11185_v35 = vld [vmem:[#allocation8 + $0xeec] sm:$0xf0] }
 0x1aa   :  { %4459 = vmatpush.bf16.msrb.mxu0 %v8914_v1  ;;  %v8942_v1 = vor.u32 %v11131_v51, %v8941_v30  ;;  %v9158_v42 = vor.u32 %v11185_v35, %v9157_v32 }
 0x1ab   :  { %4487 = vmatpush.bf16.msrb.mxu2 %v9298_v56  ;;  %v9438_v56 = vor.u32 %v11256_v46, %v9437_v45 }
 0x1ac   :  { %4501 = vmatpush.bf16.msrb.mxu3 %v9490_v21  ;;  %v9391_v21 = vld [vmem:[#allocation8 + $0x10c8] sm:$0xf0] }
 0x1ad   :  { %4451 = vmatmul.bf16.vlgmr.msra.gmra.mxu3 %v12065_v27  ;;  %4419 = vmatpush.bf16.msra.mxu1 %v9438_v56  ;;  %v9394_v60 = vor.u32 %v11241_v10, %v9391_v21  ;;  %v8797_v10 = vld [vmem:[#allocation8 + $0xc08] sm:$0xf]  ;;  %v11095_v21 = vld [vmem:[#allocation8 + $0xc1c] sm:$0xf0] }
 0x1ae   :  { %4460 = vmatpush.bf16.msrb.mxu0 %v8890_v14  ;;  %v8794_v14 = vor.u32 %v11091_v17, %v8791_v55  ;;  %v9110_v17 = vor.u32 %v11173_v8, %v9109_v28  ;;  %v11163_v55 = vld [vmem:[#allocation8 + $0xe44] sm:$0xf]  ;;  %v8509_v8 = vld [vmem:[#allocation8 + $0x9c8] sm:$0xf] }
 0x1af   :  { %4488 = vmatpush.bf16.msrb.mxu2 %v9274_v0  ;;  %v8818_v0 = vor.u32 %v11097_v59, %v8815_v39  ;;  %v2454_v43 = vpop.f32.mrf.mxu2  ;;  %v11107_v59 = vld [vmem:[#allocation8 + $0xc7c] sm:$0xf0] }
 0x1b0   :  { %4502 = vmatpush.bf16.msrb.mxu3 %v9466_v38  ;;  %v9154_v38 = vor.u32 %v11181_v61, %v9151_v31  ;;  %v2468_v24 = vpop.f32.mrf.mxu3  ;;  %v11035_v31 = vld [vmem:[#allocation8 + $0xa3c] sm:$0xf0] }
 0x1b1   :  { %4420 = vmatpush.bf16.msra.mxu1 %v9414_v12 }
 0x1b2   :  { %4461 = vmatpush.bf16.msrb.mxu0 %v8866_v52  ;;  %v9365_v52 = vld [vmem:[#allocation8 + $0x1080] sm:$0xf] }
 0x1b3   :  { %4489 = vmatpush.bf16.msrb.mxu2 %v9250_v36  ;;  %v2439_v36 = vadd.f32 %v2438_v22, %v2425_v49  ;;  %v2441_v22 = vadd.f32 %v2440_v7, %v2427_v13  ;;  %v9366_v11 = vor.u32 %v11238_v26, %v9365_v52  ;;  %v11175_v49 = vld [vmem:[#allocation8 + $0xea4] sm:$0xf]  ;;  %v9055_v52 = vld [vmem:[#allocation8 + $0xe28] sm:$0xf0]  ;;  %v9061_v26 = vld [vmem:[#allocation8 + $0xe18] sm:$0xf] }
 0x1b4   :  { %4503 = vmatpush.bf16.msrb.mxu3 %v9442_v48  ;;  %v8845_v48 = vld [vmem:[#allocation8 + $0xc68] sm:$0xf] }
 0x1b5   :  { %v2453_v23 = vadd.f32 %v2452_v5, %v2439_v36  ;;  %v2455_v46 = vadd.f32 %v2454_v43, %v2441_v22  ;;  %v11179_v5 = vld [vmem:[#allocation8 + $0xebc] sm:$0xf0]  ;;  %v8846_v4 = vor.u32 %v11107_v59, %v8845_v48  ;;  %v11101_v36 = vld [vmem:[#allocation8 + $0xc4c] sm:$0xf0]  ;;  %v11038_v22 = vld [vmem:[#allocation8 + $0xa5c] sm:$0xf] }
 0x1b6   :  { %4462 = vmatpush.bf16.msrb.mxu0 %v8842_v47  ;;  %v8869_v47 = vld [vmem:[#allocation8 + $0xc98] sm:$0xf]  ;;  %v9134_v39 = vor.u32 %v11179_v5, %v9133_v57  ;;  %v8822_v13 = vor.u32 %v11101_v36, %v8821_v50  ;;  %v11026_v5 = vld [vmem:[#allocation8 + $0x9fc] sm:$0xf]  ;;  %v8535_v48 = vld [vmem:[#allocation8 + $0xa10] sm:$0xf0] }
 0x1b7   :  { %4490 = vmatpush.bf16.msrb.mxu2 %v9226_v25  ;;  %v9390_v25 = vor.u32 %v11244_v3, %v9389_v20  ;;  %v2467_v37 = vadd.f32 %v2466_v19, %v2453_v23  ;;  %v2469_v63 = vadd.f32 %v2468_v24, %v2455_v46  ;;  %v9079_v19 = vld [vmem:[#allocation8 + $0xe58] sm:$0xf0]  ;;  %v11167_v3 = vld [vmem:[#allocation8 + $0xe5c] sm:$0xf0]  ;;  %v8559_v46 = vld [vmem:[#allocation8 + $0xa40] sm:$0xf0] }
 0x1b8   :  { %4504 = vmatpush.bf16.msrb.mxu3 %v9418_v15  ;;  %v9082_v20 = vor.u32 %v11163_v55, %v9079_v19  ;;  %v11145_v59 = vld [vmem:[#allocation8 + $0xdb4] sm:$0xf]  ;;  %v8983_v50 = vld [vmem:[#allocation8 + $0xd98] sm:$0xf0]  ;;  %v11020_v55 = vld [vmem:[#allocation8 + $0x9cc] sm:$0xf] }
 0x1b9   :  { %4421 = vmatpush.bf16.msra.mxu1 %v9390_v25  ;;  %v11041_v25 = vld [vmem:[#allocation8 + $0xa6c] sm:$0xf0]  ;;  %v8511_v19 = vld [vmem:[#allocation8 + $0x9e0] sm:$0xf0] }
 0x1ba   :  { %4463 = vmatpush.bf16.msrb.mxu0 %v8818_v0 }
 0x1bb   :  { %4491 = vmatpush.bf16.msrb.mxu2 %v9202_v40  ;;  %v9367_v40 = vld [vmem:[#allocation8 + $0x1098] sm:$0xf0] }
 0x1bc   :  { %4505 = vmatpush.bf16.msrb.mxu3 %v9394_v60  ;;  %v9370_v9 = vor.u32 %v11235_v53, %v9367_v40  ;;  %v8798_v60 = vor.u32 %v11095_v21, %v8797_v10  ;;  %v9058_v53 = vor.u32 %v11157_v54, %v9055_v52  ;;  %v11161_v40 = vld [vmem:[#allocation8 + $0xe2c] sm:$0xf0]  ;;  %v8487_v54 = vld [vmem:[#allocation8 + $0x9b0] sm:$0xf0] }
 0x1bd   :  { %4422 = vmatpush.bf16.msra.mxu1 %v9366_v11  ;;  %v8583_v11 = vld [vmem:[#allocation8 + $0xa70] sm:$0xf0]  ;;  %v9062_v43 = vor.u32 %v11161_v40, %v9061_v26 }
 0x1be   :  { %4464 = vmatpush.bf16.msrb.mxu0 %v8794_v14  ;;  %v2480_v41 = vpop.f32.mrf.mxu0  ;;  %v2494_v45 = vpop.f32.mrf.mxu1 }
 0x1bf   :  { %4492 = vmatpush.bf16.msrb.mxu2 %v9178_v29  ;;  %v11113_v29 = vld [vmem:[#allocation8 + $0xcac] sm:$0xf0]  ;;  %v2481_v30 = vadd.f32 %v2480_v41, %v2467_v37  ;;  %v9031_v41 = vld [vmem:[#allocation8 + $0xdf8] sm:$0xf0] }
 0x1c0   :  { %4506 = vmatpush.bf16.msrb.mxu3 %v9370_v9  ;;  %v8870_v51 = vor.u32 %v11113_v29, %v8869_v47  ;;  %v8557_v9 = vld [vmem:[#allocation8 + $0xa28] sm:$0xf] }
 0x1c1   :  { %4471 = vmatpush.bf16.msrb.mxu1 %v9154_v38  ;;  %v2495_v0 = vadd.f32 %v2494_v45, %v2481_v30  ;;  %v8586_v38 = vor.u32 %v11038_v22, %v8583_v11  ;;  %v9037_v47 = vld [vmem:[#allocation8 + $0xde8] sm:$0xf]  ;;  %v11032_v45 = vld [vmem:[#allocation8 + $0xa2c] sm:$0xf]  ;;  %v8533_v30 = vld [vmem:[#allocation8 + $0x9f8] sm:$0xf] }
 0x1c2   :  { %v8562_v57 = vor.u32 %v11032_v45, %v8559_v46  ;;  %v11005_v46 = vld [vmem:[#allocation8 + $0x94c] sm:$0xf0] }
 0x1c3   :  { %4541 = vmatpush.bf16.msra.mxu2 %v8966_v16  ;;  %v9127_v16 = vld [vmem:[#allocation8 + $0xeb8] sm:$0xf0]  ;;  %11596 = vtanh.f32 %v2495_v0  ;;  %v11149_v0 = vld [vmem:[#allocation8 + $0xdcc] sm:$0xf0] }
 0x1c4   :  { %4555 = vmatpush.bf16.msra.mxu3 %v9158_v42  ;;  %v9130_v56 = vor.u32 %v11175_v49, %v9127_v16  ;;  %v11151_v42 = vld [vmem:[#allocation8 + $0xde4] sm:$0xf]  ;;  %v11155_v49 = vld [vmem:[#allocation8 + $0xdfc] sm:$0xf0] }
 0x1c5   :  { %v9034_v24 = vor.u32 %v11151_v42, %v9031_v41  ;;  %v9038_v16 = vor.u32 %v11155_v49, %v9037_v47  ;;  %v8437_v47 = vld [vmem:[#allocation8 + $0x938] sm:$0xf]  ;;  %v8439_v49 = vld [vmem:[#allocation8 + $0x950] sm:$0xf0] }
 0x1c6   :  { %4472 = vmatpush.bf16.msrb.mxu1 %v9130_v56  ;;  %v2482_v33 = vpop.f32.mrf.mxu0  ;;  %v2496_v15 = vpop.f32.mrf.mxu1  ;;  %v8558_v56 = vor.u32 %v11035_v31, %v8557_v9  ;;  %v11008_v9 = vld [vmem:[#allocation8 + $0x96c] sm:$0xf]  ;;  %v8463_v31 = vld [vmem:[#allocation8 + $0x980] sm:$0xf0] }
 0x1c7   :  { %4542 = vmatpush.bf16.msra.mxu2 %v8942_v1  ;;  %v9103_v1 = vld [vmem:[#allocation8 + $0xe88] sm:$0xf0]  ;;  %v2483_v12 = vadd.f32 %v2482_v33, %v2469_v63  ;;  %v2508_v35 = vpop.f32.mrf.mxu2  ;;  %v12076_v37 = vpop.f32.mrf.mxu3  ;;  %v9013_v63 = vld [vmem:[#allocation8 + $0xdb8] sm:$0xf]  ;;  %v11139_v33 = vld [vmem:[#allocation8 + $0xd84] sm:$0xf]  ;;  %v8466_v41 = vor.u32 %v11008_v9, %v8463_v31 }
 0x1c8   :  { %4556 = vmatpush.bf16.msra.mxu3 %v9134_v39  ;;  %v9106_v7 = vor.u32 %v11169_v44, %v9103_v1  ;;  %v9007_v39 = vld [vmem:[#allocation8 + $0xdc8] sm:$0xf0]  ;;  %v9014_v28 = vor.u32 %v11149_v0, %v9013_v63  ;;  %v9349_v63 = vld [vmem:[#allocation8 + $0x1058] sm:$0xf]  ;;  %v8751_v31 = vld [vmem:[#allocation8 + $0xbc0] sm:$0xf0] }
 0x1c9   :  { %v2497_v14 = vadd.f32 %v2496_v15, %v2483_v12  ;;  %v11597_v61 = vpop.eup %11596  ;;  %v9010_v1 = vor.u32 %v11145_v59, %v9007_v39  ;;  %v8989_v12 = vld [vmem:[#allocation8 + $0xd88] sm:$0xf]  ;;  %v11143_v15 = vld [vmem:[#allocation8 + $0xd9c] sm:$0xf0]  ;;  %v10996_v59 = vld [vmem:[#allocation8 + $0x90c] sm:$0xf] }
 0x1ca   :  { %4473 = vmatpush.bf16.msrb.mxu1 %v9106_v7  ;;  %v8538_v7 = vor.u32 %v11026_v5, %v8535_v48  ;;  %v10999_v5 = vld [vmem:[#allocation8 + $0x91c] sm:$0xf0]  ;;  %v8415_v39 = vld [vmem:[#allocation8 + $0x920] sm:$0xf0]  ;;  %v11080_v9 = vld [vmem:[#allocation8 + $0xbac] sm:$0xf] }
 0x1cb   :  { %4543 = vmatpush.bf16.msra.mxu2 %v8918_v62  ;;  %v9085_v62 = vld [vmem:[#allocation8 + $0xe48] sm:$0xf]  ;;  %11598 = vtanh.f32 %v2497_v14  ;;  %v8986_v14 = vor.u32 %v11139_v33, %v8983_v50 }
 0x1cc   :  { %4557 = vmatpush.bf16.msra.mxu3 %v9110_v17  ;;  %v9086_v23 = vor.u32 %v11167_v3, %v9085_v62  ;;  %v11023_v17 = vld [vmem:[#allocation8 + $0x9dc] sm:$0xf0] }
 0x1cd   :  { %v8510_v21 = vor.u32 %v11023_v17, %v8509_v8  ;;  %v9325_v17 = vld [vmem:[#allocation8 + $0x1028] sm:$0xf] }
 0x1ce   :  { %4474 = vmatpush.bf16.msrb.mxu1 %v9082_v20 }
 0x1cf   :  { %4544 = vmatpush.bf16.msra.mxu2 %v8894_v18  ;;  %v8582_v18 = vor.u32 %v11041_v25, %v8581_v2  ;;  %v2510_v62 = vpop.f32.mrf.mxu2  ;;  %v2524_v3 = vpop.f32.mrf.mxu3  ;;  %v8485_v2 = vld [vmem:[#allocation8 + $0x998] sm:$0xf]  ;;  %v11017_v25 = vld [vmem:[#allocation8 + $0x9ac] sm:$0xf0] }
 0x1d0   :  { %4558 = vmatpush.bf16.msra.mxu3 %v9086_v23  ;;  %v8514_v23 = vor.u32 %v11020_v55, %v8511_v19  ;;  %v11227_v55 = vld [vmem:[#allocation8 + $0x103c] sm:$0xf0]  ;;  %v11224_v19 = vld [vmem:[#allocation8 + $0x102c] sm:$0xf] }
 0x1d1   :  { %v11599_v32 = vpop.eup %11598 }
 0x1d2   :  { %4475 = vmatpush.bf16.msrb.mxu1 %v9058_v53  ;;  %v12078_v29 = vpack.c.bf16 %v11599_v32, %v11597_v61  ;;  %v8486_v53 = vor.u32 %v11017_v25, %v8485_v2  ;;  %v8461_v61 = vld [vmem:[#allocation8 + $0x968] sm:$0xf]  ;;  %v11221_v2 = vld [vmem:[#allocation8 + $0x100c] sm:$0xf0]  ;;  %v11218_v25 = vld [vmem:[#allocation8 + $0xffc] sm:$0xf] }
 0x1d3   :  { %4545 = vmatpush.bf16.msra.mxu2 %v8870_v51  ;;  %v11029_v51 = vld [vmem:[#allocation8 + $0xa0c] sm:$0xf0] }
 0x1d4   :  { %4559 = vmatpush.bf16.msra.mxu3 %v9062_v43  ;;  %4409 = vmatmul.bf16.vlgmr.msra.gmra.mxu0 %v12078_v29  ;;  %v8534_v36 = vor.u32 %v11029_v51, %v8533_v30  ;;  %v11011_v43 = vld [vmem:[#allocation8 + $0x97c] sm:$0xf0]  ;;  %v8438_v51 = vor.u32 %v11005_v46, %v8437_v47  ;;  %v11077_v47 = vld [vmem:[#allocation8 + $0xb8c] sm:$0xf0] }
 0x1d5   :  { %4493 = vmatmul.bf16.vlgmr.msrb.gmra.mxu2 %v12078_v29  ;;  %4513 = vmatpush.bf16.msra.mxu0 %v8582_v18  ;;  %v8462_v42 = vor.u32 %v11011_v43, %v8461_v61 }
 0x1d6   :  { %4476 = vmatpush.bf16.msrb.mxu1 %v9034_v24  ;;  %v11002_v24 = vld [vmem:[#allocation8 + $0x93c] sm:$0xf] }
 0x1d7   :  { %4546 = vmatpush.bf16.msra.mxu2 %v8846_v4  ;;  %v11652_v4 = vld [vmem:[#allocation10] ss:$4 sm:$0x3f] }
 0x1d8   :  { %4560 = vmatpush.bf16.msra.mxu3 %v9038_v16  ;;  %v632_v44 = vperm.slane %v11652_v4, 5 }
 0x1d9   :  { %4514 = vmatpush.bf16.msra.mxu0 %v8558_v56  ;;  %v8442_v56 = vor.u32 %v11002_v24, %v8439_v49  ;;  %v11074_v24 = vld [vmem:[#allocation8 + $0xb7c] sm:$0xf]  ;;  %v8727_v49 = vld [vmem:[#allocation8 + $0xb90] sm:$0xf0] }
 0x1da   :  { %4477 = vmatpush.bf16.msrb.mxu1 %v9010_v1  ;;  %v2509_v20 = vadd.f32 %v2508_v35, %v632_v44  ;;  %v2511_v22 = vadd.f32 %v2510_v62, %v632_v44  ;;  %v11233_v44 = vld [vmem:[#allocation8 + $0x106c] sm:$0xf0]  ;;  %v11230_v1 = vld [vmem:[#allocation8 + $0x105c] sm:$0xf]  ;;  %v8773_v62 = vld [vmem:[#allocation8 + $0xbd8] sm:$0xf] }
 0x1db   :  { %4547 = vmatpush.bf16.msra.mxu2 %v8822_v13  ;;  %v8990_v13 = vor.u32 %v11143_v15, %v8989_v12  ;;  %v9350_v12 = vor.u32 %v11233_v44, %v9349_v63  ;;  %v9229_v44 = vld [vmem:[#allocation8 + $0xf68] sm:$0xf] }
 0x1dc   :  { %4561 = vmatpush.bf16.msra.mxu3 %v9014_v28  ;;  %v2523_v52 = vadd.f32 %v12076_v37, %v2509_v20  ;;  %v2525_v18 = vadd.f32 %v2524_v3, %v2511_v22  ;;  %v9351_v28 = vld [vmem:[#allocation8 + $0x1070] sm:$0xf0]  ;;  %v11089_v3 = vld [vmem:[#allocation8 + $0xbec] sm:$0xf0] }
 0x1dd   :  { %4515 = vmatpush.bf16.msra.mxu0 %v8534_v36  ;;  %v9354_v15 = vor.u32 %v11230_v1, %v9351_v28  ;;  %v11203_v1 = vld [vmem:[#allocation8 + $0xf7c] sm:$0xf0]  ;;  %v11200_v28 = vld [vmem:[#allocation8 + $0xf6c] sm:$0xf] }
 0x1de   :  { %v2536_v10 = vpop.f32.mrf.mxu0  ;;  %4478 = vmatpush.bf16.msrb.mxu1 %v8986_v14  ;;  %v2550_v26 = vpop.f32.mrf.mxu1  ;;  %v9327_v14 = vld [vmem:[#allocation8 + $0x1040] sm:$0xf0] }
 0x1df   :  { %4548 = vmatpush.bf16.msra.mxu2 %v8798_v60  ;;  %v11014_v60 = vld [vmem:[#allocation8 + $0x99c] sm:$0xf]  ;;  %v2537_v11 = vadd.f32 %v2536_v10, %v2523_v52  ;;  %v9330_v20 = vor.u32 %v11224_v19, %v9327_v14  ;;  %v9205_v19 = vld [vmem:[#allocation8 + $0xf38] sm:$0xf]  ;;  %v11197_v14 = vld [vmem:[#allocation8 + $0xf4c] sm:$0xf0] }
 0x1e0   :  { %4562 = vmatpush.bf16.msra.mxu3 %v8990_v13  ;;  %v8490_v40 = vor.u32 %v11014_v60, %v8487_v54  ;;  %v9326_v13 = vor.u32 %v11227_v55, %v9325_v17  ;;  %v11086_v10 = vld [vmem:[#allocation8 + $0xbdc] sm:$0xf]  ;;  %v9303_v60 = vld [vmem:[#allocation8 + $0x1010] sm:$0xf0] }
 0x1e1   :  { %4516 = vmatpush.bf16.msra.mxu0 %v8510_v21  ;;  %v2551_v37 = vadd.f32 %v2550_v26, %v2537_v11  ;;  %v8775_v21 = vld [vmem:[#allocation8 + $0xbf0] sm:$0xf0]  ;;  %v8774_v26 = vor.u32 %v11089_v3, %v8773_v62  ;;  %v8749_v11 = vld [vmem:[#allocation8 + $0xba8] sm:$0xf]  ;;  %v9306_v43 = vor.u32 %v11218_v25, %v9303_v60  ;;  %v11062_v17 = vld [vmem:[#allocation8 + $0xb1c] sm:$0xf] }
 0x1e2   :  { %v8778_v22 = vor.u32 %v11086_v10, %v8775_v21  ;;  %v8679_v55 = vld [vmem:[#allocation8 + $0xb30] sm:$0xf0]  ;;  %v8653_v10 = vld [vmem:[#allocation8 + $0xae8] sm:$0xf]  ;;  %v11059_v21 = vld [vmem:[#allocation8 + $0xafc] sm:$0xf0] }
 0x1e3   :  { %4597 = vmatpush.bf16.msrb.mxu2 %v8586_v38  ;;  %v8682_v3 = vor.u32 %v11062_v17, %v8679_v55  ;;  %v8655_v60 = vld [vmem:[#allocation8 + $0xb00] sm:$0xf0] }
 0x1e4   :  { %4465 = vmatmul.bf16.vlgmr.msrb.gmra.mxu0 %v12060_v6 }
 0x1e5   :  { %4549 = vmatmul.bf16.vlgmr.msra.gmra.mxu2 %v12060_v6  ;;  %4517 = vmatpush.bf16.msra.mxu0 %v8486_v53  ;;  %v11083_v53 = vld [vmem:[#allocation8 + $0xbbc] sm:$0xf0] }
 0x1e6   :  { %v2578_v35 = vpop.f32.mrf.mxu3  ;;  %v2538_v38 = vpop.f32.mrf.mxu0 }
 0x1e7   :  { %4598 = vmatpush.bf16.msrb.mxu2 %v8562_v57  ;;  %v2564_v32 = vpop.f32.mrf.mxu2  ;;  %v2539_v45 = vadd.f32 %v2538_v38, %v2525_v18  ;;  %v2552_v30 = vpop.f32.mrf.mxu1  ;;  %v8413_v57 = vld [vmem:[#allocation8 + $0x908] sm:$0xf]  ;;  %v11212_v18 = vld [vmem:[#allocation8 + $0xfcc] sm:$0xf]  ;;  %v9279_v38 = vld [vmem:[#allocation8 + $0xfe0] sm:$0xf0] }
 0x1e8   :  { %v2565_v16 = vadd.f32 %v2564_v32, %v2551_v37  ;;  %v8414_v36 = vor.u32 %v10999_v5, %v8413_v57  ;;  %v9277_v32 = vld [vmem:[#allocation8 + $0xfc8] sm:$0xf]  ;;  %v8750_v37 = vor.u32 %v11083_v53, %v8749_v11  ;;  %v9282_v46 = vor.u32 %v11212_v18, %v9279_v38  ;;  %v11134_v11 = vld [vmem:[#allocation8 + $0xd5c] sm:$0xf]  ;;  %v8967_v53 = vld [vmem:[#allocation8 + $0xd70] sm:$0xf0] }
 0x1e9   :  { %4518 = vmatpush.bf16.msra.mxu0 %v8462_v42  ;;  %v2553_v48 = vadd.f32 %v2552_v30, %v2539_v45  ;;  %v8754_v42 = vor.u32 %v11080_v9, %v8751_v31  ;;  %v11209_v30 = vld [vmem:[#allocation8 + $0xfac] sm:$0xf0]  ;;  %v8730_v5 = vor.u32 %v11074_v24, %v8727_v49  ;;  %v8654_v9 = vor.u32 %v11059_v21, %v8653_v10  ;;  %v11132_v49 = vld [vmem:[#allocation8 + $0xd44] sm:$0xf0] }
 0x1ea   :  { %v2579_v0 = vadd.f32 %v2578_v35, %v2565_v16  ;;  %v11215_v35 = vld [vmem:[#allocation8 + $0xfdc] sm:$0xf0]  ;;  %v9253_v16 = vld [vmem:[#allocation8 + $0xf98] sm:$0xf]  ;;  %v11053_v38 = vld [vmem:[#allocation8 + $0xacc] sm:$0xf0] }
 0x1eb   :  { %4599 = vmatpush.bf16.msrb.mxu2 %v8538_v7  ;;  %v8418_v7 = vor.u32 %v10996_v59, %v8415_v39  ;;  %v9278_v45 = vor.u32 %v11215_v35, %v9277_v32  ;;  %v11071_v59 = vld [vmem:[#allocation8 + $0xb5c] sm:$0xf0]  ;;  %v9254_v39 = vor.u32 %v11209_v30, %v9253_v16  ;;  %v8629_v32 = vld [vmem:[#allocation8 + $0xab8] sm:$0xf]  ;;  %v8949_v24 = vld [vmem:[#allocation8 + $0xd30] sm:$0xf] }
 0x1ec   :  { %11600 = vtanh.f32 %v2579_v0  ;;  %v11068_v0 = vld [vmem:[#allocation8 + $0xb4c] sm:$0xf]  ;;  %v8630_v16 = vor.u32 %v11053_v38, %v8629_v32  ;;  %v9471_v38 = vld [vmem:[#allocation8 + $0x1160] sm:$0xf0] }
 0x1ed   :  { %4519 = vmatpush.bf16.msra.mxu0 %v8438_v51  ;;  %v11206_v51 = vld [vmem:[#allocation8 + $0xf9c] sm:$0xf] }
 0x1ee   :  { %v2580_v50 = vpop.f32.mrf.mxu3 }
 0x1ef   :  { %4600 = vmatpush.bf16.msrb.mxu2 %v8514_v23  ;;  %v2566_v4 = vpop.f32.mrf.mxu2  ;;  %v9301_v23 = vld [vmem:[#allocation8 + $0xff8] sm:$0xf] }
 0x1f0   :  { %v2567_v33 = vadd.f32 %v2566_v4, %v2553_v48  ;;  %v9302_v61 = vor.u32 %v11221_v2, %v9301_v23  ;;  %v8701_v48 = vld [vmem:[#allocation8 + $0xb48] sm:$0xf]  ;;  %v8703_v4 = vld [vmem:[#allocation8 + $0xb60] sm:$0xf0]  ;;  %v11056_v23 = vld [vmem:[#allocation8 + $0xaec] sm:$0xf]  ;;  %v9206_v2 = vor.u32 %v11197_v14, %v9205_v19 }
 0x1f1   :  { %4520 = vmatpush.bf16.msra.mxu0 %v8414_v36  ;;  %v8706_v36 = vor.u32 %v11068_v0, %v8703_v4  ;;  %v8658_v31 = vor.u32 %v11056_v23, %v8655_v60  ;;  %v11278_v0 = vld [vmem:[#allocation8 + $0x11dc] sm:$0xf]  ;;  %v9543_v4 = vld [vmem:[#allocation8 + $0x11f0] sm:$0xf0]  ;;  %v11272_v19 = vld [vmem:[#allocation8 + $0x11ac] sm:$0xf] }
 0x1f2   :  { %v2581_v8 = vadd.f32 %v2580_v50, %v2567_v33  ;;  %v11601_v54 = vpop.eup %11600  ;;  %v9231_v33 = vld [vmem:[#allocation8 + $0xf80] sm:$0xf0]  ;;  %v8702_v50 = vor.u32 %v11071_v59, %v8701_v48  ;;  %v9541_v48 = vld [vmem:[#allocation8 + $0x11d8] sm:$0xf]  ;;  %v11281_v59 = vld [vmem:[#allocation8 + $0x11ec] sm:$0xf0] }
 0x1f3   :  { %4601 = vmatpush.bf16.msrb.mxu2 %v8490_v40  ;;  %v9519_v14 = vld [vmem:[#allocation8 + $0x11c0] sm:$0xf0]  ;;  %v9493_v23 = vld [vmem:[#allocation8 + $0x1178] sm:$0xf] }
 0x1f4   :  { %11602 = vtanh.f32 %v2581_v8  ;;  %4521 = vmatmul.bf16.vlgmr.msra.gmra.mxu0 %v12063_v34  ;;  %v11065_v8 = vld [vmem:[#allocation8 + $0xb2c] sm:$0xf0]  ;;  %v9522_v21 = vor.u32 %v11272_v19, %v9519_v14 }
 0x1f5   :  { %4569 = vmatpush.bf16.msrb.mxu0 %v9350_v12  ;;  %v9230_v12 = vor.u32 %v11203_v1, %v9229_v44  ;;  %v11122_v44 = vld [vmem:[#allocation8 + $0xcfc] sm:$0xf]  ;;  %v8919_v1 = vld [vmem:[#allocation8 + $0xd10] sm:$0xf0] }
 0x1f6   :  { %v8922_v17 = vor.u32 %v11122_v44, %v8919_v1  ;;  %v11248_v44 = vld [vmem:[#allocation8 + $0x10ec] sm:$0xf] }
 0x1f7   :  { %4602 = vmatpush.bf16.msrb.mxu2 %v8466_v41  ;;  %v8725_v41 = vld [vmem:[#allocation8 + $0xb78] sm:$0xf] }
 0x1f8   :  { %v8726_v57 = vor.u32 %v11077_v47, %v8725_v41  ;;  %v8970_v41 = vor.u32 %v11134_v11, %v8967_v53  ;;  %v8877_v11 = vld [vmem:[#allocation8 + $0xca0] sm:$0xf]  ;;  %v11114_v53 = vld [vmem:[#allocation8 + $0xcb4] sm:$0xf0] }
 0x1f9   :  { %4570 = vmatpush.bf16.msrb.mxu0 %v9326_v13  ;;  %v11194_v13 = vld [vmem:[#allocation8 + $0xf3c] sm:$0xf] }
 0x1fa   :  { %v11603_v52 = vpop.eup %11602 }
 0x1fb   :  { %4603 = vmatpush.bf16.msrb.mxu2 %v8442_v56  ;;  %v12087_v40 = vpack.c.bf16 %v11603_v52, %v11601_v54  ;;  %v9255_v56 = vld [vmem:[#allocation8 + $0xfb0] sm:$0xf0]  ;;  %v9181_v54 = vld [vmem:[#allocation8 + $0xf08] sm:$0xf]  ;;  %v11191_v52 = vld [vmem:[#allocation8 + $0xf1c] sm:$0xf0] }
 0x1fc   :  { %v9258_v63 = vor.u32 %v11206_v51, %v9255_v56  ;;  %v9182_v35 = vor.u32 %v11191_v52, %v9181_v54  ;;  %v8605_v51 = vld [vmem:[#allocation8 + $0xa88] sm:$0xf]  ;;  %v11047_v56 = vld [vmem:[#allocation8 + $0xa9c] sm:$0xf0]  ;;  %v11266_v54 = vld [vmem:[#allocation8 + $0x117c] sm:$0xf] }
 0x1fd   :  { %4423 = vmatmul.bf16.vlgmr.msra.gmra.mxu1 %v12087_v40  ;;  %4507 = vmatmul.bf16.vlgmr.msrb.gmra.mxu3 %v12087_v40  ;;  %v9495_v52 = vld [vmem:[#allocation8 + $0x1190] sm:$0xf0] }
 0x1fe   :  { %4527 = vmatpush.bf16.msra.mxu1 %v8774_v26  ;;  %4611 = vmatpush.bf16.msrb.mxu3 %v8778_v22  ;;  %v11188_v26 = vld [vmem:[#allocation8 + $0xf0c] sm:$0xf]  ;;  %v9183_v22 = vld [vmem:[#allocation8 + $0xf20] sm:$0xf0] }
 0x1ff   :  { %4604 = vmatpush.bf16.msrb.mxu2 %v8418_v7  ;;  %4571 = vmatpush.bf16.msrb.mxu0 %v9302_v61  ;;  %v8677_v7 = vld [vmem:[#allocation8 + $0xb18] sm:$0xf]  ;;  %v8973_v61 = vld [vmem:[#allocation8 + $0xd60] sm:$0xf]  ;;  %v9186_v18 = vor.u32 %v11188_v26, %v9183_v22  ;;  %v11110_v26 = vld [vmem:[#allocation8 + $0xc9c] sm:$0xf] }
 0x200   :  { %v8678_v62 = vor.u32 %v11065_v8, %v8677_v7  ;;  %v9542_v7 = vor.u32 %v11281_v59, %v9541_v48  ;;  %v9546_v8 = vor.u32 %v11278_v0, %v9543_v4  ;;  %v8871_v22 = vld [vmem:[#allocation8 + $0xcb0] sm:$0xf0]  ;;  %v8829_v48 = vld [vmem:[#allocation8 + $0xc40] sm:$0xf]  ;;  %v11102_v59 = vld [vmem:[#allocation8 + $0xc54] sm:$0xf0] }
 0x201   :  { %v8874_v32 = vor.u32 %v11110_v26, %v8871_v22  ;;  %v9421_v0 = vld [vmem:[#allocation8 + $0x10e8] sm:$0xf]  ;;  %v11251_v4 = vld [vmem:[#allocation8 + $0x10fc] sm:$0xf0] }
 0x202   :  { %4605 = vmatmul.bf16.vlgmr.msrb.gmra.mxu2 %v12063_v34  ;;  %4528 = vmatpush.bf16.msra.mxu1 %v8750_v37  ;;  %v11050_v37 = vld [vmem:[#allocation8 + $0xabc] sm:$0xf]  ;;  %v9422_v19 = vor.u32 %v11251_v4, %v9421_v0 }
 0x203   :  { %4653 = vmatpush.bf16.msra.mxu2 %v9354_v15  ;;  %4612 = vmatpush.bf16.msrb.mxu3 %v8754_v42  ;;  %v9234_v15 = vor.u32 %v11200_v28, %v9231_v33  ;;  %v8631_v42 = vld [vmem:[#allocation8 + $0xad0] sm:$0xf0]  ;;  %v8925_v28 = vld [vmem:[#allocation8 + $0xd00] sm:$0xf]  ;;  %v11126_v33 = vld [vmem:[#allocation8 + $0xd14] sm:$0xf0] }
 0x204   :  { %4572 = vmatpush.bf16.msrb.mxu0 %v9278_v45  ;;  %v11128_v45 = vld [vmem:[#allocation8 + $0xd2c] sm:$0xf]  ;;  %v8634_v30 = vor.u32 %v11050_v37, %v8631_v42  ;;  %v8926_v55 = vor.u32 %v11126_v33, %v8925_v28  ;;  %v8847_v42 = vld [vmem:[#allocation8 + $0xc80] sm:$0xf0]  ;;  %v8830_v28 = vor.u32 %v11102_v59, %v8829_v48  ;;  %v8517_v48 = vld [vmem:[#allocation8 + $0x9d0] sm:$0xf] }
 0x205   :  { %v11104_v37 = vld [vmem:[#allocation8 + $0xc6c] sm:$0xf]  ;;  %v9423_v33 = vld [vmem:[#allocation8 + $0x1100] sm:$0xf0]  ;;  %v11024_v59 = vld [vmem:[#allocation8 + $0x9e4] sm:$0xf0] }
 0x206   :  { %4529 = vmatpush.bf16.msra.mxu1 %v8726_v57  ;;  %v11044_v57 = vld [vmem:[#allocation8 + $0xa8c] sm:$0xf]  ;;  %v9426_v14 = vor.u32 %v11248_v44, %v9423_v33  ;;  %v11170_v44 = vld [vmem:[#allocation8 + $0xe7c] sm:$0xf] }
 0x207   :  { %4654 = vmatpush.bf16.msra.mxu2 %v9330_v20  ;;  %4613 = vmatpush.bf16.msrb.mxu3 %v8730_v5  ;;  %v9207_v20 = vld [vmem:[#allocation8 + $0xf50] sm:$0xf0]  ;;  %v8607_v5 = vld [vmem:[#allocation8 + $0xaa0] sm:$0xf0] }
 0x208   :  { %4573 = vmatpush.bf16.msrb.mxu0 %v9254_v39  ;;  %v9210_v25 = vor.u32 %v11194_v13, %v9207_v20  ;;  %v11116_v13 = vld [vmem:[#allocation8 + $0xccc] sm:$0xf]  ;;  %v8895_v20 = vld [vmem:[#allocation8 + $0xce0] sm:$0xf0] }
 0x20a   :  { %4530 = vmatpush.bf16.msra.mxu1 %v8702_v50  ;;  %v8606_v50 = vor.u32 %v11047_v56, %v8605_v51  ;;  %v11254_v51 = vld [vmem:[#allocation8 + $0x111c] sm:$0xf]  ;;  %v9447_v56 = vld [vmem:[#allocation8 + $0x1130] sm:$0xf0] }
 0x20b   :  { %4655 = vmatpush.bf16.msra.mxu2 %v9306_v43  ;;  %4614 = vmatpush.bf16.msrb.mxu3 %v8706_v36  ;;  %v11138_v43 = vld [vmem:[#allocation8 + $0xd74] sm:$0xf0]  ;;  %v8610_v36 = vor.u32 %v11044_v57, %v8607_v5  ;;  %v11098_v57 = vld [vmem:[#allocation8 + $0xc3c] sm:$0xf]  ;;  %v8823_v5 = vld [vmem:[#allocation8 + $0xc50] sm:$0xf0] }
 0x20c   :  { %4574 = vmatpush.bf16.msrb.mxu0 %v9230_v12  ;;  %v8974_v47 = vor.u32 %v11138_v43, %v8973_v61  ;;  %v9517_v12 = vld [vmem:[#allocation8 + $0x11a8] sm:$0xf]  ;;  %v9498_v43 = vor.u32 %v11266_v54, %v9495_v52  ;;  %v8826_v1 = vor.u32 %v11098_v57, %v8823_v5  ;;  %v11033_v54 = vld [vmem:[#allocation8 + $0xa34] sm:$0xf]  ;;  %v8567_v52 = vld [vmem:[#allocation8 + $0xa48] sm:$0xf0] }
 0x20d   :  { %4479 = vmatmul.bf16.vlgmr.msrb.gmra.mxu1 %v12071_v58  ;;  %4563 = vmatmul.bf16.vlgmr.msra.gmra.mxu3 %v12071_v58  ;;  %v9141_v57 = vld [vmem:[#allocation8 + $0xeb0] sm:$0xf]  ;;  %v11180_v5 = vld [vmem:[#allocation8 + $0xec4] sm:$0xf0] }
 0x20e   :  { %4531 = vmatpush.bf16.msra.mxu1 %v8678_v62  ;;  %v8901_v62 = vld [vmem:[#allocation8 + $0xcd0] sm:$0xf]  ;;  %v9142_v4 = vor.u32 %v11180_v5, %v9141_v57 }
 0x20f   :  { %4656 = vmatpush.bf16.msra.mxu2 %v9282_v46  ;;  %4615 = vmatpush.bf16.msrb.mxu3 %v8682_v3  ;;  %v8943_v46 = vld [vmem:[#allocation8 + $0xd40] sm:$0xf0]  ;;  %v11120_v3 = vld [vmem:[#allocation8 + $0xce4] sm:$0xf0] }
 0x210   :  { %4575 = vmatpush.bf16.msrb.mxu0 %v9206_v2  ;;  %v8946_v39 = vor.u32 %v11128_v45, %v8943_v46  ;;  %v11269_v2 = vld [vmem:[#allocation8 + $0x118c] sm:$0xf0]  ;;  %v8902_v60 = vor.u32 %v11120_v3, %v8901_v62 }
 0x211   :  { %v9494_v61 = vor.u32 %v11269_v2, %v9493_v23  ;;  %v11245_v3 = vld [vmem:[#allocation8 + $0x10cc] sm:$0xf0] }
 0x212   :  { %4532 = vmatpush.bf16.msra.mxu1 %v8654_v9  ;;  %v9469_v9 = vld [vmem:[#allocation8 + $0x1148] sm:$0xf] }
 0x213   :  { %4657 = vmatpush.bf16.msra.mxu2 %v9258_v63  ;;  %4616 = vmatpush.bf16.msrb.mxu3 %v8658_v31  ;;  %v8950_v63 = vor.u32 %v11132_v49, %v8949_v24  ;;  %v11263_v31 = vld [vmem:[#allocation8 + $0x115c] sm:$0xf0]  ;;  %v9445_v24 = vld [vmem:[#allocation8 + $0x1118] sm:$0xf]  ;;  %v11257_v49 = vld [vmem:[#allocation8 + $0x112c] sm:$0xf0] }
 0x214   :  { %4576 = vmatpush.bf16.msrb.mxu0 %v9182_v35  ;;  %v8878_v35 = vor.u32 %v11114_v53, %v8877_v11  ;;  %v9470_v45 = vor.u32 %v11263_v31, %v9469_v9  ;;  %v9373_v11 = vld [vmem:[#allocation8 + $0x1088] sm:$0xf]  ;;  %v11239_v53 = vld [vmem:[#allocation8 + $0x109c] sm:$0xf0]  ;;  %v11182_v9 = vld [vmem:[#allocation8 + $0xedc] sm:$0xf] }
 0x215   :  { %v9159_v31 = vld [vmem:[#allocation8 + $0xef0] sm:$0xf0] }
 0x216   :  { %4533 = vmatpush.bf16.msra.mxu1 %v8630_v16  ;;  %v8850_v16 = vor.u32 %v11104_v37, %v8847_v42  ;;  %v8541_v37 = vld [vmem:[#allocation8 + $0xa00] sm:$0xf]  ;;  %v11030_v42 = vld [vmem:[#allocation8 + $0xa14] sm:$0xf0] }
 0x217   :  { %4658 = vmatpush.bf16.msra.mxu2 %v9234_v15  ;;  %4617 = vmatpush.bf16.msrb.mxu3 %v8634_v30  ;;  %v11275_v15 = vld [vmem:[#allocation8 + $0x11bc] sm:$0xf0] }
 0x218   :  { %4625 = vmatpush.bf16.msra.mxu0 %v8970_v41  ;;  %v9518_v10 = vor.u32 %v11275_v15, %v9517_v12  ;;  %v8853_v41 = vld [vmem:[#allocation8 + $0xc70] sm:$0xf]  ;;  %v8589_v12 = vld [vmem:[#allocation8 + $0xa60] sm:$0xf]  ;;  %v11042_v15 = vld [vmem:[#allocation8 + $0xa74] sm:$0xf0] }
 0x219   :  { %4577 = vmatmul.bf16.vlgmr.msrb.gmra.mxu0 %v12078_v29  ;;  %v8590_v23 = vor.u32 %v11042_v15, %v8589_v12  ;;  %v11015_v12 = vld [vmem:[#allocation8 + $0x9a4] sm:$0xf]  ;;  %v8495_v15 = vld [vmem:[#allocation8 + $0x9b8] sm:$0xf0] }
 0x21a   :  { %4534 = vmatpush.bf16.msra.mxu1 %v8606_v50  ;;  %v11092_v50 = vld [vmem:[#allocation8 + $0xc0c] sm:$0xf] }
 0x21b   :  { %4659 = vmatpush.bf16.msra.mxu2 %v9210_v25  ;;  %4618 = vmatpush.bf16.msrb.mxu3 %v8610_v36  ;;  %v8898_v25 = vor.u32 %v11116_v13, %v8895_v20  ;;  %v8799_v36 = vld [vmem:[#allocation8 + $0xc20] sm:$0xf0]  ;;  %v9397_v13 = vld [vmem:[#allocation8 + $0x10b8] sm:$0xf] }
 0x21c   :  { %4626 = vmatpush.bf16.msra.mxu0 %v8946_v39  ;;  %v9446_v39 = vor.u32 %v11257_v49, %v9445_v24  ;;  %v8802_v20 = vor.u32 %v11092_v50, %v8799_v36  ;;  %v9398_v26 = vor.u32 %v11245_v3, %v9397_v13  ;;  %v9162_v24 = vor.u32 %v11182_v9, %v9159_v31  ;;  %v9117_v50 = vld [vmem:[#allocation8 + $0xe80] sm:$0xf]  ;;  %v11174_v36 = vld [vmem:[#allocation8 + $0xe94] sm:$0xf0]  ;;  %v11168_v3 = vld [vmem:[#allocation8 + $0xe64] sm:$0xf0] }
 0x21d   :  { %4535 = vmatmul.bf16.vlgmr.msra.gmra.mxu1 %v12065_v27  ;;  %v11003_v9 = vld [vmem:[#allocation8 + $0x944] sm:$0xf]  ;;  %v8447_v31 = vld [vmem:[#allocation8 + $0x958] sm:$0xf0] }
 0x21e   :  { %4583 = vmatpush.bf16.msrb.mxu1 %v9542_v7  ;;  %4619 = vmatmul.bf16.vlgmr.msrb.gmra.mxu3 %v12065_v27  ;;  %v8805_v7 = vld [vmem:[#allocation8 + $0xc10] sm:$0xf] }
 0x21f   :  { %4660 = vmatpush.bf16.msra.mxu2 %v9186_v18  ;;  %4667 = vmatpush.bf16.msra.mxu3 %v9546_v8  ;;  %v11260_v18 = vld [vmem:[#allocation8 + $0x114c] sm:$0xf]  ;;  %v11096_v8 = vld [vmem:[#allocation8 + $0xc24] sm:$0xf0] }
 0x220   :  { %4627 = vmatpush.bf16.msra.mxu0 %v8922_v17  ;;  %v9474_v46 = vor.u32 %v11260_v18, %v9471_v38  ;;  %v11039_v17 = vld [vmem:[#allocation8 + $0xa64] sm:$0xf]  ;;  %v8806_v62 = vor.u32 %v11096_v8, %v8805_v7  ;;  %v9165_v18 = vld [vmem:[#allocation8 + $0xee0] sm:$0xf]  ;;  %v11186_v38 = vld [vmem:[#allocation8 + $0xef4] sm:$0xf0] }
 0x221   :  { %v9166_v49 = vor.u32 %v11186_v38, %v9165_v18  ;;  %v8493_v7 = vld [vmem:[#allocation8 + $0x9a0] sm:$0xf]  ;;  %v11018_v8 = vld [vmem:[#allocation8 + $0x9b4] sm:$0xf0]  ;;  %v11152_v18 = vld [vmem:[#allocation8 + $0xdec] sm:$0xf] }
 0x222   :  { %4661 = vmatmul.bf16.vlgmr.msra.gmra.mxu2 %v12078_v29  ;;  %4584 = vmatpush.bf16.msrb.mxu1 %v9518_v10  ;;  %v11242_v10 = vld [vmem:[#allocation8 + $0x10bc] sm:$0xf]  ;;  %v8494_v13 = vor.u32 %v11018_v8, %v8493_v7  ;;  %v9039_v38 = vld [vmem:[#allocation8 + $0xe00] sm:$0xf0] }
 0x223   :  { %4709 = vmatpush.bf16.msrb.mxu2 %v8974_v47  ;;  %4668 = vmatpush.bf16.msra.mxu3 %v9522_v21  ;;  %v11108_v47 = vld [vmem:[#allocation8 + $0xc84] sm:$0xf0]  ;;  %v9399_v21 = vld [vmem:[#allocation8 + $0x10d0] sm:$0xf0]  ;;  %v9042_v57 = vor.u32 %v11152_v18, %v9039_v38  ;;  %v8733_v38 = vld [vmem:[#allocation8 + $0xb80] sm:$0xf] }
 0x224   :  { %4628 = vmatpush.bf16.msra.mxu0 %v8898_v25  ;;  %v8854_v30 = vor.u32 %v11108_v47, %v8853_v41  ;;  %v8565_v25 = vld [vmem:[#allocation8 + $0xa30] sm:$0xf]  ;;  %v9402_v22 = vor.u32 %v11242_v10, %v9399_v21  ;;  %v11027_v41 = vld [vmem:[#allocation8 + $0xa04] sm:$0xf]  ;;  %v8543_v47 = vld [vmem:[#allocation8 + $0xa18] sm:$0xf0] }
 0x225   :  { %v8469_v10 = vld [vmem:[#allocation8 + $0x970] sm:$0xf]  ;;  %v11012_v21 = vld [vmem:[#allocation8 + $0x984] sm:$0xf0] }
 0x226   :  { %4585 = vmatpush.bf16.msrb.mxu1 %v9494_v61  ;;  %v11236_v61 = vld [vmem:[#allocation8 + $0x108c] sm:$0xf] }
 0x227   :  { %4710 = vmatpush.bf16.msrb.mxu2 %v8950_v63  ;;  %4669 = vmatpush.bf16.msra.mxu3 %v9498_v43  ;;  %v9450_v63 = vor.u32 %v11254_v51, %v9447_v56  ;;  %v9375_v43 = vld [vmem:[#allocation8 + $0x10a0] sm:$0xf0]  ;;  %v8542_v51 = vor.u32 %v11030_v42, %v8541_v37  ;;  %v8546_v56 = vor.u32 %v11027_v41, %v8543_v47  ;;  %v9045_v37 = vld [vmem:[#allocation8 + $0xdf0] sm:$0xf]  ;;  %v11156_v47 = vld [vmem:[#allocation8 + $0xe04] sm:$0xf0] }
 0x228   :  { %4629 = vmatpush.bf16.msra.mxu0 %v8874_v32  ;;  %v8450_v41 = vor.u32 %v11003_v9, %v8447_v31  ;;  %v9046_v5 = vor.u32 %v11156_v47, %v9045_v37  ;;  %v9285_v9 = vld [vmem:[#allocation8 + $0xfd0] sm:$0xf]  ;;  %v11216_v31 = vld [vmem:[#allocation8 + $0xfe4] sm:$0xf0]  ;;  %v11078_v37 = vld [vmem:[#allocation8 + $0xb94] sm:$0xf0] }
 0x229   :  { %v11075_v47 = vld [vmem:[#allocation8 + $0xb84] sm:$0xf] }
 0x22a   :  { %4586 = vmatpush.bf16.msrb.mxu1 %v9470_v45  ;;  %v9374_v45 = vor.u32 %v11239_v53, %v9373_v11  ;;  %v9069_v11 = vld [vmem:[#allocation8 + $0xe20] sm:$0xf]  ;;  %v11162_v53 = vld [vmem:[#allocation8 + $0xe34] sm:$0xf0] }
 0x22b   :  { %4711 = vmatpush.bf16.msrb.mxu2 %v8926_v55  ;;  %4670 = vmatpush.bf16.msra.mxu3 %v9474_v46  ;;  %v8591_v55 = vld [vmem:[#allocation8 + $0xa78] sm:$0xf0]  ;;  %v9378_v46 = vor.u32 %v11236_v61, %v9375_v43  ;;  %v8445_v61 = vld [vmem:[#allocation8 + $0x940] sm:$0xf]  ;;  %v11006_v43 = vld [vmem:[#allocation8 + $0x954] sm:$0xf0] }
 0x22c   :  { %4630 = vmatpush.bf16.msra.mxu0 %v8850_v16  ;;  %v8594_v2 = vor.u32 %v11039_v17, %v8591_v55  ;;  %v11176_v16 = vld [vmem:[#allocation8 + $0xeac] sm:$0xf]  ;;  %v9118_v55 = vor.u32 %v11174_v36, %v9117_v50  ;;  %v8446_v42 = vor.u32 %v11006_v43, %v8445_v61  ;;  %v11225_v50 = vld [vmem:[#allocation8 + $0x1034] sm:$0xf] }
 0x22d   :  { %v9335_v36 = vld [vmem:[#allocation8 + $0x1048] sm:$0xf0]  ;;  %v11081_v61 = vld [vmem:[#allocation8 + $0xbb4] sm:$0xf] }
 0x22e   :  { %4587 = vmatpush.bf16.msrb.mxu1 %v9446_v39  ;;  %v11021_v39 = vld [vmem:[#allocation8 + $0x9d4] sm:$0xf]  ;;  %v8759_v43 = vld [vmem:[#allocation8 + $0xbc8] sm:$0xf0] }
 0x22f   :  { %4712 = vmatpush.bf16.msrb.mxu2 %v8902_v60  ;;  %4671 = vmatpush.bf16.msra.mxu3 %v9450_v63  ;;  %v11036_v60 = vld [vmem:[#allocation8 + $0xa44] sm:$0xf0]  ;;  %v8519_v63 = vld [vmem:[#allocation8 + $0x9e8] sm:$0xf0] }
 0x230   :  { %4631 = vmatpush.bf16.msra.mxu0 %v8826_v1  ;;  %v8566_v32 = vor.u32 %v11036_v60, %v8565_v25  ;;  %v9111_v1 = vld [vmem:[#allocation8 + $0xe90] sm:$0xf0]  ;;  %v8522_v33 = vor.u32 %v11021_v39, %v8519_v63 }
 0x231   :  { %v9114_v17 = vor.u32 %v11170_v44, %v9111_v1  ;;  %v9015_v63 = vld [vmem:[#allocation8 + $0xdd0] sm:$0xf0] }
 0x232   :  { %4588 = vmatpush.bf16.msrb.mxu1 %v9422_v19  ;;  %v11164_v19 = vld [vmem:[#allocation8 + $0xe4c] sm:$0xf] }
 0x233   :  { %4713 = vmatpush.bf16.msrb.mxu2 %v8878_v35  ;;  %4672 = vmatpush.bf16.msra.mxu3 %v9426_v14  ;;  %v8570_v35 = vor.u32 %v11033_v54, %v8567_v52  ;;  %v9087_v14 = vld [vmem:[#allocation8 + $0xe60] sm:$0xf0]  ;;  %v11158_v54 = vld [vmem:[#allocation8 + $0xe1c] sm:$0xf]  ;;  %v9063_v52 = vld [vmem:[#allocation8 + $0xe30] sm:$0xf0] }
 0x234   :  { %4632 = vmatpush.bf16.msra.mxu0 %v8802_v20  ;;  %v8498_v20 = vor.u32 %v11015_v12, %v8495_v15  ;;  %v9090_v25 = vor.u32 %v11164_v19, %v9087_v14  ;;  %v11140_v12 = vld [vmem:[#allocation8 + $0xd8c] sm:$0xf]  ;;  %v8991_v15 = vld [vmem:[#allocation8 + $0xda0] sm:$0xf0]  ;;  %v8781_v19 = vld [vmem:[#allocation8 + $0xbe0] sm:$0xf] }
 0x235   :  { %v11090_v14 = vld [vmem:[#allocation8 + $0xbf4] sm:$0xf0] }
 0x236   :  { %4589 = vmatpush.bf16.msrb.mxu1 %v9398_v26  ;;  %v8470_v26 = vor.u32 %v11012_v21, %v8469_v10  ;;  %v9309_v10 = vld [vmem:[#allocation8 + $0x1000] sm:$0xf]  ;;  %v11222_v21 = vld [vmem:[#allocation8 + $0x1014] sm:$0xf0] }
 0x237   :  { %4714 = vmatpush.bf16.msrb.mxu2 %v8854_v30  ;;  %4673 = vmatpush.bf16.msra.mxu3 %v9402_v22  ;;  %v9135_v30 = vld [vmem:[#allocation8 + $0xec0] sm:$0xf0] }
 0x238   :  { %4681 = vmatpush.bf16.msrb.mxu0 %v8590_v23  ;;  %v9138_v0 = vor.u32 %v11176_v16, %v9135_v30  ;;  %v11009_v23 = vld [vmem:[#allocation8 + $0x974] sm:$0xf]  ;;  %v9357_v16 = vld [vmem:[#allocation8 + $0x1060] sm:$0xf]  ;;  %v11234_v30 = vld [vmem:[#allocation8 + $0x1074] sm:$0xf0] }
 0x239   :  { %4633 = vmatmul.bf16.vlgmr.msra.gmra.mxu0 %v12060_v6  ;;  %v9358_v44 = vor.u32 %v11234_v30, %v9357_v16  ;;  %v9263_v16 = vld [vmem:[#allocation8 + $0xfb8] sm:$0xf0]  ;;  %v8734_v30 = vor.u32 %v11078_v37, %v8733_v38 }
 0x23a   :  { %4590 = vmatpush.bf16.msrb.mxu1 %v9374_v45  ;;  %v8421_v45 = vld [vmem:[#allocation8 + $0x910] sm:$0xf]  ;;  %v8639_v38 = vld [vmem:[#allocation8 + $0xad8] sm:$0xf0] }
 0x23b   :  { %4715 = vmatpush.bf16.msrb.mxu2 %v8830_v28  ;;  %4674 = vmatpush.bf16.msra.mxu3 %v9378_v46  ;;  %v8518_v28 = vor.u32 %v11024_v59, %v8517_v48  ;;  %v11000_v46 = vld [vmem:[#allocation8 + $0x924] sm:$0xf0]  ;;  %v11146_v48 = vld [vmem:[#allocation8 + $0xdbc] sm:$0xf] }
 0x23c   :  { %4682 = vmatpush.bf16.msrb.mxu0 %v8566_v32  ;;  %v9066_v32 = vor.u32 %v11158_v54, %v9063_v52  ;;  %v8422_v59 = vor.u32 %v11000_v46, %v8421_v45  ;;  %v9018_v7 = vor.u32 %v11146_v48, %v9015_v63  ;;  %v8782_v54 = vor.u32 %v11090_v14, %v8781_v19  ;;  %v8735_v45 = vld [vmem:[#allocation8 + $0xb98] sm:$0xf0]  ;;  %v9261_v46 = vld [vmem:[#allocation8 + $0xfa0] sm:$0xf]  ;;  %v9237_v63 = vld [vmem:[#allocation8 + $0xf70] sm:$0xf] }
 0x23d   :  { %4591 = vmatmul.bf16.vlgmr.msrb.gmra.mxu1 %v12087_v40  ;;  %v11195_v19 = vld [vmem:[#allocation8 + $0xf44] sm:$0xf]  ;;  %v9215_v14 = vld [vmem:[#allocation8 + $0xf58] sm:$0xf0] }
 0x23e   :  { %4639 = vmatpush.bf16.msra.mxu1 %v9162_v24  ;;  %4675 = vmatmul.bf16.vlgmr.msra.gmra.mxu3 %v12087_v40  ;;  %v10997_v24 = vld [vmem:[#allocation8 + $0x914] sm:$0xf] }
 0x23f   :  { %4716 = vmatpush.bf16.msrb.mxu2 %v8806_v62  ;;  %4723 = vmatpush.bf16.msrb.mxu3 %v9166_v49  ;;  %v9093_v62 = vld [vmem:[#allocation8 + $0xe50] sm:$0xf]  ;;  %v8423_v49 = vld [vmem:[#allocation8 + $0x928] sm:$0xf0] }
 0x240   :  { %4683 = vmatpush.bf16.msrb.mxu0 %v8542_v51  ;;  %v9094_v60 = vor.u32 %v11168_v3, %v9093_v62  ;;  %v11231_v51 = vld [vmem:[#allocation8 + $0x1064] sm:$0xf]  ;;  %v8426_v39 = vor.u32 %v10997_v24, %v8423_v49  ;;  %v8783_v3 = vld [vmem:[#allocation8 + $0xbf8] sm:$0xf0]  ;;  %v11210_v24 = vld [vmem:[#allocation8 + $0xfb4] sm:$0xf0] }
 0x241   :  { %v11087_v62 = vld [vmem:[#allocation8 + $0xbe4] sm:$0xf] }
 0x242   :  { %4717 = vmatmul.bf16.vlgmr.msrb.gmra.mxu2 %v12060_v6  ;;  %4640 = vmatpush.bf16.msra.mxu1 %v9138_v0  ;;  %v9021_v0 = vld [vmem:[#allocation8 + $0xdc0] sm:$0xf]  ;;  %v8786_v52 = vor.u32 %v11087_v62, %v8783_v3  ;;  %v11207_v49 = vld [vmem:[#allocation8 + $0xfa4] sm:$0xf]  ;;  %v8661_v62 = vld [vmem:[#allocation8 + $0xaf0] sm:$0xf] }
 0x243   :  { %4765 = vmatpush.bf16.msra.mxu2 %v8594_v2  ;;  %4724 = vmatpush.bf16.msrb.mxu3 %v9142_v4  ;;  %v8471_v2 = vld [vmem:[#allocation8 + $0x988] sm:$0xf0]  ;;  %v11150_v4 = vld [vmem:[#allocation8 + $0xdd4] sm:$0xf0]  ;;  %v9266_v48 = vor.u32 %v11207_v49, %v9263_v16  ;;  %v11060_v3 = vld [vmem:[#allocation8 + $0xb04] sm:$0xf0] }
 0x244   :  { %4684 = vmatpush.bf16.msrb.mxu0 %v8518_v28  ;;  %v8474_v22 = vor.u32 %v11009_v23, %v8471_v2  ;;  %v9333_v28 = vld [vmem:[#allocation8 + $0x1030] sm:$0xf]  ;;  %v9022_v8 = vor.u32 %v11150_v4, %v9021_v0  ;;  %v11219_v23 = vld [vmem:[#allocation8 + $0x1004] sm:$0xf]  ;;  %v9311_v2 = vld [vmem:[#allocation8 + $0x1018] sm:$0xf0] }
 0x245   :  { %v11204_v0 = vld [vmem:[#allocation8 + $0xf84] sm:$0xf0]  ;;  %v11201_v4 = vld [vmem:[#allocation8 + $0xf74] sm:$0xf]  ;;  %v8613_v16 = vld [vmem:[#allocation8 + $0xa90] sm:$0xf] }
 0x246   :  { %4641 = vmatpush.bf16.msra.mxu1 %v9114_v17  ;;  %v8997_v17 = vld [vmem:[#allocation8 + $0xd90] sm:$0xf] }
 0x247   :  { %4766 = vmatpush.bf16.msra.mxu2 %v8570_v35  ;;  %4725 = vmatpush.bf16.msrb.mxu3 %v9118_v55  ;;  %v9070_v35 = vor.u32 %v11162_v53, %v9069_v11  ;;  %v11144_v55 = vld [vmem:[#allocation8 + $0xda4] sm:$0xf0]  ;;  %v9310_v11 = vor.u32 %v11222_v21, %v9309_v10  ;;  %v9314_v53 = vor.u32 %v11219_v23, %v9311_v2  ;;  %v11057_v23 = vld [vmem:[#allocation8 + $0xaf4] sm:$0xf]  ;;  %v8663_v2 = vld [vmem:[#allocation8 + $0xb08] sm:$0xf0] }
 0x248   :  { %4685 = vmatpush.bf16.msrb.mxu0 %v8494_v13  ;;  %v9218_v21 = vor.u32 %v11195_v19, %v9215_v14  ;;  %v11117_v14 = vld [vmem:[#allocation8 + $0xcd4] sm:$0xf] }
 0x24a   :  { %4642 = vmatpush.bf16.msra.mxu1 %v9090_v25  ;;  %v8994_v25 = vor.u32 %v11140_v12, %v8991_v15  ;;  %v11063_v12 = vld [vmem:[#allocation8 + $0xb24] sm:$0xf]  ;;  %v8687_v15 = vld [vmem:[#allocation8 + $0xb38] sm:$0xf0] }
 0x24b   :  { %4767 = vmatpush.bf16.msra.mxu2 %v8546_v56  ;;  %4726 = vmatpush.bf16.msrb.mxu3 %v9094_v60  ;;  %v9359_v56 = vld [vmem:[#allocation8 + $0x1078] sm:$0xf0]  ;;  %v8998_v60 = vor.u32 %v11144_v55, %v8997_v17  ;;  %v9213_v17 = vld [vmem:[#allocation8 + $0xf40] sm:$0xf]  ;;  %v11198_v55 = vld [vmem:[#allocation8 + $0xf54] sm:$0xf0] }
 0x24c   :  { %4686 = vmatpush.bf16.msrb.mxu0 %v8470_v26  ;;  %v9362_v1 = vor.u32 %v11231_v51, %v9359_v56  ;;  %v8757_v26 = vld [vmem:[#allocation8 + $0xbb0] sm:$0xf]  ;;  %v8738_v51 = vor.u32 %v11075_v47, %v8735_v45  ;;  %v9214_v10 = vor.u32 %v11198_v55, %v9213_v17  ;;  %v11129_v47 = vld [vmem:[#allocation8 + $0xd34] sm:$0xf]  ;;  %v8951_v45 = vld [vmem:[#allocation8 + $0xd48] sm:$0xf0] }
 0x24d   :  { %v8709_v56 = vld [vmem:[#allocation8 + $0xb50] sm:$0xf]  ;;  %v9527_v17 = vld [vmem:[#allocation8 + $0x11c8] sm:$0xf0] }
 0x24e   :  { %4643 = vmatpush.bf16.msra.mxu1 %v9066_v32  ;;  %v11213_v32 = vld [vmem:[#allocation8 + $0xfd4] sm:$0xf] }
 0x24f   :  { %4768 = vmatpush.bf16.msra.mxu2 %v8522_v33  ;;  %4727 = vmatpush.bf16.msrb.mxu3 %v9070_v35  ;;  %v11228_v33 = vld [vmem:[#allocation8 + $0x1044] sm:$0xf0]  ;;  %v9287_v35 = vld [vmem:[#allocation8 + $0xfe8] sm:$0xf0] }
 0x250   :  { %4687 = vmatpush.bf16.msrb.mxu0 %v8446_v42  ;;  %v9334_v13 = vor.u32 %v11228_v33, %v9333_v28  ;;  %v9286_v42 = vor.u32 %v11216_v31, %v9285_v9  ;;  %v8685_v33 = vld [vmem:[#allocation8 + $0xb20] sm:$0xf]  ;;  %v12111_v31 = vpop.f32.mrf.mxu2 }
 0x251   :  { %v8637_v9 = vld [vmem:[#allocation8 + $0xac0] sm:$0xf] }
 0x252   :  { %4644 = vmatpush.bf16.msra.mxu1 %v9042_v57  ;;  %v11072_v57 = vld [vmem:[#allocation8 + $0xb64] sm:$0xf0] }
 0x253   :  { %4769 = vmatpush.bf16.msra.mxu2 %v8498_v20  ;;  %4728 = vmatpush.bf16.msrb.mxu3 %v9046_v5  ;;  %v9338_v20 = vor.u32 %v11225_v50, %v9335_v36  ;;  %v9262_v5 = vor.u32 %v11210_v24, %v9261_v46  ;;  %v11066_v50 = vld [vmem:[#allocation8 + $0xb34] sm:$0xf0]  ;;  %v12105_v36 = vpop.f32.mrf.mxu0 }
 0x254   :  { %4688 = vmatpush.bf16.msrb.mxu0 %v8422_v59  ;;  %v11069_v59 = vld [vmem:[#allocation8 + $0xb54] sm:$0xf] }
 0x256   :  { %4645 = vmatpush.bf16.msra.mxu1 %v9018_v7  ;;  %v9238_v7 = vor.u32 %v11204_v0, %v9237_v63  ;;  %v11123_v63 = vld [vmem:[#allocation8 + $0xd04] sm:$0xf]  ;;  %v8927_v0 = vld [vmem:[#allocation8 + $0xd18] sm:$0xf0] }
 0x257   :  { %4770 = vmatpush.bf16.msra.mxu2 %v8474_v22  ;;  %4729 = vmatpush.bf16.msrb.mxu3 %v9022_v8  ;;  %v11084_v22 = vld [vmem:[#allocation8 + $0xbc4] sm:$0xf0] }
 0x258   :  { %4737 = vmatpush.bf16.msra.mxu0 %v9358_v44  ;;  %v8758_v18 = vor.u32 %v11084_v22, %v8757_v26  ;;  %v9239_v44 = vld [vmem:[#allocation8 + $0xf88] sm:$0xf0]  ;;  %v11135_v26 = vld [vmem:[#allocation8 + $0xd64] sm:$0xf]  ;;  %v8975_v22 = vld [vmem:[#allocation8 + $0xd78] sm:$0xf0]  ;;  %v4384_v55 = vpop.f32.mrf.mxu2 }
 0x259   :  { %4689 = vmatmul.bf16.vlgmr.msrb.gmra.mxu0 %v12063_v34  ;;  %v9242_v8 = vor.u32 %v11201_v4, %v9239_v44  ;;  %v8978_v37 = vor.u32 %v11135_v26, %v8975_v22  ;;  %v9477_v22 = vld [vmem:[#allocation8 + $0x1150] sm:$0xf] }
 0x25a   :  { %4646 = vmatpush.bf16.msra.mxu1 %v8994_v25  ;;  %v9189_v25 = vld [vmem:[#allocation8 + $0xf10] sm:$0xf] }
 0x25b   :  { %4771 = vmatpush.bf16.msra.mxu2 %v8450_v41  ;;  %4730 = vmatpush.bf16.msrb.mxu3 %v8998_v60  ;;  %v9290_v41 = vor.u32 %v11213_v32, %v9287_v35  ;;  %v11192_v60 = vld [vmem:[#allocation8 + $0xf24] sm:$0xf0] }
 0x25c   :  { %4738 = vmatpush.bf16.msra.mxu0 %v9334_v13  ;;  %v8686_v13 = vor.u32 %v11066_v50, %v8685_v33  ;;  %v9190_v32 = vor.u32 %v11192_v60, %v9189_v25  ;;  %v9525_v33 = vld [vmem:[#allocation8 + $0x11b0] sm:$0xf]  ;;  %v11111_v25 = vld [vmem:[#allocation8 + $0xca4] sm:$0xf]  ;;  %v8879_v60 = vld [vmem:[#allocation8 + $0xcb8] sm:$0xf0] }
 0x25d   :  { %4647 = vmatmul.bf16.vlgmr.msra.gmra.mxu1 %v12071_v58 }
 0x25e   :  { %4695 = vmatpush.bf16.msrb.mxu1 %v8782_v54  ;;  %4731 = vmatmul.bf16.vlgmr.msrb.gmra.mxu3 %v12071_v58  ;;  %v11189_v54 = vld [vmem:[#allocation8 + $0xf14] sm:$0xf] }
 0x25f   :  { %4772 = vmatpush.bf16.msra.mxu2 %v8426_v39  ;;  %4779 = vmatpush.bf16.msra.mxu3 %v8786_v52  ;;  %v8711_v39 = vld [vmem:[#allocation8 + $0xb68] sm:$0xf0] }
 0x260   :  { %4739 = vmatpush.bf16.msra.mxu0 %v9310_v11  ;;  %v8714_v28 = vor.u32 %v11069_v59, %v8711_v39  ;;  %v9191_v52 = vld [vmem:[#allocation8 + $0xf28] sm:$0xf0]  ;;  %v11279_v59 = vld [vmem:[#allocation8 + $0x11e4] sm:$0xf]  ;;  %v9551_v39 = vld [vmem:[#allocation8 + $0x11f8] sm:$0xf0] }
 0x261   :  { %v12107_v11 = vld [vmem:[#allocation10 + $0x1] ss:$4 sm:$0x3f]  ;;  %v9194_v35 = vor.u32 %v11189_v54, %v9191_v52 }
 0x262   :  { %4773 = vmatmul.bf16.vlgmr.msra.gmra.mxu2 %v12063_v34  ;;  %v8762_v34 = vor.u32 %v11081_v61, %v8759_v43  ;;  %4696 = vmatpush.bf16.msrb.mxu1 %v8758_v18  ;;  %v8662_v61 = vor.u32 %v11060_v3, %v8661_v62  ;;  %v8666_v43 = vor.u32 %v11057_v23, %v8663_v2  ;;  %v11054_v18 = vld [vmem:[#allocation8 + $0xad4] sm:$0xf0]  ;;  %v2893_v46 = vperm.slane %v12107_v11, 0  ;;  %v9501_v3 = vld [vmem:[#allocation8 + $0x1180] sm:$0xf] }
 0x263   :  { %4821 = vmatpush.bf16.msrb.mxu2 %v9362_v1  ;;  %v8710_v1 = vor.u32 %v11072_v57, %v8709_v56  ;;  %v8638_v24 = vor.u32 %v11054_v18, %v8637_v9  ;;  %v8615_v56 = vld [vmem:[#allocation8 + $0xaa8] sm:$0xf0]  ;;  %v9549_v57 = vld [vmem:[#allocation8 + $0x11e0] sm:$0xf]  ;;  %v11267_v23 = vld [vmem:[#allocation8 + $0x1184] sm:$0xf]  ;;  %v8882_v9 = vor.u32 %v11111_v25, %v8879_v60  ;;  %v12130_v18 = vpop.f32.mrf.mxu2 }
 0x264   :  { %4780 = vmatpush.bf16.msra.mxu3 %v8762_v34  ;;  %4740 = vmatpush.bf16.msra.mxu0 %v9286_v42  ;;  %v11051_v34 = vld [vmem:[#allocation8 + $0xac4] sm:$0xf]  ;;  %v4368_v42 = vpop.f32.mrf.mxu1  ;;  %v4355_v50 = vadd.f32 %v12105_v36, %v2893_v46  ;;  %v9503_v2 = vld [vmem:[#allocation8 + $0x1198] sm:$0xf0] }
 0x265   :  { %v8642_v49 = vor.u32 %v11051_v34, %v8639_v38  ;;  %v9506_v26 = vor.u32 %v11267_v23, %v9503_v2  ;;  %v11105_v34 = vld [vmem:[#allocation8 + $0xc74] sm:$0xf]  ;;  %v9407_v23 = vld [vmem:[#allocation8 + $0x10d8] sm:$0xf0]  ;;  %v10085_v2 = vld [vmem:[#allocation8 + $0x1620] sm:$0xf] }
 0x266   :  { %4697 = vmatpush.bf16.msrb.mxu1 %v8734_v30  ;;  %v11048_v30 = vld [vmem:[#allocation8 + $0xaa4] sm:$0xf0]  ;;  %v4369_v36 = vadd.f32 %v4368_v42, %v4355_v50  ;;  %v8807_v50 = vld [vmem:[#allocation8 + $0xc28] sm:$0xf0] }
 0x267   :  { %4822 = vmatpush.bf16.msrb.mxu2 %v9338_v20  ;;  %v8690_v20 = vor.u32 %v11063_v12, %v8687_v15  ;;  %v8614_v4 = vor.u32 %v11048_v30, %v8613_v16  ;;  %v11276_v12 = vld [vmem:[#allocation8 + $0x11c4] sm:$0xf0]  ;;  %v11273_v15 = vld [vmem:[#allocation8 + $0x11b4] sm:$0xf]  ;;  %v11258_v16 = vld [vmem:[#allocation8 + $0x1134] sm:$0xf0] }
 0x268   :  { %4781 = vmatpush.bf16.msra.mxu3 %v8738_v51  ;;  %4741 = vmatpush.bf16.msra.mxu0 %v9262_v5  ;;  %v11045_v51 = vld [vmem:[#allocation8 + $0xa94] sm:$0xf]  ;;  %v8954_v5 = vor.u32 %v11129_v47, %v8951_v45  ;;  %v9530_v62 = vor.u32 %v11273_v15, %v9527_v17  ;;  %v4383_v54 = vadd.f32 %v12111_v31, %v4369_v36  ;;  %v8855_v31 = vld [vmem:[#allocation8 + $0xc88] sm:$0xf0]  ;;  %v11255_v30 = vld [vmem:[#allocation8 + $0x1124] sm:$0xf] }
 0x269   :  { %v8618_v44 = vor.u32 %v11045_v51, %v8615_v56  ;;  %v9455_v51 = vld [vmem:[#allocation8 + $0x1138] sm:$0xf0]  ;;  %v11099_v56 = vld [vmem:[#allocation8 + $0xc44] sm:$0xf]  ;;  %v9725_v17 = vld [vmem:[#allocation8 + $0x1350] sm:$0xf] }
 0x26a   :  { %4698 = vmatpush.bf16.msrb.mxu1 %v8710_v1 }
 0x26b   :  { %4823 = vmatpush.bf16.msrb.mxu2 %v9314_v53  ;;  %v12109_v53 = vpop.f32.mrf.mxu3 }
 0x26c   :  { %4782 = vmatpush.bf16.msra.mxu3 %v8714_v28  ;;  %4742 = vmatpush.bf16.msra.mxu0 %v9238_v7  ;;  %v9554_v28 = vor.u32 %v11279_v59, %v9551_v39  ;;  %v9458_v59 = vor.u32 %v11255_v30, %v9455_v51  ;;  %v9429_v39 = vld [vmem:[#allocation8 + $0x10f0] sm:$0xf] }
 0x26e   :  { %4699 = vmatpush.bf16.msrb.mxu1 %v8686_v13  ;;  %v8903_v13 = vld [vmem:[#allocation8 + $0xce8] sm:$0xf0] }
 0x26f   :  { %4824 = vmatpush.bf16.msrb.mxu2 %v9290_v41  ;;  %v12113_v41 = vpop.f32.mrf.mxu0 }
 0x270   :  { %4783 = vmatpush.bf16.msra.mxu3 %v8690_v20  ;;  %4743 = vmatpush.bf16.msra.mxu0 %v9214_v10  ;;  %v9526_v20 = vor.u32 %v11276_v12, %v9525_v33  ;;  %v8906_v10 = vor.u32 %v11117_v14, %v8903_v13  ;;  %v11093_v33 = vld [vmem:[#allocation8 + $0xc14] sm:$0xf]  ;;  %v2894_v12 = vperm.slane %v12107_v11, 1  ;;  %v4440_v14 = vpop.f32.mrf.mxu2 }
 0x272   :  { %4700 = vmatpush.bf16.msrb.mxu1 %v8662_v61  ;;  %v4357_v61 = vadd.f32 %v12113_v41, %v2893_v46  ;;  %v9453_v46 = vld [vmem:[#allocation8 + $0x1120] sm:$0xf] }
 0x273   :  { %4825 = vmatpush.bf16.msrb.mxu2 %v9266_v48  ;;  %v11282_v48 = vld [vmem:[#allocation8 + $0x11f4] sm:$0xf0]  ;;  %v12121_v7 = vpop.f32.mrf.mxu3 }
 0x274   :  { %4784 = vmatpush.bf16.msra.mxu3 %v8666_v43  ;;  %4744 = vmatpush.bf16.msra.mxu0 %v9190_v32  ;;  %v9550_v1 = vor.u32 %v11282_v48, %v9549_v57  ;;  %v4397_v43 = vadd.f32 %v12109_v53, %v4383_v54  ;;  %v11264_v32 = vld [vmem:[#allocation8 + $0x1164] sm:$0xf0]  ;;  %v8831_v57 = vld [vmem:[#allocation8 + $0xc58] sm:$0xf0]  ;;  %v9454_v48 = vor.u32 %v11258_v16, %v9453_v46 }
 0x275   :  { %v9478_v45 = vor.u32 %v11264_v32, %v9477_v22  ;;  %v9701_v22 = vld [vmem:[#allocation8 + $0x1320] sm:$0xf] }
 0x276   :  { %4701 = vmatpush.bf16.msrb.mxu1 %v8638_v24 }
 0x277   :  { %4826 = vmatpush.bf16.msrb.mxu2 %v9242_v8  ;;  %4745 = vmatmul.bf16.vlgmr.msra.gmra.mxu0 %v12078_v29  ;;  %v8930_v8 = vor.u32 %v11123_v63, %v8927_v0  ;;  %v4410_v19 = vpop.f32.mrf.mxu0  ;;  %v11252_v63 = vld [vmem:[#allocation8 + $0x1104] sm:$0xf0] }
 0x278   :  { %4793 = vmatpush.bf16.msrb.mxu0 %v8978_v37  ;;  %4785 = vmatpush.bf16.msra.mxu3 %v8642_v49  ;;  %v4411_v37 = vadd.f32 %v4410_v19, %v4397_v43  ;;  %v8858_v49 = vor.u32 %v11105_v34, %v8855_v31  ;;  %v11237_v34 = vld [vmem:[#allocation8 + $0x1094] sm:$0xf]  ;;  %v4494_v16 = vpop.f32.mrf.mxu2 }
 0x27a   :  { %4702 = vmatpush.bf16.msrb.mxu1 %v8614_v4  ;;  %v8834_v4 = vor.u32 %v11099_v56, %v8831_v57 }
 0x27b   :  { %4827 = vmatpush.bf16.msrb.mxu2 %v9218_v21  ;;  %v11270_v21 = vld [vmem:[#allocation8 + $0x1194] sm:$0xf0]  ;;  %v12132_v38 = vpop.f32.mrf.mxu3 }
 0x27c   :  { %4794 = vmatpush.bf16.msrb.mxu0 %v8954_v5  ;;  %4786 = vmatpush.bf16.msra.mxu3 %v8618_v44  ;;  %v9502_v52 = vor.u32 %v11270_v21, %v9501_v3  ;;  %v11249_v44 = vld [vmem:[#allocation8 + $0x10f4] sm:$0xf]  ;;  %v11243_v21 = vld [vmem:[#allocation8 + $0x10c4] sm:$0xf] }
 0x27d   :  { %4703 = vmatmul.bf16.vlgmr.msrb.gmra.mxu1 %v12065_v27  ;;  %v9410_v32 = vor.u32 %v11243_v21, %v9407_v23  ;;  %v11394_v21 = vld [vmem:[#allocation8 + $0x1574] sm:$0xf0] }
 0x27e   :  { %4751 = vmatpush.bf16.msra.mxu1 %v9550_v1  ;;  %v9431_v1 = vld [vmem:[#allocation8 + $0x1108] sm:$0xf0] }
 0x27f   :  { %4828 = vmatpush.bf16.msrb.mxu2 %v9194_v35  ;;  %4787 = vmatmul.bf16.vlgmr.msra.gmra.mxu3 %v12065_v27  ;;  %v11261_v35 = vld [vmem:[#allocation8 + $0x1154] sm:$0xf]  ;;  %v9479_v27 = vld [vmem:[#allocation8 + $0x1168] sm:$0xf0]  ;;  %v4412_v42 = vpop.f32.mrf.mxu0 }
 0x280   :  { %4835 = vmatpush.bf16.msrb.mxu3 %v9554_v28  ;;  %4795 = vmatpush.bf16.msrb.mxu0 %v8930_v8  ;;  %v9482_v41 = vor.u32 %v11261_v35, %v9479_v27  ;;  %v10109_v28 = vld [vmem:[#allocation8 + $0x1650] sm:$0xf]  ;;  %v11424_v8 = vld [vmem:[#allocation8 + $0x1664] sm:$0xf0] }
 0x281   :  { %v10110_v19 = vor.u32 %v11424_v8, %v10109_v28  ;;  %v9381_v35 = vld [vmem:[#allocation8 + $0x1090] sm:$0xf]  ;;  %v11240_v27 = vld [vmem:[#allocation8 + $0x10a4] sm:$0xf0] }
 0x282   :  { %4829 = vmatmul.bf16.vlgmr.msrb.gmra.mxu2 %v12078_v29  ;;  %v4370_v29 = vpop.f32.mrf.mxu1  ;;  %4752 = vmatpush.bf16.msra.mxu1 %v9526_v20  ;;  %v9405_v20 = vld [vmem:[#allocation8 + $0x10c0] sm:$0xf]  ;;  %v9382_v51 = vor.u32 %v11240_v27, %v9381_v35  ;;  %v9965_v27 = vld [vmem:[#allocation8 + $0x1530] sm:$0xf] }
 0x283   :  { %v4371_v53 = vadd.f32 %v4370_v29, %v4357_v61  ;;  %v9430_v29 = vor.u32 %v11252_v63, %v9429_v39  ;;  %6639 = vmatpush.bf16.msra.mxu2 %v10110_v19  ;;  %v4454_v25 = vpop.f32.mrf.mxu3  ;;  %v11322_v61 = vld [vmem:[#allocation8 + $0x1334] sm:$0xf0]  ;;  %v4441_v39 = vadd.f32 %v4440_v14, %v2894_v12 }
 0x284   :  { %4836 = vmatpush.bf16.msrb.mxu3 %v9530_v62  ;;  %4796 = vmatpush.bf16.msrb.mxu0 %v8906_v10  ;;  %v11246_v62 = vld [vmem:[#allocation8 + $0x10d4] sm:$0xf0]  ;;  %v8810_v10 = vor.u32 %v11093_v33, %v8807_v50  ;;  %v9653_v33 = vld [vmem:[#allocation8 + $0x12c0] sm:$0xf] }
 0x285   :  { %v4385_v5 = vadd.f32 %v4384_v55, %v4371_v53  ;;  %v11328_v55 = vld [vmem:[#allocation8 + $0x1364] sm:$0xf0]  ;;  %v11310_v50 = vld [vmem:[#allocation8 + $0x12d4] sm:$0xf0]  ;;  %v4455_v8 = vadd.f32 %v4454_v25, %v4441_v39 }
 0x286   :  { %4753 = vmatpush.bf16.msra.mxu1 %v9502_v52  ;;  %v9726_v54 = vor.u32 %v11328_v55, %v9725_v17  ;;  %v11418_v52 = vld [vmem:[#allocation8 + $0x1634] sm:$0xf0]  ;;  %v11400_v17 = vld [vmem:[#allocation8 + $0x15a4] sm:$0xf0]  ;;  %v9654_v14 = vor.u32 %v11310_v50, %v9653_v33  ;;  %v11319_v33 = vld [vmem:[#allocation8 + $0x1324] sm:$0xf] }
 0x287   :  { %v4399_v0 = vadd.f32 %v12121_v7, %v4385_v5  ;;  %v9434_v7 = vor.u32 %v11249_v44, %v9431_v1  ;;  %v4466_v60 = vpop.f32.mrf.mxu0  ;;  %v10086_v43 = vor.u32 %v11418_v52, %v10085_v2  ;;  %v9143_v44 = vld [vmem:[#allocation8 + $0xec8] sm:$0xf0]  ;;  %v11165_v52 = vld [vmem:[#allocation8 + $0xe54] sm:$0xf] }
 0x288   :  { %4837 = vmatpush.bf16.msrb.mxu3 %v9506_v26  ;;  %4797 = vmatpush.bf16.msrb.mxu0 %v8882_v9  ;;  %v4439_v26 = vadd.f32 %v12130_v18, %v2894_v12  ;;  %v9406_v9 = vor.u32 %v11246_v62, %v9405_v20  ;;  %v9702_v18 = vor.u32 %v11322_v61, %v9701_v22  ;;  %v9629_v20 = vld [vmem:[#allocation8 + $0x1290] sm:$0xf]  ;;  %v11304_v62 = vld [vmem:[#allocation8 + $0x12a4] sm:$0xf0]  ;;  %v9605_v61 = vld [vmem:[#allocation8 + $0x1260] sm:$0xf] }
 0x289   :  { %v4413_v15 = vadd.f32 %v4412_v42, %v4399_v0  ;;  %6640 = vmatpush.bf16.msra.mxu2 %v10086_v43  ;;  %v10061_v42 = vld [vmem:[#allocation8 + $0x15f0] sm:$0xf]  ;;  %v11298_v43 = vld [vmem:[#allocation8 + $0x1274] sm:$0xf0] }
 0x28a   :  { %v4424_v47 = vpop.f32.mrf.mxu1  ;;  %4754 = vmatpush.bf16.msra.mxu1 %v9478_v45  ;;  %v4453_v31 = vadd.f32 %v12132_v38, %v4439_v26  ;;  %v11183_v45 = vld [vmem:[#allocation8 + $0xee4] sm:$0xf]  ;;  %v9095_v26 = vld [vmem:[#allocation8 + $0xe68] sm:$0xf0] }
 0x28b   :  { %v4425_v24 = vadd.f32 %v4424_v47, %v4411_v37  ;;  %v9383_v37 = vld [vmem:[#allocation8 + $0x10a8] sm:$0xf0]  ;;  %v11412_v47 = vld [vmem:[#allocation8 + $0x1604] sm:$0xf0]  ;;  %v4508_v63 = vpop.f32.mrf.mxu3  ;;  %v9098_v35 = vor.u32 %v11165_v52, %v9095_v26  ;;  %v10253_v52 = vld [vmem:[#allocation8 + $0x1770] sm:$0xf] }
 0x28c   :  { %4838 = vmatpush.bf16.msrb.mxu3 %v9482_v41  ;;  %4798 = vmatpush.bf16.msrb.mxu0 %v8858_v49  ;;  %v9167_v41 = vld [vmem:[#allocation8 + $0xef8] sm:$0xf0]  ;;  %v10062_v46 = vor.u32 %v11412_v47, %v10061_v42  ;;  %v4467_v53 = vadd.f32 %v4466_v60, %v4453_v31  ;;  %v11316_v49 = vld [vmem:[#allocation8 + $0x1304] sm:$0xf0]  ;;  %v9386_v56 = vor.u32 %v11237_v34, %v9383_v37  ;;  %v4496_v60 = vpop.f32.mrf.mxu2  ;;  %v11159_v37 = vld [vmem:[#allocation8 + $0xe24] sm:$0xf] }
 0x28d   :  { %11604 = vtanh.f32 %v4425_v24  ;;  %v9677_v24 = vld [vmem:[#allocation8 + $0x12f0] sm:$0xf]  ;;  %v9170_v5 = vor.u32 %v11183_v45, %v9167_v41  ;;  %v11388_v34 = vld [vmem:[#allocation8 + $0x1544] sm:$0xf0]  ;;  %v9606_v31 = vor.u32 %v11298_v43, %v9605_v61  ;;  %v9071_v42 = vld [vmem:[#allocation8 + $0xe38] sm:$0xf0] }
 0x28e   :  { %4755 = vmatpush.bf16.msra.mxu1 %v9454_v48  ;;  %6641 = vmatpush.bf16.msra.mxu2 %v10062_v46  ;;  %v10037_v48 = vld [vmem:[#allocation8 + $0x15c0] sm:$0xf]  ;;  %v9678_v0 = vor.u32 %v11316_v49, %v9677_v24  ;;  %v9966_v47 = vor.u32 %v11388_v34, %v9965_v27  ;;  %v11292_v45 = vld [vmem:[#allocation8 + $0x1244] sm:$0xf0]  ;;  %v9074_v41 = vor.u32 %v11159_v37, %v9071_v42  ;;  %v11153_v49 = vld [vmem:[#allocation8 + $0xdf4] sm:$0xf] }
 0x28f   :  { %v9941_v46 = vld [vmem:[#allocation8 + $0x1500] sm:$0xf]  ;;  %v9655_v26 = vld [vmem:[#allocation8 + $0x12d8] sm:$0xf0]  ;;  %v11454_v27 = vld [vmem:[#allocation8 + $0x1754] sm:$0xf0] }
 0x290   :  { %4839 = vmatpush.bf16.msrb.mxu3 %v9458_v59  ;;  %4799 = vmatpush.bf16.msrb.mxu0 %v8834_v4  ;;  %v11406_v59 = vld [vmem:[#allocation8 + $0x15d4] sm:$0xf0]  ;;  %v11177_v4 = vld [vmem:[#allocation8 + $0xeb4] sm:$0xf]  ;;  %v9631_v42 = vld [vmem:[#allocation8 + $0x12a8] sm:$0xf0] }
 0x291   :  { %v10038_v1 = vor.u32 %v11406_v59, %v10037_v48  ;;  %v9146_v12 = vor.u32 %v11177_v4, %v9143_v44  ;;  %v9023_v4 = vld [vmem:[#allocation8 + $0xdd8] sm:$0xf0]  ;;  %v11301_v34 = vld [vmem:[#allocation8 + $0x1294] sm:$0xf] }
 0x292   :  { %v4426_v13 = vpop.f32.mrf.mxu1  ;;  %4756 = vmatpush.bf16.msra.mxu1 %v9430_v29  ;;  %v9119_v29 = vld [vmem:[#allocation8 + $0xe98] sm:$0xf0] }
 0x293   :  { %v12136_v3 = vpop.eup %11604  ;;  %v4427_v36 = vadd.f32 %v4426_v13, %v4413_v15  ;;  %v10013_v15 = vld [vmem:[#allocation8 + $0x1590] sm:$0xf]  ;;  %6642 = vmatpush.bf16.msra.mxu2 %v10038_v1  ;;  %v11171_v13 = vld [vmem:[#allocation8 + $0xe84] sm:$0xf] }
 0x294   :  { %7127 = vst [vmem:[#allocation11] sm:$0xff] %v12136_v3  ;;  %4840 = vmatpush.bf16.msrb.mxu3 %v9434_v7  ;;  %4800 = vmatpush.bf16.msrb.mxu0 %v8810_v10  ;;  %v10014_v19 = vor.u32 %v11400_v17, %v10013_v15  ;;  %v9989_v10 = vld [vmem:[#allocation8 + $0x1560] sm:$0xf]  ;;  %v9122_v2 = vor.u32 %v11171_v13, %v9119_v29  ;;  %v10301_v1 = vld [vmem:[#allocation8 + $0x17d0] sm:$0xf] }
 0x295   :  { %11606 = vtanh.f32 %v4427_v36  ;;  %v9990_v25 = vor.u32 %v11394_v21, %v9989_v10  ;;  %v11141_v17 = vld [vmem:[#allocation8 + $0xd94] sm:$0xf]  ;;  %v10277_v13 = vld [vmem:[#allocation8 + $0x17a0] sm:$0xf] }
 0x296   :  { %4757 = vmatpush.bf16.msra.mxu1 %v9406_v9  ;;  %v4510_v9 = vpop.f32.mrf.mxu3 }
 0x297   :  { %4801 = vmatmul.bf16.vlgmr.msrb.gmra.mxu0 %v12060_v6  ;;  %v4468_v6 = vpop.f32.mrf.mxu0  ;;  %6643 = vmatpush.bf16.msra.mxu2 %v10014_v19  ;;  %v9917_v19 = vld [vmem:[#allocation8 + $0x14d0] sm:$0xf] }
 0x298   :  { %6611 = vmatpush.bf16.msra.mxu0 %v9726_v54  ;;  %4841 = vmatpush.bf16.msrb.mxu3 %v9410_v32  ;;  %v4469_v7 = vadd.f32 %v4468_v6, %v4455_v8  ;;  %v9630_v54 = vor.u32 %v11304_v62, %v9629_v20  ;;  %v9703_v8 = vld [vmem:[#allocation8 + $0x1338] sm:$0xf0]  ;;  %v2895_v6 = vperm.slane %v12107_v11, 2  ;;  %v11466_v20 = vld [vmem:[#allocation8 + $0x17b4] sm:$0xf0] }
 0x299   :  { %v11313_v62 = vld [vmem:[#allocation8 + $0x12f4] sm:$0xf]  ;;  %v10278_v10 = vor.u32 %v11466_v20, %v10277_v13  ;;  %v11436_v20 = vld [vmem:[#allocation8 + $0x16c4] sm:$0xf0] }
 0x29a   :  { %v4480_v30 = vpop.f32.mrf.mxu1  ;;  %4758 = vmatpush.bf16.msra.mxu1 %v9382_v51  ;;  %v11325_v51 = vld [vmem:[#allocation8 + $0x1354] sm:$0xf] }
 0x29b   :  { %v12143_v38 = vpop.eup %11606  ;;  %v4481_v57 = vadd.f32 %v4480_v30, %v4467_v53  ;;  %6644 = vmatpush.bf16.msra.mxu2 %v9990_v25  ;;  %v11382_v53 = vld [vmem:[#allocation8 + $0x1514] sm:$0xf0] }
 0x29c   :  { %7133 = vst [vmem:[#allocation11 + $0x30] sm:$0xff] %v12143_v38  ;;  %6612 = vmatpush.bf16.msra.mxu0 %v9702_v18  ;;  %4842 = vmatpush.bf16.msrb.mxu3 %v9386_v56  ;;  %v9581_v18 = vld [vmem:[#allocation8 + $0x1230] sm:$0xf]  ;;  %v9942_v30 = vor.u32 %v11382_v53, %v9941_v46  ;;  %v9557_v56 = vld [vmem:[#allocation8 + $0x1200] sm:$0xf]  ;;  %v12160_v29 = vpack.c.bf16 %v12143_v38, %v12136_v3 }
 0x29d   :  { %v4495_v28 = vadd.f32 %v4494_v16, %v4481_v57  ;;  %4759 = vmatmul.bf16.vlgmr.msra.gmra.mxu1 %v12087_v40  ;;  %v9582_v24 = vor.u32 %v11292_v45, %v9581_v18  ;;  %v9047_v16 = vld [vmem:[#allocation8 + $0xe08] sm:$0xf0]  ;;  %v11286_v57 = vld [vmem:[#allocation8 + $0x1214] sm:$0xf0]  ;;  %v11460_v3 = vld [vmem:[#allocation8 + $0x1784] sm:$0xf0]  ;;  %v9634_v45 = vor.u32 %v11301_v34, %v9631_v42 }
 0x29e   :  { %4807 = vmatpush.bf16.msrb.mxu1 %v9170_v5  ;;  %v9727_v5 = vld [vmem:[#allocation8 + $0x1368] sm:$0xf0]  ;;  %v9050_v39 = vor.u32 %v11153_v49, %v9047_v16  ;;  %v11307_v38 = vld [vmem:[#allocation8 + $0x12c4] sm:$0xf]  ;;  %v10254_v61 = vor.u32 %v11460_v3, %v10253_v52  ;;  %v11364_v18 = vld [vmem:[#allocation8 + $0x1484] sm:$0xf0]  ;;  %v4564_v46 = vpop.f32.mrf.mxu3 }
 0x29f   :  { %v4509_v55 = vadd.f32 %v4508_v63, %v4495_v28  ;;  %4843 = vmatmul.bf16.vlgmr.msrb.gmra.mxu3 %v12087_v40  ;;  %6645 = vmatpush.bf16.msra.mxu2 %v9966_v47  ;;  %v9730_v48 = vor.u32 %v11325_v51, %v9727_v5  ;;  %v9558_v63 = vor.u32 %v11286_v57, %v9557_v56  ;;  %v4522_v44 = vpop.f32.mrf.mxu0  ;;  %v11472_v28 = vld [vmem:[#allocation8 + $0x17e4] sm:$0xf0]  ;;  %v9869_v47 = vld [vmem:[#allocation8 + $0x1470] sm:$0xf]  ;;  %v11295_v16 = vld [vmem:[#allocation8 + $0x1264] sm:$0xf] }
 0x2a0   :  { %6613 = vmatpush.bf16.msra.mxu0 %v9678_v0  ;;  %v11147_v0 = vld [vmem:[#allocation8 + $0xdc4] sm:$0xf]  ;;  %v10302_v50 = vor.u32 %v11472_v28, %v10301_v1  ;;  %v9658_v43 = vor.u32 %v11307_v38, %v9655_v26  ;;  %v11448_v49 = vld [vmem:[#allocation8 + $0x1724] sm:$0xf0]  ;;  %v9870_v51 = vor.u32 %v11364_v18, %v9869_v47  ;;  %v9607_v57 = vld [vmem:[#allocation8 + $0x1278] sm:$0xf0] }
 0x2a1   :  { %11608 = vtanh.f32 %v4509_v55  ;;  %v9026_v15 = vor.u32 %v11147_v0, %v9023_v4  ;;  %v8999_v55 = vld [vmem:[#allocation8 + $0xda8] sm:$0xf0]  ;;  %v9845_v5 = vld [vmem:[#allocation8 + $0x1440] sm:$0xf]  ;;  %v11442_v1 = vld [vmem:[#allocation8 + $0x16f4] sm:$0xf0] }
 0x2a2   :  { %v4482_v36 = vpop.f32.mrf.mxu1  ;;  %4808 = vmatpush.bf16.msrb.mxu1 %v9146_v12  ;;  %v9706_v12 = vor.u32 %v11319_v33, %v9703_v8  ;;  %6653 = vmatpush.bf16.msra.mxu3 %v10302_v50  ;;  %v11289_v28 = vld [vmem:[#allocation8 + $0x1234] sm:$0xf]  ;;  %v9821_v50 = vld [vmem:[#allocation8 + $0x1410] sm:$0xf]  ;;  %v11352_v8 = vld [vmem:[#allocation8 + $0x1424] sm:$0xf0] }
 0x2a3   :  { %v4483_v23 = vadd.f32 %v4482_v36, %v4469_v7  ;;  %6646 = vmatpush.bf16.msra.mxu2 %v9942_v30  ;;  %v9679_v36 = vld [vmem:[#allocation8 + $0x1308] sm:$0xf0]  ;;  %v9822_v13 = vor.u32 %v11352_v8, %v9821_v50  ;;  %v9773_v52 = vld [vmem:[#allocation8 + $0x13b0] sm:$0xf]  ;;  %v10133_v3 = vld [vmem:[#allocation8 + $0x1680] sm:$0xf] }
 0x2a4   :  { %6614 = vmatpush.bf16.msra.mxu0 %v9654_v14  ;;  %v11376_v14 = vld [vmem:[#allocation8 + $0x14e4] sm:$0xf0]  ;;  %v9682_v21 = vor.u32 %v11313_v62, %v9679_v36  ;;  %v11283_v62 = vld [vmem:[#allocation8 + $0x1204] sm:$0xf]  ;;  %v11430_v38 = vld [vmem:[#allocation8 + $0x1694] sm:$0xf0] }
 0x2a5   :  { %v4497_v22 = vadd.f32 %v4496_v60, %v4483_v23  ;;  %v9002_v23 = vor.u32 %v11141_v17, %v8999_v55  ;;  %v9918_v25 = vor.u32 %v11376_v14, %v9917_v19  ;;  %v9893_v60 = vld [vmem:[#allocation8 + $0x14a0] sm:$0xf]  ;;  %v11334_v47 = vld [vmem:[#allocation8 + $0x1394] sm:$0xf0]  ;;  %v11367_v18 = vld [vmem:[#allocation8 + $0x14a4] sm:$0xf] }
 0x2a6   :  { %4809 = vmatpush.bf16.msrb.mxu1 %v9122_v2  ;;  %v4523_v2 = vadd.f32 %v4522_v44, %v2895_v6  ;;  %6654 = vmatpush.bf16.msra.mxu3 %v10278_v10  ;;  %v10181_v44 = vld [vmem:[#allocation8 + $0x16e0] sm:$0xf]  ;;  %v4566_v36 = vpop.f32.mrf.mxu3  ;;  %v11511_v50 = vld [vmem:[#allocation8 + $0x1924] sm:$0xf] }
 0x2a7   :  { %v12151_v40 = vpop.eup %11608  ;;  %v4511_v32 = vadd.f32 %v4510_v9, %v4497_v22  ;;  %6695 = vmatpush.bf16.msrb.mxu2 %v9730_v48  ;;  %v4550_v9 = vpop.f32.mrf.mxu2  ;;  %v11358_v48 = vld [vmem:[#allocation8 + $0x1454] sm:$0xf0]  ;;  %v9797_v10 = vld [vmem:[#allocation8 + $0x13e0] sm:$0xf] }
 0x2a8   :  { %7128 = vst [vmem:[#allocation11 + $0x8] sm:$0xff] %v12151_v40  ;;  %6615 = vmatpush.bf16.msra.mxu0 %v9630_v54  ;;  %v11370_v54 = vld [vmem:[#allocation8 + $0x14b4] sm:$0xf0]  ;;  %v9749_v42 = vld [vmem:[#allocation8 + $0x1380] sm:$0xf] }
 0x2a9   :  { %11610 = vtanh.f32 %v4511_v32  ;;  %v4524_v32 = vpop.f32.mrf.mxu0 }
 0x2aa   :  { %4810 = vmatpush.bf16.msrb.mxu1 %v9098_v35  ;;  %v4536_v7 = vpop.f32.mrf.mxu1  ;;  %v10229_v35 = vld [vmem:[#allocation8 + $0x1740] sm:$0xf]  ;;  %6655 = vmatpush.bf16.msra.mxu3 %v10254_v61  ;;  %v4525_v30 = vadd.f32 %v4524_v32, %v2895_v6  ;;  %v10182_v6 = vor.u32 %v11442_v1, %v10181_v44  ;;  %v10134_v61 = vor.u32 %v11430_v38, %v10133_v3  ;;  %v9847_v44 = vld [vmem:[#allocation8 + $0x1458] sm:$0xf0]  ;;  %v2896_v1 = vperm.slane %v12107_v11, 3 }
 0x2ab   :  { %6696 = vmatpush.bf16.msrb.mxu2 %v9706_v12  ;;  %v4537_v22 = vadd.f32 %v4536_v7, %v4523_v2  ;;  %v10230_v37 = vor.u32 %v11454_v27, %v10229_v35  ;;  %v10157_v7 = vld [vmem:[#allocation8 + $0x16b0] sm:$0xf]  ;;  %v9559_v2 = vld [vmem:[#allocation8 + $0x1218] sm:$0xf0]  ;;  %v10421_v3 = vld [vmem:[#allocation8 + $0x18c0] sm:$0xf] }
 0x2ac   :  { %6616 = vmatpush.bf16.msra.mxu0 %v9606_v31  ;;  %v9894_v31 = vor.u32 %v11370_v54, %v9893_v60  ;;  %v9562_v60 = vor.u32 %v11283_v62, %v9559_v2  ;;  %v10447_v62 = vld [vmem:[#allocation8 + $0x1908] sm:$0xf0]  ;;  %v9799_v2 = vld [vmem:[#allocation8 + $0x13f8] sm:$0xf0]  ;;  %v11502_v38 = vld [vmem:[#allocation8 + $0x18d4] sm:$0xf0] }
 0x2ae   :  { %4811 = vmatpush.bf16.msrb.mxu1 %v9074_v41  ;;  %v4551_v41 = vadd.f32 %v4550_v9, %v4537_v22  ;;  %6656 = vmatpush.bf16.msra.mxu3 %v10230_v37  ;;  %v11340_v22 = vld [vmem:[#allocation8 + $0x13c4] sm:$0xf0]  ;;  %v9919_v9 = vld [vmem:[#allocation8 + $0x14e8] sm:$0xf0] }
 0x2af   :  { %v12154_v59 = vpop.eup %11610  ;;  %6697 = vmatpush.bf16.msrb.mxu2 %v9682_v21  ;;  %v4552_v33 = vpop.f32.mrf.mxu2  ;;  %v11346_v21 = vld [vmem:[#allocation8 + $0x13f4] sm:$0xf0]  ;;  %v9774_v37 = vor.u32 %v11340_v22, %v9773_v52 }
 0x2b0   :  { %7134 = vst [vmem:[#allocation11 + $0x38] sm:$0xff] %v12154_v59  ;;  %6617 = vmatpush.bf16.msra.mxu0 %v9582_v24  ;;  %v10205_v24 = vld [vmem:[#allocation8 + $0x1710] sm:$0xf]  ;;  %v4565_v0 = vadd.f32 %v4564_v46, %v4551_v41  ;;  %v9798_v54 = vor.u32 %v11346_v21, %v9797_v10 }
 0x2b1   :  { %v10206_v56 = vor.u32 %v11448_v49, %v10205_v24  ;;  %v4578_v4 = vpop.f32.mrf.mxu0  ;;  %v9750_v24 = vor.u32 %v11334_v47, %v9749_v42  ;;  %v11361_v49 = vld [vmem:[#allocation8 + $0x1474] sm:$0xf]  ;;  %v10397_v47 = vld [vmem:[#allocation8 + $0x1890] sm:$0xf] }
 0x2b2   :  { %4812 = vmatpush.bf16.msrb.mxu1 %v9050_v39  ;;  %v4538_v53 = vpop.f32.mrf.mxu1  ;;  %v9610_v39 = vor.u32 %v11295_v16, %v9607_v57  ;;  %v4579_v55 = vadd.f32 %v4578_v4, %v4565_v0  ;;  %v9871_v16 = vld [vmem:[#allocation8 + $0x1488] sm:$0xf0]  ;;  %v11520_v57 = vld [vmem:[#allocation8 + $0x1964] sm:$0xf0]  ;;  %v11355_v4 = vld [vmem:[#allocation8 + $0x1444] sm:$0xf] }
 0x2b3   :  { %6698 = vmatpush.bf16.msrb.mxu2 %v9658_v43  ;;  %6657 = vmatpush.bf16.msra.mxu3 %v10206_v56  ;;  %v11373_v43 = vld [vmem:[#allocation8 + $0x14d4] sm:$0xf]  ;;  %v10493_v56 = vld [vmem:[#allocation8 + $0x1950] sm:$0xf]  ;;  %v10495_v0 = vld [vmem:[#allocation8 + $0x1968] sm:$0xf0] }
 0x2b4   :  { %6618 = vmatpush.bf16.msra.mxu0 %v9558_v63  ;;  %v4539_v63 = vadd.f32 %v4538_v53, %v4525_v30  ;;  %v9922_v35 = vor.u32 %v11373_v43, %v9919_v9  ;;  %v4620_v53 = vpop.f32.mrf.mxu3  ;;  %v9874_v30 = vor.u32 %v11361_v49, %v9871_v16  ;;  %v10423_v43 = vld [vmem:[#allocation8 + $0x18d8] sm:$0xf0]  ;;  %v11337_v9 = vld [vmem:[#allocation8 + $0x13b4] sm:$0xf]  ;;  %v11331_v49 = vld [vmem:[#allocation8 + $0x1384] sm:$0xf] }
 0x2b5   :  { %v9751_v16 = vld [vmem:[#allocation8 + $0x1398] sm:$0xf0] }
 0x2b6   :  { %4813 = vmatpush.bf16.msrb.mxu1 %v9026_v15  ;;  %v9583_v15 = vld [vmem:[#allocation8 + $0x1248] sm:$0xf0]  ;;  %v4553_v17 = vadd.f32 %v4552_v33, %v4539_v63  ;;  %v10494_v63 = vor.u32 %v11520_v57, %v10493_v56 }
 0x2b7   :  { %6619 = vmatmul.bf16.vlgmr.msra.gmra.mxu0 %v12160_v29  ;;  %6699 = vmatpush.bf16.msrb.mxu2 %v9634_v45  ;;  %v9586_v12 = vor.u32 %v11289_v28, %v9583_v15  ;;  %v9895_v45 = vld [vmem:[#allocation8 + $0x14b8] sm:$0xf0]  ;;  %v4606_v41 = vpop.f32.mrf.mxu2  ;;  %v9850_v28 = vor.u32 %v11355_v4, %v9847_v44  ;;  %v11349_v15 = vld [vmem:[#allocation8 + $0x1414] sm:$0xf] }
 0x2b8   :  { %6658 = vmatpush.bf16.msra.mxu3 %v10182_v6  ;;  %v9898_v46 = vor.u32 %v11367_v18, %v9895_v45  ;;  %6667 = vmatpush.bf16.msrb.mxu0 %v10494_v63  ;;  %v10471_v6 = vld [vmem:[#allocation8 + $0x1938] sm:$0xf0]  ;;  %v11496_v18 = vld [vmem:[#allocation8 + $0x18a4] sm:$0xf0]  ;;  %v11493_v45 = vld [vmem:[#allocation8 + $0x1894] sm:$0xf] }
 0x2b9   :  { %v4580_v26 = vpop.f32.mrf.mxu0  ;;  %v11490_v63 = vld [vmem:[#allocation8 + $0x1874] sm:$0xf0]  ;;  %v10375_v44 = vld [vmem:[#allocation8 + $0x1878] sm:$0xf0] }
 0x2ba   :  { %4814 = vmatpush.bf16.msrb.mxu1 %v9002_v23  ;;  %v4592_v19 = vpop.f32.mrf.mxu1  ;;  %v10158_v23 = vor.u32 %v11436_v20, %v10157_v7  ;;  %v11505_v7 = vld [vmem:[#allocation8 + $0x18f4] sm:$0xf]  ;;  %v4607_v20 = vadd.f32 %v4606_v41, %v2896_v1 }
 0x2bb   :  { %6700 = vmatpush.bf16.msrb.mxu2 %v9610_v39  ;;  %v4593_v14 = vadd.f32 %v4592_v19, %v4579_v55  ;;  %v10474_v19 = vor.u32 %v11511_v50, %v10471_v6  ;;  %v10450_v10 = vor.u32 %v11505_v7, %v10447_v62  ;;  %v11484_v50 = vld [vmem:[#allocation8 + $0x1844] sm:$0xf0]  ;;  %v11421_v7 = vld [vmem:[#allocation8 + $0x1654] sm:$0xf]  ;;  %v10117_v62 = vld [vmem:[#allocation8 + $0x1658] sm:$0xf] }
 0x2bc   :  { %6659 = vmatpush.bf16.msra.mxu3 %v10158_v23  ;;  %v4622_v55 = vpop.f32.mrf.mxu3  ;;  %v4621_v21 = vadd.f32 %v4620_v53, %v4607_v20  ;;  %v11343_v23 = vld [vmem:[#allocation8 + $0x13e4] sm:$0xf]  ;;  %v10398_v53 = vor.u32 %v11496_v18, %v10397_v47  ;;  %v10111_v20 = vld [vmem:[#allocation8 + $0x1668] sm:$0xf0] }
 0x2bd   :  { %4815 = vmatmul.bf16.vlgmr.msrb.gmra.mxu1 %v12071_v58  ;;  %v9846_v58 = vor.u32 %v11358_v48, %v9845_v5  ;;  %11612 = vtanh.f32 %v4593_v14  ;;  %v11517_v5 = vld [vmem:[#allocation8 + $0x1954] sm:$0xf]  ;;  %v12166_v48 = vpack.c.bf16 %v12154_v59, %v12151_v40  ;;  %v10469_v40 = vld [vmem:[#allocation8 + $0x1920] sm:$0xf]  ;;  %v11514_v59 = vld [vmem:[#allocation8 + $0x1934] sm:$0xf0] }
 0x2be   :  { %6625 = vmatpush.bf16.msra.mxu1 %v9918_v25  ;;  %v4567_v25 = vadd.f32 %v4566_v36, %v4553_v17  ;;  %v10470_v8 = vor.u32 %v11514_v59, %v10469_v40  ;;  %v9823_v17 = vld [vmem:[#allocation8 + $0x1428] sm:$0xf0]  ;;  %v10445_v14 = vld [vmem:[#allocation8 + $0x18f0] sm:$0xf]  ;;  %v11559_v18 = vld [vmem:[#allocation8 + $0x1aa4] sm:$0xf] }
 0x2bf   :  { %6701 = vmatpush.bf16.msrb.mxu2 %v9586_v12  ;;  %v4608_v33 = vpop.f32.mrf.mxu2  ;;  %v9826_v11 = vor.u32 %v11349_v15, %v9823_v17  ;;  %v10349_v59 = vld [vmem:[#allocation8 + $0x1830] sm:$0xf]  ;;  %v10063_v47 = vld [vmem:[#allocation8 + $0x1608] sm:$0xf0] }
 0x2c0   :  { %v4581_v32 = vadd.f32 %v4580_v26, %v4567_v25  ;;  %6660 = vmatpush.bf16.msra.mxu3 %v10134_v61  ;;  %6668 = vmatpush.bf16.msrb.mxu0 %v10470_v8  ;;  %v9802_v25 = vor.u32 %v11343_v23, %v9799_v2  ;;  %v11499_v26 = vld [vmem:[#allocation8 + $0x18c4] sm:$0xf]  ;;  %v10422_v61 = vor.u32 %v11502_v38, %v10421_v3  ;;  %v11481_v8 = vld [vmem:[#allocation8 + $0x1834] sm:$0xf] }
 0x2c1   :  { %v4634_v12 = vpop.f32.mrf.mxu0  ;;  %v10350_v17 = vor.u32 %v11484_v50, %v10349_v59  ;;  %v10114_v23 = vor.u32 %v11421_v7, %v10111_v20  ;;  %v10015_v50 = vld [vmem:[#allocation8 + $0x15a8] sm:$0xf0]  ;;  %v11391_v7 = vld [vmem:[#allocation8 + $0x1564] sm:$0xf] }
 0x2c2   :  { %6626 = vmatpush.bf16.msra.mxu1 %v9894_v31  ;;  %v4594_v27 = vpop.f32.mrf.mxu1 }
 0x2c3   :  { %6702 = vmatpush.bf16.msrb.mxu2 %v9562_v60  ;;  %v11613_v34 = vpop.eup %11612  ;;  %v4595_v31 = vadd.f32 %v4594_v27, %v4581_v32  ;;  %v4635_v60 = vadd.f32 %v4634_v12, %v4621_v21  ;;  %v9775_v32 = vld [vmem:[#allocation8 + $0x13c8] sm:$0xf0]  ;;  %v10426_v27 = vor.u32 %v11499_v26, %v10423_v43  ;;  %v10325_v12 = vld [vmem:[#allocation8 + $0x1800] sm:$0xf]  ;;  %v11425_v21 = vld [vmem:[#allocation8 + $0x166c] sm:$0xf0] }
 0x2c4   :  { %7129 = vst [vmem:[#allocation11 + $0x10] sm:$0xff] %v11613_v34  ;;  %6709 = vmatpush.bf16.msrb.mxu3 %v9922_v35  ;;  %v4676_v35 = vpop.f32.mrf.mxu3  ;;  %v10118_v2 = vor.u32 %v11425_v21, %v10117_v62  ;;  %v10087_v26 = vld [vmem:[#allocation8 + $0x1638] sm:$0xf0]  ;;  %v10687_v43 = vld [vmem:[#allocation8 + $0x1ae8] sm:$0xf0] }
 0x2c5   :  { %11614 = vtanh.f32 %v4595_v31  ;;  %v4609_v31 = vadd.f32 %v4608_v33, %v2896_v1  ;;  %v9991_v62 = vld [vmem:[#allocation8 + $0x1578] sm:$0xf0]  ;;  %v12177_v21 = vld [vmem:[#allocation10 + $0x1] ss:$4 sm:$0x3f] }
 0x2c6   :  { %6627 = vmatpush.bf16.msra.mxu1 %v9870_v51 }
 0x2c7   :  { %v4623_v41 = vadd.f32 %v4622_v55, %v4609_v31  ;;  %v10351_v55 = vld [vmem:[#allocation8 + $0x1848] sm:$0xf0]  ;;  %v11562_v31 = vld [vmem:[#allocation8 + $0x1ab4] sm:$0xf0] }
 0x2c8   :  { %6710 = vmatpush.bf16.msrb.mxu3 %v9898_v46 }
 0x2c9   :  { %v4636_v42 = vpop.f32.mrf.mxu0 }
 0x2ca   :  { %6628 = vmatpush.bf16.msra.mxu1 %v9846_v58  ;;  %v10498_v58 = vor.u32 %v11517_v5, %v10495_v0  ;;  %v4637_v56 = vadd.f32 %v4636_v42, %v4623_v41  ;;  %v10373_v5 = vld [vmem:[#allocation8 + $0x1860] sm:$0xf]  ;;  %v11487_v0 = vld [vmem:[#allocation8 + $0x1864] sm:$0xf] }
 0x2cb   :  { %v11615_v51 = vpop.eup %11614 }
 0x2cc   :  { %v12168_v39 = vpack.c.bf16 %v11615_v51, %v11613_v34  ;;  %7135 = vst [vmem:[#allocation11 + $0x40] sm:$0xff] %v11615_v51  ;;  %6711 = vmatpush.bf16.msrb.mxu3 %v9874_v30  ;;  %v9778_v34 = vor.u32 %v11337_v9, %v9775_v32  ;;  %v9754_v51 = vor.u32 %v11331_v49, %v9751_v16  ;;  %v4678_v40 = vpop.f32.mrf.mxu3  ;;  %v10093_v9 = vld [vmem:[#allocation8 + $0x1628] sm:$0xf]  ;;  %v11419_v32 = vld [vmem:[#allocation8 + $0x163c] sm:$0xf0] }
 0x2cd   :  { %v10637_v16 = vld [vmem:[#allocation8 + $0x1a70] sm:$0xf] }
 0x2ce   :  { %6629 = vmatpush.bf16.msra.mxu1 %v9822_v13  ;;  %6647 = vmatmul.bf16.vlgmr.msra.gmra.mxu2 %v12168_v39  ;;  %v11508_v13 = vld [vmem:[#allocation8 + $0x1904] sm:$0xf0] }
 0x2cf   :  { %6751 = vmatpush.bf16.msra.mxu2 %v10498_v58  ;;  %v10446_v36 = vor.u32 %v11508_v13, %v10445_v14  ;;  %v10374_v58 = vor.u32 %v11490_v63, %v10373_v5  ;;  %v11475_v14 = vld [vmem:[#allocation8 + $0x1804] sm:$0xf]  ;;  %v10327_v13 = vld [vmem:[#allocation8 + $0x1818] sm:$0xf0]  ;;  %v11553_v5 = vld [vmem:[#allocation8 + $0x1a74] sm:$0xf] }
 0x2d0   :  { %6712 = vmatpush.bf16.msrb.mxu3 %v9850_v28  ;;  %v10378_v28 = vor.u32 %v11487_v0, %v10375_v44  ;;  %v10639_v63 = vld [vmem:[#allocation8 + $0x1a88] sm:$0xf0]  ;;  %v11407_v44 = vld [vmem:[#allocation8 + $0x15dc] sm:$0xf0] }
 0x2d1   :  { %6669 = vmatpush.bf16.msrb.mxu0 %v10446_v36 }
 0x2d2   :  { %6630 = vmatpush.bf16.msra.mxu1 %v9798_v54  ;;  %v4662_v54 = vpop.f32.mrf.mxu2 }
 0x2d3   :  { %6752 = vmatpush.bf16.msra.mxu2 %v10474_v19  ;;  %v11478_v19 = vld [vmem:[#allocation8 + $0x1814] sm:$0xf0] }
 0x2d4   :  { %6713 = vmatpush.bf16.msrb.mxu3 %v9826_v11  ;;  %v10354_v11 = vor.u32 %v11481_v8, %v10351_v55  ;;  %v10326_v36 = vor.u32 %v11478_v19, %v10325_v12  ;;  %v11547_v8 = vld [vmem:[#allocation8 + $0x1a44] sm:$0xf]  ;;  %v10021_v55 = vld [vmem:[#allocation8 + $0x1598] sm:$0xf]  ;;  %v11401_v12 = vld [vmem:[#allocation8 + $0x15ac] sm:$0xf0] }
 0x2d5   :  { %6670 = vmatpush.bf16.msrb.mxu0 %v10422_v61 }
 0x2d6   :  { %6631 = vmatpush.bf16.msra.mxu1 %v9774_v37  ;;  %v4690_v19 = vpop.f32.mrf.mxu0 }
 0x2d7   :  { %6753 = vmatpush.bf16.msra.mxu2 %v10450_v10  ;;  %v10330_v10 = vor.u32 %v11475_v14, %v10327_v13  ;;  %v10589_v14 = vld [vmem:[#allocation8 + $0x1a10] sm:$0xf]  ;;  %v11544_v13 = vld [vmem:[#allocation8 + $0x1a24] sm:$0xf0] }
 0x2d8   :  { %6714 = vmatpush.bf16.msrb.mxu3 %v9802_v25  ;;  %v10590_v20 = vor.u32 %v11544_v13, %v10589_v14  ;;  %v11463_v13 = vld [vmem:[#allocation8 + $0x17a4] sm:$0xf] }
 0x2d9   :  { %6671 = vmatpush.bf16.msrb.mxu0 %v10398_v53  ;;  %v10069_v53 = vld [vmem:[#allocation8 + $0x15f8] sm:$0xf] }
 0x2da   :  { %6632 = vmatpush.bf16.msra.mxu1 %v9750_v24  ;;  %v4648_v52 = vpop.f32.mrf.mxu1  ;;  %v10399_v24 = vld [vmem:[#allocation8 + $0x18a8] sm:$0xf0]  ;;  %v4664_v1 = vpop.f32.mrf.mxu2 }
 0x2db   :  { %v4649_v22 = vadd.f32 %v4648_v52, %v4635_v60  ;;  %6754 = vmatpush.bf16.msra.mxu2 %v10426_v27  ;;  %v10402_v30 = vor.u32 %v11493_v45, %v10399_v24  ;;  %v10685_v60 = vld [vmem:[#allocation8 + $0x1ad0] sm:$0xf]  ;;  %v11415_v52 = vld [vmem:[#allocation8 + $0x1624] sm:$0xf]  ;;  %v10094_v27 = vor.u32 %v11419_v32, %v10093_v9  ;;  %v10663_v45 = vld [vmem:[#allocation8 + $0x1ab8] sm:$0xf0] }
 0x2dc   :  { %6715 = vmatpush.bf16.msrb.mxu3 %v9778_v34  ;;  %v10090_v61 = vor.u32 %v11415_v52, %v10087_v26  ;;  %v10661_v34 = vld [vmem:[#allocation8 + $0x1aa0] sm:$0xf]  ;;  %v11413_v24 = vld [vmem:[#allocation8 + $0x160c] sm:$0xf0]  ;;  %v9967_v9 = vld [vmem:[#allocation8 + $0x1548] sm:$0xf0] }
 0x2dd   :  { %6633 = vmatmul.bf16.vlgmr.msra.gmra.mxu1 %v12166_v48  ;;  %v4663_v37 = vadd.f32 %v4662_v54, %v4649_v22  ;;  %6672 = vmatpush.bf16.msrb.mxu0 %v10374_v58  ;;  %v11568_v54 = vld [vmem:[#allocation8 + $0x1ae4] sm:$0xf0]  ;;  %v11565_v22 = vld [vmem:[#allocation8 + $0x1ad4] sm:$0xf]  ;;  %v10662_v42 = vor.u32 %v11562_v31, %v10661_v34  ;;  %v10070_v49 = vor.u32 %v11413_v24, %v10069_v53  ;;  %v10565_v26 = vld [vmem:[#allocation8 + $0x19e0] sm:$0xf] }
 0x2de   :  { %6703 = vmatmul.bf16.vlgmr.msrb.gmra.mxu2 %v12160_v29  ;;  %v10686_v38 = vor.u32 %v11568_v54, %v10685_v60  ;;  %v10045_v58 = vld [vmem:[#allocation8 + $0x15c8] sm:$0xf]  ;;  %v11395_v54 = vld [vmem:[#allocation8 + $0x157c] sm:$0xf0]  ;;  %v11535_v32 = vld [vmem:[#allocation8 + $0x19e4] sm:$0xf] }
 0x2df   :  { %v4677_v46 = vadd.f32 %v4676_v35, %v4663_v37  ;;  %6755 = vmatpush.bf16.msra.mxu2 %v10402_v30  ;;  %v10690_v35 = vor.u32 %v11565_v22, %v10687_v43  ;;  %v11409_v37 = vld [vmem:[#allocation8 + $0x15f4] sm:$0xf]  ;;  %v11556_v30 = vld [vmem:[#allocation8 + $0x1a84] sm:$0xf0]  ;;  %v11538_v22 = vld [vmem:[#allocation8 + $0x19f4] sm:$0xf0] }
 0x2e0   :  { %6716 = vmatpush.bf16.msrb.mxu3 %v9754_v51  ;;  %6681 = vmatpush.bf16.msrb.mxu1 %v10686_v38  ;;  %v10066_v41 = vor.u32 %v11409_v37, %v10063_v47  ;;  %v11403_v51 = vld [vmem:[#allocation8 + $0x15c4] sm:$0xf]  ;;  %v9997_v60 = vld [vmem:[#allocation8 + $0x1568] sm:$0xf]  ;;  %v10566_v43 = vor.u32 %v11538_v22, %v10565_v26  ;;  %v9973_v37 = vld [vmem:[#allocation8 + $0x1538] sm:$0xf] }
 0x2e1   :  { %11616 = vtanh.f32 %v4677_v46  ;;  %6673 = vmatpush.bf16.msrb.mxu0 %v10350_v17  ;;  %v10666_v46 = vor.u32 %v11559_v18, %v10663_v45  ;;  %v9998_v38 = vor.u32 %v11395_v54, %v9997_v60  ;;  %v10541_v18 = vld [vmem:[#allocation8 + $0x19b0] sm:$0xf]  ;;  %v11532_v45 = vld [vmem:[#allocation8 + $0x19c4] sm:$0xf0]  ;;  %v9943_v24 = vld [vmem:[#allocation8 + $0x1518] sm:$0xf0] }
 0x2e2   :  { %v4650_v57 = vpop.f32.mrf.mxu1  ;;  %v10542_v53 = vor.u32 %v11532_v45, %v10541_v18 }
 0x2e3   :  { %v4651_v4 = vadd.f32 %v4650_v57, %v4637_v56  ;;  %6756 = vmatpush.bf16.msra.mxu2 %v10378_v28  ;;  %v10638_v56 = vor.u32 %v11556_v30, %v10637_v16  ;;  %v10039_v57 = vld [vmem:[#allocation8 + $0x15d8] sm:$0xf0]  ;;  %v10613_v28 = vld [vmem:[#allocation8 + $0x1a40] sm:$0xf]  ;;  %v10543_v16 = vld [vmem:[#allocation8 + $0x19c8] sm:$0xf0]  ;;  %v4718_v30 = vpop.f32.mrf.mxu2 }
 0x2e4   :  { %6682 = vmatpush.bf16.msrb.mxu1 %v10662_v42  ;;  %v10042_v0 = vor.u32 %v11403_v51, %v10039_v57  ;;  %v11389_v42 = vld [vmem:[#allocation8 + $0x154c] sm:$0xf0]  ;;  %v4692_v51 = vpop.f32.mrf.mxu0 }
 0x2e5   :  { %v4665_v33 = vadd.f32 %v4664_v1, %v4651_v4  ;;  %6674 = vmatpush.bf16.msrb.mxu0 %v10326_v36  ;;  %v10642_v4 = vor.u32 %v11553_v5, %v10639_v63  ;;  %v10046_v1 = vor.u32 %v11407_v44, %v10045_v58  ;;  %v11541_v36 = vld [vmem:[#allocation8 + $0x1a14] sm:$0xf]  ;;  %v9974_v47 = vor.u32 %v11389_v42, %v9973_v37  ;;  %v9949_v5 = vld [vmem:[#allocation8 + $0x1508] sm:$0xf]  ;;  %v11383_v63 = vld [vmem:[#allocation8 + $0x151c] sm:$0xf0] }
 0x2e6   :  { %v10517_v58 = vld [vmem:[#allocation8 + $0x1980] sm:$0xf]  ;;  %v11526_v44 = vld [vmem:[#allocation8 + $0x1994] sm:$0xf0]  ;;  %v10237_v37 = vld [vmem:[#allocation8 + $0x1748] sm:$0xf] }
 0x2e7   :  { %v11617_v6 = vpop.eup %11616  ;;  %v4679_v15 = vadd.f32 %v4678_v40, %v4665_v33  ;;  %6757 = vmatpush.bf16.msra.mxu2 %v10354_v11  ;;  %v11550_v33 = vld [vmem:[#allocation8 + $0x1a54] sm:$0xf0]  ;;  %v11397_v40 = vld [vmem:[#allocation8 + $0x1594] sm:$0xf]  ;;  %v10022_v11 = vor.u32 %v11401_v12, %v10021_v55  ;;  %v11473_v12 = vld [vmem:[#allocation8 + $0x17ec] sm:$0xf0] }
 0x2e8   :  { %7130 = vst [vmem:[#allocation11 + $0x18] sm:$0xff] %v11617_v6  ;;  %6683 = vmatpush.bf16.msrb.mxu1 %v10638_v56  ;;  %v10614_v59 = vor.u32 %v11550_v33, %v10613_v28  ;;  %v10518_v33 = vor.u32 %v11526_v44, %v10517_v58  ;;  %v10309_v55 = vld [vmem:[#allocation8 + $0x17d8] sm:$0xf]  ;;  %v11455_v42 = vld [vmem:[#allocation8 + $0x175c] sm:$0xf0] }
 0x2e9   :  { %11618 = vtanh.f32 %v4679_v15  ;;  %6723 = vmatpush.bf16.msra.mxu0 %v10114_v23  ;;  %v10018_v15 = vor.u32 %v11397_v40, %v10015_v50  ;;  %v2897_v23 = vperm.slane %v12177_v21, 4  ;;  %v11523_v40 = vld [vmem:[#allocation8 + $0x1984] sm:$0xf]  ;;  %v11469_v50 = vld [vmem:[#allocation8 + $0x17d4] sm:$0xf]  ;;  %v10310_v14 = vor.u32 %v11473_v12, %v10309_v55 }
 0x2ea   :  { %v10238_v18 = vor.u32 %v11455_v42, %v10237_v37  ;;  %v10189_v44 = vld [vmem:[#allocation8 + $0x16e8] sm:$0xf]  ;;  %v11323_v12 = vld [vmem:[#allocation8 + $0x133c] sm:$0xf0] }
 0x2eb   :  { %6758 = vmatpush.bf16.msra.mxu2 %v10330_v10  ;;  %v10591_v10 = vld [vmem:[#allocation8 + $0x1a28] sm:$0xf0]  ;;  %v11311_v42 = vld [vmem:[#allocation8 + $0x12dc] sm:$0xf0] }
 0x2ec   :  { %6684 = vmatpush.bf16.msrb.mxu1 %v10614_v59  ;;  %v10519_v59 = vld [vmem:[#allocation8 + $0x1998] sm:$0xf0] }
 0x2ed   :  { %6724 = vmatpush.bf16.msra.mxu0 %v10090_v61  ;;  %v11385_v61 = vld [vmem:[#allocation8 + $0x1534] sm:$0xf] }
 0x2ee   :  { %v9970_v34 = vor.u32 %v11385_v61, %v9967_v9  ;;  %v10261_v61 = vld [vmem:[#allocation8 + $0x1778] sm:$0xf] }
 0x2ef   :  { %v11619_v25 = vpop.eup %11618  ;;  %6807 = vmatpush.bf16.msrb.mxu2 %v10118_v2  ;;  %v9994_v2 = vor.u32 %v11391_v7, %v9991_v62  ;;  %v10279_v7 = vld [vmem:[#allocation8 + $0x17b8] sm:$0xf0] }
 0x2f0   :  { %v12174_v3 = vpack.c.bf16 %v11619_v25, %v11617_v6  ;;  %7136 = vst [vmem:[#allocation11 + $0x48] sm:$0xff] %v11619_v25  ;;  %v10615_v6 = vld [vmem:[#allocation8 + $0x1a58] sm:$0xf0]  ;;  %v10594_v25 = vor.u32 %v11541_v36, %v10591_v10  ;;  %6685 = vmatpush.bf16.msrb.mxu1 %v10590_v20  ;;  %v10282_v62 = vor.u32 %v11463_v13, %v10279_v7  ;;  %v10285_v36 = vld [vmem:[#allocation8 + $0x17a8] sm:$0xf] }
 0x2f1   :  { %6725 = vmatpush.bf16.msra.mxu0 %v10066_v41  ;;  %v10618_v17 = vor.u32 %v11547_v8, %v10615_v6  ;;  %v11379_v41 = vld [vmem:[#allocation8 + $0x1504] sm:$0xf]  ;;  %v4693_v8 = vadd.f32 %v4692_v51, %v2897_v23  ;;  %v10522_v6 = vor.u32 %v11523_v40, %v10519_v59  ;;  %v11467_v10 = vld [vmem:[#allocation8 + $0x17bc] sm:$0xf0]  ;;  %v11449_v51 = vld [vmem:[#allocation8 + $0x172c] sm:$0xf0] }
 0x2f2   :  { %6661 = vmatmul.bf16.vlgmr.msra.gmra.mxu3 %v12174_v3  ;;  %v9946_v56 = vor.u32 %v11379_v41, %v9943_v24  ;;  %v9735_v40 = vld [vmem:[#allocation8 + $0x1370] sm:$0xf0]  ;;  %v11320_v13 = vld [vmem:[#allocation8 + $0x132c] sm:$0xf]  ;;  %v9711_v7 = vld [vmem:[#allocation8 + $0x1340] sm:$0xf0] }
 0x2f3   :  { %6765 = vmatpush.bf16.msra.mxu3 %v10690_v35  ;;  %6808 = vmatpush.bf16.msrb.mxu2 %v10094_v27  ;;  %v10567_v35 = vld [vmem:[#allocation8 + $0x19f8] sm:$0xf0]  ;;  %v4691_v27 = vadd.f32 %v4690_v19, %v2897_v23  ;;  %v10286_v23 = vor.u32 %v11467_v10, %v10285_v36  ;;  %v2898_v36 = vperm.slane %v12177_v21, 5  ;;  %v11427_v10 = vld [vmem:[#allocation8 + $0x1684] sm:$0xf] }
 0x2f4   :  { %v10570_v31 = vor.u32 %v11535_v32, %v10567_v35  ;;  %6686 = vmatpush.bf16.msrb.mxu1 %v10566_v43  ;;  %v4746_v20 = vpop.f32.mrf.mxu0  ;;  %v11461_v43 = vld [vmem:[#allocation8 + $0x178c] sm:$0xf0] }
 0x2f5   :  { %6726 = vmatpush.bf16.msra.mxu0 %v10042_v0  ;;  %v9950_v0 = vor.u32 %v11383_v63, %v9949_v5  ;;  %v10262_v32 = vor.u32 %v11461_v43, %v10261_v61  ;;  %v11439_v5 = vld [vmem:[#allocation8 + $0x16e4] sm:$0xf]  ;;  %v10183_v63 = vld [vmem:[#allocation8 + $0x16f8] sm:$0xf0]  ;;  %v9687_v61 = vld [vmem:[#allocation8 + $0x1310] sm:$0xf0] }
 0x2f6   :  { %v10186_v58 = vor.u32 %v11439_v5, %v10183_v63 }
 0x2f7   :  { %6766 = vmatpush.bf16.msra.mxu3 %v10666_v46  ;;  %6809 = vmatpush.bf16.msrb.mxu2 %v10070_v49  ;;  %v11529_v49 = vld [vmem:[#allocation8 + $0x19b4] sm:$0xf] }
 0x2f8   :  { %v10546_v57 = vor.u32 %v11529_v49, %v10543_v16  ;;  %6687 = vmatpush.bf16.msrb.mxu1 %v10542_v53  ;;  %v10207_v53 = vld [vmem:[#allocation8 + $0x1728] sm:$0xf0] }
 0x2f9   :  { %6727 = vmatpush.bf16.msra.mxu0 %v10018_v15  ;;  %v10303_v15 = vld [vmem:[#allocation8 + $0x17e8] sm:$0xf0] }
 0x2fa   :  { %v4704_v52 = vpop.f32.mrf.mxu1 }
 0x2fb   :  { %6767 = vmatpush.bf16.msra.mxu3 %v10642_v4  ;;  %6810 = vmatpush.bf16.msrb.mxu2 %v10046_v1  ;;  %v4705_v46 = vadd.f32 %v4704_v52, %v4691_v27  ;;  %v4732_v1 = vpop.f32.mrf.mxu3  ;;  %v11457_v52 = vld [vmem:[#allocation8 + $0x1774] sm:$0xf]  ;;  %v11451_v27 = vld [vmem:[#allocation8 + $0x1744] sm:$0xf] }
 0x2fc   :  { %6688 = vmatpush.bf16.msrb.mxu1 %v10518_v33  ;;  %v11326_v33 = vld [vmem:[#allocation8 + $0x135c] sm:$0xf] }
 0x2fd   :  { %6728 = vmatpush.bf16.msra.mxu0 %v9994_v2  ;;  %v4719_v4 = vadd.f32 %v4718_v30, %v4705_v46  ;;  %v4720_v2 = vpop.f32.mrf.mxu2  ;;  %v11445_v46 = vld [vmem:[#allocation8 + $0x1714] sm:$0xf]  ;;  %v10213_v30 = vld [vmem:[#allocation8 + $0x1718] sm:$0xf]  ;;  %v9738_v55 = vor.u32 %v11326_v33, %v9735_v40  ;;  %v11299_v33 = vld [vmem:[#allocation8 + $0x127c] sm:$0xf0] }
 0x2fe   :  { %v10210_v16 = vor.u32 %v11445_v46, %v10207_v53  ;;  %v11296_v40 = vld [vmem:[#allocation8 + $0x126c] sm:$0xf] }
 0x2ff   :  { %6768 = vmatpush.bf16.msra.mxu3 %v10618_v17  ;;  %6811 = vmatpush.bf16.msrb.mxu2 %v10022_v11  ;;  %v10306_v17 = vor.u32 %v11469_v50, %v10303_v15  ;;  %v4733_v11 = vadd.f32 %v4732_v1, %v4719_v4  ;;  %v9733_v4 = vld [vmem:[#allocation8 + $0x1358] sm:$0xf]  ;;  %v11443_v1 = vld [vmem:[#allocation8 + $0x16fc] sm:$0xf0]  ;;  %v9709_v50 = vld [vmem:[#allocation8 + $0x1328] sm:$0xf] }
 0x300   :  { %v10190_v59 = vor.u32 %v11443_v1, %v10189_v44  ;;  %v9613_v44 = vld [vmem:[#allocation8 + $0x1268] sm:$0xf] }
 0x301   :  { %6729 = vmatpush.bf16.msra.mxu0 %v9970_v34  ;;  %6737 = vmatpush.bf16.msra.mxu1 %v10306_v17  ;;  %v4747_v60 = vadd.f32 %v4746_v20, %v4733_v11  ;;  %v10231_v34 = vld [vmem:[#allocation8 + $0x1758] sm:$0xf0]  ;;  %v11437_v11 = vld [vmem:[#allocation8 + $0x16cc] sm:$0xf0] }
 0x302   :  { %6717 = vmatmul.bf16.vlgmr.msrb.gmra.mxu3 %v12166_v48  ;;  %v4706_v28 = vpop.f32.mrf.mxu1 }
 0x303   :  { %6769 = vmatpush.bf16.msra.mxu3 %v10594_v25  ;;  %6812 = vmatpush.bf16.msrb.mxu2 %v9998_v38  ;;  %v4707_v19 = vadd.f32 %v4706_v28, %v4693_v8  ;;  %v10255_v38 = vld [vmem:[#allocation8 + $0x1788] sm:$0xf0]  ;;  %v4734_v9 = vpop.f32.mrf.mxu3  ;;  %v11329_v28 = vld [vmem:[#allocation8 + $0x136c] sm:$0xf0]  ;;  %v11433_v8 = vld [vmem:[#allocation8 + $0x16b4] sm:$0xf] }
 0x304   :  { %v10258_v22 = vor.u32 %v11457_v52, %v10255_v38  ;;  %v9734_v17 = vor.u32 %v11329_v28, %v9733_v4  ;;  %v10141_v52 = vld [vmem:[#allocation8 + $0x1688] sm:$0xf]  ;;  %v11431_v38 = vld [vmem:[#allocation8 + $0x169c] sm:$0xf0] }
 0x305   :  { %6730 = vmatpush.bf16.msra.mxu0 %v9946_v56  ;;  %v4721_v25 = vadd.f32 %v4720_v2, %v4707_v19  ;;  %6738 = vmatpush.bf16.msra.mxu1 %v10282_v62  ;;  %v10214_v56 = vor.u32 %v11449_v51, %v10213_v30  ;;  %v10165_v19 = vld [vmem:[#allocation8 + $0x16b8] sm:$0xf]  ;;  %v10135_v2 = vld [vmem:[#allocation8 + $0x1698] sm:$0xf0]  ;;  %v10142_v43 = vor.u32 %v11431_v38, %v10141_v52  ;;  %v11305_v30 = vld [vmem:[#allocation8 + $0x12ac] sm:$0xf0] }
 0x306   :  { %v10166_v62 = vor.u32 %v11437_v11, %v10165_v19  ;;  %v10138_v21 = vor.u32 %v11427_v10, %v10135_v2  ;;  %v11302_v51 = vld [vmem:[#allocation8 + $0x129c] sm:$0xf]  ;;  %v9591_v11 = vld [vmem:[#allocation8 + $0x1250] sm:$0xf0]  ;;  %v9565_v10 = vld [vmem:[#allocation8 + $0x1208] sm:$0xf] }
 0x307   :  { %6770 = vmatpush.bf16.msra.mxu3 %v10570_v31  ;;  %6813 = vmatpush.bf16.msrb.mxu2 %v9974_v47  ;;  %v4735_v35 = vadd.f32 %v4734_v9, %v4721_v25  ;;  %v10234_v31 = vor.u32 %v11451_v27, %v10231_v34  ;;  %v4748_v47 = vpop.f32.mrf.mxu0  ;;  %v9710_v25 = vor.u32 %v11323_v12, %v9709_v50  ;;  %v11293_v12 = vld [vmem:[#allocation8 + $0x124c] sm:$0xf0]  ;;  %v11290_v19 = vld [vmem:[#allocation8 + $0x123c] sm:$0xf]  ;;  %v11287_v2 = vld [vmem:[#allocation8 + $0x121c] sm:$0xf0] }
 0x308   :  { %v10501_v52 = vld [vmem:[#allocation8 + $0x1958] sm:$0xf]  ;;  %v11521_v38 = vld [vmem:[#allocation8 + $0x196c] sm:$0xf0] }
 0x309   :  { %6739 = vmatpush.bf16.msra.mxu1 %v10258_v22  ;;  %v4749_v45 = vadd.f32 %v4748_v47, %v4735_v35  ;;  %v11314_v22 = vld [vmem:[#allocation8 + $0x12fc] sm:$0xf]  ;;  %v11308_v47 = vld [vmem:[#allocation8 + $0x12cc] sm:$0xf] }
 0x30a   :  { %v9690_v34 = vor.u32 %v11314_v22, %v9687_v61  ;;  %v10503_v22 = vld [vmem:[#allocation8 + $0x1970] sm:$0xf0]  ;;  %v9566_v61 = vor.u32 %v11287_v2, %v9565_v10 }
 0x30b   :  { %6771 = vmatpush.bf16.msra.mxu3 %v10546_v57  ;;  %6814 = vmatpush.bf16.msrb.mxu2 %v9950_v0  ;;  %v4774_v57 = vpop.f32.mrf.mxu2  ;;  %v4788_v0 = vpop.f32.mrf.mxu3  ;;  %v10407_v10 = vld [vmem:[#allocation8 + $0x18b0] sm:$0xf0] }
 0x30c   :  { %v4775_v35 = vadd.f32 %v4774_v57, %v2898_v36 }
 0x30d   :  { %6740 = vmatpush.bf16.msra.mxu1 %v10234_v31  ;;  %v9661_v31 = vld [vmem:[#allocation8 + $0x12c8] sm:$0xf] }
 0x30e   :  { %v4789_v37 = vadd.f32 %v4788_v0, %v4775_v35  ;;  %v9662_v53 = vor.u32 %v11311_v42, %v9661_v31  ;;  %v11377_v35 = vld [vmem:[#allocation8 + $0x14ec] sm:$0xf0]  ;;  %v11374_v31 = vld [vmem:[#allocation8 + $0x14dc] sm:$0xf]  ;;  %v11512_v42 = vld [vmem:[#allocation8 + $0x192c] sm:$0xf] }
 0x30f   :  { %6772 = vmatpush.bf16.msra.mxu3 %v10522_v6  ;;  %v10159_v6 = vld [vmem:[#allocation8 + $0x16c8] sm:$0xf0] }
 0x310   :  { %v10162_v20 = vor.u32 %v11433_v8, %v10159_v6  ;;  %v9614_v6 = vor.u32 %v11299_v33, %v9613_v44  ;;  %v11365_v44 = vld [vmem:[#allocation8 + $0x148c] sm:$0xf0]  ;;  %v10429_v33 = vld [vmem:[#allocation8 + $0x18c8] sm:$0xf] }
 0x311   :  { %6741 = vmatpush.bf16.msra.mxu1 %v10210_v16 }
 0x313   :  { %6821 = vmatpush.bf16.msrb.mxu3 %v10310_v14  ;;  %v4790_v9 = vpop.f32.mrf.mxu3 }
 0x315   :  { %6742 = vmatpush.bf16.msra.mxu1 %v10186_v58 }
 0x317   :  { %6822 = vmatpush.bf16.msrb.mxu3 %v10286_v23  ;;  %v4776_v23 = vpop.f32.mrf.mxu2 }
 0x318   :  { %v4777_v5 = vadd.f32 %v4776_v23, %v2898_v36  ;;  %v9594_v36 = vor.u32 %v11290_v19, %v9591_v11  ;;  %v11284_v23 = vld [vmem:[#allocation8 + $0x120c] sm:$0xf] }
 0x319   :  { %6743 = vmatpush.bf16.msra.mxu1 %v10162_v20 }
 0x31a   :  { %v4760_v54 = vpop.f32.mrf.mxu1  ;;  %v4791_v1 = vadd.f32 %v4790_v9, %v4777_v5  ;;  %v11506_v5 = vld [vmem:[#allocation8 + $0x18fc] sm:$0xf] }
 0x31b   :  { %v4761_v26 = vadd.f32 %v4760_v54, %v4747_v60  ;;  %6823 = vmatpush.bf16.msrb.mxu3 %v10262_v32  ;;  %v9714_v60 = vor.u32 %v11320_v13, %v9711_v7  ;;  %v9685_v54 = vld [vmem:[#allocation8 + $0x12f8] sm:$0xf]  ;;  %v4802_v32 = vpop.f32.mrf.mxu0 }
 0x31d   :  { %11620 = vtanh.f32 %v4761_v26  ;;  %v11317_v26 = vld [vmem:[#allocation8 + $0x130c] sm:$0xf0]  ;;  %6744 = vmatpush.bf16.msra.mxu1 %v10138_v21 }
 0x31e   :  { %v9686_v27 = vor.u32 %v11317_v26, %v9685_v54  ;;  %v9567_v54 = vld [vmem:[#allocation8 + $0x1220] sm:$0xf0]  ;;  %v11518_v26 = vld [vmem:[#allocation8 + $0x195c] sm:$0xf] }
 0x31f   :  { %6824 = vmatpush.bf16.msrb.mxu3 %v10238_v18  ;;  %v9663_v18 = vld [vmem:[#allocation8 + $0x12e0] sm:$0xf0]  ;;  %v9570_v21 = vor.u32 %v11284_v23, %v9567_v54  ;;  %v10506_v9 = vor.u32 %v11518_v26, %v10503_v22  ;;  %v11491_v26 = vld [vmem:[#allocation8 + $0x187c] sm:$0xf0]  ;;  %v11350_v22 = vld [vmem:[#allocation8 + $0x141c] sm:$0xf] }
 0x322   :  { %v4762_v41 = vpop.f32.mrf.mxu1  ;;  %v4844_v57 = vpop.f32.mrf.mxu3 }
 0x323   :  { %v11621_v24 = vpop.eup %11620  ;;  %v4763_v49 = vadd.f32 %v4762_v41, %v4749_v45  ;;  %6825 = vmatpush.bf16.msrb.mxu3 %v10214_v56  ;;  %v4803_v45 = vadd.f32 %v4802_v32, %v4789_v37  ;;  %v4830_v41 = vpop.f32.mrf.mxu2  ;;  %v9639_v56 = vld [vmem:[#allocation8 + $0x12b0] sm:$0xf0]  ;;  %v9925_v32 = vld [vmem:[#allocation8 + $0x14d8] sm:$0xf] }
 0x324   :  { %7131 = vst [vmem:[#allocation11 + $0x20] sm:$0xff] %v11621_v24  ;;  %v4804_v0 = vpop.f32.mrf.mxu0  ;;  %v9642_v58 = vor.u32 %v11302_v51, %v9639_v56  ;;  %v9927_v37 = vld [vmem:[#allocation8 + $0x14f0] sm:$0xf0]  ;;  %v11509_v51 = vld [vmem:[#allocation8 + $0x190c] sm:$0xf0] }
 0x325   :  { %11622 = vtanh.f32 %v4763_v49  ;;  %v9637_v49 = vld [vmem:[#allocation8 + $0x1298] sm:$0xf]  ;;  %v4805_v50 = vadd.f32 %v4804_v0, %v4791_v1  ;;  %v11368_v56 = vld [vmem:[#allocation8 + $0x14ac] sm:$0xf] }
 0x326   :  { %v9638_v4 = vor.u32 %v11305_v30, %v9637_v49 }
 0x327   :  { %6826 = vmatpush.bf16.msrb.mxu3 %v10190_v59  ;;  %v9615_v59 = vld [vmem:[#allocation8 + $0x1280] sm:$0xf0] }
 0x32a   :  { %v4846_v20 = vpop.f32.mrf.mxu3 }
 0x32b   :  { %v11623_v15 = vpop.eup %11622  ;;  %6827 = vmatpush.bf16.msrb.mxu3 %v10166_v62  ;;  %v4832_v13 = vpop.f32.mrf.mxu2 }
 0x32c   :  { %v12181_v14 = vpack.c.bf16 %v11623_v15, %v11621_v24  ;;  %7137 = vst [vmem:[#allocation11 + $0x50] sm:$0xff] %v11623_v15  ;;  %v9666_v24 = vor.u32 %v11308_v47, %v9663_v18  ;;  %v9618_v15 = vor.u32 %v11296_v40, %v9615_v59  ;;  %v10479_v47 = vld [vmem:[#allocation8 + $0x1940] sm:$0xf0]  ;;  %v11503_v40 = vld [vmem:[#allocation8 + $0x18dc] sm:$0xf0] }
 0x32d   :  { %v10482_v30 = vor.u32 %v11512_v42, %v10479_v47  ;;  %v11362_v59 = vld [vmem:[#allocation8 + $0x147c] sm:$0xf]  ;;  %v11485_v42 = vld [vmem:[#allocation8 + $0x184c] sm:$0xf0]  ;;  %v11344_v47 = vld [vmem:[#allocation8 + $0x13ec] sm:$0xf] }
 0x32e   :  { %6675 = vmatmul.bf16.vlgmr.msrb.gmra.mxu0 %v12181_v14  ;;  %6759 = vmatmul.bf16.vlgmr.msra.gmra.mxu2 %v12181_v14 }
 0x32f   :  { %6779 = vmatpush.bf16.msrb.mxu0 %v9734_v17  ;;  %6863 = vmatpush.bf16.msra.mxu2 %v9738_v55  ;;  %v9589_v17 = vld [vmem:[#allocation8 + $0x1238] sm:$0xf] }
 0x330   :  { %6828 = vmatpush.bf16.msrb.mxu3 %v10142_v43  ;;  %v9590_v62 = vor.u32 %v11293_v12, %v9589_v17  ;;  %v10502_v43 = vor.u32 %v11521_v38, %v10501_v52  ;;  %v10430_v17 = vor.u32 %v11503_v40, %v10429_v33  ;;  %v11359_v12 = vld [vmem:[#allocation8 + $0x145c] sm:$0xf0]  ;;  %v10381_v38 = vld [vmem:[#allocation8 + $0x1868] sm:$0xf] }
 0x333   :  { %6780 = vmatpush.bf16.msrb.mxu0 %v9710_v25  ;;  %6864 = vmatpush.bf16.msra.mxu2 %v9714_v60 }
 0x337   :  { %6781 = vmatpush.bf16.msrb.mxu0 %v9686_v27  ;;  %6865 = vmatpush.bf16.msra.mxu2 %v9690_v34  ;;  %v10477_v27 = vld [vmem:[#allocation8 + $0x1928] sm:$0xf]  ;;  %v11515_v34 = vld [vmem:[#allocation8 + $0x193c] sm:$0xf0] }
 0x33a   :  { %v4816_v46 = vpop.f32.mrf.mxu1 }
 0x33b   :  { %v4817_v16 = vadd.f32 %v4816_v46, %v4803_v45  ;;  %6782 = vmatpush.bf16.msrb.mxu0 %v9662_v53  ;;  %6866 = vmatpush.bf16.msra.mxu2 %v9666_v24  ;;  %v9926_v45 = vor.u32 %v11377_v35, %v9925_v32  ;;  %v9901_v46 = vld [vmem:[#allocation8 + $0x14a8] sm:$0xf]  ;;  %v11371_v53 = vld [vmem:[#allocation8 + $0x14bc] sm:$0xf0]  ;;  %v10453_v24 = vld [vmem:[#allocation8 + $0x18f8] sm:$0xf]  ;;  %v10382_v32 = vor.u32 %v11491_v26, %v10381_v38 }
 0x33c   :  { %v9902_v0 = vor.u32 %v11371_v53, %v9901_v46  ;;  %v9805_v35 = vld [vmem:[#allocation8 + $0x13e8] sm:$0xf]  ;;  %v11563_v38 = vld [vmem:[#allocation8 + $0x1abc] sm:$0xf0]  ;;  %v11410_v26 = vld [vmem:[#allocation8 + $0x15fc] sm:$0xf] }
 0x33d   :  { %v4831_v63 = vadd.f32 %v4830_v41, %v4817_v16  ;;  %v10478_v41 = vor.u32 %v11515_v34, %v10477_v27  ;;  %v9930_v16 = vor.u32 %v11374_v31, %v9927_v37  ;;  %v11347_v27 = vld [vmem:[#allocation8 + $0x13fc] sm:$0xf0]  ;;  %v10357_v37 = vld [vmem:[#allocation8 + $0x1838] sm:$0xf] }
 0x33e   :  { %6731 = vmatmul.bf16.vlgmr.msra.gmra.mxu0 %v12168_v39  ;;  %6815 = vmatmul.bf16.vlgmr.msrb.gmra.mxu2 %v12168_v39  ;;  %v9806_v46 = vor.u32 %v11347_v27, %v9805_v35  ;;  %v10358_v53 = vor.u32 %v11485_v42, %v10357_v37  ;;  %v11557_v37 = vld [vmem:[#allocation8 + $0x1a8c] sm:$0xf0]  ;;  %v11404_v42 = vld [vmem:[#allocation8 + $0x15cc] sm:$0xf] }
 0x33f   :  { %v4845_v28 = vadd.f32 %v4844_v57, %v4831_v63  ;;  %6783 = vmatpush.bf16.msrb.mxu0 %v9638_v4  ;;  %6867 = vmatpush.bf16.msra.mxu2 %v9642_v58  ;;  %v9903_v57 = vld [vmem:[#allocation8 + $0x14c0] sm:$0xf0]  ;;  %v10455_v63 = vld [vmem:[#allocation8 + $0x1910] sm:$0xf0]  ;;  %v10454_v4 = vor.u32 %v11509_v51, %v10453_v24  ;;  %v9877_v58 = vld [vmem:[#allocation8 + $0x1478] sm:$0xf] }
 0x340   :  { %v9906_v1 = vor.u32 %v11368_v56, %v9903_v57  ;;  %v9781_v24 = vld [vmem:[#allocation8 + $0x13b8] sm:$0xf]  ;;  %v11479_v57 = vld [vmem:[#allocation8 + $0x181c] sm:$0xf0] }
 0x341   :  { %11624 = vtanh.f32 %v4845_v28  ;;  %v10458_v28 = vor.u32 %v11506_v5, %v10455_v63  ;;  %v11338_v5 = vld [vmem:[#allocation8 + $0x13bc] sm:$0xf]  ;;  %v9783_v63 = vld [vmem:[#allocation8 + $0x13d0] sm:$0xf0] }
 0x342   :  { %v4818_v8 = vpop.f32.mrf.mxu1 }
 0x343   :  { %v4819_v55 = vadd.f32 %v4818_v8, %v4805_v50  ;;  %6784 = vmatpush.bf16.msrb.mxu0 %v9614_v6  ;;  %6868 = vmatpush.bf16.msra.mxu2 %v9618_v15  ;;  %v9879_v50 = vld [vmem:[#allocation8 + $0x1490] sm:$0xf0]  ;;  %v11500_v8 = vld [vmem:[#allocation8 + $0x18cc] sm:$0xf]  ;;  %v10431_v6 = vld [vmem:[#allocation8 + $0x18e0] sm:$0xf0]  ;;  %v9878_v15 = vor.u32 %v11365_v44, %v9877_v58 }
 0x344   :  { %v9882_v19 = vor.u32 %v11362_v59, %v9879_v50  ;;  %v10434_v11 = vor.u32 %v11500_v8, %v10431_v6  ;;  %v11422_v58 = vld [vmem:[#allocation8 + $0x165c] sm:$0xf]  ;;  %v10119_v44 = vld [vmem:[#allocation8 + $0x1670] sm:$0xf0]  ;;  %v9757_v59 = vld [vmem:[#allocation8 + $0x1388] sm:$0xf]  ;;  %v9786_v50 = vor.u32 %v11338_v5, %v9783_v63 }
 0x345   :  { %v4833_v7 = vadd.f32 %v4832_v13, %v4819_v55  ;;  %v9853_v55 = vld [vmem:[#allocation8 + $0x1448] sm:$0xf]  ;;  %v10405_v13 = vld [vmem:[#allocation8 + $0x1898] sm:$0xf]  ;;  %v11335_v6 = vld [vmem:[#allocation8 + $0x139c] sm:$0xf0] }
 0x346   :  { %v9854_v2 = vor.u32 %v11359_v12, %v9853_v55  ;;  %v10122_v55 = vor.u32 %v11422_v58, %v10119_v44  ;;  %v10023_v63 = vld [vmem:[#allocation8 + $0x15b0] sm:$0xf0]  ;;  %v10029_v58 = vld [vmem:[#allocation8 + $0x15a0] sm:$0xf]  ;;  %v11402_v44 = vld [vmem:[#allocation8 + $0x15b4] sm:$0xf0] }
 0x347   :  { %v11625_v25 = vpop.eup %11624  ;;  %v4847_v60 = vadd.f32 %v4846_v20, %v4833_v7  ;;  %6785 = vmatpush.bf16.msrb.mxu0 %v9590_v62  ;;  %6869 = vmatpush.bf16.msra.mxu2 %v9594_v36  ;;  %v11497_v7 = vld [vmem:[#allocation8 + $0x18ac] sm:$0xf0]  ;;  %v11356_v20 = vld [vmem:[#allocation8 + $0x144c] sm:$0xf]  ;;  %v9855_v62 = vld [vmem:[#allocation8 + $0x1460] sm:$0xf0] }
 0x348   :  { %7132 = vst [vmem:[#allocation11 + $0x28] sm:$0xff] %v11625_v25  ;;  %v11494_v36 = vld [vmem:[#allocation8 + $0x189c] sm:$0xf]  ;;  %v10406_v23 = vor.u32 %v11497_v7, %v10405_v13  ;;  %v9858_v54 = vor.u32 %v11356_v20, %v9855_v62  ;;  %v11416_v13 = vld [vmem:[#allocation8 + $0x162c] sm:$0xf] }
 0x349   :  { %11626 = vtanh.f32 %v4847_v60  ;;  %v11353_v60 = vld [vmem:[#allocation8 + $0x142c] sm:$0xf0]  ;;  %v10410_v52 = vor.u32 %v11494_v36, %v10407_v10  ;;  %v10095_v7 = vld [vmem:[#allocation8 + $0x1640] sm:$0xf0]  ;;  %v11566_v20 = vld [vmem:[#allocation8 + $0x1adc] sm:$0xf]  ;;  %v9758_v36 = vor.u32 %v11335_v6, %v9757_v59 }
 0x34a   :  { %v10695_v62 = vld [vmem:[#allocation8 + $0x1af0] sm:$0xf0]  ;;  %v10101_v10 = vld [vmem:[#allocation8 + $0x1630] sm:$0xf]  ;;  %v9999_v6 = vld [vmem:[#allocation8 + $0x1580] sm:$0xf0] }
 0x34b   :  { %6786 = vmatpush.bf16.msrb.mxu0 %v9566_v61  ;;  %6870 = vmatpush.bf16.msra.mxu2 %v9570_v21  ;;  %v9831_v61 = vld [vmem:[#allocation8 + $0x1430] sm:$0xf0]  ;;  %v11488_v21 = vld [vmem:[#allocation8 + $0x186c] sm:$0xf]  ;;  %v11545_v59 = vld [vmem:[#allocation8 + $0x1a2c] sm:$0xf0] }
 0x34c   :  { %v9834_v34 = vor.u32 %v11350_v22, %v9831_v61  ;;  %v10071_v61 = vld [vmem:[#allocation8 + $0x1610] sm:$0xf0] }
 0x34d   :  { %v10074_v27 = vor.u32 %v11410_v26, %v10071_v61  ;;  %v11380_v61 = vld [vmem:[#allocation8 + $0x150c] sm:$0xf] }
 0x34e   :  { %6787 = vmatmul.bf16.vlgmr.msrb.gmra.mxu0 %v12160_v29  ;;  %6871 = vmatmul.bf16.vlgmr.msra.gmra.mxu2 %v12160_v29 }
 0x34f   :  { %v11627_v18 = vpop.eup %11626  ;;  %6835 = vmatpush.bf16.msra.mxu0 %v10502_v43  ;;  %6919 = vmatpush.bf16.msrb.mxu2 %v10506_v9  ;;  %v10383_v43 = vld [vmem:[#allocation8 + $0x1880] sm:$0xf0] }
 0x350   :  { %v12188_v49 = vpack.c.bf16 %v11627_v18, %v11625_v25  ;;  %7138 = vst [vmem:[#allocation11 + $0x58] sm:$0xff] %v11627_v18  ;;  %v9829_v25 = vld [vmem:[#allocation8 + $0x1418] sm:$0xf]  ;;  %v10386_v31 = vor.u32 %v11488_v21, %v10383_v43  ;;  %v9807_v18 = vld [vmem:[#allocation8 + $0x1400] sm:$0xf0] }
 0x351   :  { %v9830_v9 = vor.u32 %v11353_v60, %v9829_v25  ;;  %v9810_v51 = vor.u32 %v11344_v47, %v9807_v18  ;;  %v10098_v60 = vor.u32 %v11416_v13, %v10095_v7  ;;  %v11560_v21 = vld [vmem:[#allocation8 + $0x1aac] sm:$0xf]  ;;  %v10671_v43 = vld [vmem:[#allocation8 + $0x1ac0] sm:$0xf0]  ;;  %v10573_v7 = vld [vmem:[#allocation8 + $0x19e8] sm:$0xf] }
 0x352   :  { %6689 = vmatmul.bf16.vlgmr.msrb.gmra.mxu1 %v12188_v49  ;;  %6773 = vmatmul.bf16.vlgmr.msra.gmra.mxu3 %v12188_v49  ;;  %v10047_v18 = vld [vmem:[#allocation8 + $0x15e0] sm:$0xf0] }
 0x353   :  { %6793 = vmatpush.bf16.msrb.mxu1 %v9926_v45  ;;  %6836 = vmatpush.bf16.msra.mxu0 %v10478_v41  ;;  %v11482_v45 = vld [vmem:[#allocation8 + $0x183c] sm:$0xf]  ;;  %v10359_v41 = vld [vmem:[#allocation8 + $0x1850] sm:$0xf0] }
 0x354   :  { %6877 = vmatpush.bf16.msra.mxu3 %v9930_v16  ;;  %6920 = vmatpush.bf16.msrb.mxu2 %v10482_v30  ;;  %v11341_v16 = vld [vmem:[#allocation8 + $0x13cc] sm:$0xf0]  ;;  %v10333_v30 = vld [vmem:[#allocation8 + $0x1808] sm:$0xf]  ;;  %v10362_v56 = vor.u32 %v11482_v45, %v10359_v41  ;;  %v11554_v45 = vld [vmem:[#allocation8 + $0x1a7c] sm:$0xf] }
 0x355   :  { %v9782_v33 = vor.u32 %v11341_v16, %v9781_v24  ;;  %v10334_v40 = vor.u32 %v11479_v57, %v10333_v30  ;;  %v10647_v41 = vld [vmem:[#allocation8 + $0x1a90] sm:$0xf0]  ;;  %v10050_v16 = vor.u32 %v11404_v42, %v10047_v18  ;;  %v11398_v57 = vld [vmem:[#allocation8 + $0x159c] sm:$0xf]  ;;  %v11327_v42 = vld [vmem:[#allocation8 + $0x1364] sm:$0xf] }
 0x356   :  { %v10650_v30 = vor.u32 %v11554_v45, %v10647_v41  ;;  %v10525_v41 = vld [vmem:[#allocation8 + $0x1988] sm:$0xf] }
 0x357   :  { %6794 = vmatpush.bf16.msrb.mxu1 %v9902_v0  ;;  %6837 = vmatpush.bf16.msra.mxu0 %v10454_v4  ;;  %v11476_v0 = vld [vmem:[#allocation8 + $0x180c] sm:$0xf]  ;;  %v10335_v4 = vld [vmem:[#allocation8 + $0x1820] sm:$0xf0] }
 0x358   :  { %6878 = vmatpush.bf16.msra.mxu3 %v9906_v1  ;;  %6921 = vmatpush.bf16.msrb.mxu2 %v10458_v28  ;;  %v10125_v1 = vld [vmem:[#allocation8 + $0x1660] sm:$0xf]  ;;  %v11426_v28 = vld [vmem:[#allocation8 + $0x1674] sm:$0xf0]  ;;  %v10338_v8 = vor.u32 %v11476_v0, %v10335_v4  ;;  %v11548_v0 = vld [vmem:[#allocation8 + $0x1a4c] sm:$0xf] }
 0x359   :  { %v10126_v12 = vor.u32 %v11426_v28, %v10125_v1  ;;  %v10623_v4 = vld [vmem:[#allocation8 + $0x1a60] sm:$0xf0]  ;;  %v10026_v28 = vor.u32 %v11398_v57, %v10023_v63  ;;  %v11324_v63 = vld [vmem:[#allocation8 + $0x1344] sm:$0xf0] }
 0x35b   :  { %6795 = vmatpush.bf16.msrb.mxu1 %v9878_v15  ;;  %6838 = vmatpush.bf16.msra.mxu0 %v10430_v17  ;;  %v11332_v15 = vld [vmem:[#allocation8 + $0x138c] sm:$0xf]  ;;  %v9759_v17 = vld [vmem:[#allocation8 + $0x13a0] sm:$0xf0] }
 0x35c   :  { %6879 = vmatpush.bf16.msra.mxu3 %v9882_v19  ;;  %6922 = vmatpush.bf16.msrb.mxu2 %v10434_v11  ;;  %v10693_v19 = vld [vmem:[#allocation8 + $0x1ad8] sm:$0xf]  ;;  %v11569_v11 = vld [vmem:[#allocation8 + $0x1aec] sm:$0xf0] }
 0x35d   :  { %v10694_v25 = vor.u32 %v11569_v11, %v10693_v19 }
 0x35f   :  { %6796 = vmatpush.bf16.msrb.mxu1 %v9854_v2  ;;  %6839 = vmatpush.bf16.msra.mxu0 %v10406_v23  ;;  %v11420_v2 = vld [vmem:[#allocation8 + $0x1644] sm:$0xf0]  ;;  %v9762_v23 = vor.u32 %v11332_v15, %v9759_v17  ;;  %v11542_v15 = vld [vmem:[#allocation8 + $0x1a1c] sm:$0xf]  ;;  %v10599_v17 = vld [vmem:[#allocation8 + $0x1a30] sm:$0xf0] }
 0x360   :  { %6880 = vmatpush.bf16.msra.mxu3 %v9858_v54  ;;  %6923 = vmatpush.bf16.msrb.mxu2 %v10410_v52  ;;  %v10698_v54 = vor.u32 %v11566_v20, %v10695_v62  ;;  %v10669_v52 = vld [vmem:[#allocation8 + $0x1aa8] sm:$0xf]  ;;  %v10102_v22 = vor.u32 %v11420_v2, %v10101_v10  ;;  %v10602_v13 = vor.u32 %v11542_v15, %v10599_v17  ;;  %v11539_v20 = vld [vmem:[#allocation8 + $0x19fc] sm:$0xf0]  ;;  %v11386_v62 = vld [vmem:[#allocation8 + $0x153c] sm:$0xf] }
 0x361   :  { %v10670_v35 = vor.u32 %v11563_v38, %v10669_v52  ;;  %v9975_v10 = vld [vmem:[#allocation8 + $0x1550] sm:$0xf0]  ;;  %v11536_v2 = vld [vmem:[#allocation8 + $0x19ec] sm:$0xf]  ;;  %v10549_v52 = vld [vmem:[#allocation8 + $0x19b8] sm:$0xf] }
 0x362   :  { %6745 = vmatmul.bf16.vlgmr.msra.gmra.mxu1 %v12174_v3  ;;  %6829 = vmatmul.bf16.vlgmr.msrb.gmra.mxu3 %v12174_v3  ;;  %v9978_v38 = vor.u32 %v11386_v62, %v9975_v10  ;;  %v9693_v15 = vld [vmem:[#allocation8 + $0x1300] sm:$0xf]  ;;  %v11318_v17 = vld [vmem:[#allocation8 + $0x1314] sm:$0xf0]  ;;  %v10263_v62 = vld [vmem:[#allocation8 + $0x1790] sm:$0xf0] }
 0x363   :  { %6797 = vmatpush.bf16.msrb.mxu1 %v9830_v9  ;;  %6840 = vmatpush.bf16.msra.mxu0 %v10382_v32  ;;  %v10077_v9 = vld [vmem:[#allocation8 + $0x1600] sm:$0xf]  ;;  %v11414_v32 = vld [vmem:[#allocation8 + $0x1614] sm:$0xf0] }
 0x364   :  { %6881 = vmatpush.bf16.msra.mxu3 %v9834_v34  ;;  %6924 = vmatpush.bf16.msrb.mxu2 %v10386_v31  ;;  %v10674_v34 = vor.u32 %v11560_v21, %v10671_v43  ;;  %v10645_v31 = vld [vmem:[#allocation8 + $0x1a78] sm:$0xf]  ;;  %v10078_v47 = vor.u32 %v11414_v32, %v10077_v9  ;;  %v9951_v21 = vld [vmem:[#allocation8 + $0x1520] sm:$0xf0]  ;;  %v11530_v9 = vld [vmem:[#allocation8 + $0x19bc] sm:$0xf] }
 0x365   :  { %v10646_v24 = vor.u32 %v11557_v37, %v10645_v31  ;;  %v10551_v32 = vld [vmem:[#allocation8 + $0x19d0] sm:$0xf0]  ;;  %v11330_v31 = vld [vmem:[#allocation8 + $0x1374] sm:$0xf0]  ;;  %v9954_v18 = vor.u32 %v11380_v61, %v9951_v21  ;;  %v10239_v61 = vld [vmem:[#allocation8 + $0x1760] sm:$0xf0] }
 0x366   :  { %v10554_v45 = vor.u32 %v11530_v9, %v10551_v32  ;;  %v9645_v9 = vld [vmem:[#allocation8 + $0x12a0] sm:$0xf]  ;;  %v11306_v32 = vld [vmem:[#allocation8 + $0x12b4] sm:$0xf0] }
 0x367   :  { %6798 = vmatpush.bf16.msrb.mxu1 %v9806_v46  ;;  %6841 = vmatpush.bf16.msra.mxu0 %v10358_v53  ;;  %v10053_v46 = vld [vmem:[#allocation8 + $0x15d0] sm:$0xf]  ;;  %v11408_v53 = vld [vmem:[#allocation8 + $0x15e4] sm:$0xf0] }
 0x368   :  { %6882 = vmatpush.bf16.msra.mxu3 %v9810_v51  ;;  %6925 = vmatpush.bf16.msrb.mxu2 %v10362_v56  ;;  %v10621_v51 = vld [vmem:[#allocation8 + $0x1a48] sm:$0xf]  ;;  %v11551_v56 = vld [vmem:[#allocation8 + $0x1a5c] sm:$0xf0]  ;;  %v10054_v5 = vor.u32 %v11408_v53, %v10053_v46  ;;  %v11524_v53 = vld [vmem:[#allocation8 + $0x198c] sm:$0xf] }
 0x369   :  { %v10622_v1 = vor.u32 %v11551_v56, %v10621_v51  ;;  %v11527_v46 = vld [vmem:[#allocation8 + $0x199c] sm:$0xf0]  ;;  %v11470_v51 = vld [vmem:[#allocation8 + $0x17dc] sm:$0xf]  ;;  %v10311_v56 = vld [vmem:[#allocation8 + $0x17f0] sm:$0xf0] }
 0x36b   :  { %6799 = vmatpush.bf16.msrb.mxu1 %v9782_v33  ;;  %6842 = vmatpush.bf16.msra.mxu0 %v10334_v40  ;;  %v10626_v33 = vor.u32 %v11548_v0, %v10623_v4  ;;  %v10597_v40 = vld [vmem:[#allocation8 + $0x1a18] sm:$0xf]  ;;  %v10317_v0 = vld [vmem:[#allocation8 + $0x17e0] sm:$0xf]  ;;  %v10526_v4 = vor.u32 %v11527_v46, %v10525_v41  ;;  %v9621_v46 = vld [vmem:[#allocation8 + $0x1270] sm:$0xf] }
 0x36c   :  { %6883 = vmatpush.bf16.msra.mxu3 %v9786_v50  ;;  %6926 = vmatpush.bf16.msrb.mxu2 %v10338_v8  ;;  %v11392_v50 = vld [vmem:[#allocation8 + $0x156c] sm:$0xf]  ;;  %v10030_v8 = vor.u32 %v11402_v44, %v10029_v58  ;;  %v10598_v19 = vor.u32 %v11545_v59, %v10597_v40  ;;  %v11474_v58 = vld [vmem:[#allocation8 + $0x17f4] sm:$0xf0]  ;;  %v11321_v44 = vld [vmem:[#allocation8 + $0x1334] sm:$0xf] }
 0x36d   :  { %v10002_v11 = vor.u32 %v11392_v50, %v9999_v6  ;;  %v11464_v59 = vld [vmem:[#allocation8 + $0x17ac] sm:$0xf]  ;;  %v10287_v50 = vld [vmem:[#allocation8 + $0x17c0] sm:$0xf0] }
 0x36e   :  { %6843 = vmatmul.bf16.vlgmr.msra.gmra.mxu0 %v12181_v14 }
 0x36f   :  { %6891 = vmatpush.bf16.msrb.mxu0 %v10122_v55  ;;  %6927 = vmatmul.bf16.vlgmr.msrb.gmra.mxu2 %v12181_v14  ;;  %v10005_v55 = vld [vmem:[#allocation8 + $0x1570] sm:$0xf] }
 0x370   :  { %6975 = vmatpush.bf16.msra.mxu2 %v10126_v12  ;;  %6800 = vmatpush.bf16.msrb.mxu1 %v9758_v36  ;;  %v11396_v12 = vld [vmem:[#allocation8 + $0x1584] sm:$0xf0] }
 0x371   :  { %6884 = vmatpush.bf16.msra.mxu3 %v9762_v23  ;;  %v10006_v36 = vor.u32 %v11396_v12, %v10005_v55  ;;  %v10575_v23 = vld [vmem:[#allocation8 + $0x1a00] sm:$0xf0]  ;;  %v10293_v55 = vld [vmem:[#allocation8 + $0x17b0] sm:$0xf]  ;;  %v11468_v12 = vld [vmem:[#allocation8 + $0x17c4] sm:$0xf0] }
 0x372   :  { %v10578_v26 = vor.u32 %v11536_v2, %v10575_v23  ;;  %v9669_v2 = vld [vmem:[#allocation8 + $0x12d0] sm:$0xf]  ;;  %v11312_v23 = vld [vmem:[#allocation8 + $0x12e4] sm:$0xf0] }
 0x373   :  { %6892 = vmatpush.bf16.msrb.mxu0 %v10098_v60  ;;  %6801 = vmatmul.bf16.vlgmr.msrb.gmra.mxu1 %v12166_v48  ;;  %v11390_v60 = vld [vmem:[#allocation8 + $0x1554] sm:$0xf0] }
 0x374   :  { %6849 = vmatpush.bf16.msra.mxu1 %v10694_v25  ;;  %6976 = vmatpush.bf16.msra.mxu2 %v10102_v22  ;;  %v9981_v25 = vld [vmem:[#allocation8 + $0x1540] sm:$0xf]  ;;  %v11533_v22 = vld [vmem:[#allocation8 + $0x19cc] sm:$0xf0] }
 0x375   :  { %6933 = vmatpush.bf16.msrb.mxu3 %v10698_v54  ;;  %v10574_v54 = vor.u32 %v11539_v20, %v10573_v7  ;;  %v9982_v43 = vor.u32 %v11390_v60, %v9981_v25  ;;  %v10550_v37 = vor.u32 %v11533_v22, %v10549_v52  ;;  %v9694_v7 = vor.u32 %v11318_v17, %v9693_v15  ;;  %v11458_v20 = vld [vmem:[#allocation8 + $0x177c] sm:$0xf]  ;;  %v10269_v25 = vld [vmem:[#allocation8 + $0x1780] sm:$0xf]  ;;  %v11462_v60 = vld [vmem:[#allocation8 + $0x1794] sm:$0xf0] }
 0x376   :  { %6885 = vmatmul.bf16.vlgmr.msra.gmra.mxu3 %v12166_v48  ;;  %v9671_v52 = vld [vmem:[#allocation8 + $0x12e8] sm:$0xf0]  ;;  %v10270_v21 = vor.u32 %v11462_v60, %v10269_v25  ;;  %v9573_v15 = vld [vmem:[#allocation8 + $0x1210] sm:$0xf] }
 0x377   :  { %6893 = vmatpush.bf16.msrb.mxu0 %v10074_v27  ;;  %v11384_v27 = vld [vmem:[#allocation8 + $0x1524] sm:$0xf0]  ;;  %v11452_v22 = vld [vmem:[#allocation8 + $0x174c] sm:$0xf] }
 0x378   :  { %6850 = vmatpush.bf16.msra.mxu1 %v10670_v35  ;;  %6977 = vmatpush.bf16.msra.mxu2 %v10078_v47  ;;  %v9957_v35 = vld [vmem:[#allocation8 + $0x1510] sm:$0xf]  ;;  %v9743_v47 = vld [vmem:[#allocation8 + $0x1378] sm:$0xf0]  ;;  %v11428_v25 = vld [vmem:[#allocation8 + $0x168c] sm:$0xf] }
 0x379   :  { %6934 = vmatpush.bf16.msrb.mxu3 %v10674_v34  ;;  %v9741_v34 = vld [vmem:[#allocation8 + $0x1360] sm:$0xf]  ;;  %v9746_v57 = vor.u32 %v11327_v42, %v9743_v47  ;;  %v9646_v42 = vor.u32 %v11306_v32, %v9645_v9  ;;  %v11446_v47 = vld [vmem:[#allocation8 + $0x171c] sm:$0xf]  ;;  %v10485_v9 = vld [vmem:[#allocation8 + $0x1930] sm:$0xf] }
 0x37a   :  { %v11516_v32 = vld [vmem:[#allocation8 + $0x1944] sm:$0xf0] }
 0x37b   :  { %6894 = vmatpush.bf16.msrb.mxu0 %v10050_v16  ;;  %v9742_v16 = vor.u32 %v11330_v31, %v9741_v34  ;;  %v11303_v34 = vld [vmem:[#allocation8 + $0x12a4] sm:$0xf]  ;;  %v9647_v31 = vld [vmem:[#allocation8 + $0x12b8] sm:$0xf0] }
 0x37c   :  { %6851 = vmatpush.bf16.msra.mxu1 %v10646_v24  ;;  %6978 = vmatpush.bf16.msra.mxu2 %v10054_v5  ;;  %v9958_v24 = vor.u32 %v11384_v27, %v9957_v35  ;;  %v9717_v5 = vld [vmem:[#allocation8 + $0x1330] sm:$0xf]  ;;  %v11456_v27 = vld [vmem:[#allocation8 + $0x1764] sm:$0xf0]  ;;  %v9650_v41 = vor.u32 %v11303_v34, %v9647_v31  ;;  %v11513_v31 = vld [vmem:[#allocation8 + $0x1934] sm:$0xf] }
 0x37d   :  { %6935 = vmatpush.bf16.msrb.mxu3 %v10650_v30  ;;  %v10527_v30 = vld [vmem:[#allocation8 + $0x19a0] sm:$0xf0]  ;;  %v9718_v40 = vor.u32 %v11324_v63, %v9717_v5  ;;  %v10245_v35 = vld [vmem:[#allocation8 + $0x1750] sm:$0xf]  ;;  %v11440_v5 = vld [vmem:[#allocation8 + $0x16ec] sm:$0xf] }
 0x37e   :  { %v10191_v63 = vld [vmem:[#allocation8 + $0x1700] sm:$0xf0] }
 0x37f   :  { %6895 = vmatpush.bf16.msrb.mxu0 %v10026_v28  ;;  %v10530_v28 = vor.u32 %v11524_v53, %v10527_v30  ;;  %v11300_v53 = vld [vmem:[#allocation8 + $0x1284] sm:$0xf0]  ;;  %v11297_v30 = vld [vmem:[#allocation8 + $0x1274] sm:$0xf] }
 0x380   :  { %6852 = vmatpush.bf16.msra.mxu1 %v10622_v1  ;;  %6979 = vmatpush.bf16.msra.mxu2 %v10030_v8  ;;  %v9719_v1 = vld [vmem:[#allocation8 + $0x1348] sm:$0xf0]  ;;  %v10318_v8 = vor.u32 %v11474_v58, %v10317_v0  ;;  %v9597_v58 = vld [vmem:[#allocation8 + $0x1240] sm:$0xf] }
 0x381   :  { %6936 = vmatpush.bf16.msrb.mxu3 %v10626_v33  ;;  %v10314_v33 = vor.u32 %v11470_v51, %v10311_v56  ;;  %v9722_v6 = vor.u32 %v11321_v44, %v9719_v1  ;;  %v9623_v51 = vld [vmem:[#allocation8 + $0x1288] sm:$0xf0]  ;;  %v11294_v44 = vld [vmem:[#allocation8 + $0x1254] sm:$0xf0]  ;;  %v10197_v1 = vld [vmem:[#allocation8 + $0x16f0] sm:$0xf] }
 0x383   :  { %6896 = vmatpush.bf16.msrb.mxu0 %v10002_v11  ;;  %v9695_v11 = vld [vmem:[#allocation8 + $0x1318] sm:$0xf0] }
 0x384   :  { %6853 = vmatpush.bf16.msra.mxu1 %v10598_v19  ;;  %6980 = vmatpush.bf16.msra.mxu2 %v10006_v36  ;;  %v11315_v19 = vld [vmem:[#allocation8 + $0x1304] sm:$0xf]  ;;  %v10294_v36 = vor.u32 %v11468_v12, %v10293_v55  ;;  %v11288_v12 = vld [vmem:[#allocation8 + $0x1224] sm:$0xf0] }
 0x385   :  { %6937 = vmatpush.bf16.msrb.mxu3 %v10602_v13  ;;  %v10290_v13 = vor.u32 %v11464_v59, %v10287_v50  ;;  %v9698_v10 = vor.u32 %v11315_v19, %v9695_v11  ;;  %v10194_v59 = vor.u32 %v11440_v5, %v10191_v63  ;;  %v9598_v50 = vor.u32 %v11294_v44, %v9597_v58  ;;  %v10173_v19 = vld [vmem:[#allocation8 + $0x16c0] sm:$0xf]  ;;  %v11438_v11 = vld [vmem:[#allocation8 + $0x16d4] sm:$0xf0]  ;;  %v10437_v44 = vld [vmem:[#allocation8 + $0x18d0] sm:$0xf] }
 0x386   :  { %v10174_v60 = vor.u32 %v11438_v11, %v10173_v19  ;;  %v11366_v58 = vld [vmem:[#allocation8 + $0x1494] sm:$0xf0]  ;;  %v11357_v11 = vld [vmem:[#allocation8 + $0x1454] sm:$0xf] }
 0x387   :  { %6897 = vmatpush.bf16.msrb.mxu0 %v9978_v38  ;;  %v10266_v38 = vor.u32 %v11458_v20, %v10263_v62  ;;  %v10509_v20 = vld [vmem:[#allocation8 + $0x1960] sm:$0xf]  ;;  %v11522_v62 = vld [vmem:[#allocation8 + $0x1974] sm:$0xf0] }
 0x388   :  { %6854 = vmatpush.bf16.msra.mxu1 %v10574_v54  ;;  %6981 = vmatpush.bf16.msra.mxu2 %v9982_v43  ;;  %v11309_v54 = vld [vmem:[#allocation8 + $0x12d4] sm:$0xf]  ;;  %v11498_v19 = vld [vmem:[#allocation8 + $0x18b4] sm:$0xf0] }
 0x389   :  { %6938 = vmatpush.bf16.msrb.mxu3 %v10578_v26  ;;  %v9670_v26 = vor.u32 %v11312_v23, %v9669_v2  ;;  %v9674_v43 = vor.u32 %v11309_v54, %v9671_v52  ;;  %v9574_v23 = vor.u32 %v11288_v12, %v9573_v15  ;;  %v10143_v52 = vld [vmem:[#allocation8 + $0x16a0] sm:$0xf0]  ;;  %v9861_v15 = vld [vmem:[#allocation8 + $0x1450] sm:$0xf] }
 0x38a   :  { %v10146_v34 = vor.u32 %v11428_v25, %v10143_v52  ;;  %v11354_v25 = vld [vmem:[#allocation8 + $0x1434] sm:$0xf0]  ;;  %v11492_v52 = vld [vmem:[#allocation8 + $0x1884] sm:$0xf0] }
 0x38b   :  { %6898 = vmatpush.bf16.msrb.mxu0 %v9954_v18  ;;  %v10215_v18 = vld [vmem:[#allocation8 + $0x1730] sm:$0xf0] }
 0x38c   :  { %6855 = vmatpush.bf16.msra.mxu1 %v10550_v37  ;;  %6982 = vmatpush.bf16.msra.mxu2 %v9958_v24  ;;  %v10242_v37 = vor.u32 %v11452_v22, %v10239_v61  ;;  %v10221_v24 = vld [vmem:[#allocation8 + $0x1720] sm:$0xf]  ;;  %v10218_v56 = vor.u32 %v11446_v47, %v10215_v18  ;;  %v10510_v22 = vor.u32 %v11522_v62, %v10509_v20  ;;  %v10415_v20 = vld [vmem:[#allocation8 + $0x18b8] sm:$0xf0]  ;;  %v12208_v62 = vpop.f32.mrf.mxu0 }
 0x38d   :  { %6939 = vmatpush.bf16.msrb.mxu3 %v10554_v45  ;;  %v10246_v45 = vor.u32 %v11456_v27, %v10245_v35  ;;  %v11375_v35 = vld [vmem:[#allocation8 + $0x14e4] sm:$0xf]  ;;  %v9935_v27 = vld [vmem:[#allocation8 + $0x14f8] sm:$0xf0]  ;;  %v10486_v18 = vor.u32 %v11516_v32, %v10485_v9  ;;  %v9813_v32 = vld [vmem:[#allocation8 + $0x13f0] sm:$0xf] }
 0x38e   :  { %6899 = vmatmul.bf16.vlgmr.msrb.gmra.mxu0 %v12168_v39 }
 0x38f   :  { %6947 = vmatpush.bf16.msra.mxu0 %v9742_v16  ;;  %6983 = vmatmul.bf16.vlgmr.msra.gmra.mxu2 %v12168_v39  ;;  %v11450_v16 = vld [vmem:[#allocation8 + $0x1734] sm:$0xf0] }
 0x390   :  { %7031 = vmatpush.bf16.msrb.mxu2 %v9746_v57  ;;  %6856 = vmatpush.bf16.msra.mxu1 %v10526_v4  ;;  %v9622_v57 = vor.u32 %v11300_v53, %v9621_v46  ;;  %v10222_v0 = vor.u32 %v11450_v16, %v10221_v24  ;;  %v9626_v4 = vor.u32 %v11297_v30, %v9623_v51  ;;  %v11372_v46 = vld [vmem:[#allocation8 + $0x14c4] sm:$0xf0]  ;;  %v10461_v53 = vld [vmem:[#allocation8 + $0x1900] sm:$0xf]  ;;  %v11510_v16 = vld [vmem:[#allocation8 + $0x1914] sm:$0xf0] }
 0x391   :  { %6940 = vmatpush.bf16.msrb.mxu3 %v10530_v28  ;;  %v11444_v28 = vld [vmem:[#allocation8 + $0x1704] sm:$0xf0]  ;;  %v11369_v30 = vld [vmem:[#allocation8 + $0x14b4] sm:$0xf]  ;;  %v9911_v51 = vld [vmem:[#allocation8 + $0x14c8] sm:$0xf0]  ;;  %v10462_v63 = vor.u32 %v11510_v16, %v10461_v53 }
 0x392   :  { %v10198_v17 = vor.u32 %v11444_v28, %v10197_v1  ;;  %v11504_v28 = vld [vmem:[#allocation8 + $0x18e4] sm:$0xf0] }
 0x393   :  { %6948 = vmatpush.bf16.msra.mxu0 %v9718_v40  ;;  %6857 = vmatmul.bf16.vlgmr.msra.gmra.mxu1 %v12188_v49  ;;  %v9599_v40 = vld [vmem:[#allocation8 + $0x1258] sm:$0xf0] }
 0x394   :  { %6905 = vmatpush.bf16.msrb.mxu1 %v10314_v33  ;;  %7032 = vmatpush.bf16.msrb.mxu2 %v9722_v6  ;;  %v11291_v33 = vld [vmem:[#allocation8 + $0x1244] sm:$0xf]  ;;  %v10167_v6 = vld [vmem:[#allocation8 + $0x16d0] sm:$0xf0] }
 0x395   :  { %6989 = vmatpush.bf16.msra.mxu3 %v10318_v8  ;;  %v11434_v8 = vld [vmem:[#allocation8 + $0x16bc] sm:$0xf]  ;;  %v9602_v55 = vor.u32 %v11291_v33, %v9599_v40  ;;  %v11363_v33 = vld [vmem:[#allocation8 + $0x1484] sm:$0xf]  ;;  %v11501_v40 = vld [vmem:[#allocation8 + $0x18d4] sm:$0xf] }
 0x396   :  { %6941 = vmatmul.bf16.vlgmr.msrb.gmra.mxu3 %v12188_v49  ;;  %v10170_v2 = vor.u32 %v11434_v8, %v10167_v6  ;;  %v10438_v8 = vor.u32 %v11504_v28, %v10437_v44  ;;  %v11477_v44 = vld [vmem:[#allocation8 + $0x1814] sm:$0xf]  ;;  %v11423_v28 = vld [vmem:[#allocation8 + $0x1664] sm:$0xf] }
 0x397   :  { %6949 = vmatpush.bf16.msra.mxu0 %v9694_v7  ;;  %v9575_v7 = vld [vmem:[#allocation8 + $0x1228] sm:$0xf0] }
 0x398   :  { %6906 = vmatpush.bf16.msrb.mxu1 %v10290_v13  ;;  %7033 = vmatpush.bf16.msrb.mxu2 %v9698_v10  ;;  %v11285_v13 = vld [vmem:[#allocation8 + $0x1214] sm:$0xf]  ;;  %v10511_v10 = vld [vmem:[#allocation8 + $0x1978] sm:$0xf0] }
 0x399   :  { %6990 = vmatpush.bf16.msra.mxu3 %v10294_v36  ;;  %v11519_v36 = vld [vmem:[#allocation8 + $0x1964] sm:$0xf]  ;;  %v9578_v54 = vor.u32 %v11285_v13, %v9575_v7  ;;  %v9863_v13 = vld [vmem:[#allocation8 + $0x1468] sm:$0xf0] }
 0x39a   :  { %v10514_v61 = vor.u32 %v11519_v36, %v10511_v10  ;;  %v11495_v7 = vld [vmem:[#allocation8 + $0x18a4] sm:$0xf] }
 0x39b   :  { %6950 = vmatpush.bf16.msra.mxu0 %v9670_v26  ;;  %v11432_v26 = vld [vmem:[#allocation8 + $0x16a4] sm:$0xf0] }
 0x39c   :  { %6907 = vmatpush.bf16.msrb.mxu1 %v10266_v38  ;;  %7034 = vmatpush.bf16.msrb.mxu2 %v9674_v43  ;;  %v10149_v38 = vld [vmem:[#allocation8 + $0x1690] sm:$0xf]  ;;  %v11378_v43 = vld [vmem:[#allocation8 + $0x14f4] sm:$0xf0] }
 0x39d   :  { %6991 = vmatpush.bf16.msra.mxu3 %v10270_v21  ;;  %v9933_v21 = vld [vmem:[#allocation8 + $0x14e0] sm:$0xf] }
 0x39e   :  { %v9934_v47 = vor.u32 %v11378_v43, %v9933_v21 }
 0x39f   :  { %6951 = vmatpush.bf16.msra.mxu0 %v9646_v42  ;;  %v10150_v42 = vor.u32 %v11432_v26, %v10149_v38  ;;  %v11351_v38 = vld [vmem:[#allocation8 + $0x1424] sm:$0xf]  ;;  %v9839_v26 = vld [vmem:[#allocation8 + $0x1438] sm:$0xf0] }
 0x3a0   :  { %6908 = vmatpush.bf16.msrb.mxu1 %v10242_v37  ;;  %7035 = vmatpush.bf16.msrb.mxu2 %v9650_v41  ;;  %v10487_v37 = vld [vmem:[#allocation8 + $0x1948] sm:$0xf0]  ;;  %v9909_v41 = vld [vmem:[#allocation8 + $0x14b0] sm:$0xf]  ;;  %v9842_v9 = vor.u32 %v11351_v38, %v9839_v26 }
 0x3a1   :  { %6992 = vmatpush.bf16.msra.mxu3 %v10246_v45  ;;  %v9938_v45 = vor.u32 %v11375_v35, %v9935_v27  ;;  %v10490_v24 = vor.u32 %v11513_v31, %v10487_v37  ;;  %v9910_v5 = vor.u32 %v11372_v46, %v9909_v41  ;;  %v11348_v35 = vld [vmem:[#allocation8 + $0x1404] sm:$0xf0]  ;;  %v10365_v27 = vld [vmem:[#allocation8 + $0x1840] sm:$0xf]  ;;  %v11486_v37 = vld [vmem:[#allocation8 + $0x1854] sm:$0xf0] }
 0x3a2   :  { %v10367_v41 = vld [vmem:[#allocation8 + $0x1858] sm:$0xf0]  ;;  %v12214_v46 = vld [vmem:[#allocation10 + $0x2] ss:$4 sm:$0x3f]  ;;  %v9814_v53 = vor.u32 %v11348_v35, %v9813_v32  ;;  %v10366_v16 = vor.u32 %v11486_v37, %v10365_v27 }
 0x3a3   :  { %6952 = vmatpush.bf16.msra.mxu0 %v9622_v57  ;;  %v10463_v57 = vld [vmem:[#allocation8 + $0x1918] sm:$0xf0]  ;;  %v10677_v38 = vld [vmem:[#allocation8 + $0x1ab0] sm:$0xf]  ;;  %v11561_v32 = vld [vmem:[#allocation8 + $0x1ab4] sm:$0xf] }
 0x3a4   :  { %6909 = vmatpush.bf16.msrb.mxu1 %v10218_v56  ;;  %7036 = vmatpush.bf16.msrb.mxu2 %v9626_v4  ;;  %v11507_v56 = vld [vmem:[#allocation8 + $0x1904] sm:$0xf]  ;;  %v9885_v4 = vld [vmem:[#allocation8 + $0x1480] sm:$0xf]  ;;  %v10679_v35 = vld [vmem:[#allocation8 + $0x1ac8] sm:$0xf0] }
 0x3a5   :  { %6993 = vmatpush.bf16.msra.mxu3 %v10222_v0  ;;  %v9914_v0 = vor.u32 %v11369_v30, %v9911_v51  ;;  %v10466_v1 = vor.u32 %v11507_v56, %v10463_v57  ;;  %v11342_v51 = vld [vmem:[#allocation8 + $0x13d4] sm:$0xf0]  ;;  %v10341_v56 = vld [vmem:[#allocation8 + $0x1810] sm:$0xf]  ;;  %v11480_v57 = vld [vmem:[#allocation8 + $0x1824] sm:$0xf0] }
 0x3a7   :  { %6953 = vmatpush.bf16.msra.mxu0 %v9598_v50  ;;  %v9886_v50 = vor.u32 %v11366_v58, %v9885_v4  ;;  %v11339_v4 = vld [vmem:[#allocation8 + $0x13c4] sm:$0xf]  ;;  %v9791_v58 = vld [vmem:[#allocation8 + $0x13d8] sm:$0xf0] }
 0x3a8   :  { %6910 = vmatpush.bf16.msrb.mxu1 %v10194_v59  ;;  %7037 = vmatpush.bf16.msrb.mxu2 %v9602_v55  ;;  %v10439_v59 = vld [vmem:[#allocation8 + $0x18e8] sm:$0xf0]  ;;  %v10413_v55 = vld [vmem:[#allocation8 + $0x18a0] sm:$0xf] }
 0x3a9   :  { %6994 = vmatpush.bf16.msra.mxu3 %v10198_v17  ;;  %v11360_v17 = vld [vmem:[#allocation8 + $0x1464] sm:$0xf0]  ;;  %v10442_v12 = vor.u32 %v11501_v40, %v10439_v59  ;;  %v10414_v10 = vor.u32 %v11498_v19, %v10413_v55  ;;  %v5159_v40 = vperm.slane %v12214_v46, 0  ;;  %v10342_v59 = vor.u32 %v11480_v57, %v10341_v56  ;;  %v11333_v55 = vld [vmem:[#allocation8 + $0x1394] sm:$0xf] }
 0x3aa   :  { %v9862_v36 = vor.u32 %v11360_v17, %v9861_v15  ;;  %v10701_v19 = vld [vmem:[#allocation8 + $0x1ae0] sm:$0xf]  ;;  %v10629_v57 = vld [vmem:[#allocation8 + $0x1a50] sm:$0xf] }
 0x3ab   :  { %6954 = vmatpush.bf16.msra.mxu0 %v9574_v23  ;;  %v9837_v23 = vld [vmem:[#allocation8 + $0x1420] sm:$0xf]  ;;  %v6621_v26 = vadd.f32 %v12208_v62, %v5159_v40 }
 0x3ac   :  { %6911 = vmatpush.bf16.msrb.mxu1 %v10170_v2  ;;  %7038 = vmatpush.bf16.msrb.mxu2 %v9578_v54  ;;  %v9866_v2 = vor.u32 %v11357_v11, %v9863_v13  ;;  %v10418_v54 = vor.u32 %v11495_v7, %v10415_v20  ;;  %v9838_v21 = vor.u32 %v11354_v25, %v9837_v23  ;;  %v11570_v11 = vld [vmem:[#allocation8 + $0x1af4] sm:$0xf0]  ;;  %v11417_v13 = vld [vmem:[#allocation8 + $0x1634] sm:$0xf]  ;;  %v10103_v7 = vld [vmem:[#allocation8 + $0x1648] sm:$0xf0] }
 0x3ad   :  { %6995 = vmatpush.bf16.msra.mxu3 %v10174_v60  ;;  %v10389_v60 = vld [vmem:[#allocation8 + $0x1870] sm:$0xf] }
 0x3ae   :  { %6955 = vmatmul.bf16.vlgmr.msra.gmra.mxu0 %v12160_v29  ;;  %v10390_v43 = vor.u32 %v11492_v52, %v10389_v60  ;;  %v10106_v52 = vor.u32 %v11417_v13, %v10103_v7  ;;  %v5160_v13 = vperm.slane %v12214_v46, 1 }
 0x3af   :  { %7003 = vmatpush.bf16.msrb.mxu0 %v10510_v22  ;;  %7039 = vmatmul.bf16.vlgmr.msrb.gmra.mxu2 %v12160_v29  ;;  %v9887_v29 = vld [vmem:[#allocation8 + $0x1498] sm:$0xf0]  ;;  %v11489_v22 = vld [vmem:[#allocation8 + $0x1874] sm:$0xf] }
 0x3b0   :  { %7087 = vmatpush.bf16.msra.mxu2 %v10514_v61  ;;  %6912 = vmatpush.bf16.msrb.mxu1 %v10146_v34  ;;  %v9890_v6 = vor.u32 %v11363_v33, %v9887_v29  ;;  %v10391_v61 = vld [vmem:[#allocation8 + $0x1888] sm:$0xf0]  ;;  %v12210_v34 = vpop.f32.mrf.mxu2  ;;  %v10127_v33 = vld [vmem:[#allocation8 + $0x1678] sm:$0xf0] }
 0x3b1   :  { %6996 = vmatpush.bf16.msra.mxu3 %v10150_v42  ;;  %v10394_v31 = vor.u32 %v11489_v22, %v10391_v61  ;;  %v11345_v42 = vld [vmem:[#allocation8 + $0x13f4] sm:$0xf]  ;;  %v10130_v17 = vor.u32 %v11423_v28, %v10127_v33  ;;  %v11564_v61 = vld [vmem:[#allocation8 + $0x1ac4] sm:$0xf0]  ;;  %v10631_v33 = vld [vmem:[#allocation8 + $0x1a68] sm:$0xf0] }
 0x3b2   :  { %v11549_v28 = vld [vmem:[#allocation8 + $0x1a54] sm:$0xf] }
 0x3b3   :  { %7004 = vmatpush.bf16.msrb.mxu0 %v10486_v18  ;;  %6913 = vmatmul.bf16.vlgmr.msrb.gmra.mxu1 %v12174_v3  ;;  %v12212_v18 = vpop.f32.mrf.mxu3 }
 0x3b4   :  { %6961 = vmatpush.bf16.msra.mxu1 %v9934_v47  ;;  %7088 = vmatpush.bf16.msra.mxu2 %v10490_v24  ;;  %v9815_v47 = vld [vmem:[#allocation8 + $0x1408] sm:$0xf0]  ;;  %v9789_v24 = vld [vmem:[#allocation8 + $0x13c0] sm:$0xf] }
 0x3b5   :  { %7045 = vmatpush.bf16.msrb.mxu3 %v9938_v45  ;;  %v11483_v45 = vld [vmem:[#allocation8 + $0x1844] sm:$0xf]  ;;  %v9818_v30 = vor.u32 %v11345_v42, %v9815_v47  ;;  %v9790_v29 = vor.u32 %v11342_v51, %v9789_v24  ;;  %v10653_v42 = vld [vmem:[#allocation8 + $0x1a80] sm:$0xf]  ;;  %v10682_v47 = vor.u32 %v11561_v32, %v10679_v35 }
 0x3b6   :  { %6997 = vmatmul.bf16.vlgmr.msra.gmra.mxu3 %v12174_v3  ;;  %v11555_v24 = vld [vmem:[#allocation8 + $0x1a84] sm:$0xf]  ;;  %v10557_v35 = vld [vmem:[#allocation8 + $0x19c0] sm:$0xf] }
 0x3b7   :  { %7005 = vmatpush.bf16.msrb.mxu0 %v10462_v63  ;;  %v6634_v63 = vpop.f32.mrf.mxu1 }
 0x3b8   :  { %6962 = vmatpush.bf16.msra.mxu1 %v9910_v5  ;;  %7089 = vmatpush.bf16.msra.mxu2 %v10466_v1  ;;  %v12216_v5 = vpop.f32.mrf.mxu0  ;;  %v10343_v1 = vld [vmem:[#allocation8 + $0x1828] sm:$0xf0]  ;;  %v12219_v20 = vpop.f32.mrf.mxu2  ;;  %v6635_v27 = vadd.f32 %v6634_v63, %v6621_v26  ;;  %v11537_v26 = vld [vmem:[#allocation8 + $0x19f4] sm:$0xf] }
 0x3b9   :  { %7046 = vmatpush.bf16.msrb.mxu3 %v9914_v0  ;;  %v10370_v0 = vor.u32 %v11483_v45, %v10367_v41  ;;  %v10346_v15 = vor.u32 %v11477_v44, %v10343_v1  ;;  %v11558_v45 = vld [vmem:[#allocation8 + $0x1a94] sm:$0xf0]  ;;  %v11405_v41 = vld [vmem:[#allocation8 + $0x15d4] sm:$0xf]  ;;  %v10031_v44 = vld [vmem:[#allocation8 + $0x15b8] sm:$0xf0] }
 0x3ba   :  { %v6649_v62 = vadd.f32 %v12210_v34, %v6635_v27  ;;  %v10654_v51 = vor.u32 %v11558_v45, %v10653_v42  ;;  %v6623_v34 = vadd.f32 %v12216_v5, %v5159_v40  ;;  %v10634_v40 = vor.u32 %v11549_v28, %v10631_v33  ;;  %v11381_v42 = vld [vmem:[#allocation8 + $0x1514] sm:$0xf]  ;;  %v10559_v45 = vld [vmem:[#allocation8 + $0x19d8] sm:$0xf0] }
 0x3bb   :  { %7006 = vmatpush.bf16.msrb.mxu0 %v10438_v8  ;;  %v9765_v8 = vld [vmem:[#allocation8 + $0x1390] sm:$0xf]  ;;  %v12221_v23 = vpop.f32.mrf.mxu3 }
 0x3bc   :  { %6963 = vmatpush.bf16.msra.mxu1 %v9886_v50  ;;  %7090 = vmatpush.bf16.msra.mxu2 %v10442_v12  ;;  %v9794_v50 = vor.u32 %v11339_v4, %v9791_v58  ;;  %v9767_v12 = vld [vmem:[#allocation8 + $0x13a8] sm:$0xf0]  ;;  %v11399_v58 = vld [vmem:[#allocation8 + $0x15a4] sm:$0xf] }
 0x3bd   :  { %7047 = vmatpush.bf16.msrb.mxu3 %v9890_v6  ;;  %v11336_v6 = vld [vmem:[#allocation8 + $0x13a4] sm:$0xf0]  ;;  %v9770_v25 = vor.u32 %v11333_v55, %v9767_v12  ;;  %v10007_v55 = vld [vmem:[#allocation8 + $0x1588] sm:$0xf0]  ;;  %v11543_v12 = vld [vmem:[#allocation8 + $0x1a24] sm:$0xf] }
 0x3bf   :  { %7007 = vmatpush.bf16.msrb.mxu0 %v10414_v10  ;;  %v11567_v10 = vld [vmem:[#allocation8 + $0x1ae4] sm:$0xf] }
 0x3c0   :  { %6964 = vmatpush.bf16.msra.mxu1 %v9862_v36  ;;  %7091 = vmatpush.bf16.msra.mxu2 %v10418_v54  ;;  %v9766_v36 = vor.u32 %v11336_v6, %v9765_v8  ;;  %v6676_v60 = vpop.f32.mrf.mxu0  ;;  %v10702_v54 = vor.u32 %v11570_v11, %v10701_v19  ;;  %v10034_v8 = vor.u32 %v11399_v58, %v10031_v44  ;;  %v10605_v6 = vld [vmem:[#allocation8 + $0x1a20] sm:$0xf]  ;;  %v10607_v19 = vld [vmem:[#allocation8 + $0x1a38] sm:$0xf0] }
 0x3c1   :  { %7048 = vmatpush.bf16.msrb.mxu3 %v9866_v2  ;;  %v10703_v2 = vld [vmem:[#allocation8 + $0x1af8] sm:$0xf0] }
 0x3c2   :  { %v10706_v22 = vor.u32 %v11567_v10, %v10703_v2  ;;  %v10581_v10 = vld [vmem:[#allocation8 + $0x19f0] sm:$0xf] }
 0x3c3   :  { %7008 = vmatpush.bf16.msrb.mxu0 %v10390_v43  ;;  %v10079_v43 = vld [vmem:[#allocation8 + $0x1618] sm:$0xf0]  ;;  %v12235_v63 = vpop.f32.mrf.mxu3 }
 0x3c4   :  { %6965 = vmatpush.bf16.msra.mxu1 %v9838_v21  ;;  %7092 = vmatpush.bf16.msra.mxu2 %v10394_v31  ;;  %v11411_v21 = vld [vmem:[#allocation8 + $0x1604] sm:$0xf]  ;;  %v10678_v31 = vor.u32 %v11564_v61, %v10677_v38 }
 0x3c5   :  { %7049 = vmatpush.bf16.msrb.mxu3 %v9842_v9  ;;  %v6636_v9 = vpop.f32.mrf.mxu1  ;;  %v10082_v37 = vor.u32 %v11411_v21, %v10079_v43 }
 0x3c7   :  { %7009 = vmatpush.bf16.msrb.mxu0 %v10366_v16  ;;  %v10655_v16 = vld [vmem:[#allocation8 + $0x1a98] sm:$0xf0] }
 0x3c8   :  { %6966 = vmatpush.bf16.msra.mxu1 %v9814_v53  ;;  %7093 = vmatpush.bf16.msra.mxu2 %v10370_v0  ;;  %v10055_v53 = vld [vmem:[#allocation8 + $0x15e8] sm:$0xf0]  ;;  %v10658_v4 = vor.u32 %v11555_v24, %v10655_v16  ;;  %v6678_v1 = vpop.f32.mrf.mxu0 }
 0x3c9   :  { %7050 = vmatpush.bf16.msrb.mxu3 %v9818_v30  ;;  %v6704_v30 = vpop.f32.mrf.mxu2  ;;  %v10058_v56 = vor.u32 %v11405_v41, %v10055_v53 }
 0x3ca   :  { %v6705_v27 = vadd.f32 %v6704_v30, %v5160_v13  ;;  %v11525_v30 = vld [vmem:[#allocation8 + $0x1994] sm:$0xf] }
 0x3cb   :  { %7010 = vmatpush.bf16.msrb.mxu0 %v10342_v59 }
 0x3cc   :  { %6967 = vmatpush.bf16.msra.mxu1 %v9790_v29  ;;  %7094 = vmatpush.bf16.msra.mxu2 %v10346_v15  ;;  %v6637_v29 = vadd.f32 %v6636_v9, %v6623_v34  ;;  %v11546_v15 = vld [vmem:[#allocation8 + $0x1a34] sm:$0xf0]  ;;  %v6719_v41 = vadd.f32 %v12235_v63, %v6705_v27  ;;  %v10151_v27 = vld [vmem:[#allocation8 + $0x16a8] sm:$0xf0] }
 0x3cd   :  { %7051 = vmatpush.bf16.msrb.mxu3 %v9794_v50  ;;  %v10606_v7 = vor.u32 %v11546_v15, %v10605_v6 }
 0x3ce   :  { %7011 = vmatmul.bf16.vlgmr.msrb.gmra.mxu0 %v12181_v14  ;;  %v6651_v5 = vadd.f32 %v12219_v20, %v6637_v29  ;;  %v10610_v20 = vor.u32 %v11543_v12, %v10607_v19  ;;  %v10271_v12 = vld [vmem:[#allocation8 + $0x1798] sm:$0xf0] }
 0x3cf   :  { %7059 = vmatpush.bf16.msra.mxu0 %v10130_v17  ;;  %7095 = vmatmul.bf16.vlgmr.msra.gmra.mxu2 %v12181_v14  ;;  %v6663_v14 = vadd.f32 %v12212_v18, %v6649_v62  ;;  %v6690_v18 = vpop.f32.mrf.mxu1  ;;  %v11393_v17 = vld [vmem:[#allocation8 + $0x1574] sm:$0xf]  ;;  %v9959_v62 = vld [vmem:[#allocation8 + $0x1528] sm:$0xf0] }
 0x3d0   :  { %6968 = vmatpush.bf16.msra.mxu1 %v9766_v36  ;;  %v6665_v11 = vadd.f32 %v12221_v23, %v6651_v5  ;;  %v10010_v36 = vor.u32 %v11393_v17, %v10007_v55  ;;  %v6720_v23 = vpop.f32.mrf.mxu3  ;;  %v6732_v43 = vpop.f32.mrf.mxu0  ;;  %v9962_v24 = vor.u32 %v11381_v42, %v9959_v62  ;;  %v11459_v55 = vld [vmem:[#allocation8 + $0x1784] sm:$0xf] }
 0x3d1   :  { %7052 = vmatpush.bf16.msrb.mxu3 %v9770_v25  ;;  %v6677_v0 = vadd.f32 %v6676_v60, %v6663_v14  ;;  %v11540_v25 = vld [vmem:[#allocation8 + $0x1a04] sm:$0xf0]  ;;  %v11387_v60 = vld [vmem:[#allocation8 + $0x1544] sm:$0xf]  ;;  %v6733_v16 = vadd.f32 %v6732_v43, %v6719_v41  ;;  %v5161_v43 = vperm.slane %v12214_v46, 2 }
 0x3d2   :  { %v6679_v2 = vadd.f32 %v6678_v1, %v6665_v11  ;;  %v10582_v9 = vor.u32 %v11540_v25, %v10581_v10  ;;  %v10247_v10 = vld [vmem:[#allocation8 + $0x1768] sm:$0xf0] }
 0x3d3   :  { %7060 = vmatpush.bf16.msra.mxu0 %v10106_v52  ;;  %6969 = vmatmul.bf16.vlgmr.msra.gmra.mxu1 %v12166_v48  ;;  %v6691_v59 = vadd.f32 %v6690_v18, %v6677_v0  ;;  %v6706_v52 = vpop.f32.mrf.mxu2  ;;  %v10535_v0 = vld [vmem:[#allocation8 + $0x19a8] sm:$0xf0] }
 0x3d4   :  { %7017 = vmatpush.bf16.msrb.mxu1 %v10702_v54  ;;  %7053 = vmatmul.bf16.vlgmr.msrb.gmra.mxu3 %v12166_v48  ;;  %v11552_v48 = vld [vmem:[#allocation8 + $0x1a64] sm:$0xf0]  ;;  %v9983_v54 = vld [vmem:[#allocation8 + $0x1558] sm:$0xf0]  ;;  %v6707_v18 = vadd.f32 %v6706_v52, %v5160_v13  ;;  %v10538_v33 = vor.u32 %v11525_v30, %v10535_v0 }
 0x3d5   :  { %7101 = vmatpush.bf16.msra.mxu3 %v10706_v22  ;;  %v10630_v50 = vor.u32 %v11552_v48, %v10629_v57  ;;  %11628 = vtanh.f32 %v6691_v59  ;;  %v10583_v22 = vld [vmem:[#allocation8 + $0x1a08] sm:$0xf0]  ;;  %v9986_v32 = vor.u32 %v11387_v60, %v9983_v54  ;;  %v10319_v48 = vld [vmem:[#allocation8 + $0x17f8] sm:$0xf0]  ;;  %v11447_v60 = vld [vmem:[#allocation8 + $0x1724] sm:$0xf] }
 0x3d6   :  { %v6721_v6 = vadd.f32 %v6720_v23, %v6707_v18  ;;  %v10223_v54 = vld [vmem:[#allocation8 + $0x1738] sm:$0xf0] }
 0x3d7   :  { %7061 = vmatpush.bf16.msra.mxu0 %v10082_v37  ;;  %v6692_v38 = vpop.f32.mrf.mxu1  ;;  %v11534_v37 = vld [vmem:[#allocation8 + $0x19d4] sm:$0xf0]  ;;  %v10226_v52 = vor.u32 %v11447_v60, %v10223_v54  ;;  %v10175_v23 = vld [vmem:[#allocation8 + $0x16d8] sm:$0xf0] }
 0x3d8   :  { %7018 = vmatpush.bf16.msrb.mxu1 %v10678_v31  ;;  %v6693_v21 = vadd.f32 %v6692_v38, %v6679_v2  ;;  %v10586_v31 = vor.u32 %v11537_v26, %v10583_v22  ;;  %v10558_v53 = vor.u32 %v11534_v37, %v10557_v35  ;;  %v6774_v1 = vpop.f32.mrf.mxu3  ;;  %v6734_v59 = vpop.f32.mrf.mxu0  ;;  %v11441_v38 = vld [vmem:[#allocation8 + $0x16f4] sm:$0xf]  ;;  %v10199_v26 = vld [vmem:[#allocation8 + $0x1708] sm:$0xf0] }
 0x3d9   :  { %7102 = vmatpush.bf16.msra.mxu3 %v10682_v47  ;;  %v11531_v47 = vld [vmem:[#allocation8 + $0x19c4] sm:$0xf]  ;;  %v11429_v35 = vld [vmem:[#allocation8 + $0x1694] sm:$0xf] }
 0x3da   :  { %11630 = vtanh.f32 %v6693_v21  ;;  %v10562_v14 = vor.u32 %v11531_v47, %v10559_v45  ;;  %v11435_v21 = vld [vmem:[#allocation8 + $0x16c4] sm:$0xf]  ;;  %v10154_v37 = vor.u32 %v11429_v35, %v10151_v27 }
 0x3db   :  { %7062 = vmatpush.bf16.msra.mxu0 %v10058_v56  ;;  %v11629_v61 = vpop.eup %11628  ;;  %v11528_v56 = vld [vmem:[#allocation8 + $0x19a4] sm:$0xf0]  ;;  %v6760_v57 = vpop.f32.mrf.mxu2 }
 0x3dc   :  { %7019 = vmatpush.bf16.msrb.mxu1 %v10654_v51  ;;  %7139 = vst [vmem:[#allocation11 + $0x60] sm:$0xff] %v11629_v61  ;;  %v10533_v51 = vld [vmem:[#allocation8 + $0x1990] sm:$0xf] }
 0x3dd   :  { %7103 = vmatpush.bf16.msra.mxu3 %v10658_v4  ;;  %v11471_v4 = vld [vmem:[#allocation8 + $0x17e4] sm:$0xf]  ;;  %v10534_v63 = vor.u32 %v11528_v56, %v10533_v51 }
 0x3de   :  { %v10322_v29 = vor.u32 %v11471_v4, %v10319_v48 }
 0x3df   :  { %7063 = vmatpush.bf16.msra.mxu0 %v10034_v8  ;;  %v6746_v34 = vpop.f32.mrf.mxu1  ;;  %v10295_v8 = vld [vmem:[#allocation8 + $0x17c8] sm:$0xf0] }
 0x3e0   :  { %7020 = vmatpush.bf16.msrb.mxu1 %v10630_v50  ;;  %v11631_v58 = vpop.eup %11630  ;;  %v6747_v44 = vadd.f32 %v6746_v34, %v6733_v16  ;;  %v11465_v50 = vld [vmem:[#allocation8 + $0x17b4] sm:$0xf]  ;;  %v6788_v61 = vpop.f32.mrf.mxu0 }
 0x3e1   :  { %7104 = vmatpush.bf16.msra.mxu3 %v10634_v40  ;;  %7145 = vst [vmem:[#allocation11 + $0x90] sm:$0xff] %v11631_v58  ;;  %v6735_v40 = vadd.f32 %v6734_v59, %v6721_v6  ;;  %v10298_v15 = vor.u32 %v11465_v50, %v10295_v8 }
 0x3e2   :  { %v6761_v28 = vadd.f32 %v6760_v57, %v6747_v44 }
 0x3e3   :  { %7064 = vmatpush.bf16.msra.mxu0 %v10010_v36  ;;  %v6762_v11 = vpop.f32.mrf.mxu2  ;;  %v6776_v36 = vpop.f32.mrf.mxu3 }
 0x3e4   :  { %7021 = vmatpush.bf16.msrb.mxu1 %v10606_v7  ;;  %v6775_v5 = vadd.f32 %v6774_v1, %v6761_v28  ;;  %v10274_v7 = vor.u32 %v11459_v55, %v10271_v12 }
 0x3e5   :  { %7105 = vmatpush.bf16.msra.mxu3 %v10610_v20 }
 0x3e6   :  { %11632 = vtanh.f32 %v6775_v5 }
 0x3e7   :  { %7065 = vmatpush.bf16.msra.mxu0 %v9986_v32  ;;  %v6748_v17 = vpop.f32.mrf.mxu1 }
 0x3e8   :  { %7022 = vmatpush.bf16.msrb.mxu1 %v10582_v9  ;;  %v6749_v19 = vadd.f32 %v6748_v17, %v6735_v40  ;;  %v10178_v9 = vor.u32 %v11435_v21, %v10175_v23  ;;  %v6790_v47 = vpop.f32.mrf.mxu0 }
 0x3e9   :  { %7106 = vmatpush.bf16.msra.mxu3 %v10586_v31  ;;  %v6789_v31 = vadd.f32 %v6788_v61, %v5161_v43 }
 0x3ea   :  { %v6763_v13 = vadd.f32 %v6762_v11, %v6749_v19 }
 0x3eb   :  { %7066 = vmatpush.bf16.msra.mxu0 %v9962_v24  ;;  %v6816_v62 = vpop.f32.mrf.mxu2  ;;  %v6830_v41 = vpop.f32.mrf.mxu3  ;;  %v6791_v24 = vadd.f32 %v6790_v47, %v5161_v43 }
 0x3ec   :  { %7023 = vmatpush.bf16.msrb.mxu1 %v10558_v53  ;;  %v11633_v2 = vpop.eup %11632  ;;  %v6777_v20 = vadd.f32 %v6776_v36, %v6763_v13 }
 0x3ed   :  { %7107 = vmatpush.bf16.msra.mxu3 %v10562_v14  ;;  %7140 = vst [vmem:[#allocation11 + $0x68] sm:$0xff] %v11633_v2 }
 0x3ee   :  { %7067 = vmatmul.bf16.vlgmr.msra.gmra.mxu0 %v12168_v39  ;;  %v11453_v39 = vld [vmem:[#allocation8 + $0x1754] sm:$0xf]  ;;  %11634 = vtanh.f32 %v6777_v20 }
 0x3ef   :  { %v10250_v25 = vor.u32 %v11453_v39, %v10247_v10 }
 0x3f0   :  { %7024 = vmatpush.bf16.msrb.mxu1 %v10534_v63  ;;  %v6802_v32 = vpop.f32.mrf.mxu1  ;;  %v6844_v51 = vpop.f32.mrf.mxu0 }
 0x3f1   :  { %7108 = vmatpush.bf16.msra.mxu3 %v10538_v33  ;;  %v6803_v42 = vadd.f32 %v6802_v32, %v6789_v31 }
 0x3f3   :  { %7025 = vmatmul.bf16.vlgmr.msrb.gmra.mxu1 %v12188_v49  ;;  %v6817_v45 = vadd.f32 %v6816_v62, %v6803_v42  ;;  %v6818_v56 = vpop.f32.mrf.mxu2  ;;  %v6832_v4 = vpop.f32.mrf.mxu3 }
 0x3f4   :  { %7073 = vmatpush.bf16.msra.mxu1 %v10322_v29  ;;  %7109 = vmatmul.bf16.vlgmr.msra.gmra.mxu3 %v12188_v49  ;;  %v11635_v22 = vpop.eup %11634  ;;  %v10202_v49 = vor.u32 %v11441_v38, %v10199_v26  ;;  %v5162_v29 = vperm.slane %v12214_v46, 3 }
 0x3f5   :  { %7146 = vst [vmem:[#allocation11 + $0x98] sm:$0xff] %v11635_v22  ;;  %v6831_v14 = vadd.f32 %v6830_v41, %v6817_v45  ;;  %v5163_v22 = vperm.slane %v12214_v46, 4 }
 0x3f7   :  { %v6845_v57 = vadd.f32 %v6844_v51, %v6831_v14 }
 0x3f8   :  { %7074 = vmatpush.bf16.msra.mxu1 %v10298_v15  ;;  %v6804_v53 = vpop.f32.mrf.mxu1  ;;  %v6846_v58 = vpop.f32.mrf.mxu0 }
 0x3f9   :  { %v6805_v16 = vadd.f32 %v6804_v53, %v6791_v24 }
 0x3fb   :  { %v6819_v30 = vadd.f32 %v6818_v56, %v6805_v16  ;;  %v6872_v28 = vpop.f32.mrf.mxu2 }
 0x3fc   :  { %7075 = vmatpush.bf16.msra.mxu1 %v10274_v7  ;;  %v6873_v6 = vadd.f32 %v6872_v28, %v5162_v29 }
 0x3fd   :  { %v6833_v48 = vadd.f32 %v6832_v4, %v6819_v30 }
 0x3ff   :  { %v6847_v44 = vadd.f32 %v6846_v58, %v6833_v48  ;;  %v5164_v48 = vperm.slane %v12214_v46, 5 }
 0x400   :  { %7076 = vmatpush.bf16.msra.mxu1 %v10250_v25 }
 0x403   :  { %v6874_v59 = vpop.f32.mrf.mxu2 }
 0x404   :  { %7077 = vmatpush.bf16.msra.mxu1 %v10226_v52  ;;  %v6875_v19 = vadd.f32 %v6874_v59, %v5162_v29 }
 0x408   :  { %7078 = vmatpush.bf16.msra.mxu1 %v10202_v49 }
 0x40b   :  { %v6900_v8 = vpop.f32.mrf.mxu0  ;;  %v6928_v15 = vpop.f32.mrf.mxu2 }
 0x40c   :  { %7079 = vmatpush.bf16.msra.mxu1 %v10178_v9 }
 0x410   :  { %7080 = vmatpush.bf16.msra.mxu1 %v10154_v37  ;;  %v6858_v34 = vpop.f32.mrf.mxu1 }
 0x411   :  { %v6859_v0 = vadd.f32 %v6858_v34, %v6845_v57 }
 0x413   :  { %7081 = vmatmul.bf16.vlgmr.msra.gmra.mxu1 %v12174_v3  ;;  %11636 = vtanh.f32 %v6859_v0  ;;  %v6886_v3 = vpop.f32.mrf.mxu3  ;;  %v6902_v13 = vpop.f32.mrf.mxu0 }
 0x414   :  { %v6887_v5 = vadd.f32 %v6886_v3, %v6873_v6  ;;  %v6930_v20 = vpop.f32.mrf.mxu2 }
 0x416   :  { %v6901_v40 = vadd.f32 %v6900_v8, %v6887_v5 }
 0x418   :  { %v6860_v1 = vpop.f32.mrf.mxu1 }
 0x419   :  { %v11637_v63 = vpop.eup %11636  ;;  %v6861_v18 = vadd.f32 %v6860_v1, %v6847_v44 }
 0x41a   :  { %7141 = vst [vmem:[#allocation11 + $0x70] sm:$0xff] %v11637_v63 }
 0x41b   :  { %11638 = vtanh.f32 %v6861_v18  ;;  %v6888_v50 = vpop.f32.mrf.mxu3 }
 0x41c   :  { %v6889_v7 = vadd.f32 %v6888_v50, %v6875_v19  ;;  %v6984_v23 = vpop.f32.mrf.mxu2 }
 0x41e   :  { %v6903_v39 = vadd.f32 %v6902_v13, %v6889_v7 }
 0x421   :  { %v11639_v33 = vpop.eup %11638 }
 0x422   :  { %7147 = vst [vmem:[#allocation11 + $0xa0] sm:$0xff] %v11639_v33 }
 0x423   :  { %v6942_v12 = vpop.f32.mrf.mxu3 }
 0x424   :  { %v6986_v62 = vpop.f32.mrf.mxu2 }
 0x42b   :  { %v6944_v60 = vpop.f32.mrf.mxu3  ;;  %v6956_v26 = vpop.f32.mrf.mxu0 }
 0x42c   :  { %v6957_v61 = vadd.f32 %v6956_v26, %v5163_v22 }
 0x430   :  { %v6914_v17 = vpop.f32.mrf.mxu1 }
 0x431   :  { %v6915_v55 = vadd.f32 %v6914_v17, %v6901_v40 }
 0x432   :  { %v7040_v34 = vpop.f32.mrf.mxu2 }
 0x433   :  { %v6929_v11 = vadd.f32 %v6928_v15, %v6915_v55  ;;  %v6958_v43 = vpop.f32.mrf.mxu0  ;;  %v7041_v63 = vadd.f32 %v7040_v34, %v5164_v48 }
 0x434   :  { %v6959_v27 = vadd.f32 %v6958_v43, %v5163_v22 }
 0x435   :  { %v6943_v36 = vadd.f32 %v6942_v12, %v6929_v11 }
 0x437   :  { %11640 = vtanh.f32 %v6943_v36 }
 0x438   :  { %v6916_v10 = vpop.f32.mrf.mxu1 }
 0x439   :  { %v6917_v2 = vadd.f32 %v6916_v10, %v6903_v39  ;;  %v6998_v32 = vpop.f32.mrf.mxu3 }
 0x43a   :  { %v7042_v58 = vpop.f32.mrf.mxu2 }
 0x43b   :  { %v6931_v25 = vadd.f32 %v6930_v20, %v6917_v2  ;;  %v7043_v50 = vadd.f32 %v7042_v58, %v5164_v48 }
 0x43d   :  { %v11641_v54 = vpop.eup %11640  ;;  %v6945_v52 = vadd.f32 %v6944_v60, %v6931_v25 }
 0x43e   :  { %7142 = vst [vmem:[#allocation11 + $0x78] sm:$0xff] %v11641_v54 }
 0x43f   :  { %11642 = vtanh.f32 %v6945_v52 }
 0x441   :  { %v7000_v24 = vpop.f32.mrf.mxu3 }
 0x445   :  { %v11643_v38 = vpop.eup %11642 }
 0x446   :  { %7148 = vst [vmem:[#allocation11 + $0xa8] sm:$0xff] %v11643_v38 }
 0x44b   :  { %v7012_v42 = vpop.f32.mrf.mxu0 }
 0x450   :  { %v6970_v49 = vpop.f32.mrf.mxu1 }
 0x451   :  { %v6971_v21 = vadd.f32 %v6970_v49, %v6957_v61 }
 0x452   :  { %v7096_v3 = vpop.f32.mrf.mxu2 }
 0x453   :  { %v6985_v9 = vadd.f32 %v6984_v23, %v6971_v21  ;;  %v7014_v14 = vpop.f32.mrf.mxu0 }
 0x455   :  { %v6999_v37 = vadd.f32 %v6998_v32, %v6985_v9 }
 0x457   :  { %v7013_v45 = vadd.f32 %v7012_v42, %v6999_v37  ;;  %v7054_v0 = vpop.f32.mrf.mxu3 }
 0x458   :  { %v6972_v35 = vpop.f32.mrf.mxu1  ;;  %v7055_v18 = vadd.f32 %v7054_v0, %v7041_v63 }
 0x459   :  { %v6973_v31 = vadd.f32 %v6972_v35, %v6959_v27 }
 0x45a   :  { %v7098_v46 = vpop.f32.mrf.mxu2 }
 0x45b   :  { %v6987_v47 = vadd.f32 %v6986_v62, %v6973_v31 }
 0x45d   :  { %v7001_v16 = vadd.f32 %v7000_v24, %v6987_v47 }
 0x45f   :  { %v7015_v51 = vadd.f32 %v7014_v14, %v7001_v16  ;;  %v7056_v44 = vpop.f32.mrf.mxu3 }
 0x460   :  { %v7057_v5 = vadd.f32 %v7056_v44, %v7043_v50 }
 0x46b   :  { %v7068_v1 = vpop.f32.mrf.mxu0 }
 0x46c   :  { %v7069_v28 = vadd.f32 %v7068_v1, %v7055_v18 }
 0x470   :  { %v7026_v41 = vpop.f32.mrf.mxu1 }
 0x471   :  { %v7027_v53 = vadd.f32 %v7026_v41, %v7013_v45 }
 0x473   :  { %11644 = vtanh.f32 %v7027_v53  ;;  %v7070_v6 = vpop.f32.mrf.mxu0 }
 0x474   :  { %v7071_v15 = vadd.f32 %v7070_v6, %v7057_v5 }
 0x477   :  { %v7110_v59 = vpop.f32.mrf.mxu3 }
 0x478   :  { %v7028_v56 = vpop.f32.mrf.mxu1 }
 0x479   :  { %v11645_v30 = vpop.eup %11644  ;;  %v7029_v57 = vadd.f32 %v7028_v56, %v7015_v51 }
 0x47a   :  { %7143 = vst [vmem:[#allocation11 + $0x80] sm:$0xff] %v11645_v30 }
 0x47b   :  { %11646 = vtanh.f32 %v7029_v57 }
 0x47f   :  { %v7112_v19 = vpop.f32.mrf.mxu3 }
 0x481   :  { %v11647_v4 = vpop.eup %11646 }
 0x482   :  { %7149 = vst [vmem:[#allocation11 + $0xb0] sm:$0xff] %v11647_v4 }
 0x490   :  { %v7082_v33 = vpop.f32.mrf.mxu1 }
 0x491   :  { %v7083_v29 = vadd.f32 %v7082_v33, %v7069_v28 }
 0x493   :  { %v7097_v8 = vadd.f32 %v7096_v3, %v7083_v29 }
 0x495   :  { %v7111_v40 = vadd.f32 %v7110_v59, %v7097_v8 }
 0x497   :  { %11648 = vtanh.f32 %v7111_v40 }
 0x498   :  { %v7084_v17 = vpop.f32.mrf.mxu1 }
 0x499   :  { %v7085_v55 = vadd.f32 %v7084_v17, %v7071_v15 }
 0x49b   :  { %v7099_v12 = vadd.f32 %v7098_v46, %v7085_v55 }
 0x49d   :  { %v11649_v11 = vpop.eup %11648  ;;  %v7113_v13 = vadd.f32 %v7112_v19, %v7099_v12 }
 0x49e   :  { %7144 = vst [vmem:[#allocation11 + $0x88] sm:$0xff] %v11649_v11 }
 0x49f   :  { %11650 = vtanh.f32 %v7113_v13 }
 0x4a5   :  { %v11651_v7 = vpop.eup %11650 }
 0x4a6   :  { %7150 = vst [vmem:[#allocation11 + $0xb8] sm:$0xff] %v11651_v7 }
 0x4a7   :  { %7163 = dma.vmem_to_hbm [thread:$0]  %s7156_s21, 3072, %s7158_s24, [#allocation5], %s11775_s7, %s11775_s7, %s11776_s0  }
 0x4a8   :  { %11768 = dma.done.wait [#allocation5], 3072  }
 0x4a9   :  { %11769 = vsyncadd [#allocation5], 4294964224 }
 0x4aa   :  { %7168 = vsyncpa [#allocation4], 1 }
 0x4ab   :  { %7169 = vsyncpa [#allocation9], 1 }
 0x4ac   :  { %7170 = vsyncpa [#allocation5], 1 }
 0x4ad   :  { %7171 = vsyncpa [#allocation6], 1 }

</bundles_post_ra>
